<compile_context>
chip_gen: v7x
topology: tpu7x:2x2x1
jax: 0.10.0
libtpu: 0.0.40
codegen_flags: <defaults>
</compile_context>

<pallas_src>
import functools
import math

import jax
import jax.numpy as jnp
from jax.experimental import pallas as pl
from jax.experimental.pallas import tpu as pltpu


def _pointnet_block_kernel(x_ref, w1_ref, w23_ref, w3_ref, wg_ref,
                           b1_ref, b2_ref, b3_ref, bp_ref, out_ref, *, n_pts):
    """Fused PointNetfeat + predictor for one tile of `bt` point clouds.

    Layouts (batch and points both live on the lane axis, flat index p*bt + b):
      x_ref   : [1, attr_dim, n_pts*bt]          (bf16)
      w1_ref  : [64, attr_dim]                    (bf16)
      w23_ref : [128 + d, 64]  = [w2 ; wp_point]  (bf16)
      w3_ref  : [128, 128]                        (bf16)
      wg_ref  : [d, 128]       = wp_global        (bf16)
      b*_ref  : column biases [C, 1]              (f32)
      out_ref : [1, d, n_pts*bt]                  (f32)
    """
    f32 = jnp.float32
    x = x_ref[0]                          # [attr_dim, n_pts*bt]
    n_total = x.shape[1]
    bt = n_total // n_pts
    c2 = w3_ref.shape[1]                  # 128
    d = wg_ref.shape[0]

    w1 = w1_ref[...]
    w23 = w23_ref[...]
    w3 = w3_ref[...]
    wg = wg_ref[...]

    # Layer 1: [64, attr] @ [attr, n_pts*bt]  (f32 accumulate, then ReLU on VPU).
    h1 = jnp.maximum(jnp.dot(w1, x, preferred_element_type=f32) + b1_ref[...], 0.0)

    # Fused layer 2 + point-branch predictor: one [128+d, 64] @ [64, N] pass.
    s = jnp.dot(w23, h1.astype(w23.dtype), preferred_element_type=f32)
    h2 = jnp.maximum(s[0:c2, :] + b2_ref[...], 0.0)
    out_p = s[c2:c2 + d, :]               # wp_point @ h1 (predictor bias added later)

    # Layer 3 (no ReLU before the max-pool).
    h3 = jnp.dot(w3, h2.astype(w3.dtype), preferred_element_type=f32) + b3_ref[...]

    # Global feature: max over the n_pts lane-aligned column blocks (VPU max,
    # 128-aligned static slices, no relayout).
    g = h3[:, 0:bt]
    for p in range(1, n_pts):
        g = jnp.maximum(g, h3[:, p * bt:(p + 1) * bt])

    # Global-branch predictor contribution + bias, per sample, then broadcast
    # to every point by lane-aligned concatenation (no reshape needed).
    og = jnp.dot(wg, g.astype(wg.dtype), preferred_element_type=f32) + bp_ref[...]   # [d, bt]
    og_all = jnp.concatenate([og] * n_pts, axis=1)                                   # [d, n_pts*bt]

    # Single lane-dense store per grid step.
    out_ref[0] = (out_p + og_all).astype(out_ref.dtype)


def _pick_batch_tile(batch, requested):
    bt = max(128, (requested // 128) * 128)
    bt = min(bt, 256)                           # VMEM-comfortable on every generation
    bt = min(bt, pl.cdiv(batch, 128) * 128)     # don't tile wider than the batch
    if batch > 128 and pl.cdiv(batch, bt) < 2:
        # Keep the grid at >= 2 steps so v7x's two TensorCores both get work.
        bt = max(128, pl.cdiv(pl.cdiv(batch, 2), 128) * 128)
    return bt


def pointnet_block_forward(attr, params, *, batch_tile=256):
    """PointNet_Block forward.  attr: [B, n_pts, attr_dim] -> [B, n_pts, d] (f32)."""
    B, n_pts, attr_dim = attr.shape
    w1, b1 = params["w1"], params["b1"]
    w2, b2 = params["w2"], params["b2"]
    w3, b3 = params["w3"], params["b3"]
    wp, bp = params["wp"], params["bp"]
    c1, c2, c3, d = w1.shape[0], w2.shape[0], w3.shape[0], wp.shape[0]
    assert wp.shape[1] == c3 + c1, "predictor expects a [global(128), point(64)] concat"

    bt = _pick_batch_tile(B, batch_tile)
    b_pad = pl.cdiv(B, bt) * bt
    if b_pad != B:
        attr = jnp.pad(attr, ((0, b_pad - B), (0, 0), (0, 0)))
    G = b_pad // bt
    n_lanes = n_pts * bt

    # Wrapper-side layout: fold (point, batch) onto the lane axis, flat index
    # p*bt + b, so the kernel needs no in-kernel reshape/relayout.
    x_g = attr.reshape(G, bt, n_pts, attr_dim).transpose(0, 3, 2, 1)
    x_g = x_g.reshape(G, attr_dim, n_lanes).astype(jnp.bfloat16)

    # Params: bf16 matmul operands, f32 column biases, predictor pre-split and
    # its point half stacked under w2.
    bf16 = jnp.bfloat16
    w1b = w1.astype(bf16)
    w23b = jnp.concatenate([w2, wp[:, c3:c3 + c1]], axis=0).astype(bf16)   # [c2 + d, c1]
    w3b = w3.astype(bf16)
    wgb = wp[:, 0:c3].astype(bf16)                                          # [d, c3]
    b1c = b1.reshape(c1, 1).astype(jnp.float32)
    b2c = b2.reshape(c2, 1).astype(jnp.float32)
    b3c = b3.reshape(c3, 1).astype(jnp.float32)
    bpc = bp.reshape(d, 1).astype(jnp.float32)

    grid = (G,)
    in_specs = [
        pl.BlockSpec((1, attr_dim, n_lanes), lambda i: (i, 0, 0)),
        # Params: constant block index -> fetched once, not re-DMA'd per step.
        pl.BlockSpec(w1b.shape, lambda i: (0, 0)),
        pl.BlockSpec(w23b.shape, lambda i: (0, 0)),
        pl.BlockSpec(w3b.shape, lambda i: (0, 0)),
        pl.BlockSpec(wgb.shape, lambda i: (0, 0)),
        pl.BlockSpec(b1c.shape, lambda i: (0, 0)),
        pl.BlockSpec(b2c.shape, lambda i: (0, 0)),
        pl.BlockSpec(b3c.shape, lambda i: (0, 0)),
        pl.BlockSpec(bpc.shape, lambda i: (0, 0)),
    ]
    out_specs = pl.BlockSpec((1, d, n_lanes), lambda i: (i, 0, 0))

    flops = 2 * b_pad * n_pts * (attr_dim * c1 + c1 * (c2 + d) + c2 * c3) \
        + 2 * b_pad * c3 * d
    bytes_accessed = (x_g.size * 2 + G * d * n_lanes * 4
                      + 2 * (w1b.size + w23b.size + w3b.size + wgb.size)
                      + 4 * (c1 + c2 + c3 + d))
    cost = pl.CostEstimate(flops=flops, transcendentals=0,
                           bytes_accessed=bytes_accessed)

    out_g = pl.pallas_call(
        functools.partial(_pointnet_block_kernel, n_pts=n_pts),
        out_shape=jax.ShapeDtypeStruct((G, d, n_lanes), jnp.float32),
        grid_spec=pltpu.PrefetchScalarGridSpec(
            num_scalar_prefetch=0,
            grid=grid,
            in_specs=in_specs,
            out_specs=out_specs,
        ),
        compiler_params=pltpu.CompilerParams(
            dimension_semantics=("parallel",),
            vmem_limit_bytes=32 * 1024 * 1024,
        ),
        cost_estimate=cost,
    )(x_g, w1b, w23b, w3b, wgb, b1c, b2c, b3c, bpc)

    # Layout fix back to [B, n_pts, d] in the wrapper.
    out = out_g.reshape(G, d, n_pts, bt).transpose(0, 3, 2, 1).reshape(b_pad, n_pts, d)
    return out[:B]


def init_params(key, attr_dim, dim_of_work_space):
    """PyTorch-default (uniform +-1/sqrt(fan_in)) init, weights in [out, in]."""
    c1, c2, c3 = 64, 128, 128
    d = dim_of_work_space
    shapes = {
        "w1": (c1, attr_dim), "b1": (c1,),
        "w2": (c2, c1), "b2": (c2,),
        "w3": (c3, c2), "b3": (c3,),
        "wp": (d, c3 + c1), "bp": (d,),
    }
    params = {}
    for name, shape in shapes.items():
        key, sub = jax.random.split(key)
        fan_in = shapes["w" + name[1:]][-1]
        bound = 1.0 / math.sqrt(fan_in)
        params[name] = jax.random.uniform(sub, shape, jnp.float32, -bound, bound)
    return params


def reference_forward(attr, params):
    """Plain-JAX (f32) reference of the same PointNet_Block forward pass."""
    w1, b1 = params["w1"], params["b1"]
    w2, b2 = params["w2"], params["b2"]
    w3, b3 = params["w3"], params["b3"]
    wp, bp = params["wp"], params["bp"]
    h1 = jnp.maximum(attr @ w1.T + b1, 0.0)                  # [B, N, 64]
    h2 = jnp.maximum(h1 @ w2.T + b2, 0.0)                    # [B, N, 128]
    h3 = h2 @ w3.T + b3                                      # [B, N, 128]
    g = jnp.max(h3, axis=1, keepdims=True)                   # [B, 1, 128]
    feat = jnp.concatenate([jnp.broadcast_to(g, h3.shape), h1], axis=-1)  # [B,N,192]
    return feat @ wp.T + bp                                  # [B, N, d]


if __name__ == "__main__":
    # Small config consistent with the module's __init__.
    config = {
        "data": {"state_dim": 48, "max_nobj": 16},
        "train": {"n_history": 4},
    }
    dim_of_work_space = config["data"]["state_dim"] // config["data"]["max_nobj"]  # 3
    attr_dim = config["train"]["n_history"] * dim_of_work_space * 2                # 24
    n_pts = config["data"]["max_nobj"]                                             # 16 points
    batch = 512                                              # 2 grid steps of 256 samples

    key = jax.random.PRNGKey(0)
    key, kx = jax.random.split(key)
    attr = jax.random.normal(kx, (batch, n_pts, attr_dim), jnp.float32)
    params = init_params(key, attr_dim, dim_of_work_space)

    out = pointnet_block_forward(attr, params, batch_tile=256)
    out = jax.block_until_ready(out)

    ref = reference_forward(attr, params)
    assert out.shape == (batch, n_pts, dim_of_work_space)
    err = float(jnp.max(jnp.abs(out - ref)))
    scale = float(jnp.max(jnp.abs(ref))) + 1e-6
    assert err <= 2e-2 * scale, f"mismatch: max abs err {err}, ref scale {scale}"

    print("KERNEL_OK")
</pallas_src>

<mosaic_0001>
module attributes {stable_mosaic.version = 11 : i64} {
  func.func @_pointnet_block_kernel(%arg0: i32, %arg1: memref<1x24x4096xbf16, #tpu.memory_space<vmem>>, %arg2: memref<64x24xbf16, #tpu.memory_space<vmem>>, %arg3: memref<131x64xbf16, #tpu.memory_space<vmem>>, %arg4: memref<128x128xbf16, #tpu.memory_space<vmem>>, %arg5: memref<3x128xbf16, #tpu.memory_space<vmem>>, %arg6: memref<64x1xf32, #tpu.memory_space<vmem>>, %arg7: memref<128x1xf32, #tpu.memory_space<vmem>>, %arg8: memref<128x1xf32, #tpu.memory_space<vmem>>, %arg9: memref<3x1xf32, #tpu.memory_space<vmem>>, %arg10: memref<1x3x4096xf32, #tpu.memory_space<vmem>>) attributes {dimension_semantics = [#tpu.dimension_semantics<parallel>], iteration_bounds = array<i64: 2>, scalar_prefetch = 0 : i64, scratch_operands = 0 : i64, tpu.core_type = #tpu.core_type<tc>, window_params = [{transform_indices = @transform_0, window_bounds = array<i64: 1, 24, 4096>}, {pipeline_mode = #tpu.pipeline_mode<synchronous>, transform_indices = @transform_1, window_bounds = array<i64: 64, 24>}, {pipeline_mode = #tpu.pipeline_mode<synchronous>, transform_indices = @transform_2, window_bounds = array<i64: 131, 64>}, {pipeline_mode = #tpu.pipeline_mode<synchronous>, transform_indices = @transform_3, window_bounds = array<i64: 128, 128>}, {pipeline_mode = #tpu.pipeline_mode<synchronous>, transform_indices = @transform_4, window_bounds = array<i64: 3, 128>}, {pipeline_mode = #tpu.pipeline_mode<synchronous>, transform_indices = @transform_5, window_bounds = array<i64: 64, 1>}, {pipeline_mode = #tpu.pipeline_mode<synchronous>, transform_indices = @transform_6, window_bounds = array<i64: 128, 1>}, {pipeline_mode = #tpu.pipeline_mode<synchronous>, transform_indices = @transform_7, window_bounds = array<i64: 128, 1>}, {pipeline_mode = #tpu.pipeline_mode<synchronous>, transform_indices = @transform_8, window_bounds = array<i64: 3, 1>}, {transform_indices = @transform_9, window_bounds = array<i64: 1, 3, 4096>}]} {
    %c0 = arith.constant 0 : index
    %c0_0 = arith.constant 0 : index
    %c0_1 = arith.constant 0 : index
    %0 = vector.load %arg1[%c0, %c0_0, %c0_1] : memref<1x24x4096xbf16, #tpu.memory_space<vmem>>, vector<1x24x4096xbf16>
    %1 = vector.shape_cast %0 : vector<1x24x4096xbf16> to vector<24x4096xbf16>
    %c0_2 = arith.constant 0 : index
    %c0_3 = arith.constant 0 : index
    %2 = vector.load %arg2[%c0_2, %c0_3] : memref<64x24xbf16, #tpu.memory_space<vmem>>, vector<64x24xbf16>
    %c0_4 = arith.constant 0 : index
    %c0_5 = arith.constant 0 : index
    %3 = vector.load %arg3[%c0_4, %c0_5] : memref<131x64xbf16, #tpu.memory_space<vmem>>, vector<131x64xbf16>
    %c0_6 = arith.constant 0 : index
    %c0_7 = arith.constant 0 : index
    %4 = vector.load %arg4[%c0_6, %c0_7] : memref<128x128xbf16, #tpu.memory_space<vmem>>, vector<128x128xbf16>
    %c0_8 = arith.constant 0 : index
    %c0_9 = arith.constant 0 : index
    %5 = vector.load %arg5[%c0_8, %c0_9] : memref<3x128xbf16, #tpu.memory_space<vmem>>, vector<3x128xbf16>
    %cst = arith.constant dense<0.000000e+00> : vector<64x4096xf32>
    %6 = tpu.matmul %2, %1, %cst {dimension_numbers = #tpu.dot_dimension_numbers<[1], [0], [0], [1], [0, 0, 1, 1], [], []>} : vector<64x24xbf16>, vector<24x4096xbf16>, vector<64x4096xf32> -> vector<64x4096xf32>
    %c0_10 = arith.constant 0 : index
    %c0_11 = arith.constant 0 : index
    %7 = vector.load %arg6[%c0_10, %c0_11] : memref<64x1xf32, #tpu.memory_space<vmem>>, vector<64x1xf32>
    %8 = vector.broadcast %7 : vector<64x1xf32> to vector<64x4096xf32>
    %9 = arith.addf %6, %8 : vector<64x4096xf32>
    %cst_12 = arith.constant 0.000000e+00 : f32
    %10 = vector.broadcast %cst_12 : f32 to vector<64x4096xf32>
    %11 = arith.maximumf %9, %10 : vector<64x4096xf32>
    %12 = arith.truncf %11 : vector<64x4096xf32> to vector<64x4096xbf16>
    %cst_13 = arith.constant dense<0.000000e+00> : vector<131x4096xf32>
    %13 = tpu.matmul %3, %12, %cst_13 {dimension_numbers = #tpu.dot_dimension_numbers<[1], [0], [0], [1], [0, 0, 1, 1], [], []>} : vector<131x64xbf16>, vector<64x4096xbf16>, vector<131x4096xf32> -> vector<131x4096xf32>
    %14 = vector.extract_strided_slice %13 {offsets = [0, 0], sizes = [128, 4096], strides = [1, 1]} : vector<131x4096xf32> to vector<128x4096xf32>
    %c0_14 = arith.constant 0 : index
    %c0_15 = arith.constant 0 : index
    %15 = vector.load %arg7[%c0_14, %c0_15] : memref<128x1xf32, #tpu.memory_space<vmem>>, vector<128x1xf32>
    %16 = vector.broadcast %15 : vector<128x1xf32> to vector<128x4096xf32>
    %17 = arith.addf %14, %16 : vector<128x4096xf32>
    %cst_16 = arith.constant 0.000000e+00 : f32
    %18 = vector.broadcast %cst_16 : f32 to vector<128x4096xf32>
    %19 = arith.maximumf %17, %18 : vector<128x4096xf32>
    %20 = vector.extract_strided_slice %13 {offsets = [128, 0], sizes = [3, 4096], strides = [1, 1]} : vector<131x4096xf32> to vector<3x4096xf32>
    %21 = arith.truncf %19 : vector<128x4096xf32> to vector<128x4096xbf16>
    %cst_17 = arith.constant dense<0.000000e+00> : vector<128x4096xf32>
    %22 = tpu.matmul %4, %21, %cst_17 {dimension_numbers = #tpu.dot_dimension_numbers<[1], [0], [0], [1], [0, 0, 1, 1], [], []>} : vector<128x128xbf16>, vector<128x4096xbf16>, vector<128x4096xf32> -> vector<128x4096xf32>
    %c0_18 = arith.constant 0 : index
    %c0_19 = arith.constant 0 : index
    %23 = vector.load %arg8[%c0_18, %c0_19] : memref<128x1xf32, #tpu.memory_space<vmem>>, vector<128x1xf32>
    %24 = vector.broadcast %23 : vector<128x1xf32> to vector<128x4096xf32>
    %25 = arith.addf %22, %24 : vector<128x4096xf32>
    %26 = vector.extract_strided_slice %25 {offsets = [0, 0], sizes = [128, 256], strides = [1, 1]} : vector<128x4096xf32> to vector<128x256xf32>
    %27 = vector.extract_strided_slice %25 {offsets = [0, 256], sizes = [128, 256], strides = [1, 1]} : vector<128x4096xf32> to vector<128x256xf32>
    %28 = arith.maximumf %26, %27 : vector<128x256xf32>
    %29 = vector.extract_strided_slice %25 {offsets = [0, 512], sizes = [128, 256], strides = [1, 1]} : vector<128x4096xf32> to vector<128x256xf32>
    %30 = arith.maximumf %28, %29 : vector<128x256xf32>
    %31 = vector.extract_strided_slice %25 {offsets = [0, 768], sizes = [128, 256], strides = [1, 1]} : vector<128x4096xf32> to vector<128x256xf32>
    %32 = arith.maximumf %30, %31 : vector<128x256xf32>
    %33 = vector.extract_strided_slice %25 {offsets = [0, 1024], sizes = [128, 256], strides = [1, 1]} : vector<128x4096xf32> to vector<128x256xf32>
    %34 = arith.maximumf %32, %33 : vector<128x256xf32>
    %35 = vector.extract_strided_slice %25 {offsets = [0, 1280], sizes = [128, 256], strides = [1, 1]} : vector<128x4096xf32> to vector<128x256xf32>
    %36 = arith.maximumf %34, %35 : vector<128x256xf32>
    %37 = vector.extract_strided_slice %25 {offsets = [0, 1536], sizes = [128, 256], strides = [1, 1]} : vector<128x4096xf32> to vector<128x256xf32>
    %38 = arith.maximumf %36, %37 : vector<128x256xf32>
    %39 = vector.extract_strided_slice %25 {offsets = [0, 1792], sizes = [128, 256], strides = [1, 1]} : vector<128x4096xf32> to vector<128x256xf32>
    %40 = arith.maximumf %38, %39 : vector<128x256xf32>
    %41 = vector.extract_strided_slice %25 {offsets = [0, 2048], sizes = [128, 256], strides = [1, 1]} : vector<128x4096xf32> to vector<128x256xf32>
    %42 = arith.maximumf %40, %41 : vector<128x256xf32>
    %43 = vector.extract_strided_slice %25 {offsets = [0, 2304], sizes = [128, 256], strides = [1, 1]} : vector<128x4096xf32> to vector<128x256xf32>
    %44 = arith.maximumf %42, %43 : vector<128x256xf32>
    %45 = vector.extract_strided_slice %25 {offsets = [0, 2560], sizes = [128, 256], strides = [1, 1]} : vector<128x4096xf32> to vector<128x256xf32>
    %46 = arith.maximumf %44, %45 : vector<128x256xf32>
    %47 = vector.extract_strided_slice %25 {offsets = [0, 2816], sizes = [128, 256], strides = [1, 1]} : vector<128x4096xf32> to vector<128x256xf32>
    %48 = arith.maximumf %46, %47 : vector<128x256xf32>
    %49 = vector.extract_strided_slice %25 {offsets = [0, 3072], sizes = [128, 256], strides = [1, 1]} : vector<128x4096xf32> to vector<128x256xf32>
    %50 = arith.maximumf %48, %49 : vector<128x256xf32>
    %51 = vector.extract_strided_slice %25 {offsets = [0, 3328], sizes = [128, 256], strides = [1, 1]} : vector<128x4096xf32> to vector<128x256xf32>
    %52 = arith.maximumf %50, %51 : vector<128x256xf32>
    %53 = vector.extract_strided_slice %25 {offsets = [0, 3584], sizes = [128, 256], strides = [1, 1]} : vector<128x4096xf32> to vector<128x256xf32>
    %54 = arith.maximumf %52, %53 : vector<128x256xf32>
    %55 = vector.extract_strided_slice %25 {offsets = [0, 3840], sizes = [128, 256], strides = [1, 1]} : vector<128x4096xf32> to vector<128x256xf32>
    %56 = arith.maximumf %54, %55 : vector<128x256xf32>
    %57 = arith.truncf %56 : vector<128x256xf32> to vector<128x256xbf16>
    %cst_20 = arith.constant dense<0.000000e+00> : vector<3x256xf32>
    %58 = tpu.matmul %5, %57, %cst_20 {dimension_numbers = #tpu.dot_dimension_numbers<[1], [0], [0], [1], [0, 0, 1, 1], [], []>} : vector<3x128xbf16>, vector<128x256xbf16>, vector<3x256xf32> -> vector<3x256xf32>
    %c0_21 = arith.constant 0 : index
    %c0_22 = arith.constant 0 : index
    %59 = vector.load %arg9[%c0_21, %c0_22] : memref<3x1xf32, #tpu.memory_space<vmem>>, vector<3x1xf32>
    %60 = vector.broadcast %59 : vector<3x1xf32> to vector<3x256xf32>
    %61 = arith.addf %58, %60 : vector<3x256xf32>
    %62 = tpu.concatenate %61, %61, %61, %61, %61, %61, %61, %61, %61, %61, %61, %61, %61, %61, %61, %61 in 1 : vector<3x256xf32>, vector<3x256xf32>, vector<3x256xf32>, vector<3x256xf32>, vector<3x256xf32>, vector<3x256xf32>, vector<3x256xf32>, vector<3x256xf32>, vector<3x256xf32>, vector<3x256xf32>, vector<3x256xf32>, vector<3x256xf32>, vector<3x256xf32>, vector<3x256xf32>, vector<3x256xf32>, vector<3x256xf32> -> vector<3x4096xf32>
    %63 = arith.addf %20, %62 : vector<3x4096xf32>
    %c0_23 = arith.constant 0 : index
    %c0_24 = arith.constant 0 : index
    %c0_25 = arith.constant 0 : index
    %64 = vector.load %arg10[%c0_23, %c0_24, %c0_25] : memref<1x3x4096xf32, #tpu.memory_space<vmem>>, vector<1x3x4096xf32>
    %65 = vector.shape_cast %64 : vector<1x3x4096xf32> to vector<3x4096xf32>
    %66 = vector.shape_cast %63 : vector<3x4096xf32> to vector<1x3x4096xf32>
    tpu.vector_store %arg10[%c0_23, %c0_24, %c0_25], %66 {strides = array<i32>} : memref<1x3x4096xf32, #tpu.memory_space<vmem>>, vector<1x3x4096xf32>,
    return
  }
  func.func @transform_0(%arg0: i32) -> (i32, i32, i32) {
    %c0_i32 = arith.constant 0 : i32
    %c0_i32_0 = arith.constant 0 : i32
    %c0_i32_1 = arith.constant 0 : i32
    return %arg0, %c0_i32, %c0_i32_0 : i32, i32, i32
  }
  func.func @transform_1(%arg0: i32) -> (i32, i32) {
    %c0_i32 = arith.constant 0 : i32
    %c0_i32_0 = arith.constant 0 : i32
    %c0_i32_1 = arith.constant 0 : i32
    return %c0_i32, %c0_i32_0 : i32, i32
  }
  func.func @transform_2(%arg0: i32) -> (i32, i32) {
    %c0_i32 = arith.constant 0 : i32
    %c0_i32_0 = arith.constant 0 : i32
    %c0_i32_1 = arith.constant 0 : i32
    return %c0_i32, %c0_i32_0 : i32, i32
  }
  func.func @transform_3(%arg0: i32) -> (i32, i32) {
    %c0_i32 = arith.constant 0 : i32
    %c0_i32_0 = arith.constant 0 : i32
    %c0_i32_1 = arith.constant 0 : i32
    return %c0_i32, %c0_i32_0 : i32, i32
  }
  func.func @transform_4(%arg0: i32) -> (i32, i32) {
    %c0_i32 = arith.constant 0 : i32
    %c0_i32_0 = arith.constant 0 : i32
    %c0_i32_1 = arith.constant 0 : i32
    return %c0_i32, %c0_i32_0 : i32, i32
  }
  func.func @transform_5(%arg0: i32) -> (i32, i32) {
    %c0_i32 = arith.constant 0 : i32
    %c0_i32_0 = arith.constant 0 : i32
    %c0_i32_1 = arith.constant 0 : i32
    return %c0_i32, %c0_i32_0 : i32, i32
  }
  func.func @transform_6(%arg0: i32) -> (i32, i32) {
    %c0_i32 = arith.constant 0 : i32
    %c0_i32_0 = arith.constant 0 : i32
    %c0_i32_1 = arith.constant 0 : i32
    return %c0_i32, %c0_i32_0 : i32, i32
  }
  func.func @transform_7(%arg0: i32) -> (i32, i32) {
    %c0_i32 = arith.constant 0 : i32
    %c0_i32_0 = arith.constant 0 : i32
    %c0_i32_1 = arith.constant 0 : i32
    return %c0_i32, %c0_i32_0 : i32, i32
  }
  func.func @transform_8(%arg0: i32) -> (i32, i32) {
    %c0_i32 = arith.constant 0 : i32
    %c0_i32_0 = arith.constant 0 : i32
    %c0_i32_1 = arith.constant 0 : i32
    return %c0_i32, %c0_i32_0 : i32, i32
  }
  func.func @transform_9(%arg0: i32) -> (i32, i32, i32) {
    %c0_i32 = arith.constant 0 : i32
    %c0_i32_0 = arith.constant 0 : i32
    %c0_i32_1 = arith.constant 0 : i32
    return %arg0, %c0_i32, %c0_i32_0 : i32, i32, i32
  }
}

</mosaic_0001>

<bundles_post_ra>
// kernel: tpu_custom_call.1
= control target key start
LH: loop header
LB: loop body
LE: loop exit
PB: predicated region body
PF: predicated region fallthrough
CT: control target
= control target key end

     0   :  { %14 = vsyncpa [#allocation3], 0  ;;  %s15161_s0 = inlined_call_operand.hbm [shape: bf16[2,24,4096], index: 0, kind: input, shape index: {}]   ;;  %s15162_s1 = inlined_call_operand.vmem [shape: bf16[64,24], index: 1, kind: input, shape index: {}]   ;;  %s15163_s2 = inlined_call_operand.vmem [shape: bf16[131,64], index: 2, kind: input, shape index: {}]   ;;  %s15164_s3 = inlined_call_operand.vmem [shape: bf16[128,128], index: 3, kind: input, shape index: {}]   ;;  %s15165_s4 = inlined_call_operand.vmem [shape: bf16[3,128], index: 4, kind: input, shape index: {}]   ;;  %s15166_s5 = inlined_call_operand.vmem [shape: f32[64,1], index: 5, kind: input, shape index: {}]   ;;  %s15167_s6 = inlined_call_operand.vmem [shape: f32[128,1], index: 6, kind: input, shape index: {}]   ;;  %s15168_s7 = inlined_call_operand.vmem [shape: f32[128,1], index: 7, kind: input, shape index: {}]   ;;  %s15169_s8 = inlined_call_operand.vmem [shape: f32[3,1], index: 8, kind: input, shape index: {}]   ;;  %s15170_s9 = inlined_call_operand.vmem [shape: f32[2,3,4096], index: 9, kind: output, shape index: {}]  }
   0x1   :  { %16 = vsyncpa [#allocation3 + $0x1], 0  ;;  %s9057_s30 = smov 0   ;;  %s9059_s10 = smov 0  }
   0x2   :  { %s9061_s11 = smov 0   ;;  %s9063_s12 = smov 0  }
   0x3 LB: > { %s9076_s13 = sadd.s32 4294967295, %s9001_s12   ;;  %s9079_s14 = sadd.s32 1, %s9001_s12   ;;  %s9001_s12 = sphi %s9063_s12, %s16731_s12   ;;  %s8997_s11 = sphi %s9061_s11, %s16730_s11   ;;  %s8993_s10 = sphi %s9059_s10, %s16729_s10   ;;  %s8989_s30 = sphi %s9057_s30, %s16728_s30  }
   0x4   : > { %s26_s15 = ssub.s32 %s9001_s12, %s9079_s14  ;;  %s29_s16 = sadd.s32 1, %s8997_s11 }
   0x5   : > { %p27_p0 = scmp.eq.s32.totalorder %s26_s15, 0  ;;  %p36_p1 = scmp.ne.s32.totalorder %s8997_s11, %s8993_s10 }
   0x6   : > { %p37_p2 = scmp.eq.s32.totalorder %s9001_s12, 0  ;;  %p42_p3 = scmp.ne.s32.totalorder %s8993_s10, %s8989_s30 }
   0x7   : > { %s9089_s17 = scalar_select %p27_p0, %s8997_s11, %s29_s16  }
   0x8   : > { %p38_p4 = por %p37_p2, %p36_p1  ;;  %p43_p5 = scmp.eq.s32.totalorder %s9076_s13, 0 }
   0x9   : > { %p8799_p6 = scmp.lt.s32.totalorder %s9001_s12, 2  ;;  %s284_s19 = sand.u32 1, %s8997_s11  }
   0xa   : > { %p9093_p7 = por %p43_p5, %p42_p3  ;;  %s8790_s20 = smul.u32 384, %s284_s19 }
   0xb   : > { %s8791_s21 = smul.u32 6144, %s9001_s12  ;;  %p9099_p8 = pnand %p8799_p6, %p38_p4 }
   0xc   : > { %s288_s26 = scalar_lea.vmem [#allocation2], %s8790_s20  ;;  %s9111_s28 = scalar_lea.sflag [#allocation3], %s284_s19 }
   0xd   : > { %s9106_s25 = scalar_lea.hbm %s15161_s0, %s8791_s21  ;;  %s295_s27 = sshll.u32 %s288_s26, 4  ;;  %s9108_s27 = int_to_ptr.vmem [resolvable:$true] %s295_s27 }
   0xe   : > { %s8937_s29 = scalar_lea.hbm %s9106_s25, 6144  ;;  %p8939_p11 = pneg %p9099_p8 }
   0xf   : > { %p8938_p10 = scmp.ne.s32.totalorder %s9106_s25, %s8937_s29  ;;  %s8942_s16 = scalar_lea.hbm %s15161_s0, 12288 }
  0x10   : > { %p8943_p0 = scmp.lt.u32.totalorder %s9106_s25, %s15161_s0  ;;  %p8944_p1 = scmp.lt.u32.totalorder %s8942_s16, %s8937_s29 }
  0x11   : > { %p8940_p12 = pnand %p8939_p11, %p8938_p10  ;;  %p8946_p3 = scmp.lt.u32.totalorder %s8937_s29, %s9106_s25 }
  0x12   : > { %p8945_p2 = por %p8944_p1, %p8943_p0 }
  0x13   : > { %p8941_p13 = pneg %p8940_p12 }
  0x14   : > { %p8947_p4 = por %p8946_p3, %p8945_p2 }
  0x16   : > { %p8948_p5 = pnand %p8947_p4, %p8941_p13 }
  0x18   : > { %8951 = shalt.err (!%p8948_p5)
}
  0x19   : > { %s8952_s19 = scalar_lea.vmem %s9108_s27, 6144  ;;  %s9003_s23 = smov [#allocation2]  }
  0x1a   : > { %p8953_p6 = scmp.ne.s32.totalorder %s9108_s27, %s8952_s19  ;;  %s8957_s24 = sshll.u32 %s9003_s23, 4  ;;  %s8958_s24 = int_to_ptr.vmem [resolvable:$false] %s8957_s24 }
  0x1b   : > { %s8959_s26 = scalar_lea.vmem %s8958_s24, 12288  ;;  %p8960_p9 = scmp.lt.s32.totalorder %s9108_s27, %s8958_s24 }
  0x1c   : > { %p8955_p10 = pnand %p8953_p6, %p8939_p11  ;;  %p8961_p0 = scmp.lt.s32.totalorder %s8959_s26, %s8952_s19 }
  0x1e   : > { %p8956_p12 = pneg %p8955_p10  ;;  %p8962_p1 = por %p8961_p0, %p8960_p9 }
  0x20   : > { %p8963_p2 = pnand %p8962_p1, %p8956_p12 }
  0x22   : > { %8966 = shalt.err (!%p8963_p2)
}
  0x23   : > { %s9004_s29 = smov 2048   ;;  %s9005_s30 = smov 128  }
  0x24   : > { %8798 = dma.hbm_to_vmem [thread:$0]  (!%p9099_p8), %s9106_s25, 6144, %s9108_s27, %s9111_s28, %s9004_s29, %s9004_s29, %s9005_s30  }
  0x25   : > { %p303_p11 = scmp.lt.s32.totalorder %s9001_s12, 3  ;;  %p15454_p13 = scmp.ge.s32.totalorder %s9001_s12, 1 }
  0x27   : > { %p304_p3 = pnand %p15454_p13, %p303_p11 }
  0x29   : > { %307 = sbr.rel (%p304_p3) target bundleno = 1861 (0x745), region = 56 }
  0x30   : > { %s309_s15 = sand.u32 1, %s8993_s10  }
  0x31   : > { %s8792_s16 = smul.u32 384, %s309_s15  ;;  %s310_s21 = scalar_lea.sflag [#allocation3], %s309_s15 }
  0x33   : > { %s9143_s20 = scalar_lea.vmem [#allocation2], %s8792_s16 }
  0x34   : > { %8984 = dma.done.wait (%p9093_p7), %s310_s21, 6144  }
  0x35   : > { %8986 = vsyncadd (%p9093_p7), %s310_s21, 4294961152  ;;  %v15171_v0 = vmov 0   ;;  %v354_v1 = vld [vmem:[%s9143_s20] sm:$0xff]  ;;  %v355_v3 = vld [vmem:[%s9143_s20 + $0x8] sm:$0xff]  ;;  %vm765_vm0 = vcmask 1043456   ;;  %vm752_vm1 = vcmask 195584  }
  0x36   : > { %894 = vmatprep.mubr.bf16.mxu0 %v15171_v0  ;;  %967 = vmatprep.mubr.bf16.mxu1 %v15171_v0  ;;  %v370_v2 = vld [vmem:[%s9143_s20 + $0x80] sm:$0xff]  ;;  %v371_v5 = vld [vmem:[%s9143_s20 + $0x88] sm:$0xff]  ;;  %v356_v15 = vld [vmem:[%s9143_s20 + $0x10] sm:$0xff]  ;;  %vm2457_vm2 = vcmask 523264   ;;  %p348_p7 = scmp.lt.s32.totalorder %s9076_s13, 1 }
  0x37   : > { %8835 = vset.pattern.permute.xlu0 %v15171_v0  ;;  %8836 = vset.pattern.permute.xlu1 %v15171_v0  ;;  %v8483_v4 = vcombine.high %v354_v1, %v370_v2  ;;  %v8482_v6 = vcombine.low %v354_v1, %v370_v2  ;;  %v386_v7 = vld [vmem:[%s9143_s20 + $0x100] sm:$0xff]  ;;  %v387_v8 = vld [vmem:[%s9143_s20 + $0x108] sm:$0xff]  ;;  %v8485_v9 = vcombine.high %v355_v3, %v371_v5  ;;  %v372_v16 = vld [vmem:[%s9143_s20 + $0x90] sm:$0xff] }
  0x38   : > { %v8484_v10 = vcombine.low %v355_v3, %v371_v5  ;;  %v8515_v11 = vcombine.high %v386_v7, %v386_v7  ;;  %v8517_v12 = vcombine.high %v387_v8, %v387_v8  ;;  %v8514_v13 = vcombine.low %v386_v7, %v386_v7  ;;  %v357_v17 = vld [vmem:[%s9143_s20 + $0x18] sm:$0xff]  ;;  %v444_v21 = vld [vmem:[%s15166_s5] sm:$0xff]  ;;  %v445_v25 = vld [vmem:[%s15166_s5 + $0x8] sm:$0xff]  ;;  %s16733_s13 = smov (!%p348_p7, %s9076_s13), 1 }
  0x39   : > { %862 = vmatprep.subr.bf16.mxu0 %v8483_v4  ;;  %v8516_v14 = vcombine.low %v387_v8, %v387_v8  ;;  %935 = vmatprep.subr.bf16.mxu1 %v8485_v9  ;;  %v373_v18 = vld [vmem:[%s9143_s20 + $0x98] sm:$0xff]  ;;  %v8487_v20 = vcombine.high %v356_v15, %v372_v16  ;;  %v9173_v23 = vld [vmem:[%s15162_s1] sm:$0xff]   ;;  %v388_v26 = vld [vmem:[%s9143_s20 + $0x110] sm:$0xff]  ;;  %v8486_v28 = vcombine.low %v356_v15, %v372_v16  ;;  %s8789_s18 = sshll.u32 %s16733_s13, 7 }
  0x3a   : > { %863 = vmatpush1.bf16.msra.mxu0 %v8482_v6  ;;  %936 = vmatpush1.bf16.msra.mxu1 %v8484_v10  ;;  %v767_v19 = vsel %vm765_vm0, %v8514_v13, 0  ;;  %v8489_v24 = vcombine.high %v357_v17, %v373_v18  ;;  %v446_v27 = vld [vmem:[%s15166_s5 + $0x10] sm:$0xff]  ;;  %v389_v29 = vld [vmem:[%s9143_s20 + $0x118] sm:$0xff]  ;;  %v8518_v30 = vcombine.low %v388_v26, %v388_v26  ;;  %v8488_v31 = vcombine.low %v357_v17, %v373_v18  ;;  %v448_v32 = vld [vmem:[%s15166_s5 + $0x20] sm:$0xff]  ;;  %s15126_s25 = scalar_lea.vmem %s15170_s9, %s8789_s18 }
  0x3b   : > { %8546 = vmatprep.subr.msk.bf16.mxu0 %vm765_vm0, %v8515_v11  ;;  %8551 = vmatprep.subr.msk.bf16.mxu1 %vm765_vm0, %v8517_v12  ;;  %v773_v22 = vsel %vm765_vm0, %v8516_v14, 0  ;;  %v8519_v33 = vcombine.high %v388_v26, %v388_v26  ;;  %v8521_v34 = vcombine.high %v389_v29, %v389_v29  ;;  %v8520_v35 = vcombine.low %v389_v29, %v389_v29  ;;  %v9189_v36 = vld [vmem:[%s9143_s20 + $0x20] sm:$0xff]  ;;  %v447_v39 = vld [vmem:[%s15166_s5 + $0x18] sm:$0xff]  ;;  %v9205_v41 = vld [vmem:[%s9143_s20 + $0x28] sm:$0xff] }
  0x3c   : > { %454 = vperm.xlu0 %8835, %v444_v21   ;;  %464 = vperm.xlu1 %8836, %v446_v27   ;;  %v9194_v37 = vld [vmem:[%s9143_s20 + $0xa0] sm:$0xff]  ;;  %v779_v38 = vsel %vm765_vm0, %v8518_v30, 0  ;;  %v9208_v42 = vld [vmem:[%s9143_s20 + $0xa8] sm:$0xff]  ;;  %v450_v44 = vld [vmem:[%s15166_s5 + $0x30] sm:$0xff] }
  0x3d   : > { %v8491_v40 = vcombine.high %v9189_v36, %v9194_v37  ;;  %v9213_v43 = vld [vmem:[%s15162_s1 + $0x8] sm:$0xff]   ;;  %v785_v45 = vsel %vm765_vm0, %v8520_v35, 0  ;;  %v8493_v46 = vcombine.high %v9205_v41, %v9208_v42  ;;  %v4421_v48 = vld [vmem:[%s15167_s6] sm:$0xff]  ;;  %v451_v49 = vld [vmem:[%s15166_s5 + $0x38] sm:$0xff]  ;;  %v8490_v63 = vcombine.low %v9189_v36, %v9194_v37 }
  0x3e   : > { %865 = vmatpush1.bf16.msra.mxu0 %v767_v19  ;;  %938 = vmatpush1.bf16.msra.mxu1 %v773_v22  ;;  %v449_v47 = vld [vmem:[%s15166_s5 + $0x28] sm:$0xff]  ;;  %v9241_v50 = vld [vmem:[%s15162_s1 + $0x10] sm:$0xff]   ;;  %v4425_v53 = vld [vmem:[%s15167_s6 + $0x20] sm:$0xff]  ;;  %v8492_v2 = vcombine.low %v9205_v41, %v9208_v42 }
  0x3f   : > { %1008 = vmatprep.subr.bf16.mxu0 %v8487_v20  ;;  %1081 = vmatprep.subr.bf16.mxu1 %v8489_v24  ;;  %v4423_v51 = vld [vmem:[%s15167_s6 + $0x10] sm:$0xff]  ;;  %v4422_v52 = vld [vmem:[%s15167_s6 + $0x8] sm:$0xff]  ;;  %v9261_v54 = vld [vmem:[%s15162_s1 + $0x18] sm:$0xff]  }
  0x40   : > { %459 = vperm.xlu0 %8835, %v445_v25   ;;  %469 = vperm.xlu1 %8836, %v447_v39   ;;  %v4424_v55 = vld [vmem:[%s15167_s6 + $0x18] sm:$0xff]  ;;  %v4427_v56 = vld [vmem:[%s15167_s6 + $0x30] sm:$0xff]  ;;  %v4429_v57 = vld [vmem:[%s15167_s6 + $0x40] sm:$0xff] }
  0x41   : > { %8547 = vmatmul.mubr.msk.bf16.vlgmr.msra.gmra.mrb[0].mxu0 %vm752_vm1, %v9173_v23  ;;  %8552 = vmatmul.mubr.msk.bf16.vlgmr.msra.gmra.mrb[0].mxu1 %vm752_vm1, %v9173_v23  ;;  %v4426_v58 = vld [vmem:[%s15167_s6 + $0x28] sm:$0xff]  ;;  %v4428_v59 = vld [vmem:[%s15167_s6 + $0x38] sm:$0xff]  ;;  %v390_v60 = vld [vmem:[%s9143_s20 + $0x120] sm:$0xff] }
  0x42   : > { %1009 = vmatpush1.bf16.msra.mxu0 %v8486_v28  ;;  %904 = vmatprep.mubr.bf16.mxu0 %v15171_v0  ;;  %v4431_v61 = vld [vmem:[%s15167_s6 + $0x50] sm:$0xff]  ;;  %v391_v62 = vld [vmem:[%s9143_s20 + $0x128] sm:$0xff]  ;;  %v8522_v1 = vcombine.low %v390_v60, %v390_v60  ;;  %v4433_v5 = vld [vmem:[%s15167_s6 + $0x60] sm:$0xff]  ;;  %v8523_v6 = vcombine.high %v390_v60, %v390_v60 }
  0x43   : > { %977 = vmatprep.mubr.bf16.mxu1 %v15171_v0  ;;  %1082 = vmatpush1.bf16.msra.mxu1 %v8488_v31  ;;  %v9294_v3 = vld [vmem:[%s9143_s20 + $0x30] sm:$0xff]  ;;  %v8524_v7 = vcombine.low %v391_v62, %v391_v62  ;;  %v4430_v8 = vld [vmem:[%s15167_s6 + $0x48] sm:$0xff]  ;;  %v8525_v9 = vcombine.high %v391_v62, %v391_v62  ;;  %v9315_v12 = vld [vmem:[%s9143_s20 + $0x38] sm:$0xff] }
  0x44   : > { %474 = vperm.xlu0 %8835, %v448_v32   ;;  %8556 = vmatprep.subr.msk.bf16.mxu0 %vm765_vm0, %v8519_v33  ;;  %v9297_v4 = vld [vmem:[%s9143_s20 + $0xb0] sm:$0xff]  ;;  %v791_v10 = vsel %vm765_vm0, %v8522_v1, 0  ;;  %v9318_v13 = vld [vmem:[%s9143_s20 + $0xb8] sm:$0xff]  ;;  %v5797_v18 = vld [vmem:[%s15168_s7] sm:$0xff] }
  0x45   : > { %8561 = vmatprep.subr.msk.bf16.mxu1 %vm765_vm0, %v8521_v34  ;;  %479 = vperm.xlu1 %8836, %v449_v47   ;;  %v8495_v11 = vcombine.high %v9294_v3, %v9297_v4  ;;  %v4435_v14 = vld [vmem:[%s15167_s6 + $0x70] sm:$0xff]  ;;  %v797_v15 = vsel %vm765_vm0, %v8524_v7, 0  ;;  %v4432_v16 = vld [vmem:[%s15167_s6 + $0x58] sm:$0xff]  ;;  %v8497_v17 = vcombine.high %v9315_v12, %v9318_v13  ;;  %v4434_v19 = vld [vmem:[%s15167_s6 + $0x68] sm:$0xff]  ;;  %v8494_v31 = vcombine.low %v9294_v3, %v9297_v4 }
  0x46   : > { %1011 = vmatpush1.bf16.msra.mxu0 %v779_v38  ;;  %v5799_v20 = vld [vmem:[%s15168_s7 + $0x10] sm:$0xff]  ;;  %v4436_v21 = vld [vmem:[%s15167_s6 + $0x78] sm:$0xff]  ;;  %v5801_v22 = vld [vmem:[%s15168_s7 + $0x20] sm:$0xff]  ;;  %v8496_v35 = vcombine.low %v9315_v12, %v9318_v13 }
  0x47   : > { %1154 = vmatprep.subr.bf16.mxu0 %v8491_v40  ;;  %1084 = vmatpush1.bf16.msra.mxu1 %v785_v45  ;;  %v5798_v24 = vld [vmem:[%s15168_s7 + $0x8] sm:$0xff]  ;;  %v5803_v25 = vld [vmem:[%s15168_s7 + $0x30] sm:$0xff]  ;;  %v5800_v26 = vld [vmem:[%s15168_s7 + $0x18] sm:$0xff] }
  0x48   : > { %484 = vperm.xlu0 %8835, %v450_v44   ;;  %1227 = vmatprep.subr.bf16.mxu1 %v8493_v46  ;;  %v5805_v27 = vld [vmem:[%s15168_s7 + $0x40] sm:$0xff]  ;;  %v5802_v28 = vld [vmem:[%s15168_s7 + $0x28] sm:$0xff]  ;;  %v392_v29 = vld [vmem:[%s9143_s20 + $0x130] sm:$0xff] }
  0x49   : > { %8548 = vmatmul.mubr.msk.bf16.gmra.mrb[4].mxu0 %vm752_vm1, %v9213_v43  ;;  %8553 = vmatmul.mubr.msk.bf16.gmra.mrb[4].mxu1 %vm752_vm1, %v9213_v43  ;;  %v5807_v30 = vld [vmem:[%s15168_s7 + $0x50] sm:$0xff]  ;;  %v5804_v32 = vld [vmem:[%s15168_s7 + $0x38] sm:$0xff]  ;;  %v8526_v34 = vcombine.low %v392_v29, %v392_v29  ;;  %v362_v36 = vld [vmem:[%s9143_s20 + $0x40] sm:$0xff]  ;;  %v8527_v39 = vcombine.high %v392_v29, %v392_v29 }
  0x4a   : > { %914 = vmatprep.mubr.bf16.mxu0 %v15171_v0  ;;  %987 = vmatprep.mubr.bf16.mxu1 %v15171_v0  ;;  %v393_v33 = vld [vmem:[%s9143_s20 + $0x138] sm:$0xff]  ;;  %v378_v37 = vld [vmem:[%s9143_s20 + $0xc0] sm:$0xff]  ;;  %v5806_v41 = vld [vmem:[%s15168_s7 + $0x48] sm:$0xff] }
  0x4b   : > { %489 = vperm.xlu1 %8836, %v451_v49   ;;  %v5809_v38 = vld [vmem:[%s15168_s7 + $0x60] sm:$0xff]  ;;  %v8528_v40 = vcombine.low %v393_v33, %v393_v33  ;;  %v8529_v42 = vcombine.high %v393_v33, %v393_v33  ;;  %v803_v44 = vsel %vm765_vm0, %v8526_v34, 0  ;;  %v8499_v45 = vcombine.high %v362_v36, %v378_v37  ;;  %v363_v46 = vld [vmem:[%s9143_s20 + $0x48] sm:$0xff]  ;;  %v380_v1 = vld [vmem:[%s9143_s20 + $0xd0] sm:$0xff] }
  0x4c   : > { %4439 = vperm.xlu0 %8835, %v4421_v48   ;;  %v379_v47 = vld [vmem:[%s9143_s20 + $0xc8] sm:$0xff]  ;;  %v5811_v48 = vld [vmem:[%s15168_s7 + $0x70] sm:$0xff]  ;;  %v365_v4 = vld [vmem:[%s9143_s20 + $0x58] sm:$0xff] }
  0x4d   : > { %v809_v49 = vsel %vm765_vm0, %v8528_v40, 0  ;;  %v397_v12 = vld [vmem:[%s9143_s20 + $0x158] sm:$0xff]  ;;  %v399_v29 = vld [vmem:[%s9143_s20 + $0x168] sm:$0xff]  ;;  %v368_v33 = vld [vmem:[%s9143_s20 + $0x70] sm:$0xff] }
  0x4e   : > { %v384_v34 = vld [vmem:[%s9143_s20 + $0xf0] sm:$0xff] }
  0x4f   : > { %4444 = vperm.xlu1 %8836, %v4422_v52   ;;  %v8501_v52 = vcombine.high %v363_v46, %v379_v47  ;;  %v8511_v40 = vcombine.high %v368_v33, %v384_v34 }
  0x50   : > { %4449 = vperm.xlu0 %8835, %v4423_v51   ;;  %v5808_v51 = vld [vmem:[%s15168_s7 + $0x58] sm:$0xff] }
  0x51   : > { %8549 = vmatmul.mubr.msk.bf16.gmra.mrb[8].mxu0 %vm752_vm1, %v9241_v50  ;;  %8554 = vmatmul.mubr.msk.bf16.gmra.mrb[8].mxu1 %vm752_vm1, %v9241_v50 }
  0x52   : > { %924 = vmatprep.mubr.bf16.mxu0 %v15171_v0  ;;  %997 = vmatprep.mubr.bf16.mxu1 %v15171_v0 }
  0x53   : > { %4454 = vperm.xlu1 %8836, %v4424_v55   ;;  %v5810_v55 = vld [vmem:[%s15168_s7 + $0x68] sm:$0xff] }
  0x54   : > { %4459 = vperm.xlu0 %8835, %v4425_v53   ;;  %v8245_v53 = vld [vmem:[%s15169_s8] sm:$0x7] }
  0x57   : > { %4464 = vperm.xlu1 %8836, %v4426_v58   ;;  %v8498_v58 = vcombine.low %v362_v36, %v378_v37  ;;  %v8540_v36 = vcombine.low %v399_v29, %v399_v29  ;;  %v369_v37 = vld [vmem:[%s9143_s20 + $0x78] sm:$0xff] }
  0x58   : > { %4469 = vperm.xlu0 %8835, %v4427_v56   ;;  %v5812_v56 = vld [vmem:[%s15168_s7 + $0x78] sm:$0xff] }
  0x59   : > { %8550 = vmatmul.mubr.msk.bf16.gmra.mrb[12].mxu0 %vm752_vm1, %v9261_v54  ;;  %8555 = vmatmul.mubr.msk.bf16.gmra.mrb[12].mxu1 %vm752_vm1, %v9261_v54 }
  0x5a   : > { %1040 = vmatprep.mubr.bf16.mxu0 %v15171_v0  ;;  %1113 = vmatprep.mubr.bf16.mxu1 %v15171_v0 }
  0x5b   : > { %4474 = vperm.xlu1 %8836, %v4428_v59   ;;  %v395_v59 = vld [vmem:[%s9143_s20 + $0x148] sm:$0xff] }
  0x5c   : > { %4479 = vperm.xlu0 %8835, %v4429_v57   ;;  %v394_v57 = vld [vmem:[%s9143_s20 + $0x140] sm:$0xff]  ;;  %v8532_v3 = vcombine.low %v395_v59, %v395_v59 }
  0x5d   : > { %v8530_v60 = vcombine.low %v394_v57, %v394_v57  ;;  %v8531_v62 = vcombine.high %v394_v57, %v394_v57 }
  0x5f   : > { %4484 = vperm.xlu1 %8836, %v4430_v8   ;;  %v821_v8 = vsel %vm765_vm0, %v8532_v3, 0 }
  0x60   : > { %4489 = vperm.xlu0 %8835, %v4431_v61   ;;  %v8500_v61 = vcombine.low %v363_v46, %v379_v47  ;;  %v401_v46 = vld [vmem:[%s9143_s20 + $0x178] sm:$0xff] }
  0x61   : > { %8557 = vmatmul.mubr.msk.bf16.vlgmr.msra.gmra.mrb[16].mxu0 %vm752_vm1, %v9173_v23  ;;  %8562 = vmatmul.mubr.msk.bf16.vlgmr.msra.gmra.mrb[16].mxu1 %vm752_vm1, %v9173_v23 }
  0x62   : > { %1155 = vmatpush1.bf16.msra.mxu0 %v8490_v63  ;;  %1050 = vmatprep.mubr.bf16.mxu0 %v15171_v0  ;;  %v364_v63 = vld [vmem:[%s9143_s20 + $0x50] sm:$0xff] }
  0x63   : > { %1123 = vmatprep.mubr.bf16.mxu1 %v15171_v0  ;;  %1228 = vmatpush1.bf16.msra.mxu1 %v8492_v2  ;;  %v8533_v2 = vcombine.high %v395_v59, %v395_v59  ;;  %v8503_v7 = vcombine.high %v364_v63, %v380_v1 }
  0x64   : > { %4499 = vperm.xlu0 %8835, %v4433_v5   ;;  %8566 = vmatprep.subr.msk.bf16.mxu0 %vm765_vm0, %v8523_v6  ;;  %v381_v5 = vld [vmem:[%s9143_s20 + $0xd8] sm:$0xff]  ;;  %v815_v6 = vsel %vm765_vm0, %v8530_v60, 0 }
  0x65   : > { %8571 = vmatprep.subr.msk.bf16.mxu1 %vm765_vm0, %v8525_v9  ;;  %4494 = vperm.xlu1 %8836, %v4432_v16   ;;  %v8505_v9 = vcombine.high %v365_v4, %v381_v5  ;;  %v366_v16 = vld [vmem:[%s9143_s20 + $0x60] sm:$0xff] }
  0x66   : > { %1157 = vmatpush1.bf16.msra.mxu0 %v791_v10  ;;  %v396_v10 = vld [vmem:[%s9143_s20 + $0x150] sm:$0xff] }
  0x67   : > { %1300 = vmatprep.subr.bf16.mxu0 %v8495_v11  ;;  %1230 = vmatpush1.bf16.msra.mxu1 %v797_v15  ;;  %v8502_v11 = vcombine.low %v364_v63, %v380_v1  ;;  %v8534_v13 = vcombine.low %v396_v10, %v396_v10  ;;  %v8535_v15 = vcombine.high %v396_v10, %v396_v10 }
  0x68   : > { %4509 = vperm.xlu0 %8835, %v4435_v14   ;;  %1373 = vmatprep.subr.bf16.mxu1 %v8497_v17  ;;  %v8504_v14 = vcombine.low %v365_v4, %v381_v5  ;;  %v382_v17 = vld [vmem:[%s9143_s20 + $0xe0] sm:$0xff] }
  0x69   : > { %8558 = vmatmul.mubr.msk.bf16.gmra.mrb[20].mxu0 %vm752_vm1, %v9213_v43  ;;  %8563 = vmatmul.mubr.msk.bf16.gmra.mrb[20].mxu1 %vm752_vm1, %v9213_v43 }
  0x6a   : > { %1060 = vmatprep.mubr.bf16.mxu0 %v15171_v0  ;;  %1133 = vmatprep.mubr.bf16.mxu1 %v15171_v0 }
  0x6b   : > { %4504 = vperm.xlu1 %8836, %v4434_v19   ;;  %v8536_v19 = vcombine.low %v397_v12, %v397_v12 }
  0x6c   : > { %5815 = vperm.xlu0 %8835, %v5797_v18   ;;  %v8537_v18 = vcombine.high %v397_v12, %v397_v12 }
  0x6f   : > { %4514 = vperm.xlu1 %8836, %v4436_v21   ;;  %v383_v21 = vld [vmem:[%s9143_s20 + $0xe8] sm:$0xff] }
  0x70   : > { %5825 = vperm.xlu0 %8835, %v5799_v20   ;;  %v367_v20 = vld [vmem:[%s9143_s20 + $0x68] sm:$0xff] }
  0x71   : > { %8559 = vmatmul.mubr.msk.bf16.gmra.mrb[24].mxu0 %vm752_vm1, %v9241_v50  ;;  %8564 = vmatmul.mubr.msk.bf16.gmra.mrb[24].mxu1 %vm752_vm1, %v9241_v50 }
  0x72   : > { %1070 = vmatprep.mubr.bf16.mxu0 %v15171_v0  ;;  %1143 = vmatprep.mubr.bf16.mxu1 %v15171_v0 }
  0x73   : > { %5820 = vperm.xlu1 %8836, %v5798_v24   ;;  %v8507_v24 = vcombine.high %v366_v16, %v382_v17 }
  0x74   : > { %5835 = vperm.xlu0 %8835, %v5801_v22   ;;  %v827_v22 = vsel %vm765_vm0, %v8534_v13, 0 }
  0x77   : > { %5830 = vperm.xlu1 %8836, %v5800_v26   ;;  %v8509_v26 = vcombine.high %v367_v20, %v383_v21 }
  0x78   : > { %5845 = vperm.xlu0 %8835, %v5803_v25   ;;  %v833_v25 = vsel %vm765_vm0, %v8536_v19, 0 }
  0x79   : > { %8560 = vmatmul.mubr.msk.bf16.gmra.mrb[28].mxu0 %vm752_vm1, %v9261_v54  ;;  %8565 = vmatmul.mubr.msk.bf16.gmra.mrb[28].mxu1 %vm752_vm1, %v9261_v54 }
  0x7a   : > { %1186 = vmatprep.mubr.bf16.mxu0 %v15171_v0  ;;  %1259 = vmatprep.mubr.bf16.mxu1 %v15171_v0 }
  0x7b   : > { %5840 = vperm.xlu1 %8836, %v5802_v28   ;;  %v8506_v28 = vcombine.low %v366_v16, %v382_v17 }
  0x7c   : > { %5855 = vperm.xlu0 %8835, %v5805_v27   ;;  %v398_v27 = vld [vmem:[%s9143_s20 + $0x160] sm:$0xff] }
  0x7f   : > { %5850 = vperm.xlu1 %8836, %v5804_v32   ;;  %v8539_v32 = vcombine.high %v398_v27, %v398_v27 }
  0x80   : > { %5865 = vperm.xlu0 %8835, %v5807_v30   ;;  %v8538_v30 = vcombine.low %v398_v27, %v398_v27 }
  0x81   : > { %8567 = vmatmul.mubr.msk.bf16.vlgmr.msra.gmra.mrb[32].mxu0 %vm752_vm1, %v9173_v23  ;;  %8572 = vmatmul.mubr.msk.bf16.vlgmr.msra.gmra.mrb[32].mxu1 %vm752_vm1, %v9173_v23 }
  0x82   : > { %1301 = vmatpush1.bf16.msra.mxu0 %v8494_v31  ;;  %1196 = vmatprep.mubr.bf16.mxu0 %v15171_v0  ;;  %v8508_v31 = vcombine.low %v367_v20, %v383_v21 }
  0x83   : > { %1269 = vmatprep.mubr.bf16.mxu1 %v15171_v0  ;;  %1374 = vmatpush1.bf16.msra.mxu1 %v8496_v35  ;;  %v8541_v35 = vcombine.high %v399_v29, %v399_v29 }
  0x84   : > { %5875 = vperm.xlu0 %8835, %v5809_v38   ;;  %8576 = vmatprep.subr.msk.bf16.mxu0 %vm765_vm0, %v8527_v39  ;;  %v385_v38 = vld [vmem:[%s9143_s20 + $0xf8] sm:$0xff]  ;;  %v839_v39 = vsel %vm765_vm0, %v8538_v30, 0 }
  0x85   : > { %5860 = vperm.xlu1 %8836, %v5806_v41   ;;  %8581 = vmatprep.subr.msk.bf16.mxu1 %vm765_vm0, %v8529_v42  ;;  %v845_v41 = vsel %vm765_vm0, %v8540_v36, 0  ;;  %v8513_v42 = vcombine.high %v369_v37, %v385_v38 }
  0x86   : > { %1303 = vmatpush1.bf16.msra.mxu0 %v803_v44  ;;  %v400_v44 = vld [vmem:[%s9143_s20 + $0x170] sm:$0xff] }
  0x87   : > { %1446 = vmatprep.subr.bf16.mxu0 %v8499_v45  ;;  %1376 = vmatpush1.bf16.msra.mxu1 %v809_v49  ;;  %v8510_v45 = vcombine.low %v368_v33, %v384_v34  ;;  %v8542_v47 = vcombine.low %v400_v44, %v400_v44  ;;  %v8543_v49 = vcombine.high %v400_v44, %v400_v44 }
  0x88   : > { %5885 = vperm.xlu0 %8835, %v5811_v48   ;;  %1519 = vmatprep.subr.bf16.mxu1 %v8501_v52  ;;  %v8512_v48 = vcombine.low %v369_v37, %v385_v38  ;;  %v8544_v52 = vcombine.low %v401_v46, %v401_v46 }
  0x89   : > { %8568 = vmatmul.mubr.msk.bf16.gmra.mrb[36].mxu0 %vm752_vm1, %v9213_v43  ;;  %5870 = vperm.xlu1 %8836, %v5808_v51   ;;  %v8545_v51 = vcombine.high %v401_v46, %v401_v46 }
  0x8a   : > { %8573 = vmatmul.mubr.msk.bf16.gmra.mrb[36].mxu1 %vm752_vm1, %v9213_v43  ;;  %1206 = vmatprep.mubr.bf16.mxu0 %v15171_v0 }
  0x8b   : > { %1279 = vmatprep.mubr.bf16.mxu1 %v15171_v0 }
  0x8c   : > { %8248 = vperm.xlu0 %8835, %v8245_v53   ;;  %v851_v53 = vsel %vm765_vm0, %v8542_v47, 0 }
  0x8d   : > { %5880 = vperm.xlu1 %8836, %v5810_v55   ;;  %v857_v55 = vsel %vm765_vm0, %v8544_v52, 0 }
  0x91   : > { %8569 = vmatmul.mubr.msk.bf16.gmra.mrb[40].mxu0 %vm752_vm1, %v9241_v50  ;;  %5890 = vperm.xlu1 %8836, %v5812_v56  }
  0x92   : > { %8574 = vmatmul.mubr.msk.bf16.gmra.mrb[40].mxu1 %vm752_vm1, %v9241_v50  ;;  %1216 = vmatprep.mubr.bf16.mxu0 %v15171_v0 }
  0x93   : > { %1289 = vmatprep.mubr.bf16.mxu1 %v15171_v0 }
  0x99   : > { %8570 = vmatmul.mubr.msk.bf16.gmra.mrb[44].mxu0 %vm752_vm1, %v9261_v54 }
  0x9a   : > { %8575 = vmatmul.mubr.msk.bf16.gmra.mrb[44].mxu1 %vm752_vm1, %v9261_v54  ;;  %1332 = vmatprep.mubr.bf16.mxu0 %v15171_v0 }
  0x9b   : > { %1405 = vmatprep.mubr.bf16.mxu1 %v15171_v0 }
  0xa1   : > { %8577 = vmatmul.mubr.msk.bf16.vlgmr.msra.gmra.mrb[48].mxu0 %vm752_vm1, %v9173_v23 }
  0xa2   : > { %8582 = vmatmul.mubr.msk.bf16.vlgmr.msra.gmra.mrb[48].mxu1 %vm752_vm1, %v9173_v23  ;;  %1447 = vmatpush1.bf16.msra.mxu0 %v8498_v58 }
  0xa3   : > { %1342 = vmatprep.mubr.bf16.mxu0 %v15171_v0  ;;  %1415 = vmatprep.mubr.bf16.mxu1 %v15171_v0 }
  0xa4   : > { %1520 = vmatpush1.bf16.msra.mxu1 %v8500_v61  ;;  %8586 = vmatprep.subr.msk.bf16.mxu0 %vm765_vm0, %v8531_v62 }
  0xa5   : > { %8591 = vmatprep.subr.msk.bf16.mxu1 %vm765_vm0, %v8533_v2 }
  0xa6   : > { %1449 = vmatpush1.bf16.msra.mxu0 %v815_v6 }
  0xa7   : > { %1592 = vmatprep.subr.bf16.mxu0 %v8503_v7 }
  0xa8   : > { %1522 = vmatpush1.bf16.msra.mxu1 %v821_v8 }
  0xa9   : > { %8578 = vmatmul.mubr.msk.bf16.gmra.mrb[52].mxu0 %vm752_vm1, %v9213_v43  ;;  %1665 = vmatprep.subr.bf16.mxu1 %v8505_v9 }
  0xaa   : > { %8583 = vmatmul.mubr.msk.bf16.gmra.mrb[52].mxu1 %vm752_vm1, %v9213_v43  ;;  %1352 = vmatprep.mubr.bf16.mxu0 %v15171_v0 }
  0xab   : > { %1425 = vmatprep.mubr.bf16.mxu1 %v15171_v0 }
  0xb1   : > { %8579 = vmatmul.mubr.msk.bf16.gmra.mrb[56].mxu0 %vm752_vm1, %v9241_v50 }
  0xb2   : > { %8584 = vmatmul.mubr.msk.bf16.gmra.mrb[56].mxu1 %vm752_vm1, %v9241_v50  ;;  %1362 = vmatprep.mubr.bf16.mxu0 %v15171_v0 }
  0xb3   : > { %1435 = vmatprep.mubr.bf16.mxu1 %v15171_v0 }
  0xb9   : > { %8580 = vmatmul.mubr.msk.bf16.gmra.mrb[60].mxu0 %vm752_vm1, %v9261_v54 }
  0xba   : > { %8585 = vmatmul.mubr.msk.bf16.gmra.mrb[60].mxu1 %vm752_vm1, %v9261_v54  ;;  %1478 = vmatprep.mubr.bf16.mxu0 %v15171_v0 }
  0xbb   : > { %1551 = vmatprep.mubr.bf16.mxu1 %v15171_v0  ;;  %v9564_v56 = vpop.permute.xlu0 %454  ;;  %v9571_v57 = vpop.permute.xlu1 %464 }
  0xbf   : > { %v9574_v58 = vpop.permute.xlu0 %459  ;;  %v9590_v21 = vpop.permute.xlu1 %469 }
  0xc1   : > { %8587 = vmatmul.mubr.msk.bf16.vlgmr.msra.gmra.mrb[64].mxu0 %vm752_vm1, %v9173_v23 }
  0xc2   : > { %8592 = vmatmul.mubr.msk.bf16.vlgmr.msra.gmra.mrb[64].mxu1 %vm752_vm1, %v9173_v23  ;;  %1593 = vmatpush1.bf16.msra.mxu0 %v8502_v11 }
  0xc3   : > { %1488 = vmatprep.mubr.bf16.mxu0 %v15171_v0  ;;  %1561 = vmatprep.mubr.bf16.mxu1 %v15171_v0 }
  0xc4   : > { %1666 = vmatpush1.bf16.msra.mxu1 %v8504_v14  ;;  %8596 = vmatprep.subr.msk.bf16.mxu0 %vm765_vm0, %v8535_v15 }
  0xc5   : > { %8601 = vmatprep.subr.msk.bf16.mxu1 %vm765_vm0, %v8537_v18 }
  0xc6   : > { %1595 = vmatpush1.bf16.msra.mxu0 %v827_v22 }
  0xc7   : > { %1738 = vmatprep.subr.bf16.mxu0 %v8507_v24 }
  0xc8   : > { %1668 = vmatpush1.bf16.msra.mxu1 %v833_v25 }
  0xc9   : > { %8588 = vmatmul.mubr.msk.bf16.gmra.mrb[68].mxu0 %vm752_vm1, %v9213_v43  ;;  %1811 = vmatprep.subr.bf16.mxu1 %v8509_v26 }
  0xca   : > { %8593 = vmatmul.mubr.msk.bf16.gmra.mrb[68].mxu1 %vm752_vm1, %v9213_v43  ;;  %1498 = vmatprep.mubr.bf16.mxu0 %v15171_v0 }
  0xcb   : > { %1571 = vmatprep.mubr.bf16.mxu1 %v15171_v0 }
  0xd1   : > { %8589 = vmatmul.mubr.msk.bf16.gmra.mrb[72].mxu0 %vm752_vm1, %v9241_v50 }
  0xd2   : > { %8594 = vmatmul.mubr.msk.bf16.gmra.mrb[72].mxu1 %vm752_vm1, %v9241_v50  ;;  %1508 = vmatprep.mubr.bf16.mxu0 %v15171_v0 }
  0xd3   : > { %1581 = vmatprep.mubr.bf16.mxu1 %v15171_v0 }
  0xd9   : > { %8590 = vmatmul.mubr.msk.bf16.gmra.mrb[76].mxu0 %vm752_vm1, %v9261_v54 }
  0xda   : > { %8595 = vmatmul.mubr.msk.bf16.gmra.mrb[76].mxu1 %vm752_vm1, %v9261_v54  ;;  %1624 = vmatprep.mubr.bf16.mxu0 %v15171_v0 }
  0xdb   : > { %1697 = vmatprep.mubr.bf16.mxu1 %v15171_v0 }
  0xe1   : > { %8597 = vmatmul.mubr.msk.bf16.vlgmr.msra.gmra.mrb[80].mxu0 %vm752_vm1, %v9173_v23 }
  0xe2   : > { %8602 = vmatmul.mubr.msk.bf16.vlgmr.msra.gmra.mrb[80].mxu1 %vm752_vm1, %v9173_v23  ;;  %1739 = vmatpush1.bf16.msra.mxu0 %v8506_v28 }
  0xe3   : > { %1634 = vmatprep.mubr.bf16.mxu0 %v15171_v0  ;;  %1707 = vmatprep.mubr.bf16.mxu1 %v15171_v0 }
  0xe4   : > { %1812 = vmatpush1.bf16.msra.mxu1 %v8508_v31  ;;  %8606 = vmatprep.subr.msk.bf16.mxu0 %vm765_vm0, %v8539_v32 }
  0xe5   : > { %8611 = vmatprep.subr.msk.bf16.mxu1 %vm765_vm0, %v8541_v35 }
  0xe6   : > { %1741 = vmatpush1.bf16.msra.mxu0 %v839_v39 }
  0xe7   : > { %1884 = vmatprep.subr.bf16.mxu0 %v8511_v40 }
  0xe8   : > { %1814 = vmatpush1.bf16.msra.mxu1 %v845_v41 }
  0xe9   : > { %8598 = vmatmul.mubr.msk.bf16.gmra.mrb[84].mxu0 %vm752_vm1, %v9213_v43  ;;  %1957 = vmatprep.subr.bf16.mxu1 %v8513_v42 }
  0xea   : > { %8603 = vmatmul.mubr.msk.bf16.gmra.mrb[84].mxu1 %vm752_vm1, %v9213_v43  ;;  %1644 = vmatprep.mubr.bf16.mxu0 %v15171_v0 }
  0xeb   : > { %1717 = vmatprep.mubr.bf16.mxu1 %v15171_v0 }
  0xf1   : > { %8599 = vmatmul.mubr.msk.bf16.gmra.mrb[88].mxu0 %vm752_vm1, %v9241_v50 }
  0xf2   : > { %8604 = vmatmul.mubr.msk.bf16.gmra.mrb[88].mxu1 %vm752_vm1, %v9241_v50  ;;  %1654 = vmatprep.mubr.bf16.mxu0 %v15171_v0 }
  0xf3   : > { %1727 = vmatprep.mubr.bf16.mxu1 %v15171_v0 }
  0xf9   : > { %8600 = vmatmul.mubr.msk.bf16.gmra.mrb[92].mxu0 %vm752_vm1, %v9261_v54 }
  0xfa   : > { %8605 = vmatmul.mubr.msk.bf16.gmra.mrb[92].mxu1 %vm752_vm1, %v9261_v54  ;;  %1770 = vmatprep.mubr.bf16.mxu0 %v15171_v0 }
  0xfb   : > { %1843 = vmatprep.mubr.bf16.mxu1 %v15171_v0 }
 0x101   : > { %8607 = vmatmul.mubr.msk.bf16.vlgmr.msra.gmra.mrb[96].mxu0 %vm752_vm1, %v9173_v23 }
 0x102   : > { %8612 = vmatmul.mubr.msk.bf16.vlgmr.msra.gmra.mrb[96].mxu1 %vm752_vm1, %v9173_v23  ;;  %1885 = vmatpush1.bf16.msra.mxu0 %v8510_v45 }
 0x103   : > { %1780 = vmatprep.mubr.bf16.mxu0 %v15171_v0  ;;  %1853 = vmatprep.mubr.bf16.mxu1 %v15171_v0 }
 0x104   : > { %1958 = vmatpush1.bf16.msra.mxu1 %v8512_v48  ;;  %8616 = vmatprep.subr.msk.bf16.mxu0 %vm765_vm0, %v8543_v49 }
 0x105   : > { %8621 = vmatprep.subr.msk.bf16.mxu1 %vm765_vm0, %v8545_v51  ;;  %v9604_v51 = vpop.permute.xlu0 %474 }
 0x106   : > { %1887 = vmatpush1.bf16.msra.mxu0 %v851_v53 }
 0x108   : > { %1960 = vmatpush1.bf16.msra.mxu1 %v857_v55  ;;  %v9607_v55 = vpop.permute.xlu1 %479 }
 0x109   : > { %8608 = vmatmul.mubr.msk.bf16.gmra.mrb[100].mxu0 %vm752_vm1, %v9213_v43 }
 0x10a   : > { %8613 = vmatmul.mubr.msk.bf16.gmra.mrb[100].mxu1 %vm752_vm1, %v9213_v43  ;;  %1790 = vmatprep.mubr.bf16.mxu0 %v15171_v0 }
 0x10b   : > { %1863 = vmatprep.mubr.bf16.mxu1 %v15171_v0 }
 0x111   : > { %8609 = vmatmul.mubr.msk.bf16.gmra.mrb[104].mxu0 %vm752_vm1, %v9241_v50 }
 0x112   : > { %8614 = vmatmul.mubr.msk.bf16.gmra.mrb[104].mxu1 %vm752_vm1, %v9241_v50  ;;  %1800 = vmatprep.mubr.bf16.mxu0 %v15171_v0 }
 0x113   : > { %1873 = vmatprep.mubr.bf16.mxu1 %v15171_v0 }
 0x114   : > { %v896_v59 = vpop.f32.mrb[0].mxu0  ;;  %v969_v61 = vpop.f32.mrb[0].mxu1 }
 0x115   : > { %v897_v60 = vadd.f32 %v896_v59, %v9564_v56  ;;  %v898_v62 = vpop.f32.mrb[1].mxu0  ;;  %v970_v63 = vadd.f32 %v969_v61, %v9564_v56  ;;  %v971_v2 = vpop.f32.mrb[1].mxu1 }
 0x116   : > { %v899_v1 = vadd.f32 %v898_v62, %v9564_v56  ;;  %v900_v3 = vpop.f32.mrb[2].mxu0  ;;  %v972_v4 = vadd.f32 %v971_v2, %v9564_v56  ;;  %v973_v6 = vpop.f32.mrb[2].mxu1 }
 0x117   : > { %v901_v5 = vadd.f32 %v900_v3, %v9574_v58  ;;  %v902_v7 = vpop.f32.mrb[3].mxu0  ;;  %v2032_v8 = vmax.f32 %v970_v63, 0.0  ;;  %v974_v9 = vadd.f32 %v973_v6, %v9574_v58  ;;  %v975_v11 = vpop.f32.mrb[3].mxu1  ;;  %v2030_v12 = vmax.f32 %v897_v60, 0.0 }
 0x118   : > { %v903_v10 = vadd.f32 %v902_v7, %v9574_v58  ;;  %v2033_v13 = vmax.f32 %v972_v4, 0.0  ;;  %v976_v15 = vadd.f32 %v975_v11, %v9574_v58  ;;  %v2031_v16 = vmax.f32 %v899_v1, 0.0 }
 0x119   : > { %v2062_v14 = vmax.f32 %v901_v5, 0.0  ;;  %8610 = vmatmul.mubr.msk.bf16.gmra.mrb[108].mxu0 %vm752_vm1, %v9261_v54  ;;  %v2064_v17 = vmax.f32 %v974_v9, 0.0 }
 0x11a   : > { %v2063_v18 = vmax.f32 %v903_v10, 0.0  ;;  %8615 = vmatmul.mubr.msk.bf16.gmra.mrb[108].mxu1 %vm752_vm1, %v9261_v54  ;;  %1916 = vmatprep.mubr.bf16.mxu0 %v15171_v0  ;;  %v2065_v20 = vmax.f32 %v976_v15, 0.0 }
 0x11b   : > { %v2286_v19 = vpack.c.bf16 %v2062_v14, %v2030_v12  ;;  %1989 = vmatprep.mubr.bf16.mxu1 %v15171_v0  ;;  %v2288_v22 = vpack.c.bf16 %v2064_v17, %v2032_v8 }
 0x11c   : > { %v906_v24 = vpop.f32.mrb[4].mxu0  ;;  %v2287_v25 = vpack.c.bf16 %v2063_v18, %v2031_v16  ;;  %v979_v27 = vpop.f32.mrb[4].mxu1  ;;  %v2289_v29 = vpack.c.bf16 %v2065_v20, %v2033_v13 }
 0x11d   : > { %v907_v26 = vadd.f32 %v906_v24, %v9571_v57  ;;  %v908_v28 = vpop.f32.mrb[5].mxu0  ;;  %v980_v30 = vadd.f32 %v979_v27, %v9571_v57  ;;  %v981_v32 = vpop.f32.mrb[5].mxu1 }
 0x11e   : > { %v909_v31 = vadd.f32 %v908_v28, %v9571_v57  ;;  %v910_v33 = vpop.f32.mrb[6].mxu0  ;;  %2485 = vmatprep.subr.bf16.mxu0 %v2287_v25  ;;  %v982_v34 = vadd.f32 %v981_v32, %v9571_v57  ;;  %v983_v36 = vpop.f32.mrb[6].mxu1  ;;  %2606 = vmatprep.subr.bf16.mxu1 %v2289_v29 }
 0x11f   : > { %v911_v35 = vadd.f32 %v910_v33, %v9590_v21  ;;  %v912_v37 = vpop.f32.mrb[7].mxu0  ;;  %v2096_v38 = vmax.f32 %v980_v30, 0.0  ;;  %v984_v39 = vadd.f32 %v983_v36, %v9590_v21  ;;  %v985_v41 = vpop.f32.mrb[7].mxu1  ;;  %v2094_v42 = vmax.f32 %v907_v26, 0.0 }
 0x120   : > { %v913_v40 = vadd.f32 %v912_v37, %v9590_v21  ;;  %v2097_v44 = vmax.f32 %v982_v34, 0.0  ;;  %v986_v46 = vadd.f32 %v985_v41, %v9590_v21  ;;  %v2095_v47 = vmax.f32 %v909_v31, 0.0  ;;  %v9626_v26 = vpop.permute.xlu1 %489 }
 0x121   : > { %v2126_v45 = vmax.f32 %v911_v35, 0.0  ;;  %8617 = vmatmul.mubr.msk.bf16.vlgmr.msra.gmra.mrb[112].mxu0 %vm752_vm1, %v9173_v23  ;;  %v2128_v48 = vmax.f32 %v984_v39, 0.0 }
 0x122   : > { %v2127_v49 = vmax.f32 %v913_v40, 0.0  ;;  %8622 = vmatmul.mubr.msk.bf16.vlgmr.msra.gmra.mrb[112].mxu1 %vm752_vm1, %v9173_v23  ;;  %2486 = vmatpush1.bf16.msra.mxu0 %v2286_v19  ;;  %v2129_v53 = vmax.f32 %v986_v46, 0.0 }
 0x123   : > { %v2318_v52 = vpack.c.bf16 %v2126_v45, %v2094_v42  ;;  %2607 = vmatpush1.bf16.msra.mxu1 %v2288_v22  ;;  %1926 = vmatprep.mubr.bf16.mxu0 %v15171_v0  ;;  %v2320_v59 = vpack.c.bf16 %v2128_v48, %v2096_v38  ;;  %v9623_v22 = vpop.permute.xlu0 %484 }
 0x124   : > { %v916_v60 = vpop.f32.mrb[8].mxu0  ;;  %v2319_v61 = vpack.c.bf16 %v2127_v49, %v2095_v47  ;;  %1999 = vmatprep.mubr.bf16.mxu1 %v15171_v0  ;;  %v989_v63 = vpop.f32.mrb[8].mxu1  ;;  %v2321_v23 = vpack.c.bf16 %v2129_v53, %v2097_v44 }
 0x125   : > { %v917_v62 = vadd.f32 %v916_v60, %v9604_v51  ;;  %v918_v1 = vpop.f32.mrb[9].mxu0  ;;  %v990_v2 = vadd.f32 %v989_v63, %v9604_v51  ;;  %v991_v4 = vpop.f32.mrb[9].mxu1 }
 0x126   : > { %v919_v3 = vadd.f32 %v918_v1, %v9604_v51  ;;  %v920_v5 = vpop.f32.mrb[10].mxu0  ;;  %2487 = vmatprep.subr.bf16.mxu0 %v2319_v61  ;;  %v992_v6 = vadd.f32 %v991_v4, %v9604_v51  ;;  %v993_v8 = vpop.f32.mrb[10].mxu1  ;;  %2608 = vmatprep.subr.bf16.mxu1 %v2321_v23 }
 0x127   : > { %v921_v7 = vadd.f32 %v920_v5, %v9607_v55  ;;  %v922_v9 = vpop.f32.mrb[11].mxu0  ;;  %2488 = vmatpush1.bf16.msra.mxu0 %v2318_v52  ;;  %v2160_v10 = vmax.f32 %v990_v2, 0.0  ;;  %v994_v11 = vadd.f32 %v993_v8, %v9607_v55  ;;  %v995_v13 = vpop.f32.mrb[11].mxu1  ;;  %2609 = vmatpush1.bf16.msra.mxu1 %v2320_v59  ;;  %v2158_v14 = vmax.f32 %v917_v62, 0.0 }
 0x128   : > { %v923_v12 = vadd.f32 %v922_v9, %v9607_v55  ;;  %v2161_v15 = vmax.f32 %v992_v6, 0.0  ;;  %v996_v17 = vadd.f32 %v995_v13, %v9607_v55  ;;  %v2159_v18 = vmax.f32 %v919_v3, 0.0 }
 0x129   : > { %v2190_v16 = vmax.f32 %v921_v7, 0.0  ;;  %8618 = vmatmul.mubr.msk.bf16.gmra.mrb[116].mxu0 %vm752_vm1, %v9213_v43  ;;  %v2192_v19 = vmax.f32 %v994_v11, 0.0 }
 0x12a   : > { %v2191_v20 = vmax.f32 %v923_v12, 0.0  ;;  %8623 = vmatmul.mubr.msk.bf16.gmra.mrb[116].mxu1 %vm752_vm1, %v9213_v43  ;;  %1936 = vmatprep.mubr.bf16.mxu0 %v15171_v0  ;;  %v2193_v25 = vmax.f32 %v996_v17, 0.0 }
 0x12b   : > { %v2350_v24 = vpack.c.bf16 %v2190_v16, %v2158_v14  ;;  %2009 = vmatprep.mubr.bf16.mxu1 %v15171_v0  ;;  %v2352_v27 = vpack.c.bf16 %v2192_v19, %v2160_v10 }
 0x12c   : > { %v926_v28 = vpop.f32.mrb[12].mxu0  ;;  %v2351_v29 = vpack.c.bf16 %v2191_v20, %v2159_v18  ;;  %v999_v31 = vpop.f32.mrb[12].mxu1  ;;  %v2353_v33 = vpack.c.bf16 %v2193_v25, %v2161_v15 }
 0x12d   : > { %v927_v30 = vadd.f32 %v926_v28, %v9623_v22  ;;  %v928_v32 = vpop.f32.mrb[13].mxu0  ;;  %v1000_v43 = vadd.f32 %v999_v31, %v9623_v22  ;;  %v1001_v35 = vpop.f32.mrb[13].mxu1 }
 0x12e   : > { %v929_v34 = vadd.f32 %v928_v32, %v9623_v22  ;;  %v930_v36 = vpop.f32.mrb[14].mxu0  ;;  %2489 = vmatprep.subr.bf16.mxu0 %v2351_v29  ;;  %v1002_v37 = vadd.f32 %v1001_v35, %v9623_v22  ;;  %v1003_v39 = vpop.f32.mrb[14].mxu1  ;;  %2610 = vmatprep.subr.bf16.mxu1 %v2353_v33  ;;  %v9660_v35 = vld [vmem:[%s15163_s2] sm:$0xff]  }
 0x12f   : > { %v931_v38 = vadd.f32 %v930_v36, %v9626_v26  ;;  %v932_v40 = vpop.f32.mrb[15].mxu0  ;;  %2490 = vmatpush1.bf16.msra.mxu0 %v2350_v24  ;;  %v1004_v41 = vadd.f32 %v1003_v39, %v9626_v26  ;;  %v1005_v44 = vpop.f32.mrb[15].mxu1  ;;  %2611 = vmatpush1.bf16.msra.mxu1 %v2352_v27  ;;  %v2222_v45 = vmax.f32 %v927_v30, 0.0  ;;  %v2224_v48 = vmax.f32 %v1000_v43, 0.0 }
 0x130   : > { %v933_v42 = vadd.f32 %v932_v40, %v9626_v26  ;;  %v1006_v47 = vadd.f32 %v1005_v44, %v9626_v26  ;;  %v2223_v49 = vmax.f32 %v929_v34, 0.0  ;;  %v2225_v59 = vmax.f32 %v1002_v37, 0.0 }
 0x131   : > { %v2254_v46 = vmax.f32 %v931_v38, 0.0  ;;  %8619 = vmatmul.mubr.msk.bf16.gmra.mrb[120].mxu0 %vm752_vm1, %v9241_v50  ;;  %v2256_v52 = vmax.f32 %v1004_v41, 0.0 }
 0x132   : > { %v2255_v53 = vmax.f32 %v933_v42, 0.0  ;;  %8624 = vmatmul.mubr.msk.bf16.gmra.mrb[120].mxu1 %vm752_vm1, %v9241_v50  ;;  %1946 = vmatprep.mubr.bf16.mxu0 %v15171_v0  ;;  %v2257_v61 = vmax.f32 %v1006_v47, 0.0 }
 0x133   : > { %v2382_v60 = vpack.c.bf16 %v2254_v46, %v2222_v45  ;;  %2019 = vmatprep.mubr.bf16.mxu1 %v15171_v0  ;;  %v2384_v62 = vpack.c.bf16 %v2256_v52, %v2224_v48 }
 0x134   : > { %v1042_v63 = vpop.f32.mrb[16].mxu0  ;;  %v2383_v1 = vpack.c.bf16 %v2255_v53, %v2223_v49  ;;  %v1115_v2 = vpop.f32.mrb[16].mxu1  ;;  %v2385_v4 = vpack.c.bf16 %v2257_v61, %v2225_v59 }
 0x135   : > { %v1043_v23 = vadd.f32 %v1042_v63, %v9564_v56  ;;  %v1044_v3 = vpop.f32.mrb[17].mxu0  ;;  %v1116_v5 = vadd.f32 %v1115_v2, %v9564_v56  ;;  %v1117_v50 = vpop.f32.mrb[17].mxu1 }
 0x136   : > { %v1045_v6 = vadd.f32 %v1044_v3, %v9564_v56  ;;  %v1046_v7 = vpop.f32.mrb[18].mxu0  ;;  %2491 = vmatprep.subr.bf16.mxu0 %v2383_v1  ;;  %v1118_v8 = vadd.f32 %v1117_v50, %v9564_v56  ;;  %v1119_v10 = vpop.f32.mrb[18].mxu1  ;;  %2612 = vmatprep.subr.bf16.mxu1 %v2385_v4  ;;  %v9679_v50 = vld [vmem:[%s15163_s2 + $0x8] sm:$0xff]  }
 0x137   : > { %v1047_v9 = vadd.f32 %v1046_v7, %v9574_v58  ;;  %v1048_v11 = vpop.f32.mrb[19].mxu0  ;;  %2492 = vmatpush1.bf16.msra.mxu0 %v2382_v60  ;;  %v1120_v12 = vadd.f32 %v1119_v10, %v9574_v58  ;;  %v1121_v14 = vpop.f32.mrb[19].mxu1  ;;  %2613 = vmatpush1.bf16.msra.mxu1 %v2384_v62  ;;  %v2034_v15 = vmax.f32 %v1043_v23, 0.0  ;;  %v2036_v18 = vmax.f32 %v1116_v5, 0.0 }
 0x138   : > { %v1049_v13 = vadd.f32 %v1048_v11, %v9574_v58  ;;  %v1122_v17 = vadd.f32 %v1121_v14, %v9574_v58  ;;  %v2035_v19 = vmax.f32 %v1045_v6, 0.0  ;;  %v2037_v25 = vmax.f32 %v1118_v8, 0.0 }
 0x139   : > { %v2066_v16 = vmax.f32 %v1047_v9, 0.0  ;;  %8620 = vmatmul.mubr.msk.bf16.gmra.mrb[124].mxu0 %vm752_vm1, %v9261_v54  ;;  %v2068_v20 = vmax.f32 %v1120_v12, 0.0 }
 0x13a   : > { %v2067_v24 = vmax.f32 %v1049_v13, 0.0  ;;  %8625 = vmatmul.mubr.msk.bf16.gmra.mrb[124].mxu1 %vm752_vm1, %v9261_v54  ;;  %2517 = vmatprep.mubr.bf16.mxu0 %v15171_v0  ;;  %v2069_v28 = vmax.f32 %v1122_v17, 0.0 }
 0x13b   : > { %v2290_v27 = vpack.c.bf16 %v2066_v16, %v2034_v15  ;;  %2638 = vmatprep.mubr.bf16.mxu1 %v15171_v0  ;;  %v2292_v29 = vpack.c.bf16 %v2068_v20, %v2036_v18 }
 0x13c   : > { %v1052_v30 = vpop.f32.mrb[20].mxu0  ;;  %v2291_v31 = vpack.c.bf16 %v2067_v24, %v2035_v19  ;;  %v1125_v33 = vpop.f32.mrb[20].mxu1  ;;  %v2293_v34 = vpack.c.bf16 %v2069_v28, %v2037_v25 }
 0x13d   : > { %v1053_v32 = vadd.f32 %v1052_v30, %v9571_v57  ;;  %v1054_v43 = vpop.f32.mrb[21].mxu0  ;;  %v1126_v54 = vadd.f32 %v1125_v33, %v9571_v57  ;;  %v1127_v37 = vpop.f32.mrb[21].mxu1 }
 0x13e   : > { %v1055_v36 = vadd.f32 %v1054_v43, %v9571_v57  ;;  %v1056_v38 = vpop.f32.mrb[22].mxu0  ;;  %2727 = vmatprep.subr.bf16.mxu0 %v2291_v31  ;;  %v1128_v39 = vadd.f32 %v1127_v37, %v9571_v57  ;;  %v1129_v41 = vpop.f32.mrb[22].mxu1  ;;  %2848 = vmatprep.subr.bf16.mxu1 %v2293_v34 }
 0x13f   : > { %v1057_v40 = vadd.f32 %v1056_v38, %v9590_v21  ;;  %v1058_v42 = vpop.f32.mrb[23].mxu0  ;;  %v1130_v44 = vadd.f32 %v1129_v41, %v9590_v21  ;;  %v1131_v46 = vpop.f32.mrb[23].mxu1  ;;  %v2098_v47 = vmax.f32 %v1053_v32, 0.0  ;;  %v2100_v52 = vmax.f32 %v1126_v54, 0.0  ;;  %v9698_v38 = vld [vmem:[%s15163_s2 + $0x10] sm:$0xff]  }
 0x140   : > { %v1059_v45 = vadd.f32 %v1058_v42, %v9590_v21  ;;  %v1132_v49 = vadd.f32 %v1131_v46, %v9590_v21  ;;  %v2099_v53 = vmax.f32 %v1055_v36, 0.0  ;;  %v2101_v61 = vmax.f32 %v1128_v39, 0.0 }
 0x141   : > { %v2130_v48 = vmax.f32 %v1057_v40, 0.0  ;;  %8635 = vmatmul.mubr.msk.bf16.vlgmr.msra.gmra.mrb[128].mxu0 %vm2457_vm2, %v9660_v35  ;;  %v2132_v59 = vmax.f32 %v1130_v44, 0.0 }
 0x142   : > { %v2131_v60 = vmax.f32 %v1059_v45, 0.0  ;;  %8644 = vmatmul.mubr.msk.bf16.vlgmr.msra.gmra.mrb[128].mxu1 %vm2457_vm2, %v9660_v35  ;;  %2728 = vmatpush1.bf16.msra.mxu0 %v2290_v27  ;;  %v2133_v63 = vmax.f32 %v1132_v49, 0.0 }
 0x143   : > { %v2322_v62 = vpack.c.bf16 %v2130_v48, %v2098_v47  ;;  %2849 = vmatpush1.bf16.msra.mxu1 %v2292_v29  ;;  %2527 = vmatprep.mubr.bf16.mxu0 %v15171_v0  ;;  %v2324_v1 = vpack.c.bf16 %v2132_v59, %v2100_v52 }
 0x144   : > { %v1062_v23 = vpop.f32.mrb[24].mxu0  ;;  %v2323_v2 = vpack.c.bf16 %v2131_v60, %v2099_v53  ;;  %2648 = vmatprep.mubr.bf16.mxu1 %v15171_v0  ;;  %v1135_v4 = vpop.f32.mrb[24].mxu1  ;;  %v2325_v6 = vpack.c.bf16 %v2133_v63, %v2101_v61 }
 0x145   : > { %v1063_v3 = vadd.f32 %v1062_v23, %v9604_v51  ;;  %v1064_v5 = vpop.f32.mrb[25].mxu0  ;;  %v1136_v7 = vadd.f32 %v1135_v4, %v9604_v51  ;;  %v1137_v9 = vpop.f32.mrb[25].mxu1 }
 0x146   : > { %v1065_v8 = vadd.f32 %v1064_v5, %v9604_v51  ;;  %v1066_v10 = vpop.f32.mrb[26].mxu0  ;;  %2729 = vmatprep.subr.bf16.mxu0 %v2323_v2  ;;  %v1138_v11 = vadd.f32 %v1137_v9, %v9604_v51  ;;  %v1139_v13 = vpop.f32.mrb[26].mxu1  ;;  %2850 = vmatprep.subr.bf16.mxu1 %v2325_v6 }
 0x147   : > { %v1067_v12 = vadd.f32 %v1066_v10, %v9607_v55  ;;  %v1068_v14 = vpop.f32.mrb[27].mxu0  ;;  %2730 = vmatpush1.bf16.msra.mxu0 %v2322_v62  ;;  %v1140_v15 = vadd.f32 %v1139_v13, %v9607_v55  ;;  %v1141_v17 = vpop.f32.mrb[27].mxu1  ;;  %2851 = vmatpush1.bf16.msra.mxu1 %v2324_v1  ;;  %v2162_v18 = vmax.f32 %v1063_v3, 0.0  ;;  %v2164_v24 = vmax.f32 %v1136_v7, 0.0 }
 0x148   : > { %v1069_v16 = vadd.f32 %v1068_v14, %v9607_v55  ;;  %v1142_v20 = vadd.f32 %v1141_v17, %v9607_v55  ;;  %v2163_v25 = vmax.f32 %v1065_v8, 0.0  ;;  %v2165_v29 = vmax.f32 %v1138_v11, 0.0  ;;  %v9717_v11 = vld [vmem:[%s15163_s2 + $0x18] sm:$0xff]  }
 0x149   : > { %v2194_v19 = vmax.f32 %v1067_v12, 0.0  ;;  %8636 = vmatmul.mubr.msk.bf16.gmra.mrb[132].mxu0 %vm2457_vm2, %v9679_v50  ;;  %v2196_v27 = vmax.f32 %v1140_v15, 0.0 }
 0x14a   : > { %v2195_v28 = vmax.f32 %v1069_v16, 0.0  ;;  %8645 = vmatmul.mubr.msk.bf16.gmra.mrb[132].mxu1 %vm2457_vm2, %v9679_v50  ;;  %2537 = vmatprep.mubr.bf16.mxu0 %v15171_v0  ;;  %v2197_v31 = vmax.f32 %v1142_v20, 0.0 }
 0x14b   : > { %v2354_v30 = vpack.c.bf16 %v2194_v19, %v2162_v18  ;;  %2658 = vmatprep.mubr.bf16.mxu1 %v15171_v0  ;;  %v2356_v32 = vpack.c.bf16 %v2196_v27, %v2164_v24 }
 0x14c   : > { %v1072_v33 = vpop.f32.mrb[28].mxu0  ;;  %v2355_v43 = vpack.c.bf16 %v2195_v28, %v2163_v25  ;;  %v1145_v54 = vpop.f32.mrb[28].mxu1  ;;  %v2357_v37 = vpack.c.bf16 %v2197_v31, %v2165_v29 }
 0x14d   : > { %v1073_v34 = vadd.f32 %v1072_v33, %v9623_v22  ;;  %v1074_v36 = vpop.f32.mrb[29].mxu0  ;;  %v1146_v39 = vadd.f32 %v1145_v54, %v9623_v22  ;;  %v1147_v41 = vpop.f32.mrb[29].mxu1 }
 0x14e   : > { %v1075_v40 = vadd.f32 %v1074_v36, %v9623_v22  ;;  %v1076_v42 = vpop.f32.mrb[30].mxu0  ;;  %2731 = vmatprep.subr.bf16.mxu0 %v2355_v43  ;;  %v1148_v44 = vadd.f32 %v1147_v41, %v9623_v22  ;;  %v1149_v46 = vpop.f32.mrb[30].mxu1  ;;  %2852 = vmatprep.subr.bf16.mxu1 %v2357_v37 }
 0x14f   : > { %v1077_v45 = vadd.f32 %v1076_v42, %v9626_v26  ;;  %v1078_v47 = vpop.f32.mrb[31].mxu0  ;;  %2732 = vmatpush1.bf16.msra.mxu0 %v2354_v30  ;;  %v1150_v48 = vadd.f32 %v1149_v46, %v9626_v26  ;;  %v1151_v52 = vpop.f32.mrb[31].mxu1  ;;  %2853 = vmatpush1.bf16.msra.mxu1 %v2356_v32  ;;  %v2226_v53 = vmax.f32 %v1073_v34, 0.0  ;;  %v2228_v61 = vmax.f32 %v1146_v39, 0.0 }
 0x150   : > { %v1079_v49 = vadd.f32 %v1078_v47, %v9626_v26  ;;  %v1152_v60 = vadd.f32 %v1151_v52, %v9626_v26  ;;  %v2227_v62 = vmax.f32 %v1075_v40, 0.0  ;;  %v2229_v23 = vmax.f32 %v1148_v44, 0.0 }
 0x151   : > { %v2258_v59 = vmax.f32 %v1077_v45, 0.0  ;;  %8637 = vmatmul.mubr.msk.bf16.gmra.mrb[136].mxu0 %vm2457_vm2, %v9698_v38  ;;  %v2260_v63 = vmax.f32 %v1150_v48, 0.0  ;;  %v9740_v45 = vld [vmem:[%s15163_s2 + $0x20] sm:$0xff]  }
 0x152   : > { %v2259_v1 = vmax.f32 %v1079_v49, 0.0  ;;  %8646 = vmatmul.mubr.msk.bf16.gmra.mrb[136].mxu1 %vm2457_vm2, %v9698_v38  ;;  %2547 = vmatprep.mubr.bf16.mxu0 %v15171_v0  ;;  %v2261_v3 = vmax.f32 %v1152_v60, 0.0 }
 0x153   : > { %v2386_v2 = vpack.c.bf16 %v2258_v59, %v2226_v53  ;;  %2668 = vmatprep.mubr.bf16.mxu1 %v15171_v0  ;;  %v2388_v4 = vpack.c.bf16 %v2260_v63, %v2228_v61 }
 0x154   : > { %v1188_v5 = vpop.f32.mrb[32].mxu0  ;;  %v2387_v6 = vpack.c.bf16 %v2259_v1, %v2227_v62  ;;  %v1261_v8 = vpop.f32.mrb[32].mxu1  ;;  %v2389_v10 = vpack.c.bf16 %v2261_v3, %v2229_v23 }
 0x155   : > { %v1189_v7 = vadd.f32 %v1188_v5, %v9564_v56  ;;  %v1190_v9 = vpop.f32.mrb[33].mxu0  ;;  %v1262_v12 = vadd.f32 %v1261_v8, %v9564_v56  ;;  %v1263_v14 = vpop.f32.mrb[33].mxu1 }
 0x156   : > { %v1191_v13 = vadd.f32 %v1190_v9, %v9564_v56  ;;  %v1192_v15 = vpop.f32.mrb[34].mxu0  ;;  %2733 = vmatprep.subr.bf16.mxu0 %v2387_v6  ;;  %v1264_v16 = vadd.f32 %v1263_v14, %v9564_v56  ;;  %v1265_v18 = vpop.f32.mrb[34].mxu1  ;;  %2854 = vmatprep.subr.bf16.mxu1 %v2389_v10 }
 0x157   : > { %v1193_v17 = vadd.f32 %v1192_v15, %v9574_v58  ;;  %v1194_v19 = vpop.f32.mrb[35].mxu0  ;;  %2734 = vmatpush1.bf16.msra.mxu0 %v2386_v2  ;;  %v1266_v20 = vadd.f32 %v1265_v18, %v9574_v58  ;;  %v1267_v25 = vpop.f32.mrb[35].mxu1  ;;  %2855 = vmatpush1.bf16.msra.mxu1 %v2388_v4  ;;  %v2038_v27 = vmax.f32 %v1189_v7, 0.0  ;;  %v2040_v30 = vmax.f32 %v1262_v12, 0.0 }
 0x158   : > { %v1195_v24 = vadd.f32 %v1194_v19, %v9574_v58  ;;  %v1268_v29 = vadd.f32 %v1267_v25, %v9574_v58  ;;  %v2039_v31 = vmax.f32 %v1191_v13, 0.0  ;;  %v2041_v43 = vmax.f32 %v1264_v16, 0.0 }
 0x159   : > { %v2070_v28 = vmax.f32 %v1193_v17, 0.0  ;;  %8638 = vmatmul.mubr.msk.bf16.gmra.mrb[140].mxu0 %vm2457_vm2, %v9717_v11  ;;  %v2072_v32 = vmax.f32 %v1266_v20, 0.0  ;;  %v9765_v17 = vld [vmem:[%s15163_s2 + $0x28] sm:$0xff]  }
 0x15a   : > { %v2071_v33 = vmax.f32 %v1195_v24, 0.0  ;;  %8647 = vmatmul.mubr.msk.bf16.gmra.mrb[140].mxu1 %vm2457_vm2, %v9717_v11  ;;  %2557 = vmatprep.mubr.bf16.mxu0 %v15171_v0  ;;  %v2073_v54 = vmax.f32 %v1268_v29, 0.0 }
 0x15b   : > { %v9731_v34 = vpack.c.bf16 %v2070_v28, %v2038_v27  ;;  %2678 = vmatprep.mubr.bf16.mxu1 %v15171_v0  ;;  %v9734_v36 = vpack.c.bf16 %v2072_v32, %v2040_v30 }
 0x15c   : > { %v1198_v37 = vpop.f32.mrb[36].mxu0  ;;  %v2295_v39 = vpack.c.bf16 %v2071_v33, %v2039_v31  ;;  %v2297_v44 = vpack.c.bf16 %v2073_v54, %v2041_v43 }
 0x15d   : > { %v1199_v40 = vadd.f32 %v1198_v37, %v9571_v57  ;;  %v1271_v41 = vpop.f32.mrb[36].mxu1  ;;  %v1200_v42 = vpop.f32.mrb[37].mxu0 }
 0x15e   : > { %v1272_v46 = vadd.f32 %v1271_v41, %v9571_v57  ;;  %v1201_v47 = vadd.f32 %v1200_v42, %v9571_v57  ;;  %v1273_v48 = vpop.f32.mrb[37].mxu1  ;;  %v1202_v49 = vpop.f32.mrb[38].mxu0  ;;  %2969 = vmatprep.subr.bf16.mxu0 %v2295_v39  ;;  %3090 = vmatprep.subr.bf16.mxu1 %v2297_v44 }
 0x15f   : > { %v1274_v52 = vadd.f32 %v1273_v48, %v9571_v57  ;;  %v1203_v53 = vadd.f32 %v1202_v49, %v9590_v21  ;;  %v1275_v59 = vpop.f32.mrb[38].mxu1  ;;  %v1204_v60 = vpop.f32.mrb[39].mxu0  ;;  %v2102_v1 = vmax.f32 %v1199_v40, 0.0 }
 0x160   : > { %v1276_v61 = vadd.f32 %v1275_v59, %v9590_v21  ;;  %v1205_v62 = vadd.f32 %v1204_v60, %v9590_v21  ;;  %v1277_v63 = vpop.f32.mrb[39].mxu1  ;;  %v2104_v3 = vmax.f32 %v1272_v46, 0.0  ;;  %v2103_v4 = vmax.f32 %v1201_v47, 0.0 }
 0x161   : > { %v2134_v23 = vmax.f32 %v1203_v53, 0.0  ;;  %v1278_v2 = vadd.f32 %v1277_v63, %v9590_v21  ;;  %8639 = vmatmul.mubr.msk.bf16.gmra.mrb[144].mxu0 %vm2457_vm2, %v9740_v45  ;;  %v2105_v7 = vmax.f32 %v1274_v52, 0.0 }
 0x162   : > { %v2136_v5 = vmax.f32 %v1276_v61, 0.0  ;;  %v2135_v6 = vmax.f32 %v1205_v62, 0.0  ;;  %8648 = vmatmul.mubr.msk.bf16.gmra.mrb[144].mxu1 %vm2457_vm2, %v9740_v45  ;;  %2567 = vmatprep.mubr.bf16.mxu0 %v15171_v0  ;;  %v9792_v61 = vld [vmem:[%s15163_s2 + $0x30] sm:$0xff]  }
 0x163   : > { %v9754_v8 = vpack.c.bf16 %v2134_v23, %v2102_v1  ;;  %v2137_v9 = vmax.f32 %v1278_v2, 0.0  ;;  %2688 = vmatprep.mubr.bf16.mxu1 %v15171_v0 }
 0x164   : > { %v9757_v10 = vpack.c.bf16 %v2136_v5, %v2104_v3  ;;  %v1208_v12 = vpop.f32.mrb[40].mxu0  ;;  %v9759_v13 = vpack.c.bf16 %v2135_v6, %v2103_v4 }
 0x165   : > { %v1209_v14 = vadd.f32 %v1208_v12, %v9604_v51  ;;  %v1281_v15 = vpop.f32.mrb[40].mxu1  ;;  %v1210_v16 = vpop.f32.mrb[41].mxu0  ;;  %v9767_v18 = vpack.c.bf16 %v2137_v9, %v2105_v7 }
 0x166   : > { %v1282_v19 = vadd.f32 %v1281_v15, %v9604_v51  ;;  %v1211_v20 = vadd.f32 %v1210_v16, %v9604_v51  ;;  %v1283_v24 = vpop.f32.mrb[41].mxu1  ;;  %v1212_v25 = vpop.f32.mrb[42].mxu0 }
 0x167   : > { %v1284_v27 = vadd.f32 %v1283_v24, %v9604_v51  ;;  %v1213_v28 = vadd.f32 %v1212_v25, %v9607_v55  ;;  %v1285_v29 = vpop.f32.mrb[42].mxu1  ;;  %v1214_v30 = vpop.f32.mrb[43].mxu0  ;;  %v2166_v43 = vmax.f32 %v1209_v14, 0.0 }
 0x168   : > { %v1286_v31 = vadd.f32 %v1285_v29, %v9607_v55  ;;  %v1215_v32 = vadd.f32 %v1214_v30, %v9607_v55  ;;  %v1287_v33 = vpop.f32.mrb[43].mxu1  ;;  %v2168_v39 = vmax.f32 %v1282_v19, 0.0  ;;  %v2167_v40 = vmax.f32 %v1211_v20, 0.0 }
 0x169   : > { %v2198_v54 = vmax.f32 %v1213_v28, 0.0  ;;  %v1288_v37 = vadd.f32 %v1287_v33, %v9607_v55  ;;  %8640 = vmatmul.mubr.msk.bf16.gmra.mrb[148].mxu0 %vm2457_vm2, %v9765_v17  ;;  %v2169_v44 = vmax.f32 %v1284_v27, 0.0 }
 0x16a   : > { %v2200_v41 = vmax.f32 %v1286_v31, 0.0  ;;  %v2199_v42 = vmax.f32 %v1215_v32, 0.0  ;;  %8649 = vmatmul.mubr.msk.bf16.gmra.mrb[148].mxu1 %vm2457_vm2, %v9765_v17  ;;  %2577 = vmatprep.mubr.bf16.mxu0 %v15171_v0 }
 0x16b   : > { %v9781_v46 = vpack.c.bf16 %v2198_v54, %v2166_v43  ;;  %v2201_v47 = vmax.f32 %v1288_v37, 0.0  ;;  %2698 = vmatprep.mubr.bf16.mxu1 %v15171_v0  ;;  %v9819_v37 = vld [vmem:[%s15163_s2 + $0x38] sm:$0xff]  }
 0x16c   : > { %v9784_v48 = vpack.c.bf16 %v2200_v41, %v2168_v39  ;;  %v1218_v49 = vpop.f32.mrb[44].mxu0  ;;  %v9786_v52 = vpack.c.bf16 %v2199_v42, %v2167_v40 }
 0x16d   : > { %v1219_v53 = vadd.f32 %v1218_v49, %v9623_v22  ;;  %v1291_v59 = vpop.f32.mrb[44].mxu1  ;;  %v1220_v60 = vpop.f32.mrb[45].mxu0  ;;  %v9794_v62 = vpack.c.bf16 %v2201_v47, %v2169_v44 }
 0x16e   : > { %v1292_v63 = vadd.f32 %v1291_v59, %v9623_v22  ;;  %v1221_v1 = vadd.f32 %v1220_v60, %v9623_v22  ;;  %v1293_v23 = vpop.f32.mrb[45].mxu1  ;;  %v1222_v2 = vpop.f32.mrb[46].mxu0 }
 0x16f   : > { %v1294_v3 = vadd.f32 %v1293_v23, %v9623_v22  ;;  %v1223_v4 = vadd.f32 %v1222_v2, %v9626_v26  ;;  %v1295_v5 = vpop.f32.mrb[46].mxu1  ;;  %v1224_v6 = vpop.f32.mrb[47].mxu0  ;;  %v2230_v14 = vmax.f32 %v1219_v53, 0.0 }
 0x170   : > { %v1296_v7 = vadd.f32 %v1295_v5, %v9626_v26  ;;  %v1225_v9 = vadd.f32 %v1224_v6, %v9626_v26  ;;  %v1297_v12 = vpop.f32.mrb[47].mxu1  ;;  %v2232_v19 = vmax.f32 %v1292_v63, 0.0  ;;  %v2231_v20 = vmax.f32 %v1221_v1, 0.0 }
 0x171   : > { %v2262_v15 = vmax.f32 %v1223_v4, 0.0  ;;  %v1298_v16 = vadd.f32 %v1297_v12, %v9626_v26  ;;  %8641 = vmatmul.mubr.msk.bf16.gmra.mrb[152].mxu0 %vm2457_vm2, %v9792_v61  ;;  %v2233_v27 = vmax.f32 %v1294_v3, 0.0 }
 0x172   : > { %v2264_v24 = vmax.f32 %v1296_v7, 0.0  ;;  %v2263_v25 = vmax.f32 %v1225_v9, 0.0  ;;  %8650 = vmatmul.mubr.msk.bf16.gmra.mrb[152].mxu1 %vm2457_vm2, %v9792_v61  ;;  %2587 = vmatprep.mubr.bf16.mxu0 %v15171_v0 }
 0x173   : > { %v9808_v28 = vpack.c.bf16 %v2262_v15, %v2230_v14  ;;  %v2265_v29 = vmax.f32 %v1298_v16, 0.0  ;;  %2708 = vmatprep.mubr.bf16.mxu1 %v15171_v0 }
 0x174   : > { %v9811_v30 = vpack.c.bf16 %v2264_v24, %v2232_v19  ;;  %v1334_v31 = vpop.f32.mrb[48].mxu0  ;;  %v9813_v32 = vpack.c.bf16 %v2263_v25, %v2231_v20 }
 0x175   : > { %v1335_v33 = vadd.f32 %v1334_v31, %v9564_v56  ;;  %v1407_v43 = vpop.f32.mrb[48].mxu1  ;;  %v1336_v54 = vpop.f32.mrb[49].mxu0  ;;  %v9821_v39 = vpack.c.bf16 %v2265_v29, %v2233_v27  ;;  %v9846_v27 = vld [vmem:[%s15163_s2 + $0x40] ss:$0 sps:$4 sm:$0x33]  }
 0x176   : > { %v1408_v40 = vadd.f32 %v1407_v43, %v9564_v56  ;;  %v1337_v41 = vadd.f32 %v1336_v54, %v9564_v56  ;;  %v1409_v42 = vpop.f32.mrb[49].mxu1  ;;  %v1338_v44 = vpop.f32.mrb[50].mxu0 }
 0x177   : > { %v1410_v47 = vadd.f32 %v1409_v42, %v9564_v56  ;;  %v1339_v49 = vadd.f32 %v1338_v44, %v9574_v58  ;;  %v1411_v53 = vpop.f32.mrb[50].mxu1  ;;  %v1340_v59 = vpop.f32.mrb[51].mxu0  ;;  %v2042_v23 = vmax.f32 %v1335_v33, 0.0 }
 0x178   : > { %v1412_v60 = vadd.f32 %v1411_v53, %v9574_v58  ;;  %v1341_v63 = vadd.f32 %v1340_v59, %v9574_v58  ;;  %v1413_v1 = vpop.f32.mrb[51].mxu1  ;;  %v2044_v4 = vmax.f32 %v1408_v40, 0.0  ;;  %v2043_v5 = vmax.f32 %v1337_v41, 0.0 }
 0x179   : > { %v2074_v2 = vmax.f32 %v1339_v49, 0.0  ;;  %v1414_v3 = vadd.f32 %v1413_v1, %v9574_v58  ;;  %8642 = vmatmul.mubr.msk.bf16.gmra.mrb[156].mxu0 %vm2457_vm2, %v9819_v37  ;;  %v2045_v9 = vmax.f32 %v1410_v47, 0.0 }
 0x17a   : > { %v2076_v6 = vmax.f32 %v1412_v60, 0.0  ;;  %v2075_v7 = vmax.f32 %v1341_v63, 0.0  ;;  %8651 = vmatmul.mubr.msk.bf16.gmra.mrb[156].mxu1 %vm2457_vm2, %v9819_v37  ;;  %2597 = vmatprep.mubr.bf16.mxu0 %v15171_v0 }
 0x17b   : > { %v9835_v12 = vpack.c.bf16 %v2074_v2, %v2042_v23  ;;  %v2077_v14 = vmax.f32 %v1414_v3, 0.0  ;;  %2718 = vmatprep.mubr.bf16.mxu1 %v15171_v0 }
 0x17c   : > { %v9838_v15 = vpack.c.bf16 %v2076_v6, %v2044_v4  ;;  %v1344_v16 = vpop.f32.mrb[52].mxu0  ;;  %v9840_v19 = vpack.c.bf16 %v2075_v7, %v2043_v5 }
 0x17d   : > { %v1345_v20 = vadd.f32 %v1344_v16, %v9571_v57  ;;  %v1417_v24 = vpop.f32.mrb[52].mxu1  ;;  %v1346_v25 = vpop.f32.mrb[53].mxu0  ;;  %v9848_v29 = vpack.c.bf16 %v2077_v14, %v2045_v9 }
 0x17e   : > { %v1418_v31 = vadd.f32 %v1417_v24, %v9571_v57  ;;  %v1347_v33 = vadd.f32 %v1346_v25, %v9571_v57  ;;  %v1419_v43 = vpop.f32.mrb[53].mxu1  ;;  %v1348_v54 = vpop.f32.mrb[54].mxu0 }
 0x17f   : > { %v1420_v40 = vadd.f32 %v1419_v43, %v9571_v57  ;;  %v1349_v41 = vadd.f32 %v1348_v54, %v9590_v21  ;;  %v1421_v42 = vpop.f32.mrb[54].mxu1  ;;  %v1350_v44 = vpop.f32.mrb[55].mxu0  ;;  %v2106_v59 = vmax.f32 %v1345_v20, 0.0 }
 0x180   : > { %v1422_v47 = vadd.f32 %v1421_v42, %v9590_v21  ;;  %v1351_v49 = vadd.f32 %v1350_v44, %v9590_v21  ;;  %v1423_v53 = vpop.f32.mrb[55].mxu1  ;;  %v2108_v1 = vmax.f32 %v1418_v31, 0.0  ;;  %v2107_v23 = vmax.f32 %v1347_v33, 0.0 }
 0x181   : > { %v2138_v60 = vmax.f32 %v1349_v41, 0.0  ;;  %v1424_v63 = vadd.f32 %v1423_v53, %v9590_v21  ;;  %8643 = vmatmul.mubr.msk.bf16.gmra.mrb[160].mxu0 %vm2457_vm2, %v9846_v27  ;;  %v2109_v4 = vmax.f32 %v1420_v40, 0.0 }
 0x182   : > { %v2140_v2 = vmax.f32 %v1422_v47, 0.0  ;;  %v2139_v3 = vmax.f32 %v1351_v49, 0.0  ;;  %8652 = vmatmul.mubr.msk.bf16.gmra.mrb[160].mxu1 %vm2457_vm2, %v9846_v27  ;;  %2759 = vmatprep.mubr.bf16.mxu0 %v15171_v0 }
 0x183   : > { %v9862_v5 = vpack.c.bf16 %v2138_v60, %v2106_v59  ;;  %v2141_v6 = vmax.f32 %v1424_v63, 0.0  ;;  %2880 = vmatprep.mubr.bf16.mxu1 %v15171_v0 }
 0x184   : > { %v9865_v7 = vpack.c.bf16 %v2140_v2, %v2108_v1  ;;  %v1354_v9 = vpop.f32.mrb[56].mxu0  ;;  %v9867_v14 = vpack.c.bf16 %v2139_v3, %v2107_v23 }
 0x185   : > { %v1355_v16 = vadd.f32 %v1354_v9, %v9604_v51  ;;  %v1427_v20 = vpop.f32.mrb[56].mxu1  ;;  %v1356_v24 = vpop.f32.mrb[57].mxu0  ;;  %v9870_v25 = vpack.c.bf16 %v2141_v6, %v2109_v4 }
 0x186   : > { %v1428_v31 = vadd.f32 %v1427_v20, %v9604_v51  ;;  %v1357_v33 = vadd.f32 %v1356_v24, %v9604_v51  ;;  %v1429_v43 = vpop.f32.mrb[57].mxu1  ;;  %v1358_v54 = vpop.f32.mrb[58].mxu0 }
 0x187   : > { %v1430_v40 = vadd.f32 %v1429_v43, %v9604_v51  ;;  %v1359_v41 = vadd.f32 %v1358_v54, %v9607_v55  ;;  %v1431_v42 = vpop.f32.mrb[58].mxu1  ;;  %v1360_v44 = vpop.f32.mrb[59].mxu0  ;;  %v2170_v59 = vmax.f32 %v1355_v16, 0.0 }
 0x188   : > { %v1432_v47 = vadd.f32 %v1431_v42, %v9607_v55  ;;  %v1361_v49 = vadd.f32 %v1360_v44, %v9607_v55  ;;  %v1433_v53 = vpop.f32.mrb[59].mxu1  ;;  %v2172_v1 = vmax.f32 %v1428_v31, 0.0  ;;  %v2171_v23 = vmax.f32 %v1357_v33, 0.0 }
 0x189   : > { %v2202_v60 = vmax.f32 %v1359_v41, 0.0  ;;  %v1434_v63 = vadd.f32 %v1433_v53, %v9607_v55  ;;  %8653 = vmatmul.mubr.msk.bf16.vlgmr.msra.gmra.mrb[164].mxu0 %vm2457_vm2, %v9660_v35  ;;  %v2173_v4 = vmax.f32 %v1430_v40, 0.0 }
 0x18a   : > { %v2204_v2 = vmax.f32 %v1432_v47, 0.0  ;;  %v2203_v3 = vmax.f32 %v1361_v49, 0.0  ;;  %8662 = vmatmul.mubr.msk.bf16.vlgmr.msra.gmra.mrb[164].mxu1 %vm2457_vm2, %v9660_v35  ;;  %2970 = vmatpush1.bf16.msra.mxu0 %v9731_v34 }
 0x18b   : > { %v9884_v6 = vpack.c.bf16 %v2202_v60, %v2170_v59  ;;  %v2205_v9 = vmax.f32 %v1434_v63, 0.0  ;;  %3091 = vmatpush1.bf16.msra.mxu1 %v9734_v36  ;;  %2971 = vmatprep.subr.bf16.mxu0 %v9759_v13 }
 0x18c   : > { %v9888_v16 = vpack.c.bf16 %v2204_v2, %v2172_v1  ;;  %3092 = vmatprep.subr.bf16.mxu1 %v9767_v18  ;;  %v1364_v20 = vpop.f32.mrb[60].mxu0  ;;  %2769 = vmatprep.mubr.bf16.mxu0 %v15171_v0  ;;  %v9892_v24 = vpack.c.bf16 %v2203_v3, %v2171_v23 }
 0x18d   : > { %v1365_v35 = vadd.f32 %v1364_v20, %v9623_v22  ;;  %v1437_v34 = vpop.f32.mrb[60].mxu1  ;;  %v1366_v31 = vpop.f32.mrb[61].mxu0  ;;  %2890 = vmatprep.mubr.bf16.mxu1 %v15171_v0  ;;  %v9896_v33 = vpack.c.bf16 %v2205_v9, %v2173_v4 }
 0x18e   : > { %v1438_v36 = vadd.f32 %v1437_v34, %v9623_v22  ;;  %v1367_v13 = vadd.f32 %v1366_v31, %v9623_v22  ;;  %v1439_v43 = vpop.f32.mrb[61].mxu1  ;;  %2972 = vmatpush1.bf16.msra.mxu0 %v9754_v8  ;;  %v1368_v18 = vpop.f32.mrb[62].mxu0 }
 0x18f   : > { %v1440_v54 = vadd.f32 %v1439_v43, %v9623_v22  ;;  %3093 = vmatpush1.bf16.msra.mxu1 %v9757_v10  ;;  %v1369_v40 = vadd.f32 %v1368_v18, %v9626_v26  ;;  %v1441_v41 = vpop.f32.mrb[62].mxu1  ;;  %2973 = vmatprep.subr.bf16.mxu0 %v9786_v52  ;;  %v1370_v42 = vpop.f32.mrb[63].mxu0  ;;  %v2234_v53 = vmax.f32 %v1365_v35, 0.0 }
 0x190   : > { %v1442_v44 = vadd.f32 %v1441_v41, %v9626_v26  ;;  %3094 = vmatprep.subr.bf16.mxu1 %v9794_v62  ;;  %v1371_v47 = vadd.f32 %v1370_v42, %v9626_v26  ;;  %v1443_v49 = vpop.f32.mrb[63].mxu1  ;;  %v2236_v10 = vmax.f32 %v1438_v36, 0.0  ;;  %v2235_v60 = vmax.f32 %v1367_v13, 0.0 }
 0x191   : > { %v2266_v8 = vmax.f32 %v1369_v40, 0.0  ;;  %v1444_v59 = vadd.f32 %v1443_v49, %v9626_v26  ;;  %8654 = vmatmul.mubr.msk.bf16.gmra.mrb[168].mxu0 %vm2457_vm2, %v9679_v50  ;;  %v2237_v52 = vmax.f32 %v1440_v54, 0.0 }
 0x192   : > { %v2268_v63 = vmax.f32 %v1442_v44, 0.0  ;;  %v2267_v1 = vmax.f32 %v1371_v47, 0.0  ;;  %8663 = vmatmul.mubr.msk.bf16.gmra.mrb[168].mxu1 %vm2457_vm2, %v9679_v50  ;;  %2974 = vmatpush1.bf16.msra.mxu0 %v9781_v46 }
 0x193   : > { %v9914_v62 = vpack.c.bf16 %v2266_v8, %v2234_v53  ;;  %v2269_v23 = vmax.f32 %v1444_v59, 0.0  ;;  %3095 = vmatpush1.bf16.msra.mxu1 %v9784_v48  ;;  %2975 = vmatprep.subr.bf16.mxu0 %v9813_v32 }
 0x194   : > { %v9918_v2 = vpack.c.bf16 %v2268_v63, %v2236_v10  ;;  %3096 = vmatprep.subr.bf16.mxu1 %v9821_v39  ;;  %v1480_v3 = vpop.f32.mrb[64].mxu0  ;;  %2779 = vmatprep.mubr.bf16.mxu0 %v15171_v0  ;;  %v9922_v4 = vpack.c.bf16 %v2267_v1, %v2235_v60 }
 0x195   : > { %v1481_v50 = vadd.f32 %v1480_v3, %v9564_v56  ;;  %v1553_v46 = vpop.f32.mrb[64].mxu1  ;;  %v1482_v9 = vpop.f32.mrb[65].mxu0  ;;  %2900 = vmatprep.mubr.bf16.mxu1 %v15171_v0  ;;  %v9926_v20 = vpack.c.bf16 %v2269_v23, %v2237_v52 }
 0x196   : > { %v1554_v48 = vadd.f32 %v1553_v46, %v9564_v56  ;;  %v1483_v32 = vadd.f32 %v1482_v9, %v9564_v56  ;;  %v1555_v35 = vpop.f32.mrb[65].mxu1  ;;  %2976 = vmatpush1.bf16.msra.mxu0 %v9808_v28  ;;  %v1484_v39 = vpop.f32.mrb[66].mxu0 }
 0x197   : > { %v1556_v34 = vadd.f32 %v1555_v35, %v9564_v56  ;;  %3097 = vmatpush1.bf16.msra.mxu1 %v9811_v30  ;;  %v1485_v31 = vadd.f32 %v1484_v39, %v9574_v58  ;;  %v1557_v36 = vpop.f32.mrb[66].mxu1  ;;  %3211 = vmatprep.subr.bf16.mxu0 %v9840_v19  ;;  %v1486_v13 = vpop.f32.mrb[67].mxu0  ;;  %v2046_v40 = vmax.f32 %v1481_v50, 0.0 }
 0x198   : > { %v1558_v43 = vadd.f32 %v1557_v36, %v9574_v58  ;;  %3332 = vmatprep.subr.bf16.mxu1 %v9848_v29  ;;  %v1487_v18 = vadd.f32 %v1486_v13, %v9574_v58  ;;  %v1559_v54 = vpop.f32.mrb[67].mxu1  ;;  %v2048_v30 = vmax.f32 %v1554_v48, 0.0  ;;  %v2047_v42 = vmax.f32 %v1483_v32, 0.0 }
 0x199   : > { %v2078_v28 = vmax.f32 %v1485_v31, 0.0  ;;  %v1560_v41 = vadd.f32 %v1559_v54, %v9574_v58  ;;  %8655 = vmatmul.mubr.msk.bf16.gmra.mrb[172].mxu0 %vm2457_vm2, %v9698_v38  ;;  %v2049_v19 = vmax.f32 %v1556_v34, 0.0 }
 0x19a   : > { %v2080_v44 = vmax.f32 %v1558_v43, 0.0  ;;  %v2079_v47 = vmax.f32 %v1487_v18, 0.0  ;;  %8664 = vmatmul.mubr.msk.bf16.gmra.mrb[172].mxu1 %vm2457_vm2, %v9698_v38  ;;  %2789 = vmatprep.mubr.bf16.mxu0 %v15171_v0 }
 0x19b   : > { %v9944_v29 = vpack.c.bf16 %v2078_v28, %v2046_v40  ;;  %v2081_v49 = vmax.f32 %v1560_v41, 0.0  ;;  %2910 = vmatprep.mubr.bf16.mxu1 %v15171_v0 }
 0x19c   : > { %v9947_v53 = vpack.c.bf16 %v2080_v44, %v2048_v30  ;;  %v1490_v8 = vpop.f32.mrb[68].mxu0  ;;  %v9949_v59 = vpack.c.bf16 %v2079_v47, %v2047_v42 }
 0x19d   : > { %v1491_v10 = vadd.f32 %v1490_v8, %v9571_v57  ;;  %v1563_v60 = vpop.f32.mrb[68].mxu1  ;;  %v1492_v63 = vpop.f32.mrb[69].mxu0  ;;  %v9952_v1 = vpack.c.bf16 %v2081_v49, %v2049_v19 }
 0x19e   : > { %v1564_v38 = vadd.f32 %v1563_v60, %v9571_v57  ;;  %v1493_v52 = vadd.f32 %v1492_v63, %v9571_v57  ;;  %v1565_v23 = vpop.f32.mrb[69].mxu1  ;;  %v1494_v3 = vpop.f32.mrb[70].mxu0 }
 0x19f   : > { %v1566_v50 = vadd.f32 %v1565_v23, %v9571_v57  ;;  %v1495_v46 = vadd.f32 %v1494_v3, %v9590_v21  ;;  %v1567_v9 = vpop.f32.mrb[70].mxu1  ;;  %v1496_v48 = vpop.f32.mrb[71].mxu0  ;;  %v2110_v34 = vmax.f32 %v1491_v10, 0.0 }
 0x1a0   : > { %v1568_v32 = vadd.f32 %v1567_v9, %v9590_v21  ;;  %v1497_v35 = vadd.f32 %v1496_v48, %v9590_v21  ;;  %v1569_v39 = vpop.f32.mrb[71].mxu1  ;;  %v2112_v13 = vmax.f32 %v1564_v38, 0.0  ;;  %v2111_v43 = vmax.f32 %v1493_v52, 0.0 }
 0x1a1   : > { %v2142_v31 = vmax.f32 %v1495_v46, 0.0  ;;  %v1570_v36 = vadd.f32 %v1569_v39, %v9590_v21  ;;  %8656 = vmatmul.mubr.msk.bf16.gmra.mrb[176].mxu0 %vm2457_vm2, %v9717_v11  ;;  %v2113_v40 = vmax.f32 %v1566_v50, 0.0 }
 0x1a2   : > { %v2144_v18 = vmax.f32 %v1568_v32, 0.0  ;;  %v2143_v54 = vmax.f32 %v1497_v35, 0.0  ;;  %8665 = vmatmul.mubr.msk.bf16.gmra.mrb[176].mxu1 %vm2457_vm2, %v9717_v11  ;;  %2799 = vmatprep.mubr.bf16.mxu0 %v15171_v0 }
 0x1a3   : > { %v9966_v28 = vpack.c.bf16 %v2142_v31, %v2110_v34  ;;  %v2145_v41 = vmax.f32 %v1570_v36, 0.0  ;;  %2920 = vmatprep.mubr.bf16.mxu1 %v15171_v0 }
 0x1a4   : > { %v9969_v30 = vpack.c.bf16 %v2144_v18, %v2112_v13  ;;  %v1500_v42 = vpop.f32.mrb[72].mxu0  ;;  %v9971_v44 = vpack.c.bf16 %v2143_v54, %v2111_v43 }
 0x1a5   : > { %v1501_v47 = vadd.f32 %v1500_v42, %v9604_v51  ;;  %v1573_v19 = vpop.f32.mrb[72].mxu1  ;;  %v1502_v49 = vpop.f32.mrb[73].mxu0  ;;  %v9974_v8 = vpack.c.bf16 %v2145_v41, %v2113_v40 }
 0x1a6   : > { %v1574_v11 = vadd.f32 %v1573_v19, %v9604_v51  ;;  %v1503_v10 = vadd.f32 %v1502_v49, %v9604_v51  ;;  %v1575_v60 = vpop.f32.mrb[73].mxu1  ;;  %v1504_v63 = vpop.f32.mrb[74].mxu0 }
 0x1a7   : > { %v1576_v38 = vadd.f32 %v1575_v60, %v9604_v51  ;;  %v1505_v52 = vadd.f32 %v1504_v63, %v9607_v55  ;;  %v1577_v23 = vpop.f32.mrb[74].mxu1  ;;  %v1506_v3 = vpop.f32.mrb[75].mxu0  ;;  %v2174_v48 = vmax.f32 %v1501_v47, 0.0 }
 0x1a8   : > { %v1578_v50 = vadd.f32 %v1577_v23, %v9607_v55  ;;  %v1507_v46 = vadd.f32 %v1506_v3, %v9607_v55  ;;  %v1579_v9 = vpop.f32.mrb[75].mxu1  ;;  %v2176_v39 = vmax.f32 %v1574_v11, 0.0  ;;  %v2175_v34 = vmax.f32 %v1503_v10, 0.0 }
 0x1a9   : > { %v2206_v32 = vmax.f32 %v1505_v52, 0.0  ;;  %v1580_v35 = vadd.f32 %v1579_v9, %v9607_v55  ;;  %8657 = vmatmul.mubr.msk.bf16.gmra.mrb[180].mxu0 %vm2457_vm2, %v9740_v45  ;;  %v2177_v13 = vmax.f32 %v1576_v38, 0.0 }
 0x1aa   : > { %v2208_v31 = vmax.f32 %v1578_v50, 0.0  ;;  %v2207_v36 = vmax.f32 %v1507_v46, 0.0  ;;  %8666 = vmatmul.mubr.msk.bf16.gmra.mrb[180].mxu1 %vm2457_vm2, %v9740_v45  ;;  %2809 = vmatprep.mubr.bf16.mxu0 %v15171_v0 }
 0x1ab   : > { %v9988_v43 = vpack.c.bf16 %v2206_v32, %v2174_v48  ;;  %v2209_v18 = vmax.f32 %v1580_v35, 0.0  ;;  %2930 = vmatprep.mubr.bf16.mxu1 %v15171_v0 }
 0x1ac   : > { %v9991_v54 = vpack.c.bf16 %v2208_v31, %v2176_v39  ;;  %v1510_v40 = vpop.f32.mrb[76].mxu0  ;;  %v9993_v41 = vpack.c.bf16 %v2207_v36, %v2175_v34 }
 0x1ad   : > { %v1511_v42 = vadd.f32 %v1510_v40, %v9623_v22  ;;  %v1583_v47 = vpop.f32.mrb[76].mxu1  ;;  %v1512_v19 = vpop.f32.mrb[77].mxu0  ;;  %v9996_v49 = vpack.c.bf16 %v2209_v18, %v2177_v13 }
 0x1ae   : > { %v1584_v45 = vadd.f32 %v1583_v47, %v9623_v22  ;;  %v1513_v11 = vadd.f32 %v1512_v19, %v9623_v22  ;;  %v1585_v10 = vpop.f32.mrb[77].mxu1  ;;  %v1514_v60 = vpop.f32.mrb[78].mxu0 }
 0x1af   : > { %v1586_v63 = vadd.f32 %v1585_v10, %v9623_v22  ;;  %v1515_v38 = vadd.f32 %v1514_v60, %v9626_v26  ;;  %v1587_v52 = vpop.f32.mrb[78].mxu1  ;;  %v1516_v23 = vpop.f32.mrb[79].mxu0  ;;  %v2238_v9 = vmax.f32 %v1511_v42, 0.0 }
 0x1b0   : > { %v1588_v3 = vadd.f32 %v1587_v52, %v9626_v26  ;;  %v1517_v50 = vadd.f32 %v1516_v23, %v9626_v26  ;;  %v1589_v46 = vpop.f32.mrb[79].mxu1  ;;  %v2240_v35 = vmax.f32 %v1584_v45, 0.0  ;;  %v2239_v39 = vmax.f32 %v1513_v11, 0.0 }
 0x1b1   : > { %v2270_v48 = vmax.f32 %v1515_v38, 0.0  ;;  %v1590_v32 = vadd.f32 %v1589_v46, %v9626_v26  ;;  %8658 = vmatmul.mubr.msk.bf16.gmra.mrb[184].mxu0 %vm2457_vm2, %v9765_v17  ;;  %v2241_v36 = vmax.f32 %v1586_v63, 0.0 }
 0x1b2   : > { %v2272_v34 = vmax.f32 %v1588_v3, 0.0  ;;  %v2271_v31 = vmax.f32 %v1517_v50, 0.0  ;;  %8667 = vmatmul.mubr.msk.bf16.gmra.mrb[184].mxu1 %vm2457_vm2, %v9765_v17  ;;  %2819 = vmatprep.mubr.bf16.mxu0 %v15171_v0 }
 0x1b3   : > { %v10010_v13 = vpack.c.bf16 %v2270_v48, %v2238_v9  ;;  %v2273_v18 = vmax.f32 %v1590_v32, 0.0  ;;  %2940 = vmatprep.mubr.bf16.mxu1 %v15171_v0 }
 0x1b4   : > { %v10013_v40 = vpack.c.bf16 %v2272_v34, %v2240_v35  ;;  %v1626_v42 = vpop.f32.mrb[80].mxu0  ;;  %v10015_v47 = vpack.c.bf16 %v2271_v31, %v2239_v39 }
 0x1b5   : > { %v1627_v19 = vadd.f32 %v1626_v42, %v9564_v56  ;;  %v1699_v45 = vpop.f32.mrb[80].mxu1  ;;  %v1628_v11 = vpop.f32.mrb[81].mxu0  ;;  %v10018_v10 = vpack.c.bf16 %v2273_v18, %v2241_v36 }
 0x1b6   : > { %v1700_v17 = vadd.f32 %v1699_v45, %v9564_v56  ;;  %v1629_v60 = vadd.f32 %v1628_v11, %v9564_v56  ;;  %v1701_v63 = vpop.f32.mrb[81].mxu1  ;;  %v1630_v38 = vpop.f32.mrb[82].mxu0 }
 0x1b7   : > { %v1702_v52 = vadd.f32 %v1701_v63, %v9564_v56  ;;  %v1631_v23 = vadd.f32 %v1630_v38, %v9574_v58  ;;  %v1703_v3 = vpop.f32.mrb[82].mxu1  ;;  %v1632_v50 = vpop.f32.mrb[83].mxu0  ;;  %v2050_v32 = vmax.f32 %v1627_v19, 0.0 }
 0x1b8   : > { %v1704_v46 = vadd.f32 %v1703_v3, %v9574_v58  ;;  %v1633_v9 = vadd.f32 %v1632_v50, %v9574_v58  ;;  %v1705_v48 = vpop.f32.mrb[83].mxu1  ;;  %v2052_v34 = vmax.f32 %v1700_v17, 0.0  ;;  %v2051_v31 = vmax.f32 %v1629_v60, 0.0 }
 0x1b9   : > { %v2082_v35 = vmax.f32 %v1631_v23, 0.0  ;;  %v1706_v39 = vadd.f32 %v1705_v48, %v9574_v58  ;;  %8659 = vmatmul.mubr.msk.bf16.gmra.mrb[188].mxu0 %vm2457_vm2, %v9792_v61  ;;  %v2053_v42 = vmax.f32 %v1702_v52, 0.0 }
 0x1ba   : > { %v2084_v36 = vmax.f32 %v1704_v46, 0.0  ;;  %v2083_v18 = vmax.f32 %v1633_v9, 0.0  ;;  %8668 = vmatmul.mubr.msk.bf16.gmra.mrb[188].mxu1 %vm2457_vm2, %v9792_v61  ;;  %2829 = vmatprep.mubr.bf16.mxu0 %v15171_v0 }
 0x1bb   : > { %v10032_v45 = vpack.c.bf16 %v2082_v35, %v2050_v32  ;;  %v2085_v11 = vmax.f32 %v1706_v39, 0.0  ;;  %2950 = vmatprep.mubr.bf16.mxu1 %v15171_v0 }
 0x1bc   : > { %v10035_v19 = vpack.c.bf16 %v2084_v36, %v2052_v34  ;;  %v1636_v63 = vpop.f32.mrb[84].mxu0  ;;  %v10037_v38 = vpack.c.bf16 %v2083_v18, %v2051_v31 }
 0x1bd   : > { %v1637_v17 = vadd.f32 %v1636_v63, %v9571_v57  ;;  %v1709_v60 = vpop.f32.mrb[84].mxu1  ;;  %v1638_v23 = vpop.f32.mrb[85].mxu0  ;;  %v10040_v3 = vpack.c.bf16 %v2085_v11, %v2053_v42 }
 0x1be   : > { %v1710_v61 = vadd.f32 %v1709_v60, %v9571_v57  ;;  %v1639_v52 = vadd.f32 %v1638_v23, %v9571_v57  ;;  %v1711_v50 = vpop.f32.mrb[85].mxu1  ;;  %v1640_v46 = vpop.f32.mrb[86].mxu0 }
 0x1bf   : > { %v1712_v9 = vadd.f32 %v1711_v50, %v9571_v57  ;;  %v1641_v48 = vadd.f32 %v1640_v46, %v9590_v21  ;;  %v1713_v32 = vpop.f32.mrb[86].mxu1  ;;  %v1642_v35 = vpop.f32.mrb[87].mxu0  ;;  %v2114_v36 = vmax.f32 %v1637_v17, 0.0 }
 0x1c0   : > { %v1714_v39 = vadd.f32 %v1713_v32, %v9590_v21  ;;  %v1643_v34 = vadd.f32 %v1642_v35, %v9590_v21  ;;  %v1715_v31 = vpop.f32.mrb[87].mxu1  ;;  %v2116_v11 = vmax.f32 %v1710_v61, 0.0  ;;  %v2115_v63 = vmax.f32 %v1639_v52, 0.0 }
 0x1c1   : > { %v2146_v18 = vmax.f32 %v1641_v48, 0.0  ;;  %v1716_v42 = vadd.f32 %v1715_v31, %v9590_v21  ;;  %8660 = vmatmul.mubr.msk.bf16.gmra.mrb[192].mxu0 %vm2457_vm2, %v9819_v37  ;;  %v2117_v50 = vmax.f32 %v1712_v9, 0.0 }
 0x1c2   : > { %v2148_v60 = vmax.f32 %v1714_v39, 0.0  ;;  %v2147_v23 = vmax.f32 %v1643_v34, 0.0  ;;  %8669 = vmatmul.mubr.msk.bf16.gmra.mrb[192].mxu1 %vm2457_vm2, %v9819_v37  ;;  %2839 = vmatprep.mubr.bf16.mxu0 %v15171_v0 }
 0x1c3   : > { %v10054_v46 = vpack.c.bf16 %v2146_v18, %v2114_v36  ;;  %v2149_v32 = vmax.f32 %v1716_v42, 0.0  ;;  %2960 = vmatprep.mubr.bf16.mxu1 %v15171_v0 }
 0x1c4   : > { %v10057_v17 = vpack.c.bf16 %v2148_v60, %v2116_v11  ;;  %v1646_v48 = vpop.f32.mrb[88].mxu0  ;;  %v10059_v35 = vpack.c.bf16 %v2147_v23, %v2115_v63 }
 0x1c5   : > { %15455 = vst [vmem:[#allocation5_spill] sm:$0xff] %v10054_v46  ;;  %v1647_v61 = vadd.f32 %v1646_v48, %v9604_v51  ;;  %v1719_v52 = vpop.f32.mrb[88].mxu1  ;;  %v1648_v39 = vpop.f32.mrb[89].mxu0  ;;  %v10062_v34 = vpack.c.bf16 %v2149_v32, %v2117_v50 }
 0x1c6   : > { %15456 = vst [vmem:[#allocation6_spill] sm:$0xff] %v10057_v17  ;;  %v1720_v37 = vadd.f32 %v1719_v52, %v9604_v51  ;;  %v1649_v9 = vadd.f32 %v1648_v39, %v9604_v51  ;;  %v1721_v31 = vpop.f32.mrb[89].mxu1  ;;  %v1650_v36 = vpop.f32.mrb[90].mxu0 }
 0x1c7   : > { %v1722_v18 = vadd.f32 %v1721_v31, %v9604_v51  ;;  %v1651_v42 = vadd.f32 %v1650_v36, %v9607_v55  ;;  %v1723_v11 = vpop.f32.mrb[90].mxu1  ;;  %v1652_v60 = vpop.f32.mrb[91].mxu0  ;;  %v2178_v0 = vmax.f32 %v1647_v61, 0.0  ;;  %v15457_v36 = vmov 0  }
 0x1c8   : > { %v1724_v63 = vadd.f32 %v1723_v11, %v9607_v55  ;;  %v1653_v23 = vadd.f32 %v1652_v60, %v9607_v55  ;;  %v1725_v48 = vpop.f32.mrb[91].mxu1  ;;  %v2180_v52 = vmax.f32 %v1720_v37, 0.0  ;;  %v2179_v39 = vmax.f32 %v1649_v9, 0.0 }
 0x1c9   : > { %v2210_v50 = vmax.f32 %v1651_v42, 0.0  ;;  %v1726_v32 = vadd.f32 %v1725_v48, %v9607_v55  ;;  %8661 = vmatmul.mubr.msk.bf16.gmra.mrb[196].mxu0 %vm2457_vm2, %v9846_v27  ;;  %v2181_v11 = vmax.f32 %v1722_v18, 0.0 }
 0x1ca   : > { %v2212_v17 = vmax.f32 %v1724_v63, 0.0  ;;  %v2211_v31 = vmax.f32 %v1653_v23, 0.0  ;;  %8670 = vmatmul.mubr.msk.bf16.gmra.mrb[196].mxu1 %vm2457_vm2, %v9846_v27  ;;  %3001 = vmatprep.mubr.bf16.mxu0 %v15457_v36 }
 0x1cb   : > { %v10076_v46 = vpack.c.bf16 %v2210_v50, %v2178_v0  ;;  %v2213_v60 = vmax.f32 %v1726_v32, 0.0  ;;  %3122 = vmatprep.mubr.bf16.mxu1 %v15457_v36 }
 0x1cc   : > { %v10079_v61 = vpack.c.bf16 %v2212_v17, %v2180_v52  ;;  %v1656_v42 = vpop.f32.mrb[92].mxu0  ;;  %v10081_v48 = vpack.c.bf16 %v2211_v31, %v2179_v39 }
 0x1cd   : > { %15458 = vst [vmem:[#allocation7_spill] sm:$0xff] %v10076_v46  ;;  %v1657_v37 = vadd.f32 %v1656_v42, %v9623_v22  ;;  %v1729_v9 = vpop.f32.mrb[92].mxu1  ;;  %v1658_v63 = vpop.f32.mrb[93].mxu0  ;;  %v10084_v23 = vpack.c.bf16 %v2213_v60, %v2181_v11 }
 0x1ce   : > { %15459 = vst [vmem:[#allocation8_spill] sm:$0xff] %v10079_v61  ;;  %v1730_v27 = vadd.f32 %v1729_v9, %v9623_v22  ;;  %v1659_v18 = vadd.f32 %v1658_v63, %v9623_v22  ;;  %v1731_v0 = vpop.f32.mrb[93].mxu1  ;;  %v1660_v50 = vpop.f32.mrb[94].mxu0  ;;  %v10096_v9 = vld [vmem:[%s15163_s2] sm:$0xff]  }
 0x1cf   : > { %15460 = vst [vmem:[#allocation9_spill] sm:$0xff] %v10084_v23  ;;  %v1732_v32 = vadd.f32 %v1731_v0, %v9623_v22  ;;  %v1661_v17 = vadd.f32 %v1660_v50, %v9626_v26  ;;  %v1733_v52 = vpop.f32.mrb[94].mxu1  ;;  %v1662_v61 = vpop.f32.mrb[95].mxu0  ;;  %v2242_v46 = vmax.f32 %v1657_v37, 0.0 }
 0x1d0   : > { %v1734_v39 = vadd.f32 %v1733_v52, %v9626_v26  ;;  %v1663_v31 = vadd.f32 %v1662_v61, %v9626_v26  ;;  %v1735_v42 = vpop.f32.mrb[95].mxu1  ;;  %v2244_v63 = vmax.f32 %v1730_v27, 0.0  ;;  %v2243_v0 = vmax.f32 %v1659_v18, 0.0 }
 0x1d1   : > { %v2274_v11 = vmax.f32 %v1661_v17, 0.0  ;;  %v1736_v60 = vadd.f32 %v1735_v42, %v9626_v26  ;;  %8671 = vmatmul.mubr.msk.bf16.vlgmr.msra.gmra.mrb[200].mxu0 %vm2457_vm2, %v10096_v9  ;;  %v2245_v61 = vmax.f32 %v1732_v32, 0.0 }
 0x1d2   : > { %v2276_v50 = vmax.f32 %v1734_v39, 0.0  ;;  %v2275_v23 = vmax.f32 %v1663_v31, 0.0  ;;  %8680 = vmatmul.mubr.msk.bf16.vlgmr.msra.gmra.mrb[200].mxu1 %vm2457_vm2, %v10096_v9  ;;  %3212 = vmatpush1.bf16.msra.mxu0 %v9835_v12 }
 0x1d3   : > { %v10103_v37 = vpack.c.bf16 %v2274_v11, %v2242_v46  ;;  %v2277_v17 = vmax.f32 %v1736_v60, 0.0  ;;  %3333 = vmatpush1.bf16.msra.mxu1 %v9838_v15  ;;  %3213 = vmatprep.subr.bf16.mxu0 %v9867_v14 }
 0x1d4   : > { %v10107_v52 = vpack.c.bf16 %v2276_v50, %v2244_v63  ;;  %3334 = vmatprep.subr.bf16.mxu1 %v9870_v25  ;;  %v1772_v27 = vpop.f32.mrb[96].mxu0  ;;  %3011 = vmatprep.mubr.bf16.mxu0 %v15457_v36  ;;  %v10111_v18 = vpack.c.bf16 %v2275_v23, %v2243_v0 }
 0x1d5   : > { %v1773_v39 = vadd.f32 %v1772_v27, %v9564_v56  ;;  %v1845_v12 = vpop.f32.mrb[96].mxu1  ;;  %v1774_v32 = vpop.f32.mrb[97].mxu0  ;;  %3132 = vmatprep.mubr.bf16.mxu1 %v15457_v36  ;;  %v10115_v46 = vpack.c.bf16 %v2277_v17, %v2245_v61 }
 0x1d6   : > { %v1846_v15 = vadd.f32 %v1845_v12, %v9564_v56  ;;  %v1775_v14 = vadd.f32 %v1774_v32, %v9564_v56  ;;  %v1847_v31 = vpop.f32.mrb[97].mxu1  ;;  %3214 = vmatpush1.bf16.msra.mxu0 %v9862_v5  ;;  %v1776_v25 = vpop.f32.mrb[98].mxu0 }
 0x1d7   : > { %v1848_v42 = vadd.f32 %v1847_v31, %v9564_v56  ;;  %3335 = vmatpush1.bf16.msra.mxu1 %v9865_v7  ;;  %v1777_v23 = vadd.f32 %v1776_v25, %v9574_v58  ;;  %v1849_v11 = vpop.f32.mrb[98].mxu1  ;;  %3215 = vmatprep.subr.bf16.mxu0 %v9892_v24  ;;  %v1778_v60 = vpop.f32.mrb[99].mxu0  ;;  %v2054_v61 = vmax.f32 %v1773_v39, 0.0  ;;  %v10131_v7 = vld [vmem:[%s15163_s2 + $0x8] sm:$0xff]  }
 0x1d8   : > { %v1850_v63 = vadd.f32 %v1849_v11, %v9574_v58  ;;  %3336 = vmatprep.subr.bf16.mxu1 %v9896_v33  ;;  %v1779_v0 = vadd.f32 %v1778_v60, %v9574_v58  ;;  %v1851_v50 = vpop.f32.mrb[99].mxu1  ;;  %v2056_v24 = vmax.f32 %v1846_v15, 0.0  ;;  %v2055_v27 = vmax.f32 %v1775_v14, 0.0 }
 0x1d9   : > { %v2086_v5 = vmax.f32 %v1777_v23, 0.0  ;;  %v1852_v17 = vadd.f32 %v1851_v50, %v9574_v58  ;;  %8672 = vmatmul.mubr.msk.bf16.gmra.mrb[204].mxu0 %vm2457_vm2, %v10131_v7  ;;  %v2057_v33 = vmax.f32 %v1848_v42, 0.0 }
 0x1da   : > { %v2088_v12 = vmax.f32 %v1850_v63, 0.0  ;;  %v2087_v32 = vmax.f32 %v1779_v0, 0.0  ;;  %8681 = vmatmul.mubr.msk.bf16.gmra.mrb[204].mxu1 %vm2457_vm2, %v10131_v7  ;;  %3216 = vmatpush1.bf16.msra.mxu0 %v9884_v6 }
 0x1db   : > { %v10138_v39 = vpack.c.bf16 %v2086_v5, %v2054_v61  ;;  %v2089_v31 = vmax.f32 %v1852_v17, 0.0  ;;  %3337 = vmatpush1.bf16.msra.mxu1 %v9888_v16  ;;  %3217 = vmatprep.subr.bf16.mxu0 %v9922_v4 }
 0x1dc   : > { %v10142_v25 = vpack.c.bf16 %v2088_v12, %v2056_v24  ;;  %3338 = vmatprep.subr.bf16.mxu1 %v9926_v20  ;;  %v1782_v15 = vpop.f32.mrb[100].mxu0  ;;  %3021 = vmatprep.mubr.bf16.mxu0 %v15457_v36  ;;  %v10146_v14 = vpack.c.bf16 %v2087_v32, %v2055_v27 }
 0x1dd   : > { %v1783_v23 = vadd.f32 %v1782_v15, %v9571_v57  ;;  %v1855_v6 = vpop.f32.mrb[100].mxu1  ;;  %v1784_v42 = vpop.f32.mrb[101].mxu0  ;;  %3142 = vmatprep.mubr.bf16.mxu1 %v15457_v36  ;;  %v10150_v11 = vpack.c.bf16 %v2089_v31, %v2057_v33 }
 0x1de   : > { %v1856_v16 = vadd.f32 %v1855_v6, %v9571_v57  ;;  %v1785_v4 = vadd.f32 %v1784_v42, %v9571_v57  ;;  %v1857_v60 = vpop.f32.mrb[101].mxu1  ;;  %3218 = vmatpush1.bf16.msra.mxu0 %v9914_v62  ;;  %v1786_v20 = vpop.f32.mrb[102].mxu0 }
 0x1df   : > { %v1858_v63 = vadd.f32 %v1857_v60, %v9571_v57  ;;  %3339 = vmatpush1.bf16.msra.mxu1 %v9918_v2  ;;  %v1787_v0 = vadd.f32 %v1786_v20, %v9590_v21  ;;  %v1859_v50 = vpop.f32.mrb[102].mxu1  ;;  %3453 = vmatprep.subr.bf16.mxu0 %v9949_v59  ;;  %v1788_v61 = vpop.f32.mrb[103].mxu0  ;;  %v2118_v27 = vmax.f32 %v1783_v23, 0.0  ;;  %v10166_v2 = vld [vmem:[%s15163_s2 + $0x10] sm:$0xff]  }
 0x1e0   : > { %v1860_v5 = vadd.f32 %v1859_v50, %v9590_v21  ;;  %3574 = vmatprep.subr.bf16.mxu1 %v9952_v1  ;;  %v1789_v17 = vadd.f32 %v1788_v61, %v9590_v21  ;;  %v1861_v24 = vpop.f32.mrb[103].mxu1  ;;  %v2120_v59 = vmax.f32 %v1856_v16, 0.0  ;;  %v2119_v32 = vmax.f32 %v1785_v4, 0.0 }
 0x1e1   : > { %v2150_v62 = vmax.f32 %v1787_v0, 0.0  ;;  %v1862_v12 = vadd.f32 %v1861_v24, %v9590_v21  ;;  %8673 = vmatmul.mubr.msk.bf16.gmra.mrb[208].mxu0 %vm2457_vm2, %v10166_v2  ;;  %v2121_v1 = vmax.f32 %v1858_v63, 0.0 }
 0x1e2   : > { %v2152_v33 = vmax.f32 %v1860_v5, 0.0  ;;  %v2151_v31 = vmax.f32 %v1789_v17, 0.0  ;;  %8682 = vmatmul.mubr.msk.bf16.gmra.mrb[208].mxu1 %vm2457_vm2, %v10166_v2  ;;  %3031 = vmatprep.mubr.bf16.mxu0 %v15457_v36 }
 0x1e3   : > { %v10173_v15 = vpack.c.bf16 %v2150_v62, %v2118_v27  ;;  %v2153_v23 = vmax.f32 %v1862_v12, 0.0  ;;  %3152 = vmatprep.mubr.bf16.mxu1 %v15457_v36 }
 0x1e4   : > { %v10176_v6 = vpack.c.bf16 %v2152_v33, %v2120_v59  ;;  %v1792_v42 = vpop.f32.mrb[104].mxu0  ;;  %v10178_v60 = vpack.c.bf16 %v2151_v31, %v2119_v32 }
 0x1e5   : > { %15461 = vst [vmem:[#allocation10_spill] sm:$0xff] %v10173_v15  ;;  %v1793_v16 = vadd.f32 %v1792_v42, %v9604_v51  ;;  %v1865_v4 = vpop.f32.mrb[104].mxu1  ;;  %v1794_v20 = vpop.f32.mrb[105].mxu0  ;;  %v10181_v0 = vpack.c.bf16 %v2153_v23, %v2121_v1  ;;  %v10193_v23 = vld [vmem:[%s15163_s2 + $0x18] sm:$0xff]  }
 0x1e6   : > { %15462 = vst [vmem:[#allocation11_spill] sm:$0xff] %v10176_v6  ;;  %v1866_v50 = vadd.f32 %v1865_v4, %v9604_v51  ;;  %v1795_v63 = vadd.f32 %v1794_v20, %v9604_v51  ;;  %v1867_v61 = vpop.f32.mrb[105].mxu1  ;;  %v1796_v5 = vpop.f32.mrb[106].mxu0 }
 0x1e7   : > { %v1868_v17 = vadd.f32 %v1867_v61, %v9604_v51  ;;  %v1797_v24 = vadd.f32 %v1796_v5, %v9607_v55  ;;  %v1869_v27 = vpop.f32.mrb[106].mxu1  ;;  %v1798_v62 = vpop.f32.mrb[107].mxu0  ;;  %v2182_v33 = vmax.f32 %v1793_v16, 0.0 }
 0x1e8   : > { %v1870_v12 = vadd.f32 %v1869_v27, %v9607_v55  ;;  %v1799_v59 = vadd.f32 %v1798_v62, %v9607_v55  ;;  %v1871_v32 = vpop.f32.mrb[107].mxu1  ;;  %v2184_v42 = vmax.f32 %v1866_v50, 0.0  ;;  %v2183_v4 = vmax.f32 %v1795_v63, 0.0 }
 0x1e9   : > { %v2214_v31 = vmax.f32 %v1797_v24, 0.0  ;;  %v1872_v1 = vadd.f32 %v1871_v32, %v9607_v55  ;;  %8674 = vmatmul.mubr.msk.bf16.gmra.mrb[212].mxu0 %vm2457_vm2, %v10193_v23  ;;  %v2185_v16 = vmax.f32 %v1868_v17, 0.0 }
 0x1ea   : > { %v2216_v20 = vmax.f32 %v1870_v12, 0.0  ;;  %v2215_v61 = vmax.f32 %v1799_v59, 0.0  ;;  %8683 = vmatmul.mubr.msk.bf16.gmra.mrb[212].mxu1 %vm2457_vm2, %v10193_v23  ;;  %3041 = vmatprep.mubr.bf16.mxu0 %v15457_v36 }
 0x1eb   : > { %v10200_v5 = vpack.c.bf16 %v2214_v31, %v2182_v33  ;;  %v2217_v24 = vmax.f32 %v1872_v1, 0.0  ;;  %3162 = vmatprep.mubr.bf16.mxu1 %v15457_v36 }
 0x1ec   : > { %v10203_v27 = vpack.c.bf16 %v2216_v20, %v2184_v42  ;;  %v1802_v62 = vpop.f32.mrb[108].mxu0  ;;  %v10205_v32 = vpack.c.bf16 %v2215_v61, %v2183_v4 }
 0x1ed   : > { %15463 = vst [vmem:[#allocation12_spill] sm:$0xff] %v10200_v5  ;;  %v1803_v50 = vadd.f32 %v1802_v62, %v9623_v22  ;;  %v1875_v63 = vpop.f32.mrb[108].mxu1  ;;  %v1804_v12 = vpop.f32.mrb[109].mxu0  ;;  %v10208_v59 = vpack.c.bf16 %v2217_v24, %v2185_v16 }
 0x1ee   : > { %15464 = vst [vmem:[#allocation13_spill] sm:$0xff] %v10203_v27  ;;  %15465 = vst [vmem:[#allocation14_spill] sm:$0xff] %v10205_v32  ;;  %v1876_v6 = vadd.f32 %v1875_v63, %v9623_v22  ;;  %v1805_v17 = vadd.f32 %v1804_v12, %v9623_v22  ;;  %v1877_v33 = vpop.f32.mrb[109].mxu1  ;;  %v1806_v31 = vpop.f32.mrb[110].mxu0  ;;  %v10220_v63 = vld [vmem:[%s15163_s2 + $0x20] sm:$0xff]  }
 0x1ef   : > { %15466 = vst [vmem:[#allocation15_spill] sm:$0xff] %v10208_v59  ;;  %v1878_v1 = vadd.f32 %v1877_v33, %v9623_v22  ;;  %v1807_v42 = vadd.f32 %v1806_v31, %v9626_v26  ;;  %v1879_v20 = vpop.f32.mrb[110].mxu1  ;;  %v1808_v27 = vpop.f32.mrb[111].mxu0  ;;  %v2246_v5 = vmax.f32 %v1803_v50, 0.0 }
 0x1f0   : > { %v1880_v4 = vadd.f32 %v1879_v20, %v9626_v26  ;;  %v1809_v61 = vadd.f32 %v1808_v27, %v9626_v26  ;;  %v1881_v62 = vpop.f32.mrb[111].mxu1  ;;  %v2248_v12 = vmax.f32 %v1876_v6, 0.0  ;;  %v2247_v33 = vmax.f32 %v1805_v17, 0.0 }
 0x1f1   : > { %v2278_v16 = vmax.f32 %v1807_v42, 0.0  ;;  %v1882_v24 = vadd.f32 %v1881_v62, %v9626_v26  ;;  %8675 = vmatmul.mubr.msk.bf16.gmra.mrb[216].mxu0 %vm2457_vm2, %v10220_v63  ;;  %v2249_v27 = vmax.f32 %v1878_v1, 0.0 }
 0x1f2   : > { %v2280_v31 = vmax.f32 %v1880_v4, 0.0  ;;  %v2279_v59 = vmax.f32 %v1809_v61, 0.0  ;;  %8684 = vmatmul.mubr.msk.bf16.gmra.mrb[216].mxu1 %vm2457_vm2, %v10220_v63  ;;  %3051 = vmatprep.mubr.bf16.mxu0 %v15457_v36 }
 0x1f3   : > { %v10227_v50 = vpack.c.bf16 %v2278_v16, %v2246_v5  ;;  %v2281_v42 = vmax.f32 %v1882_v24, 0.0  ;;  %3172 = vmatprep.mubr.bf16.mxu1 %v15457_v36 }
 0x1f4   : > { %v10230_v20 = vpack.c.bf16 %v2280_v31, %v2248_v12  ;;  %v1918_v62 = vpop.f32.mrb[112].mxu0  ;;  %v10232_v32 = vpack.c.bf16 %v2279_v59, %v2247_v33 }
 0x1f5   : > { %15467 = vst [vmem:[#allocation16_spill] sm:$0xff] %v10227_v50  ;;  %v1919_v6 = vadd.f32 %v1918_v62, %v9564_v56  ;;  %v1991_v17 = vpop.f32.mrb[112].mxu1  ;;  %v1920_v4 = vpop.f32.mrb[113].mxu0  ;;  %v10235_v61 = vpack.c.bf16 %v2281_v42, %v2249_v27 }
 0x1f6   : > { %15468 = vst [vmem:[#allocation17_spill] sm:$0xff] %v10230_v20  ;;  %v1992_v15 = vadd.f32 %v1991_v17, %v9564_v56  ;;  %v1921_v1 = vadd.f32 %v1920_v4, %v9564_v56  ;;  %v1993_v5 = vpop.f32.mrb[113].mxu1  ;;  %v1922_v16 = vpop.f32.mrb[114].mxu0  ;;  %v10247_v17 = vld [vmem:[%s15163_s2 + $0x28] sm:$0xff]  }
 0x1f7   : > { %15469 = vst [vmem:[#allocation18_spill] sm:$0xff] %v10235_v61  ;;  %v1994_v24 = vadd.f32 %v1993_v5, %v9564_v56  ;;  %v1923_v12 = vadd.f32 %v1922_v16, %v9574_v58  ;;  %v1995_v31 = vpop.f32.mrb[114].mxu1  ;;  %v1924_v20 = vpop.f32.mrb[115].mxu0  ;;  %v2058_v50 = vmax.f32 %v1919_v6, 0.0 }
 0x1f8   : > { %v1996_v59 = vadd.f32 %v1995_v31, %v9574_v58  ;;  %v1925_v33 = vadd.f32 %v1924_v20, %v9574_v58  ;;  %v1997_v62 = vpop.f32.mrb[115].mxu1  ;;  %v2060_v56 = vmax.f32 %v1992_v15, 0.0  ;;  %v2059_v4 = vmax.f32 %v1921_v1, 0.0 }
 0x1f9   : > { %v2090_v27 = vmax.f32 %v1923_v12, 0.0  ;;  %v1998_v42 = vadd.f32 %v1997_v62, %v9574_v58  ;;  %8676 = vmatmul.mubr.msk.bf16.gmra.mrb[220].mxu0 %vm2457_vm2, %v10247_v17  ;;  %v2061_v20 = vmax.f32 %v1994_v24, 0.0 }
 0x1fa   : > { %v2092_v5 = vmax.f32 %v1996_v59, 0.0  ;;  %v2091_v16 = vmax.f32 %v1925_v33, 0.0  ;;  %8685 = vmatmul.mubr.msk.bf16.gmra.mrb[220].mxu1 %vm2457_vm2, %v10247_v17  ;;  %3061 = vmatprep.mubr.bf16.mxu0 %v15457_v36 }
 0x1fb   : > { %v10254_v6 = vpack.c.bf16 %v2090_v27, %v2058_v50  ;;  %v2093_v58 = vmax.f32 %v1998_v42, 0.0  ;;  %3182 = vmatprep.mubr.bf16.mxu1 %v15457_v36 }
 0x1fc   : > { %v10257_v12 = vpack.c.bf16 %v2092_v5, %v2060_v56  ;;  %v1928_v31 = vpop.f32.mrb[116].mxu0  ;;  %v10259_v62 = vpack.c.bf16 %v2091_v16, %v2059_v4 }
 0x1fd   : > { %15470 = vst [vmem:[#allocation19_spill] sm:$0xff] %v10254_v6  ;;  %v1929_v15 = vadd.f32 %v1928_v31, %v9571_v57  ;;  %v2001_v1 = vpop.f32.mrb[116].mxu1  ;;  %v1930_v59 = vpop.f32.mrb[117].mxu0  ;;  %v10262_v33 = vpack.c.bf16 %v2093_v58, %v2061_v20 }
 0x1fe   : > { %15471 = vst [vmem:[#allocation20_spill] sm:$0xff] %v10257_v12  ;;  %v2002_v61 = vadd.f32 %v2001_v1, %v9571_v57  ;;  %v1931_v24 = vadd.f32 %v1930_v59, %v9571_v57  ;;  %v2003_v50 = vpop.f32.mrb[117].mxu1  ;;  %v1932_v27 = vpop.f32.mrb[118].mxu0  ;;  %v10274_v1 = vld [vmem:[%s15163_s2 + $0x30] sm:$0xff]  }
 0x1ff   : > { %15472 = vst [vmem:[#allocation21_spill] sm:$0xff] %v10262_v33  ;;  %v2004_v42 = vadd.f32 %v2003_v50, %v9571_v57  ;;  %v1933_v56 = vadd.f32 %v1932_v27, %v9590_v21  ;;  %v2005_v5 = vpop.f32.mrb[118].mxu1  ;;  %v1934_v12 = vpop.f32.mrb[119].mxu0  ;;  %v2122_v6 = vmax.f32 %v1929_v15, 0.0 }
 0x200   : > { %v2006_v4 = vadd.f32 %v2005_v5, %v9590_v21  ;;  %v1935_v16 = vadd.f32 %v1934_v12, %v9590_v21  ;;  %v2007_v31 = vpop.f32.mrb[119].mxu1  ;;  %v2124_v57 = vmax.f32 %v2002_v61, 0.0  ;;  %v2123_v59 = vmax.f32 %v1931_v24, 0.0 }
 0x201   : > { %v2154_v20 = vmax.f32 %v1933_v56, 0.0  ;;  %v2008_v58 = vadd.f32 %v2007_v31, %v9590_v21  ;;  %8677 = vmatmul.mubr.msk.bf16.gmra.mrb[224].mxu0 %vm2457_vm2, %v10274_v1  ;;  %v2125_v12 = vmax.f32 %v2004_v42, 0.0 }
 0x202   : > { %v2156_v50 = vmax.f32 %v2006_v4, 0.0  ;;  %v2155_v27 = vmax.f32 %v1935_v16, 0.0  ;;  %8686 = vmatmul.mubr.msk.bf16.gmra.mrb[224].mxu1 %vm2457_vm2, %v10274_v1  ;;  %3071 = vmatprep.mubr.bf16.mxu0 %v15457_v36 }
 0x203   : > { %v10281_v15 = vpack.c.bf16 %v2154_v20, %v2122_v6  ;;  %v2157_v21 = vmax.f32 %v2008_v58, 0.0  ;;  %3192 = vmatprep.mubr.bf16.mxu1 %v15457_v36 }
 0x204   : > { %v10284_v56 = vpack.c.bf16 %v2156_v50, %v2124_v57  ;;  %v1938_v5 = vpop.f32.mrb[120].mxu0  ;;  %v10286_v31 = vpack.c.bf16 %v2155_v27, %v2123_v59 }
 0x205   : > { %15473 = vst [vmem:[#allocation22_spill] sm:$0xff] %v10281_v15  ;;  %v1939_v61 = vadd.f32 %v1938_v5, %v9604_v51  ;;  %v2011_v24 = vpop.f32.mrb[120].mxu1  ;;  %v1940_v4 = vpop.f32.mrb[121].mxu0  ;;  %v10289_v16 = vpack.c.bf16 %v2157_v21, %v2125_v12 }
 0x206   : > { %15474 = vst [vmem:[#allocation23_spill] sm:$0xff] %v10284_v56  ;;  %v2012_v33 = vadd.f32 %v2011_v24, %v9604_v51  ;;  %v1941_v42 = vadd.f32 %v1940_v4, %v9604_v51  ;;  %v2013_v6 = vpop.f32.mrb[121].mxu1  ;;  %v1942_v20 = vpop.f32.mrb[122].mxu0  ;;  %v10301_v24 = vld [vmem:[%s15163_s2 + $0x38] sm:$0xff]  }
 0x207   : > { %15475 = vst [vmem:[#allocation24_spill] sm:$0xff] %v10289_v16  ;;  %v2014_v58 = vadd.f32 %v2013_v6, %v9604_v51  ;;  %v1943_v57 = vadd.f32 %v1942_v20, %v9607_v55  ;;  %v2015_v50 = vpop.f32.mrb[122].mxu1  ;;  %v1944_v56 = vpop.f32.mrb[123].mxu0  ;;  %v2186_v15 = vmax.f32 %v1939_v61, 0.0 }
 0x208   : > { %v2016_v59 = vadd.f32 %v2015_v50, %v9607_v55  ;;  %v1945_v27 = vadd.f32 %v1944_v56, %v9607_v55  ;;  %v2017_v5 = vpop.f32.mrb[123].mxu1  ;;  %v2188_v51 = vmax.f32 %v2012_v33, 0.0  ;;  %v2187_v4 = vmax.f32 %v1941_v42, 0.0 }
 0x209   : > { %v2218_v12 = vmax.f32 %v1943_v57, 0.0  ;;  %v2018_v21 = vadd.f32 %v2017_v5, %v9607_v55  ;;  %8678 = vmatmul.mubr.msk.bf16.gmra.mrb[228].mxu0 %vm2457_vm2, %v10301_v24  ;;  %v2189_v56 = vmax.f32 %v2014_v58, 0.0 }
 0x20a   : > { %v2220_v6 = vmax.f32 %v2016_v59, 0.0  ;;  %v2219_v20 = vmax.f32 %v1945_v27, 0.0  ;;  %8687 = vmatmul.mubr.msk.bf16.gmra.mrb[228].mxu1 %vm2457_vm2, %v10301_v24  ;;  %3081 = vmatprep.mubr.bf16.mxu0 %v15457_v36 }
 0x20b   : > { %v10308_v61 = vpack.c.bf16 %v2218_v12, %v2186_v15  ;;  %v2221_v55 = vmax.f32 %v2018_v21, 0.0  ;;  %3202 = vmatprep.mubr.bf16.mxu1 %v15457_v36 }
 0x20c   : > { %v10311_v57 = vpack.c.bf16 %v2220_v6, %v2188_v51  ;;  %v1948_v50 = vpop.f32.mrb[124].mxu0  ;;  %v10313_v5 = vpack.c.bf16 %v2219_v20, %v2187_v4 }
 0x20d   : > { %15476 = vst [vmem:[#allocation25_spill] sm:$0xff] %v10308_v61  ;;  %v1949_v33 = vadd.f32 %v1948_v50, %v9623_v22  ;;  %v2021_v42 = vpop.f32.mrb[124].mxu1  ;;  %v1950_v59 = vpop.f32.mrb[125].mxu0  ;;  %v10316_v27 = vpack.c.bf16 %v2221_v55, %v2189_v56 }
 0x20e   : > { %15477 = vst [vmem:[#allocation26_spill] sm:$0xff] %v10311_v57  ;;  %15478 = vst [vmem:[#allocation27_spill] sm:$0xff] %v10313_v5  ;;  %v2022_v16 = vadd.f32 %v2021_v42, %v9623_v22  ;;  %v1951_v58 = vadd.f32 %v1950_v59, %v9623_v22  ;;  %v2023_v15 = vpop.f32.mrb[125].mxu1  ;;  %v1952_v12 = vpop.f32.mrb[126].mxu0 }
 0x20f   : > { %15479 = vst [vmem:[#allocation28_spill] sm:$0xff] %v10316_v27  ;;  %v2024_v21 = vadd.f32 %v2023_v15, %v9623_v22  ;;  %v1953_v51 = vadd.f32 %v1952_v12, %v9626_v26  ;;  %v2025_v6 = vpop.f32.mrb[126].mxu1  ;;  %v1954_v57 = vpop.f32.mrb[127].mxu0  ;;  %v2250_v61 = vmax.f32 %v1949_v33, 0.0 }
 0x210   : > { %v2026_v4 = vadd.f32 %v2025_v6, %v9626_v26  ;;  %v1955_v20 = vadd.f32 %v1954_v57, %v9626_v26  ;;  %v2027_v50 = vpop.f32.mrb[127].mxu1  ;;  %v10328_v42 = vld [vmem:[%s15163_s2 + $0x40] ss:$0 sps:$4 sm:$0x33]   ;;  %v2252_v22 = vmax.f32 %v2022_v16, 0.0  ;;  %v2251_v59 = vmax.f32 %v1951_v58, 0.0  ;;  %v10335_v57 = vpop.permute.xlu0 %4439 }
 0x211   : > { %v2282_v56 = vmax.f32 %v1953_v51, 0.0  ;;  %v2028_v55 = vadd.f32 %v2027_v50, %v9626_v26  ;;  %8679 = vmatmul.mubr.msk.bf16.gmra.mrb[232].mxu0 %vm2457_vm2, %v10328_v42  ;;  %v2253_v26 = vmax.f32 %v2024_v21, 0.0  ;;  %v10340_v6 = vpop.permute.xlu1 %4444 }
 0x212   : > { %v2284_v15 = vmax.f32 %v2026_v4, 0.0  ;;  %v2283_v12 = vmax.f32 %v1955_v20, 0.0  ;;  %8688 = vmatmul.mubr.msk.bf16.gmra.mrb[232].mxu1 %vm2457_vm2, %v10328_v42  ;;  %3243 = vmatprep.mubr.bf16.mxu0 %v15457_v36 }
 0x213   : > { %v10337_v33 = vpack.c.bf16 %v2282_v56, %v2250_v61  ;;  %v2285_v51 = vmax.f32 %v2028_v55, 0.0  ;;  %3364 = vmatprep.mubr.bf16.mxu1 %v15457_v36 }
 0x214   : > { %v10342_v50 = vpack.c.bf16 %v2284_v15, %v2252_v22  ;;  %v2519_v16 = vpop.f32.mrb[128].mxu0  ;;  %v10344_v58 = vpack.c.bf16 %v2283_v12, %v2251_v59 }
 0x215   : > { %15480 = vst [vmem:[#allocation29_spill] sm:$0xff] %v10337_v33  ;;  %v4517_v4 = vadd.f32 %v10335_v57, %v2519_v16  ;;  %v2640_v20 = vpop.f32.mrb[128].mxu1  ;;  %v2521_v27 = vpop.f32.mrb[129].mxu0  ;;  %v10347_v5 = vpack.c.bf16 %v2285_v51, %v2253_v26 }
 0x216   : > { %15481 = vst [vmem:[#allocation30_spill] sm:$0xff] %v10342_v50  ;;  %15482 = vst [vmem:[#allocation31_spill] sm:$0xff] %v10344_v58  ;;  %v4519_v21 = vadd.f32 %v10335_v57, %v2640_v20  ;;  %v4518_v61 = vadd.f32 %v10335_v57, %v2521_v27  ;;  %v2642_v56 = vpop.f32.mrb[129].mxu1  ;;  %v2523_v55 = vpop.f32.mrb[130].mxu0 }
 0x217   : > { %15483 = vst [vmem:[#allocation32_spill] sm:$0xff] %v10347_v5  ;;  %v4520_v33 = vadd.f32 %v10335_v57, %v2642_v56  ;;  %v4549_v22 = vadd.f32 %v10340_v6, %v2523_v55  ;;  %v2644_v15 = vpop.f32.mrb[130].mxu1  ;;  %v2525_v50 = vpop.f32.mrb[131].mxu0  ;;  %v5029_v58 = vmax.f32 %v4517_v4, 0.0 }
 0x218   : > { %v4551_v59 = vadd.f32 %v10340_v6, %v2644_v15  ;;  %v4550_v12 = vadd.f32 %v10340_v6, %v2525_v50  ;;  %v2646_v16 = vpop.f32.mrb[131].mxu1  ;;  %v5031_v27 = vmax.f32 %v4519_v21, 0.0  ;;  %v5030_v20 = vmax.f32 %v4518_v61, 0.0  ;;  %v10361_v55 = vpop.permute.xlu0 %4449 }
 0x219   : > { %v5061_v26 = vmax.f32 %v4549_v22, 0.0  ;;  %v4552_v51 = vadd.f32 %v10340_v6, %v2646_v16  ;;  %8689 = vmatmul.mubr.msk.bf16.vlgmr.msra.gmra.mrb[236].mxu0 %vm2457_vm2, %v10096_v9  ;;  %v5032_v50 = vmax.f32 %v4520_v33, 0.0  ;;  %v10367_v22 = vpop.permute.xlu1 %4454 }
 0x21a   : > { %v5063_v5 = vmax.f32 %v4551_v59, 0.0  ;;  %v5062_v56 = vmax.f32 %v4550_v12, 0.0  ;;  %8698 = vmatmul.mubr.msk.bf16.vlgmr.msra.gmra.mrb[236].mxu1 %vm2457_vm2, %v10096_v9  ;;  %3454 = vmatpush1.bf16.msra.mxu0 %v9944_v29 }
 0x21b   : > { %v10363_v15 = vpack.c.bf16 %v5061_v26, %v5029_v58  ;;  %v5064_v4 = vmax.f32 %v4552_v51, 0.0  ;;  %3575 = vmatpush1.bf16.msra.mxu1 %v9947_v53  ;;  %3455 = vmatprep.subr.bf16.mxu0 %v9971_v44 }
 0x21c   : > { %v10369_v21 = vpack.c.bf16 %v5063_v5, %v5031_v27  ;;  %3576 = vmatprep.subr.bf16.mxu1 %v9974_v8  ;;  %v2529_v61 = vpop.f32.mrb[132].mxu0  ;;  %3253 = vmatprep.mubr.bf16.mxu0 %v15457_v36  ;;  %v10373_v29 = vpack.c.bf16 %v5062_v56, %v5030_v20 }
 0x21d   : > { %v4581_v9 = vadd.f32 %v10361_v55, %v2529_v61  ;;  %v2650_v33 = vpop.f32.mrb[132].mxu1  ;;  %v2531_v58 = vpop.f32.mrb[133].mxu0  ;;  %3374 = vmatprep.mubr.bf16.mxu1 %v15457_v36  ;;  %v10377_v53 = vpack.c.bf16 %v5064_v4, %v5032_v50 }
 0x21e   : > { %v4583_v44 = vadd.f32 %v10361_v55, %v2650_v33  ;;  %v4582_v5 = vadd.f32 %v10361_v55, %v2531_v58  ;;  %v2652_v59 = vpop.f32.mrb[133].mxu1  ;;  %3456 = vmatpush1.bf16.msra.mxu0 %v9966_v28  ;;  %v2533_v8 = vpop.f32.mrb[134].mxu0 }
 0x21f   : > { %v4584_v12 = vadd.f32 %v10361_v55, %v2652_v59  ;;  %3577 = vmatpush1.bf16.msra.mxu1 %v9969_v30  ;;  %v4613_v16 = vadd.f32 %v10367_v22, %v2533_v8  ;;  %v2654_v26 = vpop.f32.mrb[134].mxu1  ;;  %3457 = vmatprep.subr.bf16.mxu0 %v9993_v41  ;;  %v2535_v51 = vpop.f32.mrb[135].mxu0  ;;  %v5093_v50 = vmax.f32 %v4581_v9, 0.0 }
 0x220   : > { %v4615_v27 = vadd.f32 %v10367_v22, %v2654_v26  ;;  %3578 = vmatprep.subr.bf16.mxu1 %v9996_v49  ;;  %v4614_v20 = vadd.f32 %v10367_v22, %v2535_v51  ;;  %v2656_v56 = vpop.f32.mrb[135].mxu1  ;;  %v5095_v30 = vmax.f32 %v4583_v44, 0.0  ;;  %v5094_v61 = vmax.f32 %v4582_v5, 0.0  ;;  %v10395_v41 = vpop.permute.xlu0 %4459 }
 0x221   : > { %v5125_v28 = vmax.f32 %v4613_v16, 0.0  ;;  %v4616_v4 = vadd.f32 %v10367_v22, %v2656_v56  ;;  %8690 = vmatmul.mubr.msk.bf16.gmra.mrb[240].mxu0 %vm2457_vm2, %v10131_v7  ;;  %v5096_v49 = vmax.f32 %v4584_v12, 0.0  ;;  %v10401_v8 = vpop.permute.xlu1 %4464 }
 0x222   : > { %v5127_v33 = vmax.f32 %v4615_v27, 0.0  ;;  %v5126_v58 = vmax.f32 %v4614_v20, 0.0  ;;  %8699 = vmatmul.mubr.msk.bf16.gmra.mrb[240].mxu1 %vm2457_vm2, %v10131_v7  ;;  %3458 = vmatpush1.bf16.msra.mxu0 %v9988_v43 }
 0x223   : > { %v10397_v59 = vpack.c.bf16 %v5125_v28, %v5093_v50  ;;  %v5128_v9 = vmax.f32 %v4616_v4, 0.0  ;;  %3579 = vmatpush1.bf16.msra.mxu1 %v9991_v54  ;;  %3459 = vmatprep.subr.bf16.mxu0 %v10015_v47 }
 0x224   : > { %v10403_v44 = vpack.c.bf16 %v5127_v33, %v5095_v30  ;;  %3580 = vmatprep.subr.bf16.mxu1 %v10018_v10  ;;  %v2539_v5 = vpop.f32.mrb[136].mxu0  ;;  %3263 = vmatprep.mubr.bf16.mxu0 %v15457_v36  ;;  %v10407_v43 = vpack.c.bf16 %v5126_v58, %v5094_v61 }
 0x225   : > { %v4645_v7 = vadd.f32 %v10395_v41, %v2539_v5  ;;  %v2660_v12 = vpop.f32.mrb[136].mxu1  ;;  %v2541_v16 = vpop.f32.mrb[137].mxu0  ;;  %3384 = vmatprep.mubr.bf16.mxu1 %v15457_v36  ;;  %v10411_v54 = vpack.c.bf16 %v5128_v9, %v5096_v49 }
 0x226   : > { %v4647_v47 = vadd.f32 %v10395_v41, %v2660_v12  ;;  %v4646_v26 = vadd.f32 %v10395_v41, %v2541_v16  ;;  %v2662_v51 = vpop.f32.mrb[137].mxu1  ;;  %3460 = vmatpush1.bf16.msra.mxu0 %v10010_v13  ;;  %v2543_v10 = vpop.f32.mrb[138].mxu0 }
 0x227   : > { %v4648_v27 = vadd.f32 %v10395_v41, %v2662_v51  ;;  %3581 = vmatpush1.bf16.msra.mxu1 %v10013_v40  ;;  %v4677_v20 = vadd.f32 %v10401_v8, %v2543_v10  ;;  %v2664_v56 = vpop.f32.mrb[138].mxu1  ;;  %3695 = vmatprep.subr.bf16.mxu0 %v10037_v38  ;;  %v2545_v50 = vpop.f32.mrb[139].mxu0  ;;  %v5157_v61 = vmax.f32 %v4645_v7, 0.0 }
 0x228   : > { %v4679_v28 = vadd.f32 %v10401_v8, %v2664_v56  ;;  %3816 = vmatprep.subr.bf16.mxu1 %v10040_v3  ;;  %v4678_v4 = vadd.f32 %v10401_v8, %v2545_v50  ;;  %v2666_v30 = vpop.f32.mrb[139].mxu1  ;;  %v5159_v40 = vmax.f32 %v4647_v47, 0.0  ;;  %v5158_v58 = vmax.f32 %v4646_v26, 0.0  ;;  %v10429_v38 = vpop.permute.xlu0 %4469 }
 0x229   : > { %v5189_v13 = vmax.f32 %v4677_v20, 0.0  ;;  %v4680_v33 = vadd.f32 %v10401_v8, %v2666_v30  ;;  %8691 = vmatmul.mubr.msk.bf16.gmra.mrb[244].mxu0 %vm2457_vm2, %v10166_v2  ;;  %v5160_v3 = vmax.f32 %v4648_v27, 0.0  ;;  %v10434_v12 = vpop.permute.xlu1 %4474 }
 0x22a   : > { %v5191_v49 = vmax.f32 %v4679_v28, 0.0  ;;  %v5190_v9 = vmax.f32 %v4678_v4, 0.0  ;;  %8700 = vmatmul.mubr.msk.bf16.gmra.mrb[244].mxu1 %vm2457_vm2, %v10166_v2  ;;  %3273 = vmatprep.mubr.bf16.mxu0 %v15457_v36 }
 0x22b   : > { %v10431_v5 = vpack.c.bf16 %v5189_v13, %v5157_v61  ;;  %v5192_v7 = vmax.f32 %v4680_v33, 0.0  ;;  %3394 = vmatprep.mubr.bf16.mxu1 %v15457_v36 }
 0x22c   : > { %v10436_v16 = vpack.c.bf16 %v5191_v49, %v5159_v40  ;;  %v2549_v47 = vpop.f32.mrb[140].mxu0  ;;  %v10438_v26 = vpack.c.bf16 %v5190_v9, %v5158_v58 }
 0x22d   : > { %15484 = vst [vmem:[#allocation33_spill] sm:$0xff] %v10431_v5  ;;  %v4709_v51 = vadd.f32 %v10429_v38, %v2549_v47  ;;  %v2670_v2 = vpop.f32.mrb[140].mxu1  ;;  %v2551_v10 = vpop.f32.mrb[141].mxu0  ;;  %v10441_v20 = vpack.c.bf16 %v5192_v7, %v5160_v3 }
 0x22e   : > { %15485 = vst [vmem:[#allocation34_spill] sm:$0xff] %v10436_v16  ;;  %v4711_v27 = vadd.f32 %v10429_v38, %v2670_v2  ;;  %v4710_v56 = vadd.f32 %v10429_v38, %v2551_v10  ;;  %v2672_v50 = vpop.f32.mrb[141].mxu1  ;;  %v2553_v28 = vpop.f32.mrb[142].mxu0 }
 0x22f   : > { %15486 = vst [vmem:[#allocation35_spill] sm:$0xff] %v10441_v20  ;;  %v4712_v4 = vadd.f32 %v10429_v38, %v2672_v50  ;;  %v4741_v30 = vadd.f32 %v10434_v12, %v2553_v28  ;;  %v2674_v61 = vpop.f32.mrb[142].mxu1  ;;  %v2555_v13 = vpop.f32.mrb[143].mxu0  ;;  %v5221_v49 = vmax.f32 %v4709_v51, 0.0 }
 0x230   : > { %v4743_v33 = vadd.f32 %v10434_v12, %v2674_v61  ;;  %v4742_v40 = vadd.f32 %v10434_v12, %v2555_v13  ;;  %v2676_v58 = vpop.f32.mrb[143].mxu1  ;;  %v5223_v7 = vmax.f32 %v4711_v27, 0.0  ;;  %v5222_v47 = vmax.f32 %v4710_v56, 0.0  ;;  %v10455_v50 = vpop.permute.xlu0 %4479 }
 0x231   : > { %v5253_v9 = vmax.f32 %v4741_v30, 0.0  ;;  %v4744_v3 = vadd.f32 %v10434_v12, %v2676_v58  ;;  %8692 = vmatmul.mubr.msk.bf16.gmra.mrb[248].mxu0 %vm2457_vm2, %v10193_v23  ;;  %v5224_v28 = vmax.f32 %v4712_v4, 0.0  ;;  %v10460_v30 = vpop.permute.xlu1 %4484 }
 0x232   : > { %v5255_v2 = vmax.f32 %v4743_v33, 0.0  ;;  %v5254_v10 = vmax.f32 %v4742_v40, 0.0  ;;  %8701 = vmatmul.mubr.msk.bf16.gmra.mrb[248].mxu1 %vm2457_vm2, %v10193_v23  ;;  %3283 = vmatprep.mubr.bf16.mxu0 %v15457_v36 }
 0x233   : > { %v10457_v61 = vpack.c.bf16 %v5253_v9, %v5221_v49  ;;  %v5256_v51 = vmax.f32 %v4744_v3, 0.0  ;;  %3404 = vmatprep.mubr.bf16.mxu1 %v15457_v36 }
 0x234   : > { %v10462_v13 = vpack.c.bf16 %v5255_v2, %v5223_v7  ;;  %v2559_v27 = vpop.f32.mrb[144].mxu0  ;;  %v10464_v56 = vpack.c.bf16 %v5254_v10, %v5222_v47 }
 0x235   : > { %15487 = vst [vmem:[#allocation36_spill] sm:$0xff] %v10457_v61  ;;  %v4773_v33 = vadd.f32 %v10455_v50, %v2559_v27  ;;  %v2680_v23 = vpop.f32.mrb[144].mxu1  ;;  %v2561_v40 = vpop.f32.mrb[145].mxu0  ;;  %v10467_v58 = vpack.c.bf16 %v5256_v51, %v5224_v28 }
 0x236   : > { %15488 = vst [vmem:[#allocation37_spill] sm:$0xff] %v10462_v13  ;;  %15489 = vst [vmem:[#allocation38_spill] sm:$0xff] %v10464_v56  ;;  %v4775_v4 = vadd.f32 %v10455_v50, %v2680_v23  ;;  %v4774_v49 = vadd.f32 %v10455_v50, %v2561_v40  ;;  %v2682_v9 = vpop.f32.mrb[145].mxu1  ;;  %v2563_v3 = vpop.f32.mrb[146].mxu0 }
 0x237   : > { %15490 = vst [vmem:[#allocation39_spill] sm:$0xff] %v10467_v58  ;;  %v4776_v61 = vadd.f32 %v10455_v50, %v2682_v9  ;;  %v4805_v7 = vadd.f32 %v10460_v30, %v2563_v3  ;;  %v2684_v2 = vpop.f32.mrb[146].mxu1  ;;  %v2565_v13 = vpop.f32.mrb[147].mxu0  ;;  %v5285_v56 = vmax.f32 %v4773_v33, 0.0 }
 0x238   : > { %v4807_v47 = vadd.f32 %v10460_v30, %v2684_v2  ;;  %v4806_v10 = vadd.f32 %v10460_v30, %v2565_v13  ;;  %v2686_v27 = vpop.f32.mrb[147].mxu1  ;;  %v5287_v23 = vmax.f32 %v4775_v4, 0.0  ;;  %v5286_v40 = vmax.f32 %v4774_v49, 0.0  ;;  %v10481_v3 = vpop.permute.xlu0 %4489 }
 0x239   : > { %v5317_v28 = vmax.f32 %v4805_v7, 0.0  ;;  %v4808_v51 = vadd.f32 %v10460_v30, %v2686_v27  ;;  %8693 = vmatmul.mubr.msk.bf16.gmra.mrb[252].mxu0 %vm2457_vm2, %v10220_v63  ;;  %v5288_v13 = vmax.f32 %v4776_v61, 0.0  ;;  %v10486_v7 = vpop.permute.xlu1 %4494 }
 0x23a   : > { %v5319_v58 = vmax.f32 %v4807_v47, 0.0  ;;  %v5318_v9 = vmax.f32 %v4806_v10, 0.0  ;;  %8702 = vmatmul.mubr.msk.bf16.gmra.mrb[252].mxu1 %vm2457_vm2, %v10220_v63  ;;  %3293 = vmatprep.mubr.bf16.mxu0 %v15457_v36 }
 0x23b   : > { %v10483_v2 = vpack.c.bf16 %v5317_v28, %v5285_v56  ;;  %v5320_v33 = vmax.f32 %v4808_v51, 0.0  ;;  %3414 = vmatprep.mubr.bf16.mxu1 %v15457_v36 }
 0x23c   : > { %v10488_v27 = vpack.c.bf16 %v5319_v58, %v5287_v23  ;;  %v2569_v4 = vpop.f32.mrb[148].mxu0  ;;  %v10490_v49 = vpack.c.bf16 %v5318_v9, %v5286_v40 }
 0x23d   : > { %15491 = vst [vmem:[#allocation40_spill] sm:$0xff] %v10483_v2  ;;  %v4837_v47 = vadd.f32 %v10481_v3, %v2569_v4  ;;  %v2690_v63 = vpop.f32.mrb[148].mxu1  ;;  %v2571_v10 = vpop.f32.mrb[149].mxu0  ;;  %v10493_v16 = vpack.c.bf16 %v5320_v33, %v5288_v13 }
 0x23e   : > { %15492 = vst [vmem:[#allocation41_spill] sm:$0xff] %v10488_v27  ;;  %15493 = vst [vmem:[#allocation42_spill] sm:$0xff] %v10490_v49  ;;  %v4839_v61 = vadd.f32 %v10481_v3, %v2690_v63  ;;  %v4838_v56 = vadd.f32 %v10481_v3, %v2571_v10  ;;  %v2692_v28 = vpop.f32.mrb[149].mxu1  ;;  %v2573_v51 = vpop.f32.mrb[150].mxu0 }
 0x23f   : > { %15494 = vst [vmem:[#allocation43_spill] sm:$0xff] %v10493_v16  ;;  %v4840_v2 = vadd.f32 %v10481_v3, %v2692_v28  ;;  %v4869_v58 = vadd.f32 %v10486_v7, %v2573_v51  ;;  %v2694_v23 = vpop.f32.mrb[150].mxu1  ;;  %v2575_v27 = vpop.f32.mrb[151].mxu0  ;;  %v5349_v49 = vmax.f32 %v4837_v47, 0.0 }
 0x240   : > { %v4871_v40 = vadd.f32 %v10486_v7, %v2694_v23  ;;  %v4870_v9 = vadd.f32 %v10486_v7, %v2575_v27  ;;  %v2696_v4 = vpop.f32.mrb[151].mxu1  ;;  %v5351_v63 = vmax.f32 %v4839_v61, 0.0  ;;  %v5350_v10 = vmax.f32 %v4838_v56, 0.0  ;;  %v10507_v51 = vpop.permute.xlu0 %4499 }
 0x241   : > { %v5381_v13 = vmax.f32 %v4869_v58, 0.0  ;;  %v4872_v33 = vadd.f32 %v10486_v7, %v2696_v4  ;;  %8694 = vmatmul.mubr.msk.bf16.gmra.mrb[0].mxu0 %vm2457_vm2, %v10247_v17  ;;  %v5352_v27 = vmax.f32 %v4840_v2, 0.0  ;;  %v10512_v58 = vpop.permute.xlu1 %4504 }
 0x242   : > { %v5383_v16 = vmax.f32 %v4871_v40, 0.0  ;;  %v5382_v28 = vmax.f32 %v4870_v9, 0.0  ;;  %8703 = vmatmul.mubr.msk.bf16.gmra.mrb[0].mxu1 %vm2457_vm2, %v10247_v17  ;;  %3303 = vmatprep.mubr.bf16.mxu0 %v15457_v36 }
 0x243   : > { %v10509_v23 = vpack.c.bf16 %v5381_v13, %v5349_v49  ;;  %v5384_v47 = vmax.f32 %v4872_v33, 0.0  ;;  %3424 = vmatprep.mubr.bf16.mxu1 %v15457_v36 }
 0x244   : > { %v10514_v4 = vpack.c.bf16 %v5383_v16, %v5351_v63  ;;  %v2579_v61 = vpop.f32.mrb[152].mxu0  ;;  %v10516_v56 = vpack.c.bf16 %v5382_v28, %v5350_v10 }
 0x245   : > { %15495 = vst [vmem:[#allocation44_spill] sm:$0xff] %v10509_v23  ;;  %v4901_v40 = vadd.f32 %v10507_v51, %v2579_v61  ;;  %v2700_v17 = vpop.f32.mrb[152].mxu1  ;;  %v2581_v9 = vpop.f32.mrb[153].mxu0  ;;  %v10519_v5 = vpack.c.bf16 %v5384_v47, %v5352_v27 }
 0x246   : > { %15496 = vst [vmem:[#allocation45_spill] sm:$0xff] %v10514_v4  ;;  %15497 = vst [vmem:[#allocation46_spill] sm:$0xff] %v10516_v56  ;;  %v4903_v2 = vadd.f32 %v10507_v51, %v2700_v17  ;;  %v4902_v49 = vadd.f32 %v10507_v51, %v2581_v9  ;;  %v2702_v13 = vpop.f32.mrb[153].mxu1  ;;  %v2583_v33 = vpop.f32.mrb[154].mxu0 }
 0x247   : > { %15498 = vst [vmem:[#allocation47_spill] sm:$0xff] %v10519_v5  ;;  %v4904_v23 = vadd.f32 %v10507_v51, %v2702_v13  ;;  %v4933_v16 = vadd.f32 %v10512_v58, %v2583_v33  ;;  %v2704_v63 = vpop.f32.mrb[154].mxu1  ;;  %v2585_v4 = vpop.f32.mrb[155].mxu0  ;;  %v5413_v56 = vmax.f32 %v4901_v40, 0.0 }
 0x248   : > { %v4935_v10 = vadd.f32 %v10512_v58, %v2704_v63  ;;  %v4934_v28 = vadd.f32 %v10512_v58, %v2585_v4  ;;  %v2706_v61 = vpop.f32.mrb[155].mxu1  ;;  %v5415_v17 = vmax.f32 %v4903_v2, 0.0  ;;  %v5414_v9 = vmax.f32 %v4902_v49, 0.0  ;;  %v10533_v33 = vpop.permute.xlu0 %4509 }
 0x249   : > { %v5445_v27 = vmax.f32 %v4933_v16, 0.0  ;;  %v4936_v47 = vadd.f32 %v10512_v58, %v2706_v61  ;;  %8695 = vmatmul.mubr.msk.bf16.gmra.mrb[4].mxu0 %vm2457_vm2, %v10274_v1  ;;  %v5416_v4 = vmax.f32 %v4904_v23, 0.0  ;;  %v10538_v16 = vpop.permute.xlu1 %4514 }
 0x24a   : > { %v5447_v5 = vmax.f32 %v4935_v10, 0.0  ;;  %v5446_v13 = vmax.f32 %v4934_v28, 0.0  ;;  %8704 = vmatmul.mubr.msk.bf16.gmra.mrb[4].mxu1 %vm2457_vm2, %v10274_v1  ;;  %3313 = vmatprep.mubr.bf16.mxu0 %v15457_v36 }
 0x24b   : > { %v10535_v63 = vpack.c.bf16 %v5445_v27, %v5413_v56  ;;  %v5448_v40 = vmax.f32 %v4936_v47, 0.0  ;;  %3434 = vmatprep.mubr.bf16.mxu1 %v15457_v36 }
 0x24c   : > { %v10540_v61 = vpack.c.bf16 %v5447_v5, %v5415_v17  ;;  %v2589_v2 = vpop.f32.mrb[156].mxu0  ;;  %v10542_v49 = vpack.c.bf16 %v5446_v13, %v5414_v9 }
 0x24d   : > { %15499 = vst [vmem:[#allocation48_spill] sm:$0xff] %v10535_v63  ;;  %v4965_v10 = vadd.f32 %v10533_v33, %v2589_v2  ;;  %v2710_v1 = vpop.f32.mrb[156].mxu1  ;;  %v2591_v28 = vpop.f32.mrb[157].mxu0  ;;  %v10545_v20 = vpack.c.bf16 %v5448_v40, %v5416_v4 }
 0x24e   : > { %15500 = vst [vmem:[#allocation49_spill] sm:$0xff] %v10540_v61  ;;  %15501 = vst [vmem:[#allocation50_spill] sm:$0xff] %v10542_v49  ;;  %v4967_v23 = vadd.f32 %v10533_v33, %v2710_v1  ;;  %v4966_v56 = vadd.f32 %v10533_v33, %v2591_v28  ;;  %v2712_v27 = vpop.f32.mrb[157].mxu1  ;;  %v2593_v47 = vpop.f32.mrb[158].mxu0 }
 0x24f   : > { %15502 = vst [vmem:[#allocation51_spill] sm:$0xff] %v10545_v20  ;;  %v4968_v63 = vadd.f32 %v10533_v33, %v2712_v27  ;;  %v4997_v5 = vadd.f32 %v10538_v16, %v2593_v47  ;;  %v2714_v17 = vpop.f32.mrb[158].mxu1  ;;  %v2595_v61 = vpop.f32.mrb[159].mxu0  ;;  %v5477_v49 = vmax.f32 %v4965_v10, 0.0 }
 0x250   : > { %v4999_v9 = vadd.f32 %v10538_v16, %v2714_v17  ;;  %v4998_v13 = vadd.f32 %v10538_v16, %v2595_v61  ;;  %v2716_v2 = vpop.f32.mrb[159].mxu1  ;;  %v5479_v1 = vmax.f32 %v4967_v23, 0.0  ;;  %v5478_v28 = vmax.f32 %v4966_v56, 0.0 }
 0x251   : > { %v5509_v4 = vmax.f32 %v4997_v5, 0.0  ;;  %v5000_v40 = vadd.f32 %v10538_v16, %v2716_v2  ;;  %8696 = vmatmul.mubr.msk.bf16.gmra.mrb[8].mxu0 %vm2457_vm2, %v10301_v24  ;;  %v5480_v47 = vmax.f32 %v4968_v63, 0.0 }
 0x252   : > { %v5511_v20 = vmax.f32 %v4999_v9, 0.0  ;;  %v5510_v27 = vmax.f32 %v4998_v13, 0.0  ;;  %8705 = vmatmul.mubr.msk.bf16.gmra.mrb[8].mxu1 %vm2457_vm2, %v10301_v24  ;;  %3323 = vmatprep.mubr.bf16.mxu0 %v15457_v36 }
 0x253   : > { %v10559_v17 = vpack.c.bf16 %v5509_v4, %v5477_v49  ;;  %v5512_v61 = vmax.f32 %v5000_v40, 0.0  ;;  %3444 = vmatprep.mubr.bf16.mxu1 %v15457_v36 }
 0x254   : > { %v10562_v10 = vpack.c.bf16 %v5511_v20, %v5479_v1  ;;  %v10564_v5 = vpop.f32.mrb[160].mxu0  ;;  %v10566_v2 = vpack.c.bf16 %v5510_v27, %v5478_v28 }
 0x255   : > { %15503 = vst [vmem:[#allocation52_spill] sm:$0xff] %v10559_v17  ;;  %15505 = vst [vmem:[#allocation54_spill] sm:$0xff] %v10564_v5  ;;  %v10568_v23 = vpop.f32.mrb[160].mxu1  ;;  %v10570_v56 = vpop.f32.mrb[161].mxu0  ;;  %v10572_v9 = vpack.c.bf16 %v5512_v61, %v5480_v47 }
 0x256   : > { %15504 = vst [vmem:[#allocation53_spill] sm:$0xff] %v10562_v10  ;;  %15506 = vst [vmem:[#allocation55_spill] sm:$0xff] %v10568_v23  ;;  %v10574_v24 = vpop.f32.mrb[161].mxu1  ;;  %v2603_v63 = vpop.f32.mrb[162].mxu0 }
 0x257   : > { %15507 = vst [vmem:[#allocation56_spill] sm:$0xff] %v10570_v56  ;;  %15508 = vst [vmem:[#allocation57_spill] sm:$0xff] %v10574_v24  ;;  %v2724_v49 = vpop.f32.mrb[162].mxu1  ;;  %v2604_v13 = vpop.f32.mrb[163].mxu0 }
 0x258   : > { %v2725_v4 = vpop.f32.mrb[163].mxu1 }
 0x259   : > { %8697 = vmatmul.mubr.msk.bf16.gmra.mrb[12].mxu0 %vm2457_vm2, %v10328_v42 }
 0x25a   : > { %8706 = vmatmul.mubr.msk.bf16.gmra.mrb[12].mxu1 %vm2457_vm2, %v10328_v42  ;;  %3485 = vmatprep.mubr.bf16.mxu0 %v15457_v36 }
 0x25b   : > { %3606 = vmatprep.mubr.bf16.mxu1 %v15457_v36 }
 0x25c   : > { %v2761_v20 = vpop.f32.mrb[164].mxu0 }
 0x25d   : > { %v4521_v40 = vadd.f32 %v10335_v57, %v2761_v20  ;;  %v2882_v1 = vpop.f32.mrb[164].mxu1  ;;  %v2763_v28 = vpop.f32.mrb[165].mxu0 }
 0x25e   : > { %v4523_v27 = vadd.f32 %v10335_v57, %v2882_v1  ;;  %v4522_v47 = vadd.f32 %v10335_v57, %v2763_v28  ;;  %v2884_v61 = vpop.f32.mrb[165].mxu1  ;;  %v2765_v63 = vpop.f32.mrb[166].mxu0  ;;  %v10593_v1 = vld [vmem:[%s15163_s2] sm:$0xff]  }
 0x25f   : > { %v4524_v49 = vadd.f32 %v10335_v57, %v2884_v61  ;;  %v4553_v13 = vadd.f32 %v10340_v6, %v2765_v63  ;;  %v2886_v42 = vpop.f32.mrb[166].mxu1  ;;  %v2767_v4 = vpop.f32.mrb[167].mxu0  ;;  %v5033_v20 = vmax.f32 %v4521_v40, 0.0 }
 0x260   : > { %v4555_v24 = vadd.f32 %v10340_v6, %v2886_v42  ;;  %v4554_v56 = vadd.f32 %v10340_v6, %v2767_v4  ;;  %v2888_v23 = vpop.f32.mrb[167].mxu1  ;;  %v5035_v28 = vmax.f32 %v4523_v27, 0.0  ;;  %v5034_v61 = vmax.f32 %v4522_v47, 0.0 }
 0x261   : > { %v5065_v5 = vmax.f32 %v4553_v13, 0.0  ;;  %v4556_v10 = vadd.f32 %v10340_v6, %v2888_v23  ;;  %8707 = vmatmul.mubr.msk.bf16.vlgmr.msra.gmra.mrb[16].mxu0 %vm2457_vm2, %v10593_v1  ;;  %v5036_v40 = vmax.f32 %v4524_v49, 0.0  ;;  %v15511_v49 = vld [vmem:[#allocation5_spill] sm:$0xff] }
 0x262   : > { %v5067_v63 = vmax.f32 %v4555_v24, 0.0  ;;  %v5066_v17 = vmax.f32 %v4554_v56, 0.0  ;;  %8716 = vmatmul.mubr.msk.bf16.vlgmr.msra.gmra.mrb[16].mxu1 %vm2457_vm2, %v10593_v1  ;;  %3696 = vmatpush1.bf16.msra.mxu0 %v10032_v45 }
 0x263   : > { %v10600_v13 = vpack.c.bf16 %v5065_v5, %v5033_v20  ;;  %v5068_v23 = vmax.f32 %v4556_v10, 0.0  ;;  %3817 = vmatpush1.bf16.msra.mxu1 %v10035_v19  ;;  %3697 = vmatprep.subr.bf16.mxu0 %v10059_v35 }
 0x264   : > { %v10604_v42 = vpack.c.bf16 %v5067_v63, %v5035_v28  ;;  %3818 = vmatprep.subr.bf16.mxu1 %v10062_v34  ;;  %v2771_v27 = vpop.f32.mrb[168].mxu0  ;;  %3495 = vmatprep.mubr.bf16.mxu0 %v15457_v36  ;;  %v10608_v56 = vpack.c.bf16 %v5066_v17, %v5034_v61  ;;  %v15512_v17 = vld [vmem:[#allocation6_spill] sm:$0xff] }
 0x265   : > { %15509 = vst [vmem:[#allocation58_spill] sm:$0xff] %v10600_v13  ;;  %v4585_v24 = vadd.f32 %v10361_v55, %v2771_v27  ;;  %v2892_v45 = vpop.f32.mrb[168].mxu1  ;;  %v2773_v47 = vpop.f32.mrb[169].mxu0  ;;  %3616 = vmatprep.mubr.bf16.mxu1 %v15457_v36  ;;  %v10612_v10 = vpack.c.bf16 %v5068_v23, %v5036_v40  ;;  %v15513_v40 = vld [vmem:[#allocation9_spill] sm:$0xff] }
 0x266   : > { %15510 = vst [vmem:[#allocation59_spill] sm:$0xff] %v10604_v42  ;;  %v4587_v19 = vadd.f32 %v10361_v55, %v2892_v45  ;;  %v4586_v35 = vadd.f32 %v10361_v55, %v2773_v47  ;;  %v2894_v5 = vpop.f32.mrb[169].mxu1  ;;  %3698 = vmatpush1.bf16.msra.mxu0 %v15511_v49  ;;  %v2775_v34 = vpop.f32.mrb[170].mxu0 }
 0x267   : > { %v4588_v4 = vadd.f32 %v10361_v55, %v2894_v5  ;;  %3819 = vmatpush1.bf16.msra.mxu1 %v15512_v17  ;;  %v4617_v20 = vadd.f32 %v10367_v22, %v2775_v34  ;;  %v2896_v28 = vpop.f32.mrb[170].mxu1  ;;  %3699 = vmatprep.subr.bf16.mxu0 %v10081_v48  ;;  %v2777_v61 = vpop.f32.mrb[171].mxu0  ;;  %v5097_v45 = vmax.f32 %v4585_v24, 0.0  ;;  %v10628_v5 = vld [vmem:[%s15163_s2 + $0x8] sm:$0xff]  }
 0x268   : > { %v4619_v63 = vadd.f32 %v10367_v22, %v2896_v28  ;;  %3820 = vmatprep.subr.bf16.mxu1 %v15513_v40  ;;  %v4618_v23 = vadd.f32 %v10367_v22, %v2777_v61  ;;  %v2898_v27 = vpop.f32.mrb[171].mxu1  ;;  %v5099_v48 = vmax.f32 %v4587_v19, 0.0  ;;  %v5098_v34 = vmax.f32 %v4586_v35, 0.0  ;;  %v15514_v61 = vld [vmem:[#allocation7_spill] sm:$0xff] }
 0x269   : > { %v5129_v47 = vmax.f32 %v4617_v20, 0.0  ;;  %v4620_v49 = vadd.f32 %v10367_v22, %v2898_v27  ;;  %8708 = vmatmul.mubr.msk.bf16.gmra.mrb[20].mxu0 %vm2457_vm2, %v10628_v5  ;;  %v5100_v24 = vmax.f32 %v4588_v4, 0.0  ;;  %v15516_v27 = vld [vmem:[#allocation8_spill] sm:$0xff] }
 0x26a   : > { %v5131_v17 = vmax.f32 %v4619_v63, 0.0  ;;  %v5130_v28 = vmax.f32 %v4618_v23, 0.0  ;;  %8717 = vmatmul.mubr.msk.bf16.gmra.mrb[20].mxu1 %vm2457_vm2, %v10628_v5  ;;  %3700 = vmatpush1.bf16.msra.mxu0 %v15514_v61 }
 0x26b   : > { %v10635_v20 = vpack.c.bf16 %v5129_v47, %v5097_v45  ;;  %v5132_v40 = vmax.f32 %v4620_v49, 0.0  ;;  %3821 = vmatpush1.bf16.msra.mxu1 %v15516_v27  ;;  %3701 = vmatprep.subr.bf16.mxu0 %v10111_v18 }
 0x26c   : > { %v10639_v42 = vpack.c.bf16 %v5131_v17, %v5099_v48  ;;  %3822 = vmatprep.subr.bf16.mxu1 %v10115_v46  ;;  %v2781_v19 = vpop.f32.mrb[172].mxu0  ;;  %3505 = vmatprep.mubr.bf16.mxu0 %v15457_v36  ;;  %v10643_v35 = vpack.c.bf16 %v5130_v28, %v5098_v34 }
 0x26d   : > { %15515 = vst [vmem:[#allocation5_spill] sm:$0xff] %v10635_v20  ;;  %v4649_v63 = vadd.f32 %v10395_v41, %v2781_v19  ;;  %v2902_v23 = vpop.f32.mrb[172].mxu1  ;;  %v2783_v4 = vpop.f32.mrb[173].mxu0  ;;  %3626 = vmatprep.mubr.bf16.mxu1 %v15457_v36  ;;  %v10647_v45 = vpack.c.bf16 %v5132_v40, %v5100_v24 }
 0x26e   : > { %15517 = vst [vmem:[#allocation6_spill] sm:$0xff] %v10639_v42  ;;  %15518 = vst [vmem:[#allocation9_spill] sm:$0xff] %v10643_v35  ;;  %v4651_v47 = vadd.f32 %v10395_v41, %v2902_v23  ;;  %v4650_v18 = vadd.f32 %v10395_v41, %v2783_v4  ;;  %v2904_v49 = vpop.f32.mrb[173].mxu1  ;;  %3702 = vmatpush1.bf16.msra.mxu0 %v10103_v37  ;;  %v2785_v46 = vpop.f32.mrb[174].mxu0 }
 0x26f   : > { %15519 = vst [vmem:[#allocation7_spill] sm:$0xff] %v10647_v45  ;;  %v4652_v48 = vadd.f32 %v10395_v41, %v2904_v49  ;;  %3823 = vmatpush1.bf16.msra.mxu1 %v10107_v52  ;;  %v4681_v34 = vadd.f32 %v10401_v8, %v2785_v46  ;;  %v2906_v17 = vpop.f32.mrb[174].mxu1  ;;  %3937 = vmatprep.subr.bf16.mxu0 %v10146_v14  ;;  %v2787_v28 = vpop.f32.mrb[175].mxu0  ;;  %v5161_v27 = vmax.f32 %v4649_v63, 0.0  ;;  %v10663_v52 = vld [vmem:[%s15163_s2 + $0x10] sm:$0xff]  }
 0x270   : > { %v4683_v61 = vadd.f32 %v10401_v8, %v2906_v17  ;;  %4058 = vmatprep.subr.bf16.mxu1 %v10150_v11  ;;  %v4682_v24 = vadd.f32 %v10401_v8, %v2787_v28  ;;  %v2908_v40 = vpop.f32.mrb[175].mxu1  ;;  %v5163_v14 = vmax.f32 %v4651_v47, 0.0  ;;  %v5162_v23 = vmax.f32 %v4650_v18, 0.0 }
 0x271   : > { %v5193_v37 = vmax.f32 %v4681_v34, 0.0  ;;  %v4684_v19 = vadd.f32 %v10401_v8, %v2908_v40  ;;  %8709 = vmatmul.mubr.msk.bf16.gmra.mrb[24].mxu0 %vm2457_vm2, %v10663_v52  ;;  %v5164_v11 = vmax.f32 %v4652_v48, 0.0 }
 0x272   : > { %v5195_v4 = vmax.f32 %v4683_v61, 0.0  ;;  %v5194_v49 = vmax.f32 %v4682_v24, 0.0  ;;  %8718 = vmatmul.mubr.msk.bf16.gmra.mrb[24].mxu1 %vm2457_vm2, %v10663_v52  ;;  %3515 = vmatprep.mubr.bf16.mxu0 %v15457_v36 }
 0x273   : > { %v10670_v63 = vpack.c.bf16 %v5193_v37, %v5161_v27  ;;  %v5196_v46 = vmax.f32 %v4684_v19, 0.0  ;;  %3636 = vmatprep.mubr.bf16.mxu1 %v15457_v36 }
 0x274   : > { %v10673_v34 = vpack.c.bf16 %v5195_v4, %v5163_v14  ;;  %v2791_v17 = vpop.f32.mrb[176].mxu0  ;;  %v10675_v28 = vpack.c.bf16 %v5194_v49, %v5162_v23 }
 0x275   : > { %15520 = vst [vmem:[#allocation8_spill] sm:$0xff] %v10670_v63  ;;  %v4713_v47 = vadd.f32 %v10429_v38, %v2791_v17  ;;  %v2912_v18 = vpop.f32.mrb[176].mxu1  ;;  %v2793_v61 = vpop.f32.mrb[177].mxu0  ;;  %v10678_v24 = vpack.c.bf16 %v5196_v46, %v5164_v11 }
 0x276   : > { %15521 = vst [vmem:[#allocation60_spill] sm:$0xff] %v10673_v34  ;;  %15522 = vst [vmem:[#allocation61_spill] sm:$0xff] %v10675_v28  ;;  %v4715_v40 = vadd.f32 %v10429_v38, %v2912_v18  ;;  %v4714_v48 = vadd.f32 %v10429_v38, %v2793_v61  ;;  %v2914_v27 = vpop.f32.mrb[177].mxu1  ;;  %v2795_v37 = vpop.f32.mrb[178].mxu0  ;;  %v10690_v18 = vld [vmem:[%s15163_s2 + $0x18] sm:$0xff]  }
 0x277   : > { %15523 = vst [vmem:[#allocation62_spill] sm:$0xff] %v10678_v24  ;;  %v4716_v19 = vadd.f32 %v10429_v38, %v2914_v27  ;;  %v4745_v14 = vadd.f32 %v10434_v12, %v2795_v37  ;;  %v2916_v4 = vpop.f32.mrb[178].mxu1  ;;  %v2797_v34 = vpop.f32.mrb[179].mxu0  ;;  %v5225_v63 = vmax.f32 %v4713_v47, 0.0 }
 0x278   : > { %v4747_v23 = vadd.f32 %v10434_v12, %v2916_v4  ;;  %v4746_v49 = vadd.f32 %v10434_v12, %v2797_v34  ;;  %v2918_v17 = vpop.f32.mrb[179].mxu1  ;;  %v5227_v61 = vmax.f32 %v4715_v40, 0.0  ;;  %v5226_v27 = vmax.f32 %v4714_v48, 0.0 }
 0x279   : > { %v5257_v11 = vmax.f32 %v4745_v14, 0.0  ;;  %v4748_v46 = vadd.f32 %v10434_v12, %v2918_v17  ;;  %8710 = vmatmul.mubr.msk.bf16.gmra.mrb[28].mxu0 %vm2457_vm2, %v10690_v18  ;;  %v5228_v34 = vmax.f32 %v4716_v19, 0.0 }
 0x27a   : > { %v5259_v37 = vmax.f32 %v4747_v23, 0.0  ;;  %v5258_v24 = vmax.f32 %v4746_v49, 0.0  ;;  %8719 = vmatmul.mubr.msk.bf16.gmra.mrb[28].mxu1 %vm2457_vm2, %v10690_v18  ;;  %3525 = vmatprep.mubr.bf16.mxu0 %v15457_v36 }
 0x27b   : > { %v10697_v47 = vpack.c.bf16 %v5257_v11, %v5225_v63  ;;  %v5260_v14 = vmax.f32 %v4748_v46, 0.0  ;;  %3646 = vmatprep.mubr.bf16.mxu1 %v15457_v36 }
 0x27c   : > { %v10700_v4 = vpack.c.bf16 %v5259_v37, %v5227_v61  ;;  %v2801_v17 = vpop.f32.mrb[180].mxu0  ;;  %v10702_v28 = vpack.c.bf16 %v5258_v24, %v5226_v27 }
 0x27d   : > { %15524 = vst [vmem:[#allocation63_spill] sm:$0xff] %v10697_v47  ;;  %v4777_v40 = vadd.f32 %v10455_v50, %v2801_v17  ;;  %v2922_v48 = vpop.f32.mrb[180].mxu1  ;;  %v2803_v23 = vpop.f32.mrb[181].mxu0  ;;  %v10705_v49 = vpack.c.bf16 %v5260_v14, %v5228_v34 }
 0x27e   : > { %15525 = vst [vmem:[#allocation64_spill] sm:$0xff] %v10700_v4  ;;  %15526 = vst [vmem:[#allocation65_spill] sm:$0xff] %v10702_v28  ;;  %v4779_v42 = vadd.f32 %v10455_v50, %v2922_v48  ;;  %v4778_v19 = vadd.f32 %v10455_v50, %v2803_v23  ;;  %v2924_v63 = vpop.f32.mrb[181].mxu1  ;;  %v2805_v11 = vpop.f32.mrb[182].mxu0  ;;  %v10717_v48 = vld [vmem:[%s15163_s2 + $0x20] sm:$0xff]  }
 0x27f   : > { %15527 = vst [vmem:[#allocation66_spill] sm:$0xff] %v10705_v49  ;;  %v4780_v46 = vadd.f32 %v10455_v50, %v2924_v63  ;;  %v4809_v61 = vadd.f32 %v10460_v30, %v2805_v11  ;;  %v2926_v37 = vpop.f32.mrb[182].mxu1  ;;  %v2807_v4 = vpop.f32.mrb[183].mxu0  ;;  %v5289_v47 = vmax.f32 %v4777_v40, 0.0 }
 0x280   : > { %v4811_v24 = vadd.f32 %v10460_v30, %v2926_v37  ;;  %v4810_v27 = vadd.f32 %v10460_v30, %v2807_v4  ;;  %v2928_v17 = vpop.f32.mrb[183].mxu1  ;;  %v5291_v23 = vmax.f32 %v4779_v42, 0.0  ;;  %v5290_v63 = vmax.f32 %v4778_v19, 0.0 }
 0x281   : > { %v5321_v34 = vmax.f32 %v4809_v61, 0.0  ;;  %v4812_v14 = vadd.f32 %v10460_v30, %v2928_v17  ;;  %8711 = vmatmul.mubr.msk.bf16.gmra.mrb[32].mxu0 %vm2457_vm2, %v10717_v48  ;;  %v5292_v4 = vmax.f32 %v4780_v46, 0.0 }
 0x282   : > { %v5323_v11 = vmax.f32 %v4811_v24, 0.0  ;;  %v5322_v49 = vmax.f32 %v4810_v27, 0.0  ;;  %8720 = vmatmul.mubr.msk.bf16.gmra.mrb[32].mxu1 %vm2457_vm2, %v10717_v48  ;;  %3535 = vmatprep.mubr.bf16.mxu0 %v15457_v36 }
 0x283   : > { %v10724_v40 = vpack.c.bf16 %v5321_v34, %v5289_v47  ;;  %v5324_v61 = vmax.f32 %v4812_v14, 0.0  ;;  %3656 = vmatprep.mubr.bf16.mxu1 %v15457_v36 }
 0x284   : > { %v10727_v37 = vpack.c.bf16 %v5323_v11, %v5291_v23  ;;  %v2811_v17 = vpop.f32.mrb[184].mxu0  ;;  %v10729_v28 = vpack.c.bf16 %v5322_v49, %v5290_v63 }
 0x285   : > { %15528 = vst [vmem:[#allocation67_spill] sm:$0xff] %v10724_v40  ;;  %v4841_v42 = vadd.f32 %v10481_v3, %v2811_v17  ;;  %v2932_v19 = vpop.f32.mrb[184].mxu1  ;;  %v2813_v24 = vpop.f32.mrb[185].mxu0  ;;  %v10732_v27 = vpack.c.bf16 %v5324_v61, %v5292_v4 }
 0x286   : > { %15529 = vst [vmem:[#allocation68_spill] sm:$0xff] %v10727_v37  ;;  %15530 = vst [vmem:[#allocation69_spill] sm:$0xff] %v10729_v28  ;;  %v4843_v20 = vadd.f32 %v10481_v3, %v2932_v19  ;;  %v4842_v46 = vadd.f32 %v10481_v3, %v2813_v24  ;;  %v2934_v47 = vpop.f32.mrb[185].mxu1  ;;  %v2815_v34 = vpop.f32.mrb[186].mxu0  ;;  %v10744_v19 = vld [vmem:[%s15163_s2 + $0x28] sm:$0xff]  }
 0x287   : > { %15531 = vst [vmem:[#allocation70_spill] sm:$0xff] %v10732_v27  ;;  %v4844_v14 = vadd.f32 %v10481_v3, %v2934_v47  ;;  %v4873_v23 = vadd.f32 %v10486_v7, %v2815_v34  ;;  %v2936_v11 = vpop.f32.mrb[186].mxu1  ;;  %v2817_v37 = vpop.f32.mrb[187].mxu0  ;;  %v5353_v40 = vmax.f32 %v4841_v42, 0.0 }
 0x288   : > { %v4875_v49 = vadd.f32 %v10486_v7, %v2936_v11  ;;  %v4874_v63 = vadd.f32 %v10486_v7, %v2817_v37  ;;  %v2938_v17 = vpop.f32.mrb[187].mxu1  ;;  %v5355_v24 = vmax.f32 %v4843_v20, 0.0  ;;  %v5354_v47 = vmax.f32 %v4842_v46, 0.0 }
 0x289   : > { %v5385_v4 = vmax.f32 %v4873_v23, 0.0  ;;  %v4876_v61 = vadd.f32 %v10486_v7, %v2938_v17  ;;  %8712 = vmatmul.mubr.msk.bf16.gmra.mrb[36].mxu0 %vm2457_vm2, %v10744_v19  ;;  %v5356_v37 = vmax.f32 %v4844_v14, 0.0 }
 0x28a   : > { %v5387_v34 = vmax.f32 %v4875_v49, 0.0  ;;  %v5386_v27 = vmax.f32 %v4874_v63, 0.0  ;;  %8721 = vmatmul.mubr.msk.bf16.gmra.mrb[36].mxu1 %vm2457_vm2, %v10744_v19  ;;  %3545 = vmatprep.mubr.bf16.mxu0 %v15457_v36 }
 0x28b   : > { %v10751_v42 = vpack.c.bf16 %v5385_v4, %v5353_v40  ;;  %v5388_v23 = vmax.f32 %v4876_v61, 0.0  ;;  %3666 = vmatprep.mubr.bf16.mxu1 %v15457_v36 }
 0x28c   : > { %v10754_v11 = vpack.c.bf16 %v5387_v34, %v5355_v24  ;;  %v2821_v17 = vpop.f32.mrb[188].mxu0  ;;  %v10756_v28 = vpack.c.bf16 %v5386_v27, %v5354_v47 }
 0x28d   : > { %15532 = vst [vmem:[#allocation71_spill] sm:$0xff] %v10751_v42  ;;  %v4905_v20 = vadd.f32 %v10507_v51, %v2821_v17  ;;  %v2942_v46 = vpop.f32.mrb[188].mxu1  ;;  %v2823_v49 = vpop.f32.mrb[189].mxu0  ;;  %v10759_v63 = vpack.c.bf16 %v5388_v23, %v5356_v37 }
 0x28e   : > { %15533 = vst [vmem:[#allocation72_spill] sm:$0xff] %v10754_v11  ;;  %15534 = vst [vmem:[#allocation73_spill] sm:$0xff] %v10756_v28  ;;  %v4907_v45 = vadd.f32 %v10507_v51, %v2942_v46  ;;  %v4906_v14 = vadd.f32 %v10507_v51, %v2823_v49  ;;  %v2944_v40 = vpop.f32.mrb[189].mxu1  ;;  %v2825_v4 = vpop.f32.mrb[190].mxu0  ;;  %v10771_v46 = vld [vmem:[%s15163_s2 + $0x30] sm:$0xff]  }
 0x28f   : > { %15535 = vst [vmem:[#allocation74_spill] sm:$0xff] %v10759_v63  ;;  %v4908_v61 = vadd.f32 %v10507_v51, %v2944_v40  ;;  %v4937_v24 = vadd.f32 %v10512_v58, %v2825_v4  ;;  %v2946_v34 = vpop.f32.mrb[190].mxu1  ;;  %v2827_v11 = vpop.f32.mrb[191].mxu0  ;;  %v5417_v42 = vmax.f32 %v4905_v20, 0.0 }
 0x290   : > { %v4939_v27 = vadd.f32 %v10512_v58, %v2946_v34  ;;  %v4938_v47 = vadd.f32 %v10512_v58, %v2827_v11  ;;  %v2948_v17 = vpop.f32.mrb[191].mxu1  ;;  %v5419_v49 = vmax.f32 %v4907_v45, 0.0  ;;  %v5418_v40 = vmax.f32 %v4906_v14, 0.0 }
 0x291   : > { %v5449_v37 = vmax.f32 %v4937_v24, 0.0  ;;  %v4940_v23 = vadd.f32 %v10512_v58, %v2948_v17  ;;  %8713 = vmatmul.mubr.msk.bf16.gmra.mrb[40].mxu0 %vm2457_vm2, %v10771_v46  ;;  %v5420_v11 = vmax.f32 %v4908_v61, 0.0 }
 0x292   : > { %v5451_v4 = vmax.f32 %v4939_v27, 0.0  ;;  %v5450_v63 = vmax.f32 %v4938_v47, 0.0  ;;  %8722 = vmatmul.mubr.msk.bf16.gmra.mrb[40].mxu1 %vm2457_vm2, %v10771_v46  ;;  %3555 = vmatprep.mubr.bf16.mxu0 %v15457_v36 }
 0x293   : > { %v10778_v20 = vpack.c.bf16 %v5449_v37, %v5417_v42  ;;  %v5452_v24 = vmax.f32 %v4940_v23, 0.0  ;;  %3676 = vmatprep.mubr.bf16.mxu1 %v15457_v36 }
 0x294   : > { %v10781_v34 = vpack.c.bf16 %v5451_v4, %v5419_v49  ;;  %v2831_v17 = vpop.f32.mrb[192].mxu0  ;;  %v10783_v28 = vpack.c.bf16 %v5450_v63, %v5418_v40 }
 0x295   : > { %15536 = vst [vmem:[#allocation75_spill] sm:$0xff] %v10778_v20  ;;  %v4969_v45 = vadd.f32 %v10533_v33, %v2831_v17  ;;  %v2952_v14 = vpop.f32.mrb[192].mxu1  ;;  %v2833_v27 = vpop.f32.mrb[193].mxu0  ;;  %v10786_v47 = vpack.c.bf16 %v5452_v24, %v5420_v11 }
 0x296   : > { %15537 = vst [vmem:[#allocation76_spill] sm:$0xff] %v10781_v34  ;;  %15538 = vst [vmem:[#allocation77_spill] sm:$0xff] %v10783_v28  ;;  %v4971_v35 = vadd.f32 %v10533_v33, %v2952_v14  ;;  %v4970_v61 = vadd.f32 %v10533_v33, %v2833_v27  ;;  %v2954_v42 = vpop.f32.mrb[193].mxu1  ;;  %v2835_v37 = vpop.f32.mrb[194].mxu0  ;;  %v10798_v14 = vld [vmem:[%s15163_s2 + $0x38] sm:$0xff]  }
 0x297   : > { %15539 = vst [vmem:[#allocation78_spill] sm:$0xff] %v10786_v47  ;;  %v4972_v23 = vadd.f32 %v10533_v33, %v2954_v42  ;;  %v5001_v49 = vadd.f32 %v10538_v16, %v2835_v37  ;;  %v2956_v4 = vpop.f32.mrb[194].mxu1  ;;  %v2837_v34 = vpop.f32.mrb[195].mxu0  ;;  %v5481_v20 = vmax.f32 %v4969_v45, 0.0 }
 0x298   : > { %v5003_v63 = vadd.f32 %v10538_v16, %v2956_v4  ;;  %v5002_v40 = vadd.f32 %v10538_v16, %v2837_v34  ;;  %v2958_v17 = vpop.f32.mrb[195].mxu1  ;;  %v5483_v27 = vmax.f32 %v4971_v35, 0.0  ;;  %v5482_v42 = vmax.f32 %v4970_v61, 0.0 }
 0x299   : > { %v5513_v11 = vmax.f32 %v5001_v49, 0.0  ;;  %v5004_v24 = vadd.f32 %v10538_v16, %v2958_v17  ;;  %8714 = vmatmul.mubr.msk.bf16.gmra.mrb[44].mxu0 %vm2457_vm2, %v10798_v14  ;;  %v5484_v34 = vmax.f32 %v4972_v23, 0.0 }
 0x29a   : > { %v5515_v37 = vmax.f32 %v5003_v63, 0.0  ;;  %v5514_v47 = vmax.f32 %v5002_v40, 0.0  ;;  %8723 = vmatmul.mubr.msk.bf16.gmra.mrb[44].mxu1 %vm2457_vm2, %v10798_v14  ;;  %3565 = vmatprep.mubr.bf16.mxu0 %v15457_v36 }
 0x29b   : > { %v10805_v45 = vpack.c.bf16 %v5513_v11, %v5481_v20  ;;  %v5516_v49 = vmax.f32 %v5004_v24, 0.0  ;;  %3686 = vmatprep.mubr.bf16.mxu1 %v15457_v36 }
 0x29c   : > { %v10808_v4 = vpack.c.bf16 %v5515_v37, %v5483_v27  ;;  %v10810_v17 = vpop.f32.mrb[196].mxu0  ;;  %v10812_v28 = vpack.c.bf16 %v5514_v47, %v5482_v42  ;;  %v10825_v27 = vld [vmem:[%s15163_s2 + $0x40] ss:$0 sps:$4 sm:$0x33]  }
 0x29d   : > { %15540 = vst [vmem:[#allocation79_spill] sm:$0xff] %v10805_v45  ;;  %15542 = vst [vmem:[#allocation81_spill] sm:$0xff] %v10810_v17  ;;  %v10814_v35 = vpop.f32.mrb[196].mxu1  ;;  %v10816_v61 = vpop.f32.mrb[197].mxu0  ;;  %v10818_v63 = vpack.c.bf16 %v5516_v49, %v5484_v34 }
 0x29e   : > { %15541 = vst [vmem:[#allocation80_spill] sm:$0xff] %v10808_v4  ;;  %15543 = vst [vmem:[#allocation82_spill] sm:$0xff] %v10812_v28  ;;  %v10820_v40 = vpop.f32.mrb[197].mxu1  ;;  %v2845_v23 = vpop.f32.mrb[198].mxu0 }
 0x29f   : > { %15544 = vst [vmem:[#allocation83_spill] sm:$0xff] %v10814_v35  ;;  %15545 = vst [vmem:[#allocation84_spill] sm:$0xff] %v10816_v61  ;;  %v2966_v20 = vpop.f32.mrb[198].mxu1  ;;  %v2846_v11 = vpop.f32.mrb[199].mxu0 }
 0x2a0   : > { %15546 = vst [vmem:[#allocation85_spill] sm:$0xff] %v10818_v63  ;;  %15547 = vst [vmem:[#allocation86_spill] sm:$0xff] %v10820_v40  ;;  %v2967_v24 = vpop.f32.mrb[199].mxu1 }
 0x2a1   : > { %8715 = vmatmul.mubr.msk.bf16.gmra.mrb[48].mxu0 %vm2457_vm2, %v10825_v27 }
 0x2a2   : > { %8724 = vmatmul.mubr.msk.bf16.gmra.mrb[48].mxu1 %vm2457_vm2, %v10825_v27  ;;  %3727 = vmatprep.mubr.bf16.mxu0 %v15457_v36 }
 0x2a3   : > { %3848 = vmatprep.mubr.bf16.mxu1 %v15457_v36 }
 0x2a4   : > { %v3003_v47 = vpop.f32.mrb[200].mxu0 }
 0x2a5   : > { %v4525_v42 = vadd.f32 %v10335_v57, %v3003_v47  ;;  %v3124_v37 = vpop.f32.mrb[200].mxu1  ;;  %v3005_v34 = vpop.f32.mrb[201].mxu0 }
 0x2a6   : > { %v4527_v49 = vadd.f32 %v10335_v57, %v3124_v37  ;;  %v4526_v23 = vadd.f32 %v10335_v57, %v3005_v34  ;;  %v3126_v20 = vpop.f32.mrb[201].mxu1  ;;  %v3007_v11 = vpop.f32.mrb[202].mxu0 }
 0x2a7   : > { %v4528_v24 = vadd.f32 %v10335_v57, %v3126_v20  ;;  %v4557_v40 = vadd.f32 %v10340_v6, %v3007_v11  ;;  %v3128_v61 = vpop.f32.mrb[202].mxu1  ;;  %v3009_v35 = vpop.f32.mrb[203].mxu0  ;;  %v5037_v47 = vmax.f32 %v4525_v42, 0.0 }
 0x2a8   : > { %v4559_v17 = vadd.f32 %v10340_v6, %v3128_v61  ;;  %v4558_v4 = vadd.f32 %v10340_v6, %v3009_v35  ;;  %v3130_v45 = vpop.f32.mrb[203].mxu1  ;;  %v5039_v37 = vmax.f32 %v4527_v49, 0.0  ;;  %v5038_v34 = vmax.f32 %v4526_v23, 0.0  ;;  %v15549_v49 = vld [vmem:[#allocation11_spill] sm:$0xff] }
 0x2a9   : > { %v5069_v63 = vmax.f32 %v4557_v40, 0.0  ;;  %v4560_v28 = vadd.f32 %v10340_v6, %v3130_v45  ;;  %8725 = vmatmul.mubr.msk.bf16.vlgmr.msra.gmra.mrb[52].mxu0 %vm2457_vm2, %v10593_v1  ;;  %v5040_v61 = vmax.f32 %v4528_v24, 0.0 }
 0x2aa   : > { %v5071_v13 = vmax.f32 %v4559_v17, 0.0  ;;  %v5070_v20 = vmax.f32 %v4558_v4, 0.0  ;;  %8734 = vmatmul.mubr.msk.bf16.vlgmr.msra.gmra.mrb[52].mxu1 %vm2457_vm2, %v10593_v1  ;;  %3938 = vmatpush1.bf16.msra.mxu0 %v10138_v39 }
 0x2ab   : > { %v10846_v11 = vpack.c.bf16 %v5069_v63, %v5037_v47  ;;  %v5072_v35 = vmax.f32 %v4560_v28, 0.0  ;;  %4059 = vmatpush1.bf16.msra.mxu1 %v10142_v25  ;;  %3939 = vmatprep.subr.bf16.mxu0 %v10178_v60  ;;  %v15548_v63 = vld [vmem:[#allocation10_spill] sm:$0xff] }
 0x2ac   : > { %v10850_v45 = vpack.c.bf16 %v5071_v13, %v5039_v37  ;;  %4060 = vmatprep.subr.bf16.mxu1 %v10181_v0  ;;  %v3013_v40 = vpop.f32.mrb[204].mxu0  ;;  %3737 = vmatprep.mubr.bf16.mxu0 %v15457_v36  ;;  %v10854_v4 = vpack.c.bf16 %v5070_v20, %v5038_v34  ;;  %v15550_v47 = vld [vmem:[#allocation14_spill] sm:$0xff]  ;;  %v15551_v20 = vld [vmem:[#allocation15_spill] sm:$0xff] }
 0x2ad   : > { %v4589_v1 = vadd.f32 %v10361_v55, %v3013_v40  ;;  %v3134_v39 = vpop.f32.mrb[204].mxu1  ;;  %v3015_v17 = vpop.f32.mrb[205].mxu0  ;;  %3858 = vmatprep.mubr.bf16.mxu1 %v15457_v36  ;;  %v10858_v28 = vpack.c.bf16 %v5072_v35, %v5040_v61 }
 0x2ae   : > { %v4591_v25 = vadd.f32 %v10361_v55, %v3134_v39  ;;  %v4590_v60 = vadd.f32 %v10361_v55, %v3015_v17  ;;  %v3136_v13 = vpop.f32.mrb[205].mxu1  ;;  %3940 = vmatpush1.bf16.msra.mxu0 %v15548_v63  ;;  %v3017_v0 = vpop.f32.mrb[206].mxu0 }
 0x2af   : > { %v4592_v42 = vadd.f32 %v10361_v55, %v3136_v13  ;;  %4061 = vmatpush1.bf16.msra.mxu1 %v15549_v49  ;;  %v4621_v23 = vadd.f32 %v10367_v22, %v3017_v0  ;;  %v3138_v24 = vpop.f32.mrb[206].mxu1  ;;  %3941 = vmatprep.subr.bf16.mxu0 %v15550_v47  ;;  %v3019_v37 = vpop.f32.mrb[207].mxu0  ;;  %v5101_v40 = vmax.f32 %v4589_v1, 0.0  ;;  %v15553_v1 = vld [vmem:[#allocation13_spill] sm:$0xff] }
 0x2b0   : > { %v4623_v34 = vadd.f32 %v10367_v22, %v3138_v24  ;;  %4062 = vmatprep.subr.bf16.mxu1 %v15551_v20  ;;  %v4622_v61 = vadd.f32 %v10367_v22, %v3019_v37  ;;  %v3140_v35 = vpop.f32.mrb[207].mxu1  ;;  %v5103_v13 = vmax.f32 %v4591_v25, 0.0  ;;  %v5102_v63 = vmax.f32 %v4590_v60, 0.0  ;;  %v15552_v24 = vld [vmem:[#allocation12_spill] sm:$0xff] }
 0x2b1   : > { %v5133_v39 = vmax.f32 %v4621_v23, 0.0  ;;  %v4624_v17 = vadd.f32 %v10367_v22, %v3140_v35  ;;  %8726 = vmatmul.mubr.msk.bf16.gmra.mrb[56].mxu0 %vm2457_vm2, %v10628_v5  ;;  %v5104_v47 = vmax.f32 %v4592_v42, 0.0  ;;  %v15555_v35 = vld [vmem:[#allocation18_spill] sm:$0xff] }
 0x2b2   : > { %v5135_v0 = vmax.f32 %v4623_v34, 0.0  ;;  %v5134_v49 = vmax.f32 %v4622_v61, 0.0  ;;  %8735 = vmatmul.mubr.msk.bf16.gmra.mrb[56].mxu1 %vm2457_vm2, %v10628_v5  ;;  %3942 = vmatpush1.bf16.msra.mxu0 %v15552_v24 }
 0x2b3   : > { %v10876_v20 = vpack.c.bf16 %v5133_v39, %v5101_v40  ;;  %v5136_v37 = vmax.f32 %v4624_v17, 0.0  ;;  %4063 = vmatpush1.bf16.msra.mxu1 %v15553_v1  ;;  %3943 = vmatprep.subr.bf16.mxu0 %v10232_v32  ;;  %v15556_v17 = vld [vmem:[#allocation16_spill] sm:$0xff] }
 0x2b4   : > { %v10880_v23 = vpack.c.bf16 %v5135_v0, %v5103_v13  ;;  %4064 = vmatprep.subr.bf16.mxu1 %v15555_v35  ;;  %v3023_v25 = vpop.f32.mrb[208].mxu0  ;;  %3747 = vmatprep.mubr.bf16.mxu0 %v15457_v36  ;;  %v10884_v60 = vpack.c.bf16 %v5134_v49, %v5102_v63  ;;  %v15557_v63 = vld [vmem:[#allocation17_spill] sm:$0xff] }
 0x2b5   : > { %v4653_v5 = vadd.f32 %v10395_v41, %v3023_v25  ;;  %v3144_v34 = vpop.f32.mrb[208].mxu1  ;;  %v3025_v42 = vpop.f32.mrb[209].mxu0  ;;  %3868 = vmatprep.mubr.bf16.mxu1 %v15457_v36  ;;  %v10888_v61 = vpack.c.bf16 %v5136_v37, %v5104_v47  ;;  %v15558_v37 = vld [vmem:[#allocation21_spill] sm:$0xff] }
 0x2b6   : > { %15554 = vst [vmem:[#allocation10_spill] sm:$0xff] %v10880_v23  ;;  %v4655_v40 = vadd.f32 %v10395_v41, %v3144_v34  ;;  %v4654_v32 = vadd.f32 %v10395_v41, %v3025_v42  ;;  %v3146_v39 = vpop.f32.mrb[209].mxu1  ;;  %3944 = vmatpush1.bf16.msra.mxu0 %v15556_v17  ;;  %v3027_v13 = vpop.f32.mrb[210].mxu0 }
 0x2b7   : > { %v4656_v0 = vadd.f32 %v10395_v41, %v3146_v39  ;;  %4065 = vmatpush1.bf16.msra.mxu1 %v15557_v63  ;;  %v4685_v49 = vadd.f32 %v10401_v8, %v3027_v13  ;;  %v3148_v24 = vpop.f32.mrb[210].mxu1  ;;  %4179 = vmatprep.subr.bf16.mxu0 %v10259_v62  ;;  %v3029_v1 = vpop.f32.mrb[211].mxu0  ;;  %v5165_v34 = vmax.f32 %v4653_v5, 0.0 }
 0x2b8   : > { %v4687_v47 = vadd.f32 %v10401_v8, %v3148_v24  ;;  %4300 = vmatprep.subr.bf16.mxu1 %v15558_v37  ;;  %v4686_v35 = vadd.f32 %v10401_v8, %v3029_v1  ;;  %v3150_v25 = vpop.f32.mrb[211].mxu1  ;;  %v5167_v39 = vmax.f32 %v4655_v40, 0.0  ;;  %v5166_v13 = vmax.f32 %v4654_v32, 0.0 }
 0x2b9   : > { %v5197_v42 = vmax.f32 %v4685_v49, 0.0  ;;  %v4688_v17 = vadd.f32 %v10401_v8, %v3150_v25  ;;  %8727 = vmatmul.mubr.msk.bf16.gmra.mrb[60].mxu0 %vm2457_vm2, %v10663_v52  ;;  %v5168_v62 = vmax.f32 %v4656_v0, 0.0 }
 0x2ba   : > { %v5199_v63 = vmax.f32 %v4687_v47, 0.0  ;;  %v5198_v23 = vmax.f32 %v4686_v35, 0.0  ;;  %8736 = vmatmul.mubr.msk.bf16.gmra.mrb[60].mxu1 %vm2457_vm2, %v10663_v52  ;;  %3757 = vmatprep.mubr.bf16.mxu0 %v15457_v36 }
 0x2bb   : > { %v10906_v24 = vpack.c.bf16 %v5197_v42, %v5165_v34  ;;  %v5200_v1 = vmax.f32 %v4688_v17, 0.0  ;;  %3878 = vmatprep.mubr.bf16.mxu1 %v15457_v36 }
 0x2bc   : > { %v10909_v5 = vpack.c.bf16 %v5199_v63, %v5167_v39  ;;  %v3033_v49 = vpop.f32.mrb[212].mxu0  ;;  %v10911_v37 = vpack.c.bf16 %v5198_v23, %v5166_v13 }
 0x2bd   : > { %15559 = vst [vmem:[#allocation11_spill] sm:$0xff] %v10906_v24  ;;  %v4717_v40 = vadd.f32 %v10429_v38, %v3033_v49  ;;  %v3154_v32 = vpop.f32.mrb[212].mxu1  ;;  %v3035_v47 = vpop.f32.mrb[213].mxu0  ;;  %v10914_v35 = vpack.c.bf16 %v5200_v1, %v5168_v62 }
 0x2be   : > { %15560 = vst [vmem:[#allocation14_spill] sm:$0xff] %v10909_v5  ;;  %v4719_v52 = vadd.f32 %v10429_v38, %v3154_v32  ;;  %v4718_v0 = vadd.f32 %v10429_v38, %v3035_v47  ;;  %v3156_v25 = vpop.f32.mrb[213].mxu1  ;;  %v3037_v34 = vpop.f32.mrb[214].mxu0 }
 0x2bf   : > { %v4720_v42 = vadd.f32 %v10429_v38, %v3156_v25  ;;  %v4749_v17 = vadd.f32 %v10434_v12, %v3037_v34  ;;  %v3158_v39 = vpop.f32.mrb[214].mxu1  ;;  %v3039_v63 = vpop.f32.mrb[215].mxu0  ;;  %v5229_v5 = vmax.f32 %v4717_v40, 0.0 }
 0x2c0   : > { %v4751_v23 = vadd.f32 %v10434_v12, %v3158_v39  ;;  %v4750_v13 = vadd.f32 %v10434_v12, %v3039_v63  ;;  %v3160_v49 = vpop.f32.mrb[215].mxu1  ;;  %v5231_v32 = vmax.f32 %v4719_v52, 0.0  ;;  %v5230_v47 = vmax.f32 %v4718_v0, 0.0 }
 0x2c1   : > { %v5261_v62 = vmax.f32 %v4749_v17, 0.0  ;;  %v4752_v1 = vadd.f32 %v10434_v12, %v3160_v49  ;;  %8728 = vmatmul.mubr.msk.bf16.gmra.mrb[64].mxu0 %vm2457_vm2, %v10690_v18  ;;  %v5232_v34 = vmax.f32 %v4720_v42, 0.0 }
 0x2c2   : > { %v5263_v24 = vmax.f32 %v4751_v23, 0.0  ;;  %v5262_v25 = vmax.f32 %v4750_v13, 0.0  ;;  %8737 = vmatmul.mubr.msk.bf16.gmra.mrb[64].mxu1 %vm2457_vm2, %v10690_v18  ;;  %3767 = vmatprep.mubr.bf16.mxu0 %v15457_v36 }
 0x2c3   : > { %v10928_v39 = vpack.c.bf16 %v5261_v62, %v5229_v5  ;;  %v5264_v63 = vmax.f32 %v4752_v1, 0.0  ;;  %3888 = vmatprep.mubr.bf16.mxu1 %v15457_v36 }
 0x2c4   : > { %v10931_v40 = vpack.c.bf16 %v5263_v24, %v5231_v32  ;;  %v3043_v17 = vpop.f32.mrb[216].mxu0  ;;  %v10933_v49 = vpack.c.bf16 %v5262_v25, %v5230_v47 }
 0x2c5   : > { %15561 = vst [vmem:[#allocation15_spill] sm:$0xff] %v10928_v39  ;;  %v4781_v52 = vadd.f32 %v10455_v50, %v3043_v17  ;;  %v3164_v0 = vpop.f32.mrb[216].mxu1  ;;  %v3045_v23 = vpop.f32.mrb[217].mxu0  ;;  %v10936_v13 = vpack.c.bf16 %v5264_v63, %v5232_v34 }
 0x2c6   : > { %15562 = vst [vmem:[#allocation12_spill] sm:$0xff] %v10931_v40  ;;  %15563 = vst [vmem:[#allocation13_spill] sm:$0xff] %v10933_v49  ;;  %v4783_v18 = vadd.f32 %v10455_v50, %v3164_v0  ;;  %v4782_v42 = vadd.f32 %v10455_v50, %v3045_v23  ;;  %v3166_v5 = vpop.f32.mrb[217].mxu1  ;;  %v3047_v62 = vpop.f32.mrb[218].mxu0 }
 0x2c7   : > { %15564 = vst [vmem:[#allocation18_spill] sm:$0xff] %v10936_v13  ;;  %v4784_v1 = vadd.f32 %v10455_v50, %v3166_v5  ;;  %v4813_v24 = vadd.f32 %v10460_v30, %v3047_v62  ;;  %v3168_v32 = vpop.f32.mrb[218].mxu1  ;;  %v3049_v40 = vpop.f32.mrb[219].mxu0  ;;  %v5293_v39 = vmax.f32 %v4781_v52, 0.0 }
 0x2c8   : > { %v4815_v47 = vadd.f32 %v10460_v30, %v3168_v32  ;;  %v4814_v25 = vadd.f32 %v10460_v30, %v3049_v40  ;;  %v3170_v17 = vpop.f32.mrb[219].mxu1  ;;  %v5295_v0 = vmax.f32 %v4783_v18, 0.0  ;;  %v5294_v23 = vmax.f32 %v4782_v42, 0.0 }
 0x2c9   : > { %v5325_v34 = vmax.f32 %v4813_v24, 0.0  ;;  %v4816_v63 = vadd.f32 %v10460_v30, %v3170_v17  ;;  %8729 = vmatmul.mubr.msk.bf16.gmra.mrb[68].mxu0 %vm2457_vm2, %v10717_v48  ;;  %v5296_v62 = vmax.f32 %v4784_v1, 0.0 }
 0x2ca   : > { %v5327_v13 = vmax.f32 %v4815_v47, 0.0  ;;  %v5326_v5 = vmax.f32 %v4814_v25, 0.0  ;;  %8738 = vmatmul.mubr.msk.bf16.gmra.mrb[68].mxu1 %vm2457_vm2, %v10717_v48  ;;  %3777 = vmatprep.mubr.bf16.mxu0 %v15457_v36 }
 0x2cb   : > { %v10950_v32 = vpack.c.bf16 %v5325_v34, %v5293_v39  ;;  %v5328_v40 = vmax.f32 %v4816_v63, 0.0  ;;  %3898 = vmatprep.mubr.bf16.mxu1 %v15457_v36 }
 0x2cc   : > { %v10953_v52 = vpack.c.bf16 %v5327_v13, %v5295_v0  ;;  %v3053_v24 = vpop.f32.mrb[220].mxu0  ;;  %v10955_v17 = vpack.c.bf16 %v5326_v5, %v5294_v23 }
 0x2cd   : > { %15565 = vst [vmem:[#allocation16_spill] sm:$0xff] %v10950_v32  ;;  %v4845_v18 = vadd.f32 %v10481_v3, %v3053_v24  ;;  %v3174_v42 = vpop.f32.mrb[220].mxu1  ;;  %v3055_v47 = vpop.f32.mrb[221].mxu0  ;;  %v10958_v25 = vpack.c.bf16 %v5328_v40, %v5296_v62 }
 0x2ce   : > { %15566 = vst [vmem:[#allocation17_spill] sm:$0xff] %v10953_v52  ;;  %15567 = vst [vmem:[#allocation21_spill] sm:$0xff] %v10955_v17  ;;  %v4847_v48 = vadd.f32 %v10481_v3, %v3174_v42  ;;  %v4846_v1 = vadd.f32 %v10481_v3, %v3055_v47  ;;  %v3176_v39 = vpop.f32.mrb[221].mxu1  ;;  %v3057_v34 = vpop.f32.mrb[222].mxu0 }
 0x2cf   : > { %15568 = vst [vmem:[#allocation87_spill] sm:$0xff] %v10958_v25  ;;  %v4848_v63 = vadd.f32 %v10481_v3, %v3176_v39  ;;  %v4877_v13 = vadd.f32 %v10486_v7, %v3057_v34  ;;  %v3178_v0 = vpop.f32.mrb[222].mxu1  ;;  %v3059_v52 = vpop.f32.mrb[223].mxu0  ;;  %v5357_v32 = vmax.f32 %v4845_v18, 0.0 }
 0x2d0   : > { %v4879_v23 = vadd.f32 %v10486_v7, %v3178_v0  ;;  %v4878_v5 = vadd.f32 %v10486_v7, %v3059_v52  ;;  %v3180_v24 = vpop.f32.mrb[223].mxu1  ;;  %v5359_v42 = vmax.f32 %v4847_v48, 0.0  ;;  %v5358_v47 = vmax.f32 %v4846_v1, 0.0 }
 0x2d1   : > { %v5389_v62 = vmax.f32 %v4877_v13, 0.0  ;;  %v4880_v40 = vadd.f32 %v10486_v7, %v3180_v24  ;;  %8730 = vmatmul.mubr.msk.bf16.gmra.mrb[72].mxu0 %vm2457_vm2, %v10744_v19  ;;  %v5360_v34 = vmax.f32 %v4848_v63, 0.0 }
 0x2d2   : > { %v5391_v25 = vmax.f32 %v4879_v23, 0.0  ;;  %v5390_v39 = vmax.f32 %v4878_v5, 0.0  ;;  %8739 = vmatmul.mubr.msk.bf16.gmra.mrb[72].mxu1 %vm2457_vm2, %v10744_v19  ;;  %3787 = vmatprep.mubr.bf16.mxu0 %v15457_v36 }
 0x2d3   : > { %v10972_v0 = vpack.c.bf16 %v5389_v62, %v5357_v32  ;;  %v5392_v52 = vmax.f32 %v4880_v40, 0.0  ;;  %3908 = vmatprep.mubr.bf16.mxu1 %v15457_v36 }
 0x2d4   : > { %v10975_v18 = vpack.c.bf16 %v5391_v25, %v5359_v42  ;;  %v3063_v13 = vpop.f32.mrb[224].mxu0  ;;  %v10977_v24 = vpack.c.bf16 %v5390_v39, %v5358_v47 }
 0x2d5   : > { %15569 = vst [vmem:[#allocation88_spill] sm:$0xff] %v10972_v0  ;;  %v4909_v48 = vadd.f32 %v10507_v51, %v3063_v13  ;;  %v3184_v1 = vpop.f32.mrb[224].mxu1  ;;  %v3065_v23 = vpop.f32.mrb[225].mxu0  ;;  %v10980_v5 = vpack.c.bf16 %v5392_v52, %v5360_v34 }
 0x2d6   : > { %15570 = vst [vmem:[#allocation89_spill] sm:$0xff] %v10975_v18  ;;  %15571 = vst [vmem:[#allocation90_spill] sm:$0xff] %v10977_v24  ;;  %v4911_v19 = vadd.f32 %v10507_v51, %v3184_v1  ;;  %v4910_v63 = vadd.f32 %v10507_v51, %v3065_v23  ;;  %v3186_v32 = vpop.f32.mrb[225].mxu1  ;;  %v3067_v62 = vpop.f32.mrb[226].mxu0 }
 0x2d7   : > { %15572 = vst [vmem:[#allocation91_spill] sm:$0xff] %v10980_v5  ;;  %v4912_v40 = vadd.f32 %v10507_v51, %v3186_v32  ;;  %v4941_v25 = vadd.f32 %v10512_v58, %v3067_v62  ;;  %v3188_v42 = vpop.f32.mrb[226].mxu1  ;;  %v3069_v18 = vpop.f32.mrb[227].mxu0  ;;  %v5421_v0 = vmax.f32 %v4909_v48, 0.0 }
 0x2d8   : > { %v4943_v47 = vadd.f32 %v10512_v58, %v3188_v42  ;;  %v4942_v39 = vadd.f32 %v10512_v58, %v3069_v18  ;;  %v3190_v13 = vpop.f32.mrb[227].mxu1  ;;  %v5423_v1 = vmax.f32 %v4911_v19, 0.0  ;;  %v5422_v23 = vmax.f32 %v4910_v63, 0.0 }
 0x2d9   : > { %v5453_v34 = vmax.f32 %v4941_v25, 0.0  ;;  %v4944_v52 = vadd.f32 %v10512_v58, %v3190_v13  ;;  %8731 = vmatmul.mubr.msk.bf16.gmra.mrb[76].mxu0 %vm2457_vm2, %v10771_v46  ;;  %v5424_v62 = vmax.f32 %v4912_v40, 0.0 }
 0x2da   : > { %v5455_v5 = vmax.f32 %v4943_v47, 0.0  ;;  %v5454_v32 = vmax.f32 %v4942_v39, 0.0  ;;  %8740 = vmatmul.mubr.msk.bf16.gmra.mrb[76].mxu1 %vm2457_vm2, %v10771_v46  ;;  %3797 = vmatprep.mubr.bf16.mxu0 %v15457_v36 }
 0x2db   : > { %v10994_v42 = vpack.c.bf16 %v5453_v34, %v5421_v0  ;;  %v5456_v18 = vmax.f32 %v4944_v52, 0.0  ;;  %3918 = vmatprep.mubr.bf16.mxu1 %v15457_v36 }
 0x2dc   : > { %v10997_v48 = vpack.c.bf16 %v5455_v5, %v5423_v1  ;;  %v3073_v25 = vpop.f32.mrb[228].mxu0  ;;  %v10999_v13 = vpack.c.bf16 %v5454_v32, %v5422_v23 }
 0x2dd   : > { %15573 = vst [vmem:[#allocation92_spill] sm:$0xff] %v10994_v42  ;;  %v4973_v19 = vadd.f32 %v10533_v33, %v3073_v25  ;;  %v3194_v63 = vpop.f32.mrb[228].mxu1  ;;  %v3075_v47 = vpop.f32.mrb[229].mxu0  ;;  %v11002_v39 = vpack.c.bf16 %v5456_v18, %v5424_v62 }
 0x2de   : > { %15574 = vst [vmem:[#allocation93_spill] sm:$0xff] %v10997_v48  ;;  %15575 = vst [vmem:[#allocation94_spill] sm:$0xff] %v10999_v13  ;;  %v4975_v46 = vadd.f32 %v10533_v33, %v3194_v63  ;;  %v4974_v40 = vadd.f32 %v10533_v33, %v3075_v47  ;;  %v3196_v0 = vpop.f32.mrb[229].mxu1  ;;  %v3077_v34 = vpop.f32.mrb[230].mxu0  ;;  %v15601_v13 = vld [vmem:[#allocation32_spill] sm:$0xff] }
 0x2df   : > { %15576 = vst [vmem:[#allocation95_spill] sm:$0xff] %v11002_v39  ;;  %v4976_v52 = vadd.f32 %v10533_v33, %v3196_v0  ;;  %v5005_v5 = vadd.f32 %v10538_v16, %v3077_v34  ;;  %v3198_v1 = vpop.f32.mrb[230].mxu1  ;;  %v3079_v48 = vpop.f32.mrb[231].mxu0  ;;  %v5485_v42 = vmax.f32 %v4973_v19, 0.0 }
 0x2e0   : > { %v5007_v23 = vadd.f32 %v10538_v16, %v3198_v1  ;;  %v5006_v32 = vadd.f32 %v10538_v16, %v3079_v48  ;;  %v3200_v25 = vpop.f32.mrb[231].mxu1  ;;  %v5487_v63 = vmax.f32 %v4975_v46, 0.0  ;;  %v5486_v47 = vmax.f32 %v4974_v40, 0.0 }
 0x2e1   : > { %v5517_v62 = vmax.f32 %v5005_v5, 0.0  ;;  %v5008_v18 = vadd.f32 %v10538_v16, %v3200_v25  ;;  %8732 = vmatmul.mubr.msk.bf16.gmra.mrb[80].mxu0 %vm2457_vm2, %v10798_v14  ;;  %v5488_v34 = vmax.f32 %v4976_v52, 0.0 }
 0x2e2   : > { %v5519_v39 = vmax.f32 %v5007_v23, 0.0  ;;  %v5518_v0 = vmax.f32 %v5006_v32, 0.0  ;;  %8741 = vmatmul.mubr.msk.bf16.gmra.mrb[80].mxu1 %vm2457_vm2, %v10798_v14  ;;  %3807 = vmatprep.mubr.bf16.mxu0 %v15457_v36 }
 0x2e3   : > { %v11016_v1 = vpack.c.bf16 %v5517_v62, %v5485_v42  ;;  %v5520_v48 = vmax.f32 %v5008_v18, 0.0  ;;  %3928 = vmatprep.mubr.bf16.mxu1 %v15457_v36 }
 0x2e4   : > { %v11019_v19 = vpack.c.bf16 %v5519_v39, %v5487_v63  ;;  %v11021_v5 = vpop.f32.mrb[232].mxu0  ;;  %v11023_v25 = vpack.c.bf16 %v5518_v0, %v5486_v47 }
 0x2e5   : > { %15577 = vst [vmem:[#allocation96_spill] sm:$0xff] %v11016_v1  ;;  %15579 = vst [vmem:[#allocation98_spill] sm:$0xff] %v11021_v5  ;;  %v11025_v46 = vpop.f32.mrb[232].mxu1  ;;  %v11027_v40 = vpop.f32.mrb[233].mxu0  ;;  %v11029_v23 = vpack.c.bf16 %v5520_v48, %v5488_v34 }
 0x2e6   : > { %15578 = vst [vmem:[#allocation97_spill] sm:$0xff] %v11019_v19  ;;  %15580 = vst [vmem:[#allocation99_spill] sm:$0xff] %v11023_v25  ;;  %v11031_v14 = vpop.f32.mrb[233].mxu1  ;;  %v3087_v52 = vpop.f32.mrb[234].mxu0  ;;  %v15589_v25 = vld [vmem:[#allocation24_spill] sm:$0xff] }
 0x2e7   : > { %15581 = vst [vmem:[#allocation100_spill] sm:$0xff] %v11025_v46  ;;  %15582 = vst [vmem:[#allocation101_spill] sm:$0xff] %v11027_v40  ;;  %v3208_v42 = vpop.f32.mrb[234].mxu1  ;;  %v3088_v32 = vpop.f32.mrb[235].mxu0 }
 0x2e8   : > { %15583 = vst [vmem:[#allocation102_spill] sm:$0xff] %v11029_v23  ;;  %15584 = vst [vmem:[#allocation103_spill] sm:$0xff] %v11031_v14  ;;  %v3209_v62 = vpop.f32.mrb[235].mxu1 }
 0x2e9   : > { %8733 = vmatmul.mubr.msk.bf16.gmra.mrb[84].mxu0 %vm2457_vm2, %v10825_v27 }
 0x2ea   : > { %8742 = vmatmul.mubr.msk.bf16.gmra.mrb[84].mxu1 %vm2457_vm2, %v10825_v27  ;;  %3969 = vmatprep.mubr.bf16.mxu0 %v15457_v36 }
 0x2eb   : > { %4090 = vmatprep.mubr.bf16.mxu1 %v15457_v36 }
 0x2ec   : > { %v3245_v39 = vpop.f32.mrb[236].mxu0 }
 0x2ed   : > { %v4529_v18 = vadd.f32 %v10335_v57, %v3245_v39  ;;  %v3366_v63 = vpop.f32.mrb[236].mxu1  ;;  %v3247_v47 = vpop.f32.mrb[237].mxu0 }
 0x2ee   : > { %v4531_v0 = vadd.f32 %v10335_v57, %v3366_v63  ;;  %v4530_v34 = vadd.f32 %v10335_v57, %v3247_v47  ;;  %v3368_v48 = vpop.f32.mrb[237].mxu1  ;;  %v3249_v52 = vpop.f32.mrb[238].mxu0  ;;  %v11050_v63 = vld [vmem:[%s15163_s2] sm:$0xff]  }
 0x2ef   : > { %v4532_v42 = vadd.f32 %v10335_v57, %v3368_v48  ;;  %v4561_v32 = vadd.f32 %v10340_v6, %v3249_v52  ;;  %v3370_v27 = vpop.f32.mrb[238].mxu1  ;;  %v3251_v62 = vpop.f32.mrb[239].mxu0  ;;  %v5041_v39 = vmax.f32 %v4529_v18, 0.0 }
 0x2f0   : > { %v4563_v14 = vadd.f32 %v10340_v6, %v3370_v27  ;;  %v4562_v40 = vadd.f32 %v10340_v6, %v3251_v62  ;;  %v3372_v46 = vpop.f32.mrb[239].mxu1  ;;  %v5043_v47 = vmax.f32 %v4531_v0, 0.0  ;;  %v5042_v48 = vmax.f32 %v4530_v34, 0.0  ;;  %v15585_v27 = vld [vmem:[#allocation19_spill] sm:$0xff]  ;;  %v15587_v62 = vld [vmem:[#allocation20_spill] sm:$0xff] }
 0x2f1   : > { %v5073_v5 = vmax.f32 %v4561_v32, 0.0  ;;  %v4564_v19 = vadd.f32 %v10340_v6, %v3372_v46  ;;  %8743 = vmatmul.mubr.msk.bf16.vlgmr.msra.gmra.mrb[88].mxu0 %vm2457_vm2, %v11050_v63  ;;  %v5044_v18 = vmax.f32 %v4532_v42, 0.0 }
 0x2f2   : > { %v5075_v52 = vmax.f32 %v4563_v14, 0.0  ;;  %v5074_v1 = vmax.f32 %v4562_v40, 0.0  ;;  %8752 = vmatmul.mubr.msk.bf16.vlgmr.msra.gmra.mrb[88].mxu1 %vm2457_vm2, %v11050_v63  ;;  %4180 = vmatpush1.bf16.msra.mxu0 %v15585_v27 }
 0x2f3   : > { %v11057_v32 = vpack.c.bf16 %v5073_v5, %v5041_v39  ;;  %v5076_v46 = vmax.f32 %v4564_v19, 0.0  ;;  %4301 = vmatpush1.bf16.msra.mxu1 %v15587_v62  ;;  %4181 = vmatprep.subr.bf16.mxu0 %v10286_v31  ;;  %v15594_v62 = vld [vmem:[#allocation27_spill] sm:$0xff] }
 0x2f4   : > { %v11061_v23 = vpack.c.bf16 %v5075_v52, %v5043_v47  ;;  %4302 = vmatprep.subr.bf16.mxu1 %v15589_v25  ;;  %v3255_v0 = vpop.f32.mrb[240].mxu0  ;;  %3979 = vmatprep.mubr.bf16.mxu0 %v15457_v36  ;;  %v11065_v40 = vpack.c.bf16 %v5074_v1, %v5042_v48  ;;  %v15592_v47 = vld [vmem:[#allocation22_spill] sm:$0xff]  ;;  %v15593_v1 = vld [vmem:[#allocation23_spill] sm:$0xff] }
 0x2f5   : > { %15586 = vst [vmem:[#allocation19_spill] sm:$0xff] %v11057_v32  ;;  %v4593_v14 = vadd.f32 %v10361_v55, %v3255_v0  ;;  %v3376_v34 = vpop.f32.mrb[240].mxu1  ;;  %v3257_v42 = vpop.f32.mrb[241].mxu0  ;;  %4100 = vmatprep.mubr.bf16.mxu1 %v15457_v36  ;;  %v11069_v19 = vpack.c.bf16 %v5076_v46, %v5044_v18  ;;  %v15595_v46 = vld [vmem:[#allocation28_spill] sm:$0xff] }
 0x2f6   : > { %15588 = vst [vmem:[#allocation20_spill] sm:$0xff] %v11061_v23  ;;  %15590 = vst [vmem:[#allocation24_spill] sm:$0xff] %v11065_v40  ;;  %v4595_v5 = vadd.f32 %v10361_v55, %v3376_v34  ;;  %v4594_v31 = vadd.f32 %v10361_v55, %v3257_v42  ;;  %v3378_v39 = vpop.f32.mrb[241].mxu1  ;;  %4182 = vmatpush1.bf16.msra.mxu0 %v15592_v47  ;;  %v3259_v25 = vpop.f32.mrb[242].mxu0 }
 0x2f7   : > { %15591 = vst [vmem:[#allocation104_spill] sm:$0xff] %v11069_v19  ;;  %v4596_v52 = vadd.f32 %v10361_v55, %v3378_v39  ;;  %4303 = vmatpush1.bf16.msra.mxu1 %v15593_v1  ;;  %v4625_v48 = vadd.f32 %v10367_v22, %v3259_v25  ;;  %v3380_v27 = vpop.f32.mrb[242].mxu1  ;;  %4183 = vmatprep.subr.bf16.mxu0 %v15594_v62  ;;  %v3261_v0 = vpop.f32.mrb[243].mxu0  ;;  %v5105_v23 = vmax.f32 %v4593_v14, 0.0  ;;  %v11085_v39 = vld [vmem:[%s15163_s2 + $0x8] sm:$0xff]   ;;  %v15599_v19 = vld [vmem:[#allocation31_spill] sm:$0xff] }
 0x2f8   : > { %v4627_v18 = vadd.f32 %v10367_v22, %v3380_v27  ;;  %4304 = vmatprep.subr.bf16.mxu1 %v15595_v46  ;;  %v4626_v34 = vadd.f32 %v10367_v22, %v3261_v0  ;;  %v3382_v42 = vpop.f32.mrb[243].mxu1  ;;  %v5107_v25 = vmax.f32 %v4595_v5, 0.0  ;;  %v5106_v1 = vmax.f32 %v4594_v31, 0.0  ;;  %v15596_v0 = vld [vmem:[#allocation25_spill] sm:$0xff] }
 0x2f9   : > { %v5137_v47 = vmax.f32 %v4625_v48, 0.0  ;;  %v4628_v32 = vadd.f32 %v10367_v22, %v3382_v42  ;;  %8744 = vmatmul.mubr.msk.bf16.gmra.mrb[92].mxu0 %vm2457_vm2, %v11085_v39  ;;  %v5108_v14 = vmax.f32 %v4596_v52, 0.0  ;;  %v15598_v42 = vld [vmem:[#allocation26_spill] sm:$0xff] }
 0x2fa   : > { %v5139_v27 = vmax.f32 %v4627_v18, 0.0  ;;  %v5138_v62 = vmax.f32 %v4626_v34, 0.0  ;;  %8753 = vmatmul.mubr.msk.bf16.gmra.mrb[92].mxu1 %vm2457_vm2, %v11085_v39  ;;  %4184 = vmatpush1.bf16.msra.mxu0 %v15596_v0 }
 0x2fb   : > { %v11092_v48 = vpack.c.bf16 %v5137_v47, %v5105_v23  ;;  %v5140_v46 = vmax.f32 %v4628_v32, 0.0  ;;  %4305 = vmatpush1.bf16.msra.mxu1 %v15598_v42  ;;  %4185 = vmatprep.subr.bf16.mxu0 %v15599_v19 }
 0x2fc   : > { %v11096_v40 = vpack.c.bf16 %v5139_v27, %v5107_v25  ;;  %4306 = vmatprep.subr.bf16.mxu1 %v15601_v13  ;;  %v3265_v5 = vpop.f32.mrb[244].mxu0  ;;  %3989 = vmatprep.mubr.bf16.mxu0 %v15457_v36  ;;  %v11100_v31 = vpack.c.bf16 %v5138_v62, %v5106_v1  ;;  %v15604_v25 = vld [vmem:[#allocation29_spill] sm:$0xff]  ;;  %v15605_v1 = vld [vmem:[#allocation30_spill] sm:$0xff] }
 0x2fd   : > { %15597 = vst [vmem:[#allocation22_spill] sm:$0xff] %v11092_v48  ;;  %v4657_v18 = vadd.f32 %v10395_v41, %v3265_v5  ;;  %v3386_v34 = vpop.f32.mrb[244].mxu1  ;;  %v3267_v52 = vpop.f32.mrb[245].mxu0  ;;  %4110 = vmatprep.mubr.bf16.mxu1 %v15457_v36  ;;  %v11104_v23 = vpack.c.bf16 %v5140_v46, %v5108_v14 }
 0x2fe   : > { %15600 = vst [vmem:[#allocation23_spill] sm:$0xff] %v11096_v40  ;;  %15602 = vst [vmem:[#allocation27_spill] sm:$0xff] %v11100_v31  ;;  %v4659_v32 = vadd.f32 %v10395_v41, %v3386_v34  ;;  %v4658_v19 = vadd.f32 %v10395_v41, %v3267_v52  ;;  %v3388_v47 = vpop.f32.mrb[245].mxu1  ;;  %4186 = vmatpush1.bf16.msra.mxu0 %v15604_v25  ;;  %v3269_v13 = vpop.f32.mrb[246].mxu0 }
 0x2ff   : > { %15603 = vst [vmem:[#allocation28_spill] sm:$0xff] %v11104_v23  ;;  %v4660_v27 = vadd.f32 %v10395_v41, %v3388_v47  ;;  %4307 = vmatpush1.bf16.msra.mxu1 %v15605_v1  ;;  %v4689_v62 = vadd.f32 %v10401_v8, %v3269_v13  ;;  %v3390_v0 = vpop.f32.mrb[246].mxu1  ;;  %5941 = vmatprep.subr.bf16.mxu0 %v10373_v29  ;;  %v3271_v42 = vpop.f32.mrb[247].mxu0  ;;  %v5169_v34 = vmax.f32 %v4657_v18, 0.0  ;;  %v11120_v47 = vld [vmem:[%s15163_s2 + $0x10] sm:$0xff]  }
 0x300   : > { %v4691_v14 = vadd.f32 %v10401_v8, %v3390_v0  ;;  %6054 = vmatprep.subr.bf16.mxu1 %v10377_v53  ;;  %v4690_v46 = vadd.f32 %v10401_v8, %v3271_v42  ;;  %v3392_v5 = vpop.f32.mrb[247].mxu1  ;;  %v5171_v29 = vmax.f32 %v4659_v32, 0.0  ;;  %v5170_v13 = vmax.f32 %v4658_v19, 0.0 }
 0x301   : > { %v5201_v52 = vmax.f32 %v4689_v62, 0.0  ;;  %v4692_v25 = vadd.f32 %v10401_v8, %v3392_v5  ;;  %8745 = vmatmul.mubr.msk.bf16.gmra.mrb[96].mxu0 %vm2457_vm2, %v11120_v47  ;;  %v5172_v53 = vmax.f32 %v4660_v27, 0.0 }
 0x302   : > { %v5203_v1 = vmax.f32 %v4691_v14, 0.0  ;;  %v5202_v0 = vmax.f32 %v4690_v46, 0.0  ;;  %8754 = vmatmul.mubr.msk.bf16.gmra.mrb[96].mxu1 %vm2457_vm2, %v11120_v47  ;;  %3999 = vmatprep.mubr.bf16.mxu0 %v15457_v36 }
 0x303   : > { %v11127_v18 = vpack.c.bf16 %v5201_v52, %v5169_v34  ;;  %v5204_v62 = vmax.f32 %v4692_v25, 0.0  ;;  %4120 = vmatprep.mubr.bf16.mxu1 %v15457_v36 }
 0x304   : > { %v11130_v42 = vpack.c.bf16 %v5203_v1, %v5171_v29  ;;  %v3275_v5 = vpop.f32.mrb[248].mxu0  ;;  %v11132_v40 = vpack.c.bf16 %v5202_v0, %v5170_v13 }
 0x305   : > { %15606 = vst [vmem:[#allocation25_spill] sm:$0xff] %v11127_v18  ;;  %v4721_v32 = vadd.f32 %v10429_v38, %v3275_v5  ;;  %v3396_v19 = vpop.f32.mrb[248].mxu1  ;;  %v3277_v14 = vpop.f32.mrb[249].mxu0  ;;  %v11135_v46 = vpack.c.bf16 %v5204_v62, %v5172_v53 }
 0x306   : > { %15607 = vst [vmem:[#allocation26_spill] sm:$0xff] %v11130_v42  ;;  %15608 = vst [vmem:[#allocation31_spill] sm:$0xff] %v11132_v40  ;;  %v4723_v48 = vadd.f32 %v10429_v38, %v3396_v19  ;;  %v4722_v27 = vadd.f32 %v10429_v38, %v3277_v14  ;;  %v3398_v34 = vpop.f32.mrb[249].mxu1  ;;  %v3279_v52 = vpop.f32.mrb[250].mxu0  ;;  %v11147_v19 = vld [vmem:[%s15163_s2 + $0x18] sm:$0xff]  }
 0x307   : > { %15609 = vst [vmem:[#allocation32_spill] sm:$0xff] %v11135_v46  ;;  %v4724_v25 = vadd.f32 %v10429_v38, %v3398_v34  ;;  %v4753_v29 = vadd.f32 %v10434_v12, %v3279_v52  ;;  %v3400_v1 = vpop.f32.mrb[250].mxu1  ;;  %v3281_v42 = vpop.f32.mrb[251].mxu0  ;;  %v5233_v18 = vmax.f32 %v4721_v32, 0.0 }
 0x308   : > { %v4755_v13 = vadd.f32 %v10434_v12, %v3400_v1  ;;  %v4754_v0 = vadd.f32 %v10434_v12, %v3281_v42  ;;  %v3402_v5 = vpop.f32.mrb[251].mxu1  ;;  %v5235_v14 = vmax.f32 %v4723_v48, 0.0  ;;  %v5234_v34 = vmax.f32 %v4722_v27, 0.0 }
 0x309   : > { %v5265_v53 = vmax.f32 %v4753_v29, 0.0  ;;  %v4756_v62 = vadd.f32 %v10434_v12, %v3402_v5  ;;  %8746 = vmatmul.mubr.msk.bf16.gmra.mrb[100].mxu0 %vm2457_vm2, %v11147_v19  ;;  %v5236_v42 = vmax.f32 %v4724_v25, 0.0 }
 0x30a   : > { %v5267_v52 = vmax.f32 %v4755_v13, 0.0  ;;  %v5266_v46 = vmax.f32 %v4754_v0, 0.0  ;;  %8755 = vmatmul.mubr.msk.bf16.gmra.mrb[100].mxu1 %vm2457_vm2, %v11147_v19  ;;  %4009 = vmatprep.mubr.bf16.mxu0 %v15457_v36 }
 0x30b   : > { %v11154_v32 = vpack.c.bf16 %v5265_v53, %v5233_v18  ;;  %v5268_v29 = vmax.f32 %v4756_v62, 0.0  ;;  %4130 = vmatprep.mubr.bf16.mxu1 %v15457_v36 }
 0x30c   : > { %v11157_v1 = vpack.c.bf16 %v5267_v52, %v5235_v14  ;;  %v3285_v5 = vpop.f32.mrb[252].mxu0  ;;  %v11159_v40 = vpack.c.bf16 %v5266_v46, %v5234_v34 }
 0x30d   : > { %15610 = vst [vmem:[#allocation29_spill] sm:$0xff] %v11154_v32  ;;  %v4785_v48 = vadd.f32 %v10455_v50, %v3285_v5  ;;  %v3406_v27 = vpop.f32.mrb[252].mxu1  ;;  %v3287_v13 = vpop.f32.mrb[253].mxu0  ;;  %v11162_v0 = vpack.c.bf16 %v5268_v29, %v5236_v42 }
 0x30e   : > { %15611 = vst [vmem:[#allocation30_spill] sm:$0xff] %v11157_v1  ;;  %15612 = vst [vmem:[#allocation105_spill] sm:$0xff] %v11159_v40  ;;  %v4787_v23 = vadd.f32 %v10455_v50, %v3406_v27  ;;  %v4786_v25 = vadd.f32 %v10455_v50, %v3287_v13  ;;  %v3408_v18 = vpop.f32.mrb[253].mxu1  ;;  %v3289_v53 = vpop.f32.mrb[254].mxu0  ;;  %v11174_v27 = vld [vmem:[%s15163_s2 + $0x20] sm:$0xff]  }
 0x30f   : > { %15613 = vst [vmem:[#allocation106_spill] sm:$0xff] %v11162_v0  ;;  %v4788_v62 = vadd.f32 %v10455_v50, %v3408_v18  ;;  %v4817_v14 = vadd.f32 %v10460_v30, %v3289_v53  ;;  %v3410_v52 = vpop.f32.mrb[254].mxu1  ;;  %v3291_v1 = vpop.f32.mrb[255].mxu0  ;;  %v5297_v32 = vmax.f32 %v4785_v48, 0.0 }
 0x310   : > { %v4819_v46 = vadd.f32 %v10460_v30, %v3410_v52  ;;  %v4818_v34 = vadd.f32 %v10460_v30, %v3291_v1  ;;  %v3412_v5 = vpop.f32.mrb[255].mxu1  ;;  %v5299_v13 = vmax.f32 %v4787_v23, 0.0  ;;  %v5298_v18 = vmax.f32 %v4786_v25, 0.0 }
 0x311   : > { %v5329_v42 = vmax.f32 %v4817_v14, 0.0  ;;  %v4820_v29 = vadd.f32 %v10460_v30, %v3412_v5  ;;  %8747 = vmatmul.mubr.msk.bf16.gmra.mrb[104].mxu0 %vm2457_vm2, %v11174_v27  ;;  %v5300_v1 = vmax.f32 %v4788_v62, 0.0 }
 0x312   : > { %v5331_v53 = vmax.f32 %v4819_v46, 0.0  ;;  %v5330_v0 = vmax.f32 %v4818_v34, 0.0  ;;  %8756 = vmatmul.mubr.msk.bf16.gmra.mrb[104].mxu1 %vm2457_vm2, %v11174_v27  ;;  %4019 = vmatprep.mubr.bf16.mxu0 %v15457_v36 }
 0x313   : > { %v11181_v48 = vpack.c.bf16 %v5329_v42, %v5297_v32  ;;  %v5332_v14 = vmax.f32 %v4820_v29, 0.0  ;;  %4140 = vmatprep.mubr.bf16.mxu1 %v15457_v36 }
 0x314   : > { %v11184_v52 = vpack.c.bf16 %v5331_v53, %v5299_v13  ;;  %v3295_v5 = vpop.f32.mrb[0].mxu0  ;;  %v11186_v40 = vpack.c.bf16 %v5330_v0, %v5298_v18 }
 0x315   : > { %15614 = vst [vmem:[#allocation107_spill] sm:$0xff] %v11181_v48  ;;  %v4849_v23 = vadd.f32 %v10481_v3, %v3295_v5  ;;  %v3416_v25 = vpop.f32.mrb[0].mxu1  ;;  %v3297_v46 = vpop.f32.mrb[1].mxu0  ;;  %v11189_v34 = vpack.c.bf16 %v5332_v14, %v5300_v1 }
 0x316   : > { %15615 = vst [vmem:[#allocation108_spill] sm:$0xff] %v11184_v52  ;;  %15616 = vst [vmem:[#allocation109_spill] sm:$0xff] %v11186_v40  ;;  %v4851_v31 = vadd.f32 %v10481_v3, %v3416_v25  ;;  %v4850_v62 = vadd.f32 %v10481_v3, %v3297_v46  ;;  %v3418_v32 = vpop.f32.mrb[1].mxu1  ;;  %v3299_v42 = vpop.f32.mrb[2].mxu0  ;;  %v11201_v25 = vld [vmem:[%s15163_s2 + $0x28] sm:$0xff]  }
 0x317   : > { %15617 = vst [vmem:[#allocation110_spill] sm:$0xff] %v11189_v34  ;;  %v4852_v29 = vadd.f32 %v10481_v3, %v3418_v32  ;;  %v4881_v13 = vadd.f32 %v10486_v7, %v3299_v42  ;;  %v3420_v53 = vpop.f32.mrb[2].mxu1  ;;  %v3301_v52 = vpop.f32.mrb[3].mxu0  ;;  %v5361_v48 = vmax.f32 %v4849_v23, 0.0 }
 0x318   : > { %v4883_v0 = vadd.f32 %v10486_v7, %v3420_v53  ;;  %v4882_v18 = vadd.f32 %v10486_v7, %v3301_v52  ;;  %v3422_v5 = vpop.f32.mrb[3].mxu1  ;;  %v5363_v46 = vmax.f32 %v4851_v31, 0.0  ;;  %v5362_v32 = vmax.f32 %v4850_v62, 0.0 }
 0x319   : > { %v5393_v1 = vmax.f32 %v4881_v13, 0.0  ;;  %v4884_v14 = vadd.f32 %v10486_v7, %v3422_v5  ;;  %8748 = vmatmul.mubr.msk.bf16.gmra.mrb[108].mxu0 %vm2457_vm2, %v11201_v25  ;;  %v5364_v52 = vmax.f32 %v4852_v29, 0.0 }
 0x31a   : > { %v5395_v42 = vmax.f32 %v4883_v0, 0.0  ;;  %v5394_v34 = vmax.f32 %v4882_v18, 0.0  ;;  %8757 = vmatmul.mubr.msk.bf16.gmra.mrb[108].mxu1 %vm2457_vm2, %v11201_v25  ;;  %4029 = vmatprep.mubr.bf16.mxu0 %v15457_v36 }
 0x31b   : > { %v11208_v23 = vpack.c.bf16 %v5393_v1, %v5361_v48  ;;  %v5396_v13 = vmax.f32 %v4884_v14, 0.0  ;;  %4150 = vmatprep.mubr.bf16.mxu1 %v15457_v36 }
 0x31c   : > { %v11211_v53 = vpack.c.bf16 %v5395_v42, %v5363_v46  ;;  %v3305_v5 = vpop.f32.mrb[4].mxu0  ;;  %v11213_v40 = vpack.c.bf16 %v5394_v34, %v5362_v32 }
 0x31d   : > { %15618 = vst [vmem:[#allocation111_spill] sm:$0xff] %v11208_v23  ;;  %v4913_v31 = vadd.f32 %v10507_v51, %v3305_v5  ;;  %v3426_v62 = vpop.f32.mrb[4].mxu1  ;;  %v3307_v0 = vpop.f32.mrb[5].mxu0  ;;  %v11216_v18 = vpack.c.bf16 %v5396_v13, %v5364_v52 }
 0x31e   : > { %15619 = vst [vmem:[#allocation112_spill] sm:$0xff] %v11211_v53  ;;  %15620 = vst [vmem:[#allocation113_spill] sm:$0xff] %v11213_v40  ;;  %v4915_v24 = vadd.f32 %v10507_v51, %v3426_v62  ;;  %v4914_v29 = vadd.f32 %v10507_v51, %v3307_v0  ;;  %v3428_v48 = vpop.f32.mrb[5].mxu1  ;;  %v3309_v1 = vpop.f32.mrb[6].mxu0  ;;  %v11228_v62 = vld [vmem:[%s15163_s2 + $0x30] sm:$0xff]  }
 0x31f   : > { %15621 = vst [vmem:[#allocation114_spill] sm:$0xff] %v11216_v18  ;;  %v4916_v14 = vadd.f32 %v10507_v51, %v3428_v48  ;;  %v4945_v46 = vadd.f32 %v10512_v58, %v3309_v1  ;;  %v3430_v42 = vpop.f32.mrb[6].mxu1  ;;  %v3311_v53 = vpop.f32.mrb[7].mxu0  ;;  %v5425_v23 = vmax.f32 %v4913_v31, 0.0 }
 0x320   : > { %v4947_v34 = vadd.f32 %v10512_v58, %v3430_v42  ;;  %v4946_v32 = vadd.f32 %v10512_v58, %v3311_v53  ;;  %v3432_v5 = vpop.f32.mrb[7].mxu1  ;;  %v5427_v0 = vmax.f32 %v4915_v24, 0.0  ;;  %v5426_v48 = vmax.f32 %v4914_v29, 0.0 }
 0x321   : > { %v5457_v52 = vmax.f32 %v4945_v46, 0.0  ;;  %v4948_v13 = vadd.f32 %v10512_v58, %v3432_v5  ;;  %8749 = vmatmul.mubr.msk.bf16.gmra.mrb[112].mxu0 %vm2457_vm2, %v11228_v62  ;;  %v5428_v53 = vmax.f32 %v4916_v14, 0.0 }
 0x322   : > { %v5459_v1 = vmax.f32 %v4947_v34, 0.0  ;;  %v5458_v18 = vmax.f32 %v4946_v32, 0.0  ;;  %8758 = vmatmul.mubr.msk.bf16.gmra.mrb[112].mxu1 %vm2457_vm2, %v11228_v62  ;;  %4039 = vmatprep.mubr.bf16.mxu0 %v15457_v36 }
 0x323   : > { %v11235_v31 = vpack.c.bf16 %v5457_v52, %v5425_v23  ;;  %v5460_v46 = vmax.f32 %v4948_v13, 0.0  ;;  %4160 = vmatprep.mubr.bf16.mxu1 %v15457_v36 }
 0x324   : > { %v11238_v42 = vpack.c.bf16 %v5459_v1, %v5427_v0  ;;  %v3315_v5 = vpop.f32.mrb[8].mxu0  ;;  %v11240_v40 = vpack.c.bf16 %v5458_v18, %v5426_v48 }
 0x325   : > { %15622 = vst [vmem:[#allocation115_spill] sm:$0xff] %v11235_v31  ;;  %v4977_v24 = vadd.f32 %v10533_v33, %v3315_v5  ;;  %v3436_v29 = vpop.f32.mrb[8].mxu1  ;;  %v3317_v34 = vpop.f32.mrb[9].mxu0  ;;  %v11243_v32 = vpack.c.bf16 %v5460_v46, %v5428_v53 }
 0x326   : > { %15623 = vst [vmem:[#allocation116_spill] sm:$0xff] %v11238_v42  ;;  %15624 = vst [vmem:[#allocation117_spill] sm:$0xff] %v11240_v40  ;;  %v4979_v17 = vadd.f32 %v10533_v33, %v3436_v29  ;;  %v4978_v14 = vadd.f32 %v10533_v33, %v3317_v34  ;;  %v3438_v23 = vpop.f32.mrb[9].mxu1  ;;  %v3319_v52 = vpop.f32.mrb[10].mxu0  ;;  %v11255_v29 = vld [vmem:[%s15163_s2 + $0x38] sm:$0xff]  }
 0x327   : > { %15625 = vst [vmem:[#allocation118_spill] sm:$0xff] %v11243_v32  ;;  %v4980_v13 = vadd.f32 %v10533_v33, %v3438_v23  ;;  %v5009_v0 = vadd.f32 %v10538_v16, %v3319_v52  ;;  %v3440_v1 = vpop.f32.mrb[10].mxu1  ;;  %v3321_v42 = vpop.f32.mrb[11].mxu0  ;;  %v5489_v31 = vmax.f32 %v4977_v24, 0.0 }
 0x328   : > { %v5011_v18 = vadd.f32 %v10538_v16, %v3440_v1  ;;  %v5010_v48 = vadd.f32 %v10538_v16, %v3321_v42  ;;  %v3442_v5 = vpop.f32.mrb[11].mxu1  ;;  %v5491_v34 = vmax.f32 %v4979_v17, 0.0  ;;  %v5490_v23 = vmax.f32 %v4978_v14, 0.0 }
 0x329   : > { %v5521_v53 = vmax.f32 %v5009_v0, 0.0  ;;  %v5012_v46 = vadd.f32 %v10538_v16, %v3442_v5  ;;  %8750 = vmatmul.mubr.msk.bf16.gmra.mrb[116].mxu0 %vm2457_vm2, %v11255_v29  ;;  %v5492_v42 = vmax.f32 %v4980_v13, 0.0 }
 0x32a   : > { %v5523_v52 = vmax.f32 %v5011_v18, 0.0  ;;  %v5522_v32 = vmax.f32 %v5010_v48, 0.0  ;;  %8759 = vmatmul.mubr.msk.bf16.gmra.mrb[116].mxu1 %vm2457_vm2, %v11255_v29  ;;  %4049 = vmatprep.mubr.bf16.mxu0 %v15457_v36 }
 0x32b   : > { %v11262_v24 = vpack.c.bf16 %v5521_v53, %v5489_v31  ;;  %v5524_v0 = vmax.f32 %v5012_v46, 0.0  ;;  %4170 = vmatprep.mubr.bf16.mxu1 %v15457_v36 }
 0x32c   : > { %v11265_v1 = vpack.c.bf16 %v5523_v52, %v5491_v34  ;;  %v11267_v5 = vpop.f32.mrb[12].mxu0  ;;  %v11269_v40 = vpack.c.bf16 %v5522_v32, %v5490_v23  ;;  %v11282_v34 = vld [vmem:[%s15163_s2 + $0x40] ss:$0 sps:$4 sm:$0x33]  }
 0x32d   : > { %15626 = vst [vmem:[#allocation119_spill] sm:$0xff] %v11262_v24  ;;  %15628 = vst [vmem:[#allocation121_spill] sm:$0xff] %v11267_v5  ;;  %v11271_v17 = vpop.f32.mrb[12].mxu1  ;;  %v11273_v14 = vpop.f32.mrb[13].mxu0  ;;  %v11275_v18 = vpack.c.bf16 %v5524_v0, %v5492_v42 }
 0x32e   : > { %15627 = vst [vmem:[#allocation120_spill] sm:$0xff] %v11265_v1  ;;  %15629 = vst [vmem:[#allocation122_spill] sm:$0xff] %v11269_v40  ;;  %v11277_v48 = vpop.f32.mrb[13].mxu1  ;;  %v3329_v13 = vpop.f32.mrb[14].mxu0 }
 0x32f   : > { %15630 = vst [vmem:[#allocation123_spill] sm:$0xff] %v11271_v17  ;;  %15631 = vst [vmem:[#allocation124_spill] sm:$0xff] %v11273_v14  ;;  %v3450_v31 = vpop.f32.mrb[14].mxu1  ;;  %v3330_v53 = vpop.f32.mrb[15].mxu0 }
 0x330   : > { %15632 = vst [vmem:[#allocation125_spill] sm:$0xff] %v11275_v18  ;;  %15633 = vst [vmem:[#allocation126_spill] sm:$0xff] %v11277_v48  ;;  %v3451_v46 = vpop.f32.mrb[15].mxu1 }
 0x331   : > { %8751 = vmatmul.mubr.msk.bf16.gmra.mrb[120].mxu0 %vm2457_vm2, %v11282_v34 }
 0x332   : > { %8760 = vmatmul.mubr.msk.bf16.gmra.mrb[120].mxu1 %vm2457_vm2, %v11282_v34  ;;  %4211 = vmatprep.mubr.bf16.mxu0 %v15457_v36 }
 0x333   : > { %4332 = vmatprep.mubr.bf16.mxu1 %v15457_v36 }
 0x334   : > { %v3487_v32 = vpop.f32.mrb[16].mxu0 }
 0x335   : > { %v4533_v23 = vadd.f32 %v10335_v57, %v3487_v32  ;;  %v3608_v52 = vpop.f32.mrb[16].mxu1  ;;  %v3489_v42 = vpop.f32.mrb[17].mxu0 }
 0x336   : > { %v4535_v0 = vadd.f32 %v10335_v57, %v3608_v52  ;;  %v4534_v13 = vadd.f32 %v10335_v57, %v3489_v42  ;;  %v3610_v31 = vpop.f32.mrb[17].mxu1  ;;  %v3491_v53 = vpop.f32.mrb[18].mxu0 }
 0x337   : > { %v4536_v46 = vadd.f32 %v10335_v57, %v3610_v31  ;;  %v4565_v48 = vadd.f32 %v10340_v6, %v3491_v53  ;;  %v3612_v14 = vpop.f32.mrb[18].mxu1  ;;  %v3493_v17 = vpop.f32.mrb[19].mxu0  ;;  %v5045_v32 = vmax.f32 %v4533_v23, 0.0 }
 0x338   : > { %v4567_v5 = vadd.f32 %v10340_v6, %v3612_v14  ;;  %v4566_v1 = vadd.f32 %v10340_v6, %v3493_v17  ;;  %v3614_v24 = vpop.f32.mrb[19].mxu1  ;;  %v5047_v52 = vmax.f32 %v4535_v0, 0.0  ;;  %v5046_v42 = vmax.f32 %v4534_v13, 0.0 }
 0x339   : > { %v5077_v18 = vmax.f32 %v4565_v48, 0.0  ;;  %v4568_v40 = vadd.f32 %v10340_v6, %v3614_v24  ;;  %8761 = vmatmul.mubr.msk.bf16.vlgmr.msra.gmra.mrb[124].mxu0 %vm2457_vm2, %v11050_v63  ;;  %v5048_v14 = vmax.f32 %v4536_v46, 0.0 }
 0x33a   : > { %v5079_v49 = vmax.f32 %v4567_v5, 0.0  ;;  %v5078_v31 = vmax.f32 %v4566_v1, 0.0  ;;  %8770 = vmatmul.mubr.msk.bf16.vlgmr.msra.gmra.mrb[124].mxu1 %vm2457_vm2, %v11050_v63  ;;  %5942 = vmatpush1.bf16.msra.mxu0 %v10363_v15 }
 0x33b   : > { %v11303_v53 = vpack.c.bf16 %v5077_v18, %v5045_v32  ;;  %v5080_v17 = vmax.f32 %v4568_v40, 0.0  ;;  %6055 = vmatpush1.bf16.msra.mxu1 %v10369_v21  ;;  %5943 = vmatprep.subr.bf16.mxu0 %v10407_v43  ;;  %v15634_v32 = vld [vmem:[#allocation35_spill] sm:$0xff] }
 0x33c   : > { %v11307_v24 = vpack.c.bf16 %v5079_v49, %v5047_v52  ;;  %6056 = vmatprep.subr.bf16.mxu1 %v10411_v54  ;;  %v3497_v48 = vpop.f32.mrb[20].mxu0  ;;  %4221 = vmatprep.mubr.bf16.mxu0 %v15457_v36  ;;  %v11311_v1 = vpack.c.bf16 %v5078_v31, %v5046_v42 }
 0x33d   : > { %v4597_v63 = vadd.f32 %v10361_v55, %v3497_v48  ;;  %v3618_v15 = vpop.f32.mrb[20].mxu1  ;;  %v3499_v5 = vpop.f32.mrb[21].mxu0  ;;  %4342 = vmatprep.mubr.bf16.mxu1 %v15457_v36  ;;  %v11315_v40 = vpack.c.bf16 %v5080_v17, %v5048_v14 }
 0x33e   : > { %v4599_v21 = vadd.f32 %v10361_v55, %v3618_v15  ;;  %v4598_v43 = vadd.f32 %v10361_v55, %v3499_v5  ;;  %v3620_v49 = vpop.f32.mrb[21].mxu1  ;;  %5944 = vmatpush1.bf16.msra.mxu0 %v10397_v59  ;;  %v3501_v54 = vpop.f32.mrb[22].mxu0 }
 0x33f   : > { %v4600_v18 = vadd.f32 %v10361_v55, %v3620_v49  ;;  %6057 = vmatpush1.bf16.msra.mxu1 %v10403_v44  ;;  %v4629_v23 = vadd.f32 %v10367_v22, %v3501_v54  ;;  %v3622_v0 = vpop.f32.mrb[22].mxu1  ;;  %5945 = vmatprep.subr.bf16.mxu0 %v10438_v26  ;;  %v3503_v13 = vpop.f32.mrb[23].mxu0  ;;  %v5109_v31 = vmax.f32 %v4597_v63, 0.0  ;;  %v15635_v26 = vld [vmem:[#allocation33_spill] sm:$0xff]  ;;  %v15636_v63 = vld [vmem:[#allocation34_spill] sm:$0xff] }
 0x340   : > { %v4631_v46 = vadd.f32 %v10367_v22, %v3622_v0  ;;  %6058 = vmatprep.subr.bf16.mxu1 %v15634_v32  ;;  %v4630_v52 = vadd.f32 %v10367_v22, %v3503_v13  ;;  %v3624_v42 = vpop.f32.mrb[23].mxu1  ;;  %v5111_v44 = vmax.f32 %v4599_v21, 0.0  ;;  %v5110_v17 = vmax.f32 %v4598_v43, 0.0  ;;  %v15639_v13 = vld [vmem:[#allocation39_spill] sm:$0xff] }
 0x341   : > { %v5141_v59 = vmax.f32 %v4629_v23, 0.0  ;;  %v4632_v14 = vadd.f32 %v10367_v22, %v3624_v42  ;;  %8762 = vmatmul.mubr.msk.bf16.gmra.mrb[128].mxu0 %vm2457_vm2, %v11085_v39  ;;  %v5112_v5 = vmax.f32 %v4600_v18, 0.0  ;;  %v15637_v23 = vld [vmem:[#allocation38_spill] sm:$0xff] }
 0x342   : > { %v5143_v48 = vmax.f32 %v4631_v46, 0.0  ;;  %v5142_v15 = vmax.f32 %v4630_v52, 0.0  ;;  %8771 = vmatmul.mubr.msk.bf16.gmra.mrb[128].mxu1 %vm2457_vm2, %v11085_v39  ;;  %5946 = vmatpush1.bf16.msra.mxu0 %v15635_v26  ;;  %v15642_v26 = vld [vmem:[#allocation42_spill] sm:$0xff] }
 0x343   : > { %v11333_v49 = vpack.c.bf16 %v5141_v59, %v5109_v31  ;;  %v5144_v54 = vmax.f32 %v4632_v14, 0.0  ;;  %6059 = vmatpush1.bf16.msra.mxu1 %v15636_v63  ;;  %5947 = vmatprep.subr.bf16.mxu0 %v15637_v23  ;;  %v15640_v59 = vld [vmem:[#allocation36_spill] sm:$0xff] }
 0x344   : > { %v11337_v0 = vpack.c.bf16 %v5143_v48, %v5111_v44  ;;  %6060 = vmatprep.subr.bf16.mxu1 %v15639_v13  ;;  %v3507_v21 = vpop.f32.mrb[24].mxu0  ;;  %4231 = vmatprep.mubr.bf16.mxu0 %v15457_v36  ;;  %v11341_v43 = vpack.c.bf16 %v5142_v15, %v5110_v17  ;;  %v15641_v17 = vld [vmem:[#allocation37_spill] sm:$0xff] }
 0x345   : > { %v4661_v39 = vadd.f32 %v10395_v41, %v3507_v21  ;;  %v3628_v46 = vpop.f32.mrb[24].mxu1  ;;  %v3509_v18 = vpop.f32.mrb[25].mxu0  ;;  %4352 = vmatprep.mubr.bf16.mxu1 %v15457_v36  ;;  %v11345_v32 = vpack.c.bf16 %v5144_v54, %v5112_v5  ;;  %v15643_v54 = vld [vmem:[#allocation43_spill] sm:$0xff] }
 0x346   : > { %15638 = vst [vmem:[#allocation35_spill] sm:$0xff] %v11337_v0  ;;  %v4663_v52 = vadd.f32 %v10395_v41, %v3628_v46  ;;  %v4662_v42 = vadd.f32 %v10395_v41, %v3509_v18  ;;  %v3630_v31 = vpop.f32.mrb[25].mxu1  ;;  %5948 = vmatpush1.bf16.msra.mxu0 %v15640_v59  ;;  %v3511_v14 = vpop.f32.mrb[26].mxu0  ;;  %v15649_v0 = vld [vmem:[#allocation47_spill] sm:$0xff] }
 0x347   : > { %v4664_v44 = vadd.f32 %v10395_v41, %v3630_v31  ;;  %6061 = vmatpush1.bf16.msra.mxu1 %v15641_v17  ;;  %v4693_v48 = vadd.f32 %v10401_v8, %v3511_v14  ;;  %v3632_v15 = vpop.f32.mrb[26].mxu1  ;;  %5949 = vmatprep.subr.bf16.mxu0 %v15642_v26  ;;  %v3513_v63 = vpop.f32.mrb[27].mxu0  ;;  %v5173_v21 = vmax.f32 %v4661_v39, 0.0  ;;  %v15646_v39 = vld [vmem:[#allocation41_spill] sm:$0xff] }
 0x348   : > { %v4695_v5 = vadd.f32 %v10401_v8, %v3632_v15  ;;  %6062 = vmatprep.subr.bf16.mxu1 %v15643_v54  ;;  %v4694_v23 = vadd.f32 %v10401_v8, %v3513_v63  ;;  %v3634_v13 = vpop.f32.mrb[27].mxu1  ;;  %v5175_v31 = vmax.f32 %v4663_v52, 0.0  ;;  %v5174_v59 = vmax.f32 %v4662_v42, 0.0  ;;  %v15644_v15 = vld [vmem:[#allocation40_spill] sm:$0xff] }
 0x349   : > { %v5205_v46 = vmax.f32 %v4693_v48, 0.0  ;;  %v4696_v18 = vadd.f32 %v10401_v8, %v3634_v13  ;;  %8763 = vmatmul.mubr.msk.bf16.gmra.mrb[132].mxu0 %vm2457_vm2, %v11120_v47  ;;  %v5176_v26 = vmax.f32 %v4664_v44, 0.0  ;;  %v15647_v48 = vld [vmem:[#allocation46_spill] sm:$0xff] }
 0x34a   : > { %v5207_v14 = vmax.f32 %v4695_v5, 0.0  ;;  %v5206_v17 = vmax.f32 %v4694_v23, 0.0  ;;  %8772 = vmatmul.mubr.msk.bf16.gmra.mrb[132].mxu1 %vm2457_vm2, %v11120_v47  ;;  %5950 = vmatpush1.bf16.msra.mxu0 %v15644_v15 }
 0x34b   : > { %v11363_v54 = vpack.c.bf16 %v5205_v46, %v5173_v21  ;;  %v5208_v63 = vmax.f32 %v4696_v18, 0.0  ;;  %6063 = vmatpush1.bf16.msra.mxu1 %v15646_v39  ;;  %5951 = vmatprep.subr.bf16.mxu0 %v15647_v48  ;;  %v15652_v39 = vld [vmem:[#allocation50_spill] sm:$0xff] }
 0x34c   : > { %v11367_v13 = vpack.c.bf16 %v5207_v14, %v5175_v31  ;;  %6064 = vmatprep.subr.bf16.mxu1 %v15649_v0  ;;  %v3517_v52 = vpop.f32.mrb[28].mxu0  ;;  %4241 = vmatprep.mubr.bf16.mxu0 %v15457_v36  ;;  %v11371_v42 = vpack.c.bf16 %v5206_v17, %v5174_v59  ;;  %v15650_v31 = vld [vmem:[#allocation44_spill] sm:$0xff]  ;;  %v15651_v59 = vld [vmem:[#allocation45_spill] sm:$0xff] }
 0x34d   : > { %15645 = vst [vmem:[#allocation33_spill] sm:$0xff] %v11363_v54  ;;  %v4725_v47 = vadd.f32 %v10429_v38, %v3517_v52  ;;  %v3638_v5 = vpop.f32.mrb[28].mxu1  ;;  %v3519_v44 = vpop.f32.mrb[29].mxu0  ;;  %4362 = vmatprep.mubr.bf16.mxu1 %v15457_v36  ;;  %v11375_v23 = vpack.c.bf16 %v5208_v63, %v5176_v26  ;;  %v15653_v63 = vld [vmem:[#allocation51_spill] sm:$0xff] }
 0x34e   : > { %15648 = vst [vmem:[#allocation34_spill] sm:$0xff] %v11367_v13  ;;  %v4727_v21 = vadd.f32 %v10429_v38, %v3638_v5  ;;  %v4726_v46 = vadd.f32 %v10429_v38, %v3519_v44  ;;  %v3640_v18 = vpop.f32.mrb[29].mxu1  ;;  %5952 = vmatpush1.bf16.msra.mxu0 %v15650_v31  ;;  %v3521_v0 = vpop.f32.mrb[30].mxu0 }
 0x34f   : > { %v4728_v14 = vadd.f32 %v10429_v38, %v3640_v18  ;;  %6065 = vmatpush1.bf16.msra.mxu1 %v15651_v59  ;;  %v4757_v17 = vadd.f32 %v10434_v12, %v3521_v0  ;;  %v3642_v15 = vpop.f32.mrb[30].mxu1  ;;  %5953 = vmatprep.subr.bf16.mxu0 %v15652_v39  ;;  %v3523_v48 = vpop.f32.mrb[31].mxu0  ;;  %v5237_v44 = vmax.f32 %v4725_v47, 0.0  ;;  %v15655_v47 = vld [vmem:[#allocation49_spill] sm:$0xff] }
 0x350   : > { %v4759_v26 = vadd.f32 %v10434_v12, %v3642_v15  ;;  %6066 = vmatprep.subr.bf16.mxu1 %v15653_v63  ;;  %v4758_v52 = vadd.f32 %v10434_v12, %v3523_v48  ;;  %v3644_v5 = vpop.f32.mrb[31].mxu1  ;;  %v5239_v18 = vmax.f32 %v4727_v21, 0.0  ;;  %v5238_v0 = vmax.f32 %v4726_v46, 0.0  ;;  %v15654_v15 = vld [vmem:[#allocation48_spill] sm:$0xff] }
 0x351   : > { %v5269_v31 = vmax.f32 %v4757_v17, 0.0  ;;  %v4760_v13 = vadd.f32 %v10434_v12, %v3644_v5  ;;  %8764 = vmatmul.mubr.msk.bf16.gmra.mrb[136].mxu0 %vm2457_vm2, %v11147_v19  ;;  %v5240_v39 = vmax.f32 %v4728_v14, 0.0 }
 0x352   : > { %v5271_v59 = vmax.f32 %v4759_v26, 0.0  ;;  %v5270_v54 = vmax.f32 %v4758_v52, 0.0  ;;  %8773 = vmatmul.mubr.msk.bf16.gmra.mrb[136].mxu1 %vm2457_vm2, %v11147_v19  ;;  %5954 = vmatpush1.bf16.msra.mxu0 %v15654_v15 }
 0x353   : > { %v11393_v63 = vpack.c.bf16 %v5269_v31, %v5237_v44  ;;  %v5272_v48 = vmax.f32 %v4760_v13, 0.0  ;;  %6067 = vmatpush1.bf16.msra.mxu1 %v15655_v47  ;;  %5955 = vmatprep.subr.bf16.mxu0 %v10566_v2  ;;  %v15656_v44 = vld [vmem:[#allocation52_spill] sm:$0xff] }
 0x354   : > { %v11397_v17 = vpack.c.bf16 %v5271_v59, %v5239_v18  ;;  %6068 = vmatprep.subr.bf16.mxu1 %v10572_v9  ;;  %v3527_v21 = vpop.f32.mrb[32].mxu0  ;;  %4251 = vmatprep.mubr.bf16.mxu0 %v15457_v36  ;;  %v11401_v46 = vpack.c.bf16 %v5270_v54, %v5238_v0  ;;  %v15657_v54 = vld [vmem:[#allocation53_spill] sm:$0xff] }
 0x355   : > { %v4789_v19 = vadd.f32 %v10455_v50, %v3527_v21  ;;  %v3648_v26 = vpop.f32.mrb[32].mxu1  ;;  %v3529_v14 = vpop.f32.mrb[33].mxu0  ;;  %4372 = vmatprep.mubr.bf16.mxu1 %v15457_v36  ;;  %v11405_v13 = vpack.c.bf16 %v5272_v48, %v5240_v39 }
 0x356   : > { %v4791_v52 = vadd.f32 %v10455_v50, %v3648_v26  ;;  %v4790_v2 = vadd.f32 %v10455_v50, %v3529_v14  ;;  %v3650_v5 = vpop.f32.mrb[33].mxu1  ;;  %5956 = vmatpush1.bf16.msra.mxu0 %v15656_v44  ;;  %v3531_v9 = vpop.f32.mrb[34].mxu0 }
 0x357   : > { %v4792_v31 = vadd.f32 %v10455_v50, %v3650_v5  ;;  %6069 = vmatpush1.bf16.msra.mxu1 %v15657_v54  ;;  %v4821_v18 = vadd.f32 %v10460_v30, %v3531_v9  ;;  %v3652_v0 = vpop.f32.mrb[34].mxu1  ;;  %6167 = vmatprep.subr.bf16.mxu0 %v10608_v56  ;;  %v3533_v59 = vpop.f32.mrb[35].mxu0  ;;  %v5301_v47 = vmax.f32 %v4789_v19, 0.0 }
 0x358   : > { %v4823_v15 = vadd.f32 %v10460_v30, %v3652_v0  ;;  %6280 = vmatprep.subr.bf16.mxu1 %v10612_v10  ;;  %v4822_v39 = vadd.f32 %v10460_v30, %v3533_v59  ;;  %v3654_v48 = vpop.f32.mrb[35].mxu1  ;;  %v5303_v14 = vmax.f32 %v4791_v52, 0.0  ;;  %v5302_v5 = vmax.f32 %v4790_v2, 0.0 }
 0x359   : > { %v5333_v21 = vmax.f32 %v4821_v18, 0.0  ;;  %v4824_v26 = vadd.f32 %v10460_v30, %v3654_v48  ;;  %8765 = vmatmul.mubr.msk.bf16.gmra.mrb[140].mxu0 %vm2457_vm2, %v11174_v27  ;;  %v5304_v56 = vmax.f32 %v4792_v31, 0.0 }
 0x35a   : > { %v5335_v44 = vmax.f32 %v4823_v15, 0.0  ;;  %v5334_v9 = vmax.f32 %v4822_v39, 0.0  ;;  %8774 = vmatmul.mubr.msk.bf16.gmra.mrb[140].mxu1 %vm2457_vm2, %v11174_v27  ;;  %4261 = vmatprep.mubr.bf16.mxu0 %v15457_v36 }
 0x35b   : > { %v11423_v10 = vpack.c.bf16 %v5333_v21, %v5301_v47  ;;  %v5336_v54 = vmax.f32 %v4824_v26, 0.0  ;;  %4382 = vmatprep.mubr.bf16.mxu1 %v15457_v36 }
 0x35c   : > { %v11426_v19 = vpack.c.bf16 %v5335_v44, %v5303_v14  ;;  %v3537_v18 = vpop.f32.mrb[36].mxu0  ;;  %v11428_v0 = vpack.c.bf16 %v5334_v9, %v5302_v5 }
 0x35d   : > { %15658 = vst [vmem:[#allocation38_spill] sm:$0xff] %v11423_v10  ;;  %v4853_v52 = vadd.f32 %v10481_v3, %v3537_v18  ;;  %v3658_v2 = vpop.f32.mrb[36].mxu1  ;;  %v3539_v59 = vpop.f32.mrb[37].mxu0  ;;  %v11431_v15 = vpack.c.bf16 %v5336_v54, %v5304_v56 }
 0x35e   : > { %15659 = vst [vmem:[#allocation39_spill] sm:$0xff] %v11426_v19  ;;  %15660 = vst [vmem:[#allocation36_spill] sm:$0xff] %v11428_v0  ;;  %v4855_v27 = vadd.f32 %v10481_v3, %v3658_v2  ;;  %v4854_v31 = vadd.f32 %v10481_v3, %v3539_v59  ;;  %v3660_v39 = vpop.f32.mrb[37].mxu1  ;;  %v3541_v48 = vpop.f32.mrb[38].mxu0 }
 0x35f   : > { %15661 = vst [vmem:[#allocation37_spill] sm:$0xff] %v11431_v15  ;;  %v4856_v47 = vadd.f32 %v10481_v3, %v3660_v39  ;;  %v4885_v21 = vadd.f32 %v10486_v7, %v3541_v48  ;;  %v3662_v26 = vpop.f32.mrb[38].mxu1  ;;  %v3543_v14 = vpop.f32.mrb[39].mxu0  ;;  %v5365_v18 = vmax.f32 %v4853_v52, 0.0 }
 0x360   : > { %v4887_v5 = vadd.f32 %v10486_v7, %v3662_v26  ;;  %v4886_v44 = vadd.f32 %v10486_v7, %v3543_v14  ;;  %v3664_v9 = vpop.f32.mrb[39].mxu1  ;;  %v5367_v2 = vmax.f32 %v4855_v27, 0.0  ;;  %v5366_v59 = vmax.f32 %v4854_v31, 0.0 }
 0x361   : > { %v5397_v56 = vmax.f32 %v4885_v21, 0.0  ;;  %v4888_v54 = vadd.f32 %v10486_v7, %v3664_v9  ;;  %8766 = vmatmul.mubr.msk.bf16.gmra.mrb[144].mxu0 %vm2457_vm2, %v11201_v25  ;;  %v5368_v48 = vmax.f32 %v4856_v47, 0.0 }
 0x362   : > { %v5399_v19 = vmax.f32 %v4887_v5, 0.0  ;;  %v5398_v39 = vmax.f32 %v4886_v44, 0.0  ;;  %8775 = vmatmul.mubr.msk.bf16.gmra.mrb[144].mxu1 %vm2457_vm2, %v11201_v25  ;;  %4271 = vmatprep.mubr.bf16.mxu0 %v15457_v36 }
 0x363   : > { %v11445_v26 = vpack.c.bf16 %v5397_v56, %v5365_v18  ;;  %v5400_v14 = vmax.f32 %v4888_v54, 0.0  ;;  %4392 = vmatprep.mubr.bf16.mxu1 %v15457_v36 }
 0x364   : > { %v11448_v52 = vpack.c.bf16 %v5399_v19, %v5367_v2  ;;  %v3547_v21 = vpop.f32.mrb[40].mxu0  ;;  %v11450_v9 = vpack.c.bf16 %v5398_v39, %v5366_v59 }
 0x365   : > { %15662 = vst [vmem:[#allocation42_spill] sm:$0xff] %v11445_v26  ;;  %v4917_v27 = vadd.f32 %v10507_v51, %v3547_v21  ;;  %v3668_v31 = vpop.f32.mrb[40].mxu1  ;;  %v3549_v5 = vpop.f32.mrb[41].mxu0  ;;  %v11453_v44 = vpack.c.bf16 %v5400_v14, %v5368_v48 }
 0x366   : > { %15663 = vst [vmem:[#allocation43_spill] sm:$0xff] %v11448_v52  ;;  %15664 = vst [vmem:[#allocation40_spill] sm:$0xff] %v11450_v9  ;;  %v4919_v25 = vadd.f32 %v10507_v51, %v3668_v31  ;;  %v4918_v47 = vadd.f32 %v10507_v51, %v3549_v5  ;;  %v3670_v18 = vpop.f32.mrb[41].mxu1  ;;  %v3551_v56 = vpop.f32.mrb[42].mxu0 }
 0x367   : > { %15665 = vst [vmem:[#allocation41_spill] sm:$0xff] %v11453_v44  ;;  %v4920_v54 = vadd.f32 %v10507_v51, %v3670_v18  ;;  %v4949_v19 = vadd.f32 %v10512_v58, %v3551_v56  ;;  %v3672_v2 = vpop.f32.mrb[42].mxu1  ;;  %v3553_v52 = vpop.f32.mrb[43].mxu0  ;;  %v5429_v26 = vmax.f32 %v4917_v27, 0.0 }
 0x368   : > { %v4951_v59 = vadd.f32 %v10512_v58, %v3672_v2  ;;  %v4950_v39 = vadd.f32 %v10512_v58, %v3553_v52  ;;  %v3674_v21 = vpop.f32.mrb[43].mxu1  ;;  %v5431_v31 = vmax.f32 %v4919_v25, 0.0  ;;  %v5430_v5 = vmax.f32 %v4918_v47, 0.0 }
 0x369   : > { %v5461_v48 = vmax.f32 %v4949_v19, 0.0  ;;  %v4952_v14 = vadd.f32 %v10512_v58, %v3674_v21  ;;  %8767 = vmatmul.mubr.msk.bf16.gmra.mrb[148].mxu0 %vm2457_vm2, %v11228_v62  ;;  %v5432_v56 = vmax.f32 %v4920_v54, 0.0 }
 0x36a   : > { %v5463_v44 = vmax.f32 %v4951_v59, 0.0  ;;  %v5462_v18 = vmax.f32 %v4950_v39, 0.0  ;;  %8776 = vmatmul.mubr.msk.bf16.gmra.mrb[148].mxu1 %vm2457_vm2, %v11228_v62  ;;  %4281 = vmatprep.mubr.bf16.mxu0 %v15457_v36 }
 0x36b   : > { %v11467_v2 = vpack.c.bf16 %v5461_v48, %v5429_v26  ;;  %v5464_v52 = vmax.f32 %v4952_v14, 0.0  ;;  %4402 = vmatprep.mubr.bf16.mxu1 %v15457_v36 }
 0x36c   : > { %v11470_v27 = vpack.c.bf16 %v5463_v44, %v5431_v31  ;;  %v3557_v19 = vpop.f32.mrb[44].mxu0  ;;  %v11472_v21 = vpack.c.bf16 %v5462_v18, %v5430_v5 }
 0x36d   : > { %15666 = vst [vmem:[#allocation46_spill] sm:$0xff] %v11467_v2  ;;  %v4981_v25 = vadd.f32 %v10533_v33, %v3557_v19  ;;  %v3678_v47 = vpop.f32.mrb[44].mxu1  ;;  %v3559_v59 = vpop.f32.mrb[45].mxu0  ;;  %v11475_v39 = vpack.c.bf16 %v5464_v52, %v5432_v56 }
 0x36e   : > { %15667 = vst [vmem:[#allocation47_spill] sm:$0xff] %v11470_v27  ;;  %15668 = vst [vmem:[#allocation44_spill] sm:$0xff] %v11472_v21  ;;  %v4983_v62 = vadd.f32 %v10533_v33, %v3678_v47  ;;  %v4982_v54 = vadd.f32 %v10533_v33, %v3559_v59  ;;  %v3680_v26 = vpop.f32.mrb[45].mxu1  ;;  %v3561_v48 = vpop.f32.mrb[46].mxu0 }
 0x36f   : > { %15669 = vst [vmem:[#allocation45_spill] sm:$0xff] %v11475_v39  ;;  %v4984_v14 = vadd.f32 %v10533_v33, %v3680_v26  ;;  %v5013_v44 = vadd.f32 %v10538_v16, %v3561_v48  ;;  %v3682_v31 = vpop.f32.mrb[46].mxu1  ;;  %v3563_v27 = vpop.f32.mrb[47].mxu0  ;;  %v5493_v2 = vmax.f32 %v4981_v25, 0.0 }
 0x370   : > { %v5015_v5 = vadd.f32 %v10538_v16, %v3682_v31  ;;  %v5014_v18 = vadd.f32 %v10538_v16, %v3563_v27  ;;  %v3684_v19 = vpop.f32.mrb[47].mxu1  ;;  %v5495_v47 = vmax.f32 %v4983_v62, 0.0  ;;  %v5494_v59 = vmax.f32 %v4982_v54, 0.0 }
 0x371   : > { %v5525_v56 = vmax.f32 %v5013_v44, 0.0  ;;  %v5016_v52 = vadd.f32 %v10538_v16, %v3684_v19  ;;  %8768 = vmatmul.mubr.msk.bf16.gmra.mrb[152].mxu0 %vm2457_vm2, %v11255_v29  ;;  %v5496_v48 = vmax.f32 %v4984_v14, 0.0 }
 0x372   : > { %v5527_v39 = vmax.f32 %v5015_v5, 0.0  ;;  %v5526_v26 = vmax.f32 %v5014_v18, 0.0  ;;  %8777 = vmatmul.mubr.msk.bf16.gmra.mrb[152].mxu1 %vm2457_vm2, %v11255_v29  ;;  %4291 = vmatprep.mubr.bf16.mxu0 %v15457_v36 }
 0x373   : > { %v11489_v31 = vpack.c.bf16 %v5525_v56, %v5493_v2  ;;  %v5528_v27 = vmax.f32 %v5016_v52, 0.0  ;;  %4412 = vmatprep.mubr.bf16.mxu1 %v15457_v36 }
 0x374   : > { %v11492_v25 = vpack.c.bf16 %v5527_v39, %v5495_v47  ;;  %v11494_v44 = vpop.f32.mrb[48].mxu0  ;;  %v11496_v19 = vpack.c.bf16 %v5526_v26, %v5494_v59  ;;  %v11516_v26 = vld [vmem:[%s15164_s3] sm:$0xff]  }
 0x375   : > { %15670 = vst [vmem:[#allocation50_spill] sm:$0xff] %v11489_v31  ;;  %15672 = vst [vmem:[#allocation48_spill] sm:$0xff] %v11494_v44  ;;  %v11498_v62 = vpop.f32.mrb[48].mxu1  ;;  %v11500_v54 = vpop.f32.mrb[49].mxu0  ;;  %v11502_v5 = vpack.c.bf16 %v5528_v27, %v5496_v48 }
 0x376   : > { %15671 = vst [vmem:[#allocation51_spill] sm:$0xff] %v11492_v25  ;;  %15673 = vst [vmem:[#allocation49_spill] sm:$0xff] %v11496_v19  ;;  %v11504_v29 = vpop.f32.mrb[49].mxu1  ;;  %v3571_v14 = vpop.f32.mrb[50].mxu0 }
 0x377   : > { %15674 = vst [vmem:[#allocation52_spill] sm:$0xff] %v11498_v62  ;;  %15675 = vst [vmem:[#allocation53_spill] sm:$0xff] %v11500_v54  ;;  %v3692_v2 = vpop.f32.mrb[50].mxu1  ;;  %v3572_v18 = vpop.f32.mrb[51].mxu0 }
 0x378   : > { %15676 = vst [vmem:[#allocation127_spill] sm:$0xff] %v11502_v5  ;;  %15677 = vst [vmem:[#allocation128_spill] sm:$0xff] %v11504_v29  ;;  %v3693_v56 = vpop.f32.mrb[51].mxu1 }
 0x379   : > { %8769 = vmatmul.mubr.msk.bf16.gmra.mrb[156].mxu0 %vm2457_vm2, %v11282_v34 }
 0x37a   : > { %8778 = vmatmul.mubr.msk.bf16.gmra.mrb[156].mxu1 %vm2457_vm2, %v11282_v34  ;;  %5973 = vmatprep.mubr.bf16.mxu0 %v15457_v36 }
 0x37b   : > { %6086 = vmatprep.mubr.bf16.mxu1 %v15457_v36 }
 0x37c   : > { %v3729_v39 = vpop.f32.mrb[52].mxu0 }
 0x37d   : > { %v4537_v52 = vadd.f32 %v10335_v57, %v3729_v39  ;;  %v3850_v47 = vpop.f32.mrb[52].mxu1  ;;  %v3731_v59 = vpop.f32.mrb[53].mxu0 }
 0x37e   : > { %v4539_v48 = vadd.f32 %v10335_v57, %v3850_v47  ;;  %v4538_v27 = vadd.f32 %v10335_v57, %v3731_v59  ;;  %v3852_v14 = vpop.f32.mrb[53].mxu1  ;;  %v3733_v34 = vpop.f32.mrb[54].mxu0 }
 0x37f   : > { %v4540_v2 = vadd.f32 %v10335_v57, %v3852_v14  ;;  %v4569_v18 = vadd.f32 %v10340_v6, %v3733_v34  ;;  %v3854_v56 = vpop.f32.mrb[54].mxu1  ;;  %v3735_v29 = vpop.f32.mrb[55].mxu0  ;;  %v5049_v44 = vmax.f32 %v4537_v52, 0.0  ;;  %v15678_v14 = vld [vmem:[#allocation58_spill] sm:$0xff]  ;;  %v15681_v52 = vld [vmem:[#allocation9_spill] sm:$0xff] }
 0x380   : > { %v4571_v39 = vadd.f32 %v10340_v6, %v3854_v56  ;;  %v4570_v54 = vadd.f32 %v10340_v6, %v3735_v29  ;;  %v3856_v62 = vpop.f32.mrb[55].mxu1  ;;  %v5051_v47 = vmax.f32 %v4539_v48, 0.0  ;;  %v5050_v59 = vmax.f32 %v4538_v27, 0.0  ;;  %v15680_v29 = vld [vmem:[#allocation59_spill] sm:$0xff] }
 0x381   : > { %v5081_v25 = vmax.f32 %v4569_v18, 0.0  ;;  %v4572_v31 = vadd.f32 %v10340_v6, %v3856_v62  ;;  %5974 = vmatmul.mubr.bf16.vlgmr.msra.gmra.mrb[160].mxu0 %v11516_v26  ;;  %v5052_v34 = vmax.f32 %v4540_v2, 0.0  ;;  %v15683_v62 = vld [vmem:[#allocation7_spill] sm:$0xff] }
 0x382   : > { %v5083_v5 = vmax.f32 %v4571_v39, 0.0  ;;  %v5082_v19 = vmax.f32 %v4570_v54, 0.0  ;;  %6087 = vmatmul.mubr.bf16.vlgmr.msra.gmra.mrb[160].mxu1 %v11516_v26  ;;  %6168 = vmatpush1.bf16.msra.mxu0 %v15678_v14 }
 0x383   : > { %v11528_v21 = vpack.c.bf16 %v5081_v25, %v5049_v44  ;;  %v5084_v56 = vmax.f32 %v4572_v31, 0.0  ;;  %6281 = vmatpush1.bf16.msra.mxu1 %v15680_v29  ;;  %6169 = vmatprep.subr.bf16.mxu0 %v15681_v52  ;;  %v11543_v31 = vld [vmem:[%s15164_s3 + $0x8] sm:$0xff]  }
 0x384   : > { %v11532_v18 = vpack.c.bf16 %v5083_v5, %v5051_v47  ;;  %6282 = vmatprep.subr.bf16.mxu1 %v15683_v62  ;;  %v3739_v48 = vpop.f32.mrb[56].mxu0  ;;  %5983 = vmatprep.mubr.bf16.mxu0 %v15457_v36  ;;  %v11536_v54 = vpack.c.bf16 %v5082_v19, %v5050_v59  ;;  %v15686_v19 = vld [vmem:[#allocation5_spill] sm:$0xff]  ;;  %v15687_v29 = vld [vmem:[#allocation6_spill] sm:$0xff] }
 0x385   : > { %15679 = vst [vmem:[#allocation58_spill] sm:$0xff] %v11528_v21  ;;  %v4601_v27 = vadd.f32 %v10361_v55, %v3739_v48  ;;  %v3860_v39 = vpop.f32.mrb[56].mxu1  ;;  %v3741_v2 = vpop.f32.mrb[57].mxu0  ;;  %6096 = vmatprep.mubr.bf16.mxu1 %v15457_v36  ;;  %v11545_v25 = vpack.c.bf16 %v5084_v56, %v5052_v34  ;;  %v15688_v48 = vld [vmem:[#allocation61_spill] sm:$0xff]  ;;  %v15689_v56 = vld [vmem:[#allocation62_spill] sm:$0xff] }
 0x386   : > { %15682 = vst [vmem:[#allocation59_spill] sm:$0xff] %v11532_v18  ;;  %15684 = vst [vmem:[#allocation9_spill] sm:$0xff] %v11536_v54  ;;  %v4603_v44 = vadd.f32 %v10361_v55, %v3860_v39  ;;  %v4602_v5 = vadd.f32 %v10361_v55, %v3741_v2  ;;  %v3862_v47 = vpop.f32.mrb[57].mxu1  ;;  %6170 = vmatpush1.bf16.msra.mxu0 %v15686_v19  ;;  %v3743_v59 = vpop.f32.mrb[58].mxu0 }
 0x387   : > { %15685 = vst [vmem:[#allocation7_spill] sm:$0xff] %v11545_v25  ;;  %v4604_v14 = vadd.f32 %v10361_v55, %v3862_v47  ;;  %6283 = vmatpush1.bf16.msra.mxu1 %v15687_v29  ;;  %v4633_v52 = vadd.f32 %v10367_v22, %v3743_v59  ;;  %v3864_v62 = vpop.f32.mrb[58].mxu1  ;;  %6171 = vmatprep.subr.bf16.mxu0 %v15688_v48  ;;  %v3745_v18 = vpop.f32.mrb[59].mxu0  ;;  %v5113_v21 = vmax.f32 %v4601_v27, 0.0  ;;  %v15690_v48 = vld [vmem:[#allocation8_spill] sm:$0xff]  ;;  %v15693_v27 = vld [vmem:[#allocation65_spill] sm:$0xff] }
 0x388   : > { %v4635_v34 = vadd.f32 %v10367_v22, %v3864_v62  ;;  %6284 = vmatprep.subr.bf16.mxu1 %v15689_v56  ;;  %v4634_v39 = vadd.f32 %v10367_v22, %v3745_v18  ;;  %v3866_v2 = vpop.f32.mrb[59].mxu1  ;;  %v5115_v47 = vmax.f32 %v4603_v44, 0.0  ;;  %v5114_v29 = vmax.f32 %v4602_v5, 0.0  ;;  %v15692_v18 = vld [vmem:[#allocation60_spill] sm:$0xff] }
 0x389   : > { %v5145_v19 = vmax.f32 %v4633_v52, 0.0  ;;  %v4636_v25 = vadd.f32 %v10367_v22, %v3866_v2  ;;  %5984 = vmatmul.mubr.bf16.gmra.mrb[164].mxu0 %v11543_v31  ;;  %v5116_v62 = vmax.f32 %v4604_v14, 0.0  ;;  %v15695_v2 = vld [vmem:[#allocation66_spill] sm:$0xff] }
 0x38a   : > { %v5147_v59 = vmax.f32 %v4635_v34, 0.0  ;;  %v5146_v54 = vmax.f32 %v4634_v39, 0.0  ;;  %6097 = vmatmul.mubr.bf16.gmra.mrb[164].mxu1 %v11543_v31  ;;  %6172 = vmatpush1.bf16.msra.mxu0 %v15690_v48 }
 0x38b   : > { %v11561_v9 = vpack.c.bf16 %v5145_v19, %v5113_v21  ;;  %v5148_v56 = vmax.f32 %v4636_v25, 0.0  ;;  %6285 = vmatpush1.bf16.msra.mxu1 %v15692_v18  ;;  %6173 = vmatprep.subr.bf16.mxu0 %v15693_v27  ;;  %v11576_v21 = vld [vmem:[%s15164_s3 + $0x10] sm:$0xff]   ;;  %v15699_v18 = vld [vmem:[#allocation64_spill] sm:$0xff] }
 0x38c   : > { %v11565_v52 = vpack.c.bf16 %v5147_v59, %v5115_v47  ;;  %6286 = vmatprep.subr.bf16.mxu1 %v15695_v2  ;;  %v3749_v44 = vpop.f32.mrb[60].mxu0  ;;  %5993 = vmatprep.mubr.bf16.mxu0 %v15457_v36  ;;  %v11569_v5 = vpack.c.bf16 %v5146_v54, %v5114_v29  ;;  %v15698_v54 = vld [vmem:[#allocation63_spill] sm:$0xff] }
 0x38d   : > { %15691 = vst [vmem:[#allocation5_spill] sm:$0xff] %v11561_v9  ;;  %v4665_v34 = vadd.f32 %v10395_v41, %v3749_v44  ;;  %v3870_v39 = vpop.f32.mrb[60].mxu1  ;;  %v3751_v14 = vpop.f32.mrb[61].mxu0  ;;  %6106 = vmatprep.mubr.bf16.mxu1 %v15457_v36  ;;  %v11578_v25 = vpack.c.bf16 %v5148_v56, %v5116_v62  ;;  %v15700_v44 = vld [vmem:[#allocation69_spill] sm:$0xff]  ;;  %v15701_v56 = vld [vmem:[#allocation70_spill] sm:$0xff] }
 0x38e   : > { %15694 = vst [vmem:[#allocation6_spill] sm:$0xff] %v11565_v52  ;;  %15696 = vst [vmem:[#allocation61_spill] sm:$0xff] %v11569_v5  ;;  %v4667_v19 = vadd.f32 %v10395_v41, %v3870_v39  ;;  %v4666_v47 = vadd.f32 %v10395_v41, %v3751_v14  ;;  %v3872_v59 = vpop.f32.mrb[61].mxu1  ;;  %6174 = vmatpush1.bf16.msra.mxu0 %v15698_v54  ;;  %v3753_v29 = vpop.f32.mrb[62].mxu0 }
 0x38f   : > { %15697 = vst [vmem:[#allocation62_spill] sm:$0xff] %v11578_v25  ;;  %v4668_v48 = vadd.f32 %v10395_v41, %v3872_v59  ;;  %6287 = vmatpush1.bf16.msra.mxu1 %v15699_v18  ;;  %v4697_v27 = vadd.f32 %v10401_v8, %v3753_v29  ;;  %v3874_v2 = vpop.f32.mrb[62].mxu1  ;;  %6175 = vmatprep.subr.bf16.mxu0 %v15700_v44  ;;  %v3755_v52 = vpop.f32.mrb[63].mxu0  ;;  %v5177_v9 = vmax.f32 %v4665_v34, 0.0  ;;  %v15702_v44 = vld [vmem:[#allocation67_spill] sm:$0xff]  ;;  %v15705_v34 = vld [vmem:[#allocation73_spill] sm:$0xff] }
 0x390   : > { %v4699_v62 = vadd.f32 %v10401_v8, %v3874_v2  ;;  %6288 = vmatprep.subr.bf16.mxu1 %v15701_v56  ;;  %v4698_v39 = vadd.f32 %v10401_v8, %v3755_v52  ;;  %v3876_v14 = vpop.f32.mrb[63].mxu1  ;;  %v5179_v59 = vmax.f32 %v4667_v19, 0.0  ;;  %v5178_v18 = vmax.f32 %v4666_v47, 0.0  ;;  %v15704_v52 = vld [vmem:[#allocation68_spill] sm:$0xff] }
 0x391   : > { %v5209_v54 = vmax.f32 %v4697_v27, 0.0  ;;  %v4700_v25 = vadd.f32 %v10401_v8, %v3876_v14  ;;  %5994 = vmatmul.mubr.bf16.gmra.mrb[168].mxu0 %v11576_v21  ;;  %v5180_v2 = vmax.f32 %v4668_v48, 0.0  ;;  %v15707_v14 = vld [vmem:[#allocation74_spill] sm:$0xff] }
 0x392   : > { %v5211_v29 = vmax.f32 %v4699_v62, 0.0  ;;  %v5210_v5 = vmax.f32 %v4698_v39, 0.0  ;;  %6107 = vmatmul.mubr.bf16.gmra.mrb[168].mxu1 %v11576_v21  ;;  %6176 = vmatpush1.bf16.msra.mxu0 %v15702_v44 }
 0x393   : > { %v11594_v10 = vpack.c.bf16 %v5209_v54, %v5177_v9  ;;  %v5212_v56 = vmax.f32 %v4700_v25, 0.0  ;;  %6289 = vmatpush1.bf16.msra.mxu1 %v15704_v52  ;;  %6177 = vmatprep.subr.bf16.mxu0 %v15705_v34  ;;  %v11609_v9 = vld [vmem:[%s15164_s3 + $0x18] sm:$0xff]  }
 0x394   : > { %v11598_v27 = vpack.c.bf16 %v5211_v29, %v5179_v59  ;;  %6290 = vmatprep.subr.bf16.mxu1 %v15707_v14  ;;  %v3759_v19 = vpop.f32.mrb[64].mxu0  ;;  %6003 = vmatprep.mubr.bf16.mxu0 %v15457_v36  ;;  %v11602_v47 = vpack.c.bf16 %v5210_v5, %v5178_v18  ;;  %v15710_v5 = vld [vmem:[#allocation71_spill] sm:$0xff]  ;;  %v15711_v52 = vld [vmem:[#allocation72_spill] sm:$0xff] }
 0x395   : > { %15703 = vst [vmem:[#allocation8_spill] sm:$0xff] %v11594_v10  ;;  %v4729_v62 = vadd.f32 %v10429_v38, %v3759_v19  ;;  %v3880_v39 = vpop.f32.mrb[64].mxu1  ;;  %v3761_v48 = vpop.f32.mrb[65].mxu0  ;;  %6116 = vmatprep.mubr.bf16.mxu1 %v15457_v36  ;;  %v11611_v25 = vpack.c.bf16 %v5212_v56, %v5180_v2  ;;  %v15712_v19 = vld [vmem:[#allocation77_spill] sm:$0xff]  ;;  %v15713_v56 = vld [vmem:[#allocation78_spill] sm:$0xff] }
 0x396   : > { %15706 = vst [vmem:[#allocation60_spill] sm:$0xff] %v11598_v27  ;;  %15708 = vst [vmem:[#allocation65_spill] sm:$0xff] %v11602_v47  ;;  %v4731_v54 = vadd.f32 %v10429_v38, %v3880_v39  ;;  %v4730_v59 = vadd.f32 %v10429_v38, %v3761_v48  ;;  %v3882_v29 = vpop.f32.mrb[65].mxu1  ;;  %6178 = vmatpush1.bf16.msra.mxu0 %v15710_v5  ;;  %v3763_v18 = vpop.f32.mrb[66].mxu0 }
 0x397   : > { %15709 = vst [vmem:[#allocation66_spill] sm:$0xff] %v11611_v25  ;;  %v4732_v44 = vadd.f32 %v10429_v38, %v3882_v29  ;;  %6291 = vmatpush1.bf16.msra.mxu1 %v15711_v52  ;;  %v4761_v34 = vadd.f32 %v10434_v12, %v3763_v18  ;;  %v3884_v14 = vpop.f32.mrb[66].mxu1  ;;  %6179 = vmatprep.subr.bf16.mxu0 %v15712_v19  ;;  %v3765_v27 = vpop.f32.mrb[67].mxu0  ;;  %v5241_v10 = vmax.f32 %v4729_v62, 0.0  ;;  %v15714_v19 = vld [vmem:[#allocation75_spill] sm:$0xff]  ;;  %v15717_v62 = vld [vmem:[#allocation82_spill] sm:$0xff] }
 0x398   : > { %v4763_v2 = vadd.f32 %v10434_v12, %v3884_v14  ;;  %6292 = vmatprep.subr.bf16.mxu1 %v15713_v56  ;;  %v4762_v39 = vadd.f32 %v10434_v12, %v3765_v27  ;;  %v3886_v48 = vpop.f32.mrb[67].mxu1  ;;  %v5243_v29 = vmax.f32 %v4731_v54, 0.0  ;;  %v5242_v52 = vmax.f32 %v4730_v59, 0.0  ;;  %v15716_v27 = vld [vmem:[#allocation76_spill] sm:$0xff] }
 0x399   : > { %v5273_v5 = vmax.f32 %v4761_v34, 0.0  ;;  %v4764_v25 = vadd.f32 %v10434_v12, %v3886_v48  ;;  %6004 = vmatmul.mubr.bf16.gmra.mrb[172].mxu0 %v11609_v9  ;;  %v5244_v14 = vmax.f32 %v4732_v44, 0.0  ;;  %v15719_v48 = vld [vmem:[#allocation85_spill] sm:$0xff] }
 0x39a   : > { %v5275_v18 = vmax.f32 %v4763_v2, 0.0  ;;  %v5274_v47 = vmax.f32 %v4762_v39, 0.0  ;;  %6117 = vmatmul.mubr.bf16.gmra.mrb[172].mxu1 %v11609_v9  ;;  %6180 = vmatpush1.bf16.msra.mxu0 %v15714_v19 }
 0x39b   : > { %v11627_v15 = vpack.c.bf16 %v5273_v5, %v5241_v10  ;;  %v5276_v56 = vmax.f32 %v4764_v25, 0.0  ;;  %6293 = vmatpush1.bf16.msra.mxu1 %v15716_v27  ;;  %6181 = vmatprep.subr.bf16.mxu0 %v15717_v62  ;;  %v11642_v10 = vld [vmem:[%s15164_s3 + $0x20] sm:$0xff]   ;;  %v15723_v27 = vld [vmem:[#allocation80_spill] sm:$0xff] }
 0x39c   : > { %v11631_v34 = vpack.c.bf16 %v5275_v18, %v5243_v29  ;;  %6294 = vmatprep.subr.bf16.mxu1 %v15719_v48  ;;  %v3769_v54 = vpop.f32.mrb[68].mxu0  ;;  %6013 = vmatprep.mubr.bf16.mxu0 %v15457_v36  ;;  %v11635_v59 = vpack.c.bf16 %v5274_v47, %v5242_v52  ;;  %v15722_v47 = vld [vmem:[#allocation79_spill] sm:$0xff] }
 0x39d   : > { %15715 = vst [vmem:[#allocation63_spill] sm:$0xff] %v11627_v15  ;;  %v4793_v2 = vadd.f32 %v10455_v50, %v3769_v54  ;;  %v3890_v39 = vpop.f32.mrb[68].mxu1  ;;  %v3771_v44 = vpop.f32.mrb[69].mxu0  ;;  %6126 = vmatprep.mubr.bf16.mxu1 %v15457_v36  ;;  %v11644_v25 = vpack.c.bf16 %v5276_v56, %v5244_v14 }
 0x39e   : > { %15718 = vst [vmem:[#allocation64_spill] sm:$0xff] %v11631_v34  ;;  %15720 = vst [vmem:[#allocation69_spill] sm:$0xff] %v11635_v59  ;;  %v4795_v5 = vadd.f32 %v10455_v50, %v3890_v39  ;;  %v4794_v29 = vadd.f32 %v10455_v50, %v3771_v44  ;;  %v3892_v18 = vpop.f32.mrb[69].mxu1  ;;  %6182 = vmatpush1.bf16.msra.mxu0 %v15722_v47  ;;  %v3773_v52 = vpop.f32.mrb[70].mxu0 }
 0x39f   : > { %15721 = vst [vmem:[#allocation70_spill] sm:$0xff] %v11644_v25  ;;  %v4796_v19 = vadd.f32 %v10455_v50, %v3892_v18  ;;  %6295 = vmatpush1.bf16.msra.mxu1 %v15723_v27  ;;  %v4825_v62 = vadd.f32 %v10460_v30, %v3773_v52  ;;  %v3894_v48 = vpop.f32.mrb[70].mxu1  ;;  %6393 = vmatprep.subr.bf16.mxu0 %v10854_v4  ;;  %v3775_v54 = vpop.f32.mrb[71].mxu0  ;;  %v5305_v44 = vmax.f32 %v4793_v2, 0.0 }
 0x3a0   : > { %v4827_v14 = vadd.f32 %v10460_v30, %v3894_v48  ;;  %6506 = vmatprep.subr.bf16.mxu1 %v10858_v28  ;;  %v4826_v56 = vadd.f32 %v10460_v30, %v3775_v54  ;;  %v3896_v39 = vpop.f32.mrb[71].mxu1  ;;  %v5307_v18 = vmax.f32 %v4795_v5, 0.0  ;;  %v5306_v27 = vmax.f32 %v4794_v29, 0.0 }
 0x3a1   : > { %v5337_v47 = vmax.f32 %v4825_v62, 0.0  ;;  %v4828_v34 = vadd.f32 %v10460_v30, %v3896_v39  ;;  %6014 = vmatmul.mubr.bf16.gmra.mrb[176].mxu0 %v11642_v10  ;;  %v5308_v4 = vmax.f32 %v4796_v19, 0.0 }
 0x3a2   : > { %v5339_v52 = vmax.f32 %v4827_v14, 0.0  ;;  %v5338_v15 = vmax.f32 %v4826_v56, 0.0  ;;  %6127 = vmatmul.mubr.bf16.gmra.mrb[176].mxu1 %v11642_v10  ;;  %6023 = vmatprep.mubr.bf16.mxu0 %v15457_v36  ;;  %v11671_v56 = vld [vmem:[%s15164_s3 + $0x28] sm:$0xff]  }
 0x3a3   : > { %v11660_v48 = vpack.c.bf16 %v5337_v47, %v5305_v44  ;;  %v5340_v28 = vmax.f32 %v4828_v34, 0.0  ;;  %6136 = vmatprep.mubr.bf16.mxu1 %v15457_v36 }
 0x3a4   : > { %v11663_v2 = vpack.c.bf16 %v5339_v52, %v5307_v18  ;;  %v3779_v62 = vpop.f32.mrb[72].mxu0  ;;  %v11665_v54 = vpack.c.bf16 %v5338_v15, %v5306_v27 }
 0x3a5   : > { %15724 = vst [vmem:[#allocation67_spill] sm:$0xff] %v11660_v48  ;;  %v4857_v5 = vadd.f32 %v10481_v3, %v3779_v62  ;;  %v3900_v29 = vpop.f32.mrb[72].mxu1  ;;  %v3781_v14 = vpop.f32.mrb[73].mxu0  ;;  %v11673_v19 = vpack.c.bf16 %v5340_v28, %v5308_v4 }
 0x3a6   : > { %15725 = vst [vmem:[#allocation68_spill] sm:$0xff] %v11663_v2  ;;  %15726 = vst [vmem:[#allocation73_spill] sm:$0xff] %v11665_v54  ;;  %v4859_v34 = vadd.f32 %v10481_v3, %v3900_v29  ;;  %v4858_v39 = vadd.f32 %v10481_v3, %v3781_v14  ;;  %v3902_v44 = vpop.f32.mrb[73].mxu1  ;;  %v3783_v47 = vpop.f32.mrb[74].mxu0 }
 0x3a7   : > { %15727 = vst [vmem:[#allocation74_spill] sm:$0xff] %v11673_v19  ;;  %v4860_v15 = vadd.f32 %v10481_v3, %v3902_v44  ;;  %v4889_v18 = vadd.f32 %v10486_v7, %v3783_v47  ;;  %v3904_v27 = vpop.f32.mrb[74].mxu1  ;;  %v3785_v52 = vpop.f32.mrb[75].mxu0  ;;  %v5369_v54 = vmax.f32 %v4857_v5, 0.0 }
 0x3a8   : > { %v4891_v62 = vadd.f32 %v10486_v7, %v3904_v27  ;;  %v4890_v2 = vadd.f32 %v10486_v7, %v3785_v52  ;;  %v3906_v48 = vpop.f32.mrb[75].mxu1  ;;  %v5371_v29 = vmax.f32 %v4859_v34, 0.0  ;;  %v5370_v14 = vmax.f32 %v4858_v39, 0.0 }
 0x3a9   : > { %v5401_v4 = vmax.f32 %v4889_v18, 0.0  ;;  %v4892_v28 = vadd.f32 %v10486_v7, %v3906_v48  ;;  %6024 = vmatmul.mubr.bf16.gmra.mrb[180].mxu0 %v11671_v56  ;;  %v5372_v44 = vmax.f32 %v4860_v15, 0.0 }
 0x3aa   : > { %v5403_v19 = vmax.f32 %v4891_v62, 0.0  ;;  %v5402_v25 = vmax.f32 %v4890_v2, 0.0  ;;  %6137 = vmatmul.mubr.bf16.gmra.mrb[180].mxu1 %v11671_v56  ;;  %6033 = vmatprep.mubr.bf16.mxu0 %v15457_v36  ;;  %v11696_v2 = vld [vmem:[%s15164_s3 + $0x30] sm:$0xff]  }
 0x3ab   : > { %v11685_v47 = vpack.c.bf16 %v5401_v4, %v5369_v54  ;;  %v5404_v27 = vmax.f32 %v4892_v28, 0.0  ;;  %6146 = vmatprep.mubr.bf16.mxu1 %v15457_v36 }
 0x3ac   : > { %v11688_v5 = vpack.c.bf16 %v5403_v19, %v5371_v29  ;;  %v3789_v18 = vpop.f32.mrb[76].mxu0  ;;  %v11690_v48 = vpack.c.bf16 %v5402_v25, %v5370_v14 }
 0x3ad   : > { %15728 = vst [vmem:[#allocation71_spill] sm:$0xff] %v11685_v47  ;;  %v4921_v34 = vadd.f32 %v10507_v51, %v3789_v18  ;;  %v3910_v39 = vpop.f32.mrb[76].mxu1  ;;  %v3791_v52 = vpop.f32.mrb[77].mxu0  ;;  %v11698_v15 = vpack.c.bf16 %v5404_v27, %v5372_v44 }
 0x3ae   : > { %15729 = vst [vmem:[#allocation72_spill] sm:$0xff] %v11688_v5  ;;  %15730 = vst [vmem:[#allocation77_spill] sm:$0xff] %v11690_v48  ;;  %v4923_v54 = vadd.f32 %v10507_v51, %v3910_v39  ;;  %v4922_v62 = vadd.f32 %v10507_v51, %v3791_v52  ;;  %v3912_v19 = vpop.f32.mrb[77].mxu1  ;;  %v3793_v4 = vpop.f32.mrb[78].mxu0 }
 0x3af   : > { %15731 = vst [vmem:[#allocation78_spill] sm:$0xff] %v11698_v15  ;;  %v4924_v25 = vadd.f32 %v10507_v51, %v3912_v19  ;;  %v4953_v28 = vadd.f32 %v10512_v58, %v3793_v4  ;;  %v3914_v29 = vpop.f32.mrb[78].mxu1  ;;  %v3795_v14 = vpop.f32.mrb[79].mxu0  ;;  %v5433_v48 = vmax.f32 %v4921_v34, 0.0 }
 0x3b0   : > { %v4955_v18 = vadd.f32 %v10512_v58, %v3914_v29  ;;  %v4954_v5 = vadd.f32 %v10512_v58, %v3795_v14  ;;  %v3916_v47 = vpop.f32.mrb[79].mxu1  ;;  %v5435_v39 = vmax.f32 %v4923_v54, 0.0  ;;  %v5434_v52 = vmax.f32 %v4922_v62, 0.0 }
 0x3b1   : > { %v5465_v44 = vmax.f32 %v4953_v28, 0.0  ;;  %v4956_v27 = vadd.f32 %v10512_v58, %v3916_v47  ;;  %6034 = vmatmul.mubr.bf16.gmra.mrb[184].mxu0 %v11696_v2  ;;  %v5436_v19 = vmax.f32 %v4924_v25, 0.0 }
 0x3b2   : > { %v5467_v15 = vmax.f32 %v4955_v18, 0.0  ;;  %v5466_v59 = vmax.f32 %v4954_v5, 0.0  ;;  %6147 = vmatmul.mubr.bf16.gmra.mrb[184].mxu1 %v11696_v2  ;;  %6043 = vmatprep.mubr.bf16.mxu0 %v15457_v36  ;;  %v11721_v5 = vld [vmem:[%s15164_s3 + $0x38] sm:$0xff]  }
 0x3b3   : > { %v11710_v4 = vpack.c.bf16 %v5465_v44, %v5433_v48  ;;  %v5468_v29 = vmax.f32 %v4956_v27, 0.0  ;;  %6156 = vmatprep.mubr.bf16.mxu1 %v15457_v36 }
 0x3b4   : > { %v11713_v34 = vpack.c.bf16 %v5467_v15, %v5435_v39  ;;  %v3799_v28 = vpop.f32.mrb[80].mxu0  ;;  %v11715_v47 = vpack.c.bf16 %v5466_v59, %v5434_v52 }
 0x3b5   : > { %15732 = vst [vmem:[#allocation75_spill] sm:$0xff] %v11710_v4  ;;  %v4985_v54 = vadd.f32 %v10533_v33, %v3799_v28  ;;  %v3920_v62 = vpop.f32.mrb[80].mxu1  ;;  %v3801_v14 = vpop.f32.mrb[81].mxu0  ;;  %v11723_v25 = vpack.c.bf16 %v5468_v29, %v5436_v19 }
 0x3b6   : > { %15733 = vst [vmem:[#allocation76_spill] sm:$0xff] %v11713_v34  ;;  %15734 = vst [vmem:[#allocation82_spill] sm:$0xff] %v11715_v47  ;;  %v4987_v48 = vadd.f32 %v10533_v33, %v3920_v62  ;;  %v4986_v18 = vadd.f32 %v10533_v33, %v3801_v14  ;;  %v3922_v15 = vpop.f32.mrb[81].mxu1  ;;  %v3803_v44 = vpop.f32.mrb[82].mxu0 }
 0x3b7   : > { %15735 = vst [vmem:[#allocation85_spill] sm:$0xff] %v11723_v25  ;;  %v4988_v59 = vadd.f32 %v10533_v33, %v3922_v15  ;;  %v5017_v27 = vadd.f32 %v10538_v16, %v3803_v44  ;;  %v3924_v39 = vpop.f32.mrb[82].mxu1  ;;  %v3805_v52 = vpop.f32.mrb[83].mxu0  ;;  %v5497_v47 = vmax.f32 %v4985_v54, 0.0 }
 0x3b8   : > { %v5019_v28 = vadd.f32 %v10538_v16, %v3924_v39  ;;  %v5018_v34 = vadd.f32 %v10538_v16, %v3805_v52  ;;  %v3926_v4 = vpop.f32.mrb[83].mxu1  ;;  %v5499_v62 = vmax.f32 %v4987_v48, 0.0  ;;  %v5498_v14 = vmax.f32 %v4986_v18, 0.0 }
 0x3b9   : > { %v5529_v19 = vmax.f32 %v5017_v27, 0.0  ;;  %v5020_v29 = vadd.f32 %v10538_v16, %v3926_v4  ;;  %6044 = vmatmul.mubr.bf16.gmra.mrb[188].mxu0 %v11721_v5  ;;  %v5500_v15 = vmax.f32 %v4988_v59, 0.0 }
 0x3ba   : > { %v5531_v25 = vmax.f32 %v5019_v28, 0.0  ;;  %v5530_v0 = vmax.f32 %v5018_v34, 0.0  ;;  %6157 = vmatmul.mubr.bf16.gmra.mrb[188].mxu1 %v11721_v5  ;;  %6199 = vmatprep.mubr.bf16.mxu0 %v15457_v36 }
 0x3bb   : > { %v11735_v44 = vpack.c.bf16 %v5529_v19, %v5497_v47  ;;  %v5532_v39 = vmax.f32 %v5020_v29, 0.0  ;;  %6312 = vmatprep.mubr.bf16.mxu1 %v15457_v36 }
 0x3bc   : > { %v11738_v54 = vpack.c.bf16 %v5531_v25, %v5499_v62  ;;  %v11740_v27 = vpop.f32.mrb[84].mxu0  ;;  %v11742_v4 = vpack.c.bf16 %v5530_v0, %v5498_v14 }
 0x3bd   : > { %15736 = vst [vmem:[#allocation79_spill] sm:$0xff] %v11740_v27  ;;  %v11744_v48 = vpop.f32.mrb[84].mxu1  ;;  %v11746_v18 = vpop.f32.mrb[85].mxu0  ;;  %v11748_v34 = vpack.c.bf16 %v5532_v39, %v5500_v15 }
 0x3be   : > { %15737 = vst [vmem:[#allocation80_spill] sm:$0xff] %v11744_v48  ;;  %15738 = vst [vmem:[#allocation129_spill] sm:$0xff] %v11746_v18  ;;  %v11750_v52 = vpop.f32.mrb[85].mxu1  ;;  %v3813_v59 = vpop.f32.mrb[86].mxu0 }
 0x3bf   : > { %15739 = vst [vmem:[#allocation130_spill] sm:$0xff] %v11750_v52  ;;  %v3934_v47 = vpop.f32.mrb[86].mxu1  ;;  %v3814_v28 = vpop.f32.mrb[87].mxu0 }
 0x3c0   : > { %v3935_v19 = vpop.f32.mrb[87].mxu1 }
 0x3c1   : > { %6200 = vmatmul.mubr.bf16.vlgmr.msra.gmra.mrb[192].mxu0 %v11516_v26 }
 0x3c2   : > { %6313 = vmatmul.mubr.bf16.vlgmr.msra.gmra.mrb[192].mxu1 %v11516_v26  ;;  %6394 = vmatpush1.bf16.msra.mxu0 %v10846_v11 }
 0x3c3   : > { %6507 = vmatpush1.bf16.msra.mxu1 %v10850_v45  ;;  %6395 = vmatprep.subr.bf16.mxu0 %v10884_v60 }
 0x3c4   : > { %6508 = vmatprep.subr.bf16.mxu1 %v10888_v61  ;;  %v3971_v0 = vpop.f32.mrb[88].mxu0  ;;  %6209 = vmatprep.mubr.bf16.mxu0 %v15457_v36  ;;  %v15740_v61 = vld [vmem:[#allocation10_spill] sm:$0xff] }
 0x3c5   : > { %v4541_v25 = vadd.f32 %v10335_v57, %v3971_v0  ;;  %v4092_v29 = vpop.f32.mrb[88].mxu1  ;;  %v3973_v62 = vpop.f32.mrb[89].mxu0  ;;  %6322 = vmatprep.mubr.bf16.mxu1 %v15457_v36 }
 0x3c6   : > { %v4543_v14 = vadd.f32 %v10335_v57, %v4092_v29  ;;  %v4542_v26 = vadd.f32 %v10335_v57, %v3973_v62  ;;  %v4094_v11 = vpop.f32.mrb[89].mxu1  ;;  %6396 = vmatpush1.bf16.msra.mxu0 %v10876_v20  ;;  %v3975_v45 = vpop.f32.mrb[90].mxu0 }
 0x3c7   : > { %v4544_v60 = vadd.f32 %v10335_v57, %v4094_v11  ;;  %6509 = vmatpush1.bf16.msra.mxu1 %v15740_v61  ;;  %v4573_v15 = vadd.f32 %v10340_v6, %v3975_v45  ;;  %v4096_v39 = vpop.f32.mrb[90].mxu1  ;;  %6397 = vmatprep.subr.bf16.mxu0 %v10911_v37  ;;  %v3977_v59 = vpop.f32.mrb[91].mxu0  ;;  %v5053_v0 = vmax.f32 %v4541_v25, 0.0  ;;  %v15741_v37 = vld [vmem:[#allocation11_spill] sm:$0xff]  ;;  %v15744_v25 = vld [vmem:[#allocation13_spill] sm:$0xff] }
 0x3c8   : > { %v4575_v47 = vadd.f32 %v10340_v6, %v4096_v39  ;;  %6510 = vmatprep.subr.bf16.mxu1 %v10914_v35  ;;  %v4574_v28 = vadd.f32 %v10340_v6, %v3977_v59  ;;  %v4098_v19 = vpop.f32.mrb[91].mxu1  ;;  %v5055_v62 = vmax.f32 %v4543_v14, 0.0  ;;  %v5054_v11 = vmax.f32 %v4542_v26, 0.0  ;;  %v15743_v59 = vld [vmem:[#allocation14_spill] sm:$0xff] }
 0x3c9   : > { %v5085_v20 = vmax.f32 %v4573_v15, 0.0  ;;  %v4576_v29 = vadd.f32 %v10340_v6, %v4098_v19  ;;  %6210 = vmatmul.mubr.bf16.gmra.mrb[196].mxu0 %v11543_v31  ;;  %v5056_v39 = vmax.f32 %v4544_v60, 0.0  ;;  %v15746_v19 = vld [vmem:[#allocation18_spill] sm:$0xff] }
 0x3ca   : > { %v5087_v45 = vmax.f32 %v4575_v47, 0.0  ;;  %v5086_v61 = vmax.f32 %v4574_v28, 0.0  ;;  %6323 = vmatmul.mubr.bf16.gmra.mrb[196].mxu1 %v11543_v31  ;;  %6398 = vmatpush1.bf16.msra.mxu0 %v15741_v37 }
 0x3cb   : > { %v11775_v52 = vpack.c.bf16 %v5085_v20, %v5053_v0  ;;  %v5088_v35 = vmax.f32 %v4576_v29, 0.0  ;;  %6511 = vmatpush1.bf16.msra.mxu1 %v15743_v59  ;;  %6399 = vmatprep.subr.bf16.mxu0 %v15744_v25  ;;  %v15749_v25 = vld [vmem:[#allocation21_spill] sm:$0xff] }
 0x3cc   : > { %v11779_v15 = vpack.c.bf16 %v5087_v45, %v5055_v62  ;;  %6512 = vmatprep.subr.bf16.mxu1 %v15746_v19  ;;  %v3981_v14 = vpop.f32.mrb[92].mxu0  ;;  %6219 = vmatprep.mubr.bf16.mxu0 %v15457_v36  ;;  %v11783_v26 = vpack.c.bf16 %v5086_v61, %v5054_v11  ;;  %v15747_v62 = vld [vmem:[#allocation15_spill] sm:$0xff]  ;;  %v15748_v11 = vld [vmem:[#allocation12_spill] sm:$0xff] }
 0x3cd   : > { %15742 = vst [vmem:[#allocation10_spill] sm:$0xff] %v11775_v52  ;;  %v4605_v31 = vadd.f32 %v10361_v55, %v3981_v14  ;;  %v4102_v47 = vpop.f32.mrb[92].mxu1  ;;  %v3983_v60 = vpop.f32.mrb[93].mxu0  ;;  %6332 = vmatprep.mubr.bf16.mxu1 %v15457_v36  ;;  %v11787_v28 = vpack.c.bf16 %v5088_v35, %v5056_v39  ;;  %v15750_v35 = vld [vmem:[#allocation87_spill] sm:$0xff] }
 0x3ce   : > { %15745 = vst [vmem:[#allocation11_spill] sm:$0xff] %v11779_v15  ;;  %v4607_v0 = vadd.f32 %v10361_v55, %v4102_v47  ;;  %v4606_v20 = vadd.f32 %v10361_v55, %v3983_v60  ;;  %v4104_v29 = vpop.f32.mrb[93].mxu1  ;;  %6400 = vmatpush1.bf16.msra.mxu0 %v15747_v62  ;;  %v3985_v45 = vpop.f32.mrb[94].mxu0 }
 0x3cf   : > { %v4608_v37 = vadd.f32 %v10361_v55, %v4104_v29  ;;  %6513 = vmatpush1.bf16.msra.mxu1 %v15748_v11  ;;  %v4637_v61 = vadd.f32 %v10367_v22, %v3985_v45  ;;  %v4106_v59 = vpop.f32.mrb[94].mxu1  ;;  %6401 = vmatprep.subr.bf16.mxu0 %v15749_v25  ;;  %v3987_v19 = vpop.f32.mrb[95].mxu0  ;;  %v5117_v60 = vmax.f32 %v4605_v31, 0.0  ;;  %v15751_v25 = vld [vmem:[#allocation16_spill] sm:$0xff]  ;;  %v15754_v31 = vld [vmem:[#allocation90_spill] sm:$0xff] }
 0x3d0   : > { %v4639_v39 = vadd.f32 %v10367_v22, %v4106_v59  ;;  %6514 = vmatprep.subr.bf16.mxu1 %v15750_v35  ;;  %v4638_v14 = vadd.f32 %v10367_v22, %v3987_v19  ;;  %v4108_v47 = vpop.f32.mrb[95].mxu1  ;;  %v5119_v29 = vmax.f32 %v4607_v0, 0.0  ;;  %v5118_v11 = vmax.f32 %v4606_v20, 0.0  ;;  %v15753_v19 = vld [vmem:[#allocation17_spill] sm:$0xff] }
 0x3d1   : > { %v5149_v62 = vmax.f32 %v4637_v61, 0.0  ;;  %v4640_v18 = vadd.f32 %v10367_v22, %v4108_v47  ;;  %6220 = vmatmul.mubr.bf16.gmra.mrb[200].mxu0 %v11576_v21  ;;  %v5120_v59 = vmax.f32 %v4608_v37, 0.0  ;;  %v15756_v47 = vld [vmem:[#allocation91_spill] sm:$0xff] }
 0x3d2   : > { %v5151_v45 = vmax.f32 %v4639_v39, 0.0  ;;  %v5150_v48 = vmax.f32 %v4638_v14, 0.0  ;;  %6333 = vmatmul.mubr.bf16.gmra.mrb[200].mxu1 %v11576_v21  ;;  %6402 = vmatpush1.bf16.msra.mxu0 %v15751_v25 }
 0x3d3   : > { %v11803_v27 = vpack.c.bf16 %v5149_v62, %v5117_v60  ;;  %v5152_v35 = vmax.f32 %v4640_v18, 0.0  ;;  %6515 = vmatpush1.bf16.msra.mxu1 %v15753_v19  ;;  %6403 = vmatprep.subr.bf16.mxu0 %v15754_v31  ;;  %v15761_v31 = vld [vmem:[#allocation94_spill] sm:$0xff] }
 0x3d4   : > { %v11807_v61 = vpack.c.bf16 %v5151_v45, %v5119_v29  ;;  %6516 = vmatprep.subr.bf16.mxu1 %v15756_v47  ;;  %v3991_v0 = vpop.f32.mrb[96].mxu0  ;;  %6229 = vmatprep.mubr.bf16.mxu0 %v15457_v36  ;;  %v11811_v20 = vpack.c.bf16 %v5150_v48, %v5118_v11  ;;  %v15759_v29 = vld [vmem:[#allocation88_spill] sm:$0xff]  ;;  %v15760_v48 = vld [vmem:[#allocation89_spill] sm:$0xff] }
 0x3d5   : > { %15752 = vst [vmem:[#allocation14_spill] sm:$0xff] %v11803_v27  ;;  %v4669_v21 = vadd.f32 %v10395_v41, %v3991_v0  ;;  %v4112_v39 = vpop.f32.mrb[96].mxu1  ;;  %v3993_v37 = vpop.f32.mrb[97].mxu0  ;;  %6342 = vmatprep.mubr.bf16.mxu1 %v15457_v36  ;;  %v11815_v18 = vpack.c.bf16 %v5152_v35, %v5120_v59  ;;  %v15762_v35 = vld [vmem:[#allocation95_spill] sm:$0xff] }
 0x3d6   : > { %15755 = vst [vmem:[#allocation13_spill] sm:$0xff] %v11807_v61  ;;  %15757 = vst [vmem:[#allocation18_spill] sm:$0xff] %v11811_v20  ;;  %v4671_v14 = vadd.f32 %v10395_v41, %v4112_v39  ;;  %v4670_v60 = vadd.f32 %v10395_v41, %v3993_v37  ;;  %v4114_v62 = vpop.f32.mrb[97].mxu1  ;;  %6404 = vmatpush1.bf16.msra.mxu0 %v15759_v29  ;;  %v3995_v45 = vpop.f32.mrb[98].mxu0 }
 0x3d7   : > { %15758 = vst [vmem:[#allocation15_spill] sm:$0xff] %v11815_v18  ;;  %v4672_v25 = vadd.f32 %v10395_v41, %v4114_v62  ;;  %6517 = vmatpush1.bf16.msra.mxu1 %v15760_v48  ;;  %v4701_v11 = vadd.f32 %v10401_v8, %v3995_v45  ;;  %v4116_v19 = vpop.f32.mrb[98].mxu1  ;;  %6405 = vmatprep.subr.bf16.mxu0 %v15761_v31  ;;  %v3997_v47 = vpop.f32.mrb[99].mxu0  ;;  %v5181_v37 = vmax.f32 %v4669_v21, 0.0  ;;  %v15763_v31 = vld [vmem:[#allocation92_spill] sm:$0xff]  ;;  %v15766_v21 = vld [vmem:[#allocation99_spill] sm:$0xff] }
 0x3d8   : > { %v4703_v59 = vadd.f32 %v10401_v8, %v4116_v19  ;;  %6518 = vmatprep.subr.bf16.mxu1 %v15762_v35  ;;  %v4702_v0 = vadd.f32 %v10401_v8, %v3997_v47  ;;  %v4118_v39 = vpop.f32.mrb[99].mxu1  ;;  %v5183_v62 = vmax.f32 %v4671_v14, 0.0  ;;  %v5182_v48 = vmax.f32 %v4670_v60, 0.0  ;;  %v15765_v47 = vld [vmem:[#allocation93_spill] sm:$0xff] }
 0x3d9   : > { %v5213_v29 = vmax.f32 %v4701_v11, 0.0  ;;  %v4704_v61 = vadd.f32 %v10401_v8, %v4118_v39  ;;  %6230 = vmatmul.mubr.bf16.gmra.mrb[204].mxu0 %v11609_v9  ;;  %v5184_v19 = vmax.f32 %v4672_v25, 0.0  ;;  %v15768_v39 = vld [vmem:[#allocation102_spill] sm:$0xff] }
 0x3da   : > { %v5215_v45 = vmax.f32 %v4703_v59, 0.0  ;;  %v5214_v27 = vmax.f32 %v4702_v0, 0.0  ;;  %6343 = vmatmul.mubr.bf16.gmra.mrb[204].mxu1 %v11609_v9  ;;  %6406 = vmatpush1.bf16.msra.mxu0 %v15763_v31 }
 0x3db   : > { %v11831_v18 = vpack.c.bf16 %v5213_v29, %v5181_v37  ;;  %v5216_v35 = vmax.f32 %v4704_v61, 0.0  ;;  %6519 = vmatpush1.bf16.msra.mxu1 %v15765_v47  ;;  %6407 = vmatprep.subr.bf16.mxu0 %v15766_v21  ;;  %v15773_v21 = vld [vmem:[#allocation24_spill] sm:$0xff] }
 0x3dc   : > { %v11835_v11 = vpack.c.bf16 %v5215_v45, %v5183_v62  ;;  %6520 = vmatprep.subr.bf16.mxu1 %v15768_v39  ;;  %v4001_v14 = vpop.f32.mrb[100].mxu0  ;;  %6239 = vmatprep.mubr.bf16.mxu0 %v15457_v36  ;;  %v11839_v60 = vpack.c.bf16 %v5214_v27, %v5182_v48  ;;  %v15771_v62 = vld [vmem:[#allocation96_spill] sm:$0xff]  ;;  %v15772_v27 = vld [vmem:[#allocation97_spill] sm:$0xff] }
 0x3dd   : > { %15764 = vst [vmem:[#allocation12_spill] sm:$0xff] %v11831_v18  ;;  %v4733_v9 = vadd.f32 %v10429_v38, %v4001_v14  ;;  %v4122_v59 = vpop.f32.mrb[100].mxu1  ;;  %v4003_v25 = vpop.f32.mrb[101].mxu0  ;;  %6352 = vmatprep.mubr.bf16.mxu1 %v15457_v36  ;;  %v11843_v61 = vpack.c.bf16 %v5216_v35, %v5184_v19  ;;  %v15774_v35 = vld [vmem:[#allocation104_spill] sm:$0xff] }
 0x3de   : > { %15767 = vst [vmem:[#allocation21_spill] sm:$0xff] %v11835_v11  ;;  %15769 = vst [vmem:[#allocation87_spill] sm:$0xff] %v11839_v60  ;;  %v4735_v0 = vadd.f32 %v10429_v38, %v4122_v59  ;;  %v4734_v37 = vadd.f32 %v10429_v38, %v4003_v25  ;;  %v4124_v29 = vpop.f32.mrb[101].mxu1  ;;  %6408 = vmatpush1.bf16.msra.mxu0 %v15771_v62  ;;  %v4005_v45 = vpop.f32.mrb[102].mxu0 }
 0x3df   : > { %15770 = vst [vmem:[#allocation16_spill] sm:$0xff] %v11843_v61  ;;  %v4736_v31 = vadd.f32 %v10429_v38, %v4124_v29  ;;  %6521 = vmatpush1.bf16.msra.mxu1 %v15772_v27  ;;  %v4765_v48 = vadd.f32 %v10434_v12, %v4005_v45  ;;  %v4126_v47 = vpop.f32.mrb[102].mxu1  ;;  %6619 = vmatprep.subr.bf16.mxu0 %v15773_v21  ;;  %v4007_v39 = vpop.f32.mrb[103].mxu0  ;;  %v5245_v25 = vmax.f32 %v4733_v9, 0.0 }
 0x3e0   : > { %v4767_v19 = vadd.f32 %v10434_v12, %v4126_v47  ;;  %6732 = vmatprep.subr.bf16.mxu1 %v15774_v35  ;;  %v4766_v14 = vadd.f32 %v10434_v12, %v4007_v39  ;;  %v4128_v59 = vpop.f32.mrb[103].mxu1  ;;  %v5247_v29 = vmax.f32 %v4735_v0, 0.0  ;;  %v5246_v27 = vmax.f32 %v4734_v37, 0.0 }
 0x3e1   : > { %v5277_v62 = vmax.f32 %v4765_v48, 0.0  ;;  %v4768_v11 = vadd.f32 %v10434_v12, %v4128_v59  ;;  %6240 = vmatmul.mubr.bf16.gmra.mrb[208].mxu0 %v11642_v10  ;;  %v5248_v47 = vmax.f32 %v4736_v31, 0.0 }
 0x3e2   : > { %v5279_v45 = vmax.f32 %v4767_v19, 0.0  ;;  %v5278_v18 = vmax.f32 %v4766_v14, 0.0  ;;  %6353 = vmatmul.mubr.bf16.gmra.mrb[208].mxu1 %v11642_v10  ;;  %6249 = vmatprep.mubr.bf16.mxu0 %v15457_v36 }
 0x3e3   : > { %v11859_v21 = vpack.c.bf16 %v5277_v62, %v5245_v25  ;;  %v5280_v35 = vmax.f32 %v4768_v11, 0.0  ;;  %6362 = vmatprep.mubr.bf16.mxu1 %v15457_v36 }
 0x3e4   : > { %v11862_v9 = vpack.c.bf16 %v5279_v45, %v5247_v29  ;;  %v4011_v48 = vpop.f32.mrb[104].mxu0  ;;  %v11864_v39 = vpack.c.bf16 %v5278_v18, %v5246_v27 }
 0x3e5   : > { %15775 = vst [vmem:[#allocation17_spill] sm:$0xff] %v11859_v21  ;;  %v4797_v0 = vadd.f32 %v10455_v50, %v4011_v48  ;;  %v4132_v37 = vpop.f32.mrb[104].mxu1  ;;  %v4013_v19 = vpop.f32.mrb[105].mxu0  ;;  %v11867_v14 = vpack.c.bf16 %v5280_v35, %v5248_v47 }
 0x3e6   : > { %15776 = vst [vmem:[#allocation90_spill] sm:$0xff] %v11862_v9  ;;  %15777 = vst [vmem:[#allocation91_spill] sm:$0xff] %v11864_v39  ;;  %v4799_v10 = vadd.f32 %v10455_v50, %v4132_v37  ;;  %v4798_v31 = vadd.f32 %v10455_v50, %v4013_v19  ;;  %v4134_v59 = vpop.f32.mrb[105].mxu1  ;;  %v4015_v25 = vpop.f32.mrb[106].mxu0 }
 0x3e7   : > { %15778 = vst [vmem:[#allocation88_spill] sm:$0xff] %v11867_v14  ;;  %v4800_v11 = vadd.f32 %v10455_v50, %v4134_v59  ;;  %v4829_v62 = vadd.f32 %v10460_v30, %v4015_v25  ;;  %v4136_v29 = vpop.f32.mrb[106].mxu1  ;;  %v4017_v45 = vpop.f32.mrb[107].mxu0  ;;  %v5309_v9 = vmax.f32 %v4797_v0, 0.0 }
 0x3e8   : > { %v4831_v18 = vadd.f32 %v10460_v30, %v4136_v29  ;;  %v4830_v27 = vadd.f32 %v10460_v30, %v4017_v45  ;;  %v4138_v48 = vpop.f32.mrb[107].mxu1  ;;  %v5311_v37 = vmax.f32 %v4799_v10, 0.0  ;;  %v5310_v19 = vmax.f32 %v4798_v31, 0.0 }
 0x3e9   : > { %v5341_v47 = vmax.f32 %v4829_v62, 0.0  ;;  %v4832_v35 = vadd.f32 %v10460_v30, %v4138_v48  ;;  %6250 = vmatmul.mubr.bf16.gmra.mrb[212].mxu0 %v11671_v56  ;;  %v5312_v59 = vmax.f32 %v4800_v11, 0.0 }
 0x3ea   : > { %v5343_v21 = vmax.f32 %v4831_v18, 0.0  ;;  %v5342_v14 = vmax.f32 %v4830_v27, 0.0  ;;  %6363 = vmatmul.mubr.bf16.gmra.mrb[212].mxu1 %v11671_v56  ;;  %6259 = vmatprep.mubr.bf16.mxu0 %v15457_v36 }
 0x3eb   : > { %v11879_v25 = vpack.c.bf16 %v5341_v47, %v5309_v9  ;;  %v5344_v29 = vmax.f32 %v4832_v35, 0.0  ;;  %6372 = vmatprep.mubr.bf16.mxu1 %v15457_v36 }
 0x3ec   : > { %v11882_v0 = vpack.c.bf16 %v5343_v21, %v5311_v37  ;;  %v4021_v62 = vpop.f32.mrb[108].mxu0  ;;  %v11884_v45 = vpack.c.bf16 %v5342_v14, %v5310_v19 }
 0x3ed   : > { %15779 = vst [vmem:[#allocation89_spill] sm:$0xff] %v11879_v25  ;;  %v4861_v10 = vadd.f32 %v10481_v3, %v4021_v62  ;;  %v4142_v31 = vpop.f32.mrb[108].mxu1  ;;  %v4023_v18 = vpop.f32.mrb[109].mxu0  ;;  %v11887_v27 = vpack.c.bf16 %v5344_v29, %v5312_v59 }
 0x3ee   : > { %15780 = vst [vmem:[#allocation94_spill] sm:$0xff] %v11882_v0  ;;  %15781 = vst [vmem:[#allocation95_spill] sm:$0xff] %v11884_v45  ;;  %v4863_v56 = vadd.f32 %v10481_v3, %v4142_v31  ;;  %v4862_v11 = vadd.f32 %v10481_v3, %v4023_v18  ;;  %v4144_v9 = vpop.f32.mrb[109].mxu1  ;;  %v4025_v48 = vpop.f32.mrb[110].mxu0 }
 0x3ef   : > { %15782 = vst [vmem:[#allocation92_spill] sm:$0xff] %v11887_v27  ;;  %v4864_v47 = vadd.f32 %v10481_v3, %v4144_v9  ;;  %v4893_v21 = vadd.f32 %v10486_v7, %v4025_v48  ;;  %v4146_v35 = vpop.f32.mrb[110].mxu1  ;;  %v4027_v37 = vpop.f32.mrb[111].mxu0  ;;  %v5373_v0 = vmax.f32 %v4861_v10, 0.0 }
 0x3f0   : > { %v4895_v14 = vadd.f32 %v10486_v7, %v4146_v35  ;;  %v4894_v19 = vadd.f32 %v10486_v7, %v4027_v37  ;;  %v4148_v62 = vpop.f32.mrb[111].mxu1  ;;  %v5375_v31 = vmax.f32 %v4863_v56, 0.0  ;;  %v5374_v18 = vmax.f32 %v4862_v11, 0.0 }
 0x3f1   : > { %v5405_v59 = vmax.f32 %v4893_v21, 0.0  ;;  %v4896_v29 = vadd.f32 %v10486_v7, %v4148_v62  ;;  %6260 = vmatmul.mubr.bf16.gmra.mrb[216].mxu0 %v11696_v2  ;;  %v5376_v9 = vmax.f32 %v4864_v47, 0.0 }
 0x3f2   : > { %v5407_v25 = vmax.f32 %v4895_v14, 0.0  ;;  %v5406_v27 = vmax.f32 %v4894_v19, 0.0  ;;  %6373 = vmatmul.mubr.bf16.gmra.mrb[216].mxu1 %v11696_v2  ;;  %6269 = vmatprep.mubr.bf16.mxu0 %v15457_v36 }
 0x3f3   : > { %v11899_v48 = vpack.c.bf16 %v5405_v59, %v5373_v0  ;;  %v5408_v35 = vmax.f32 %v4896_v29, 0.0  ;;  %6382 = vmatprep.mubr.bf16.mxu1 %v15457_v36 }
 0x3f4   : > { %v11902_v10 = vpack.c.bf16 %v5407_v25, %v5375_v31  ;;  %v4031_v21 = vpop.f32.mrb[112].mxu0  ;;  %v11904_v37 = vpack.c.bf16 %v5406_v27, %v5374_v18 }
 0x3f5   : > { %15783 = vst [vmem:[#allocation93_spill] sm:$0xff] %v11899_v48  ;;  %v4925_v56 = vadd.f32 %v10507_v51, %v4031_v21  ;;  %v4152_v11 = vpop.f32.mrb[112].mxu1  ;;  %v4033_v14 = vpop.f32.mrb[113].mxu0  ;;  %v11907_v19 = vpack.c.bf16 %v5408_v35, %v5376_v9 }
 0x3f6   : > { %15784 = vst [vmem:[#allocation99_spill] sm:$0xff] %v11902_v10  ;;  %15785 = vst [vmem:[#allocation102_spill] sm:$0xff] %v11904_v37  ;;  %v4927_v2 = vadd.f32 %v10507_v51, %v4152_v11  ;;  %v4926_v47 = vadd.f32 %v10507_v51, %v4033_v14  ;;  %v4154_v0 = vpop.f32.mrb[113].mxu1  ;;  %v4035_v62 = vpop.f32.mrb[114].mxu0  ;;  %v15796_v37 = vld [vmem:[#allocation28_spill] sm:$0xff] }
 0x3f7   : > { %15786 = vst [vmem:[#allocation96_spill] sm:$0xff] %v11907_v19  ;;  %v4928_v59 = vadd.f32 %v10507_v51, %v4154_v0  ;;  %v4957_v25 = vadd.f32 %v10512_v58, %v4035_v62  ;;  %v4156_v29 = vpop.f32.mrb[114].mxu1  ;;  %v4037_v31 = vpop.f32.mrb[115].mxu0  ;;  %v5437_v10 = vmax.f32 %v4925_v56, 0.0 }
 0x3f8   : > { %v4959_v27 = vadd.f32 %v10512_v58, %v4156_v29  ;;  %v4958_v18 = vadd.f32 %v10512_v58, %v4037_v31  ;;  %v4158_v21 = vpop.f32.mrb[115].mxu1  ;;  %v5439_v11 = vmax.f32 %v4927_v2, 0.0  ;;  %v5438_v14 = vmax.f32 %v4926_v47, 0.0 }
 0x3f9   : > { %v5469_v9 = vmax.f32 %v4957_v25, 0.0  ;;  %v4960_v35 = vadd.f32 %v10512_v58, %v4158_v21  ;;  %6270 = vmatmul.mubr.bf16.gmra.mrb[220].mxu0 %v11721_v5  ;;  %v5440_v0 = vmax.f32 %v4928_v59, 0.0 }
 0x3fa   : > { %v5471_v48 = vmax.f32 %v4959_v27, 0.0  ;;  %v5470_v19 = vmax.f32 %v4958_v18, 0.0  ;;  %6383 = vmatmul.mubr.bf16.gmra.mrb[220].mxu1 %v11721_v5  ;;  %6425 = vmatprep.mubr.bf16.mxu0 %v15457_v36 }
 0x3fb   : > { %v11919_v62 = vpack.c.bf16 %v5469_v9, %v5437_v10  ;;  %v5472_v29 = vmax.f32 %v4960_v35, 0.0  ;;  %6538 = vmatprep.mubr.bf16.mxu1 %v15457_v36 }
 0x3fc   : > { %v11922_v56 = vpack.c.bf16 %v5471_v48, %v5439_v11  ;;  %v4041_v25 = vpop.f32.mrb[116].mxu0  ;;  %v11924_v31 = vpack.c.bf16 %v5470_v19, %v5438_v14 }
 0x3fd   : > { %15787 = vst [vmem:[#allocation97_spill] sm:$0xff] %v11919_v62  ;;  %v4989_v2 = vadd.f32 %v10533_v33, %v4041_v25  ;;  %v4162_v47 = vpop.f32.mrb[116].mxu1  ;;  %v4043_v27 = vpop.f32.mrb[117].mxu0  ;;  %v11927_v18 = vpack.c.bf16 %v5472_v29, %v5440_v0 }
 0x3fe   : > { %15788 = vst [vmem:[#allocation24_spill] sm:$0xff] %v11922_v56  ;;  %15789 = vst [vmem:[#allocation104_spill] sm:$0xff] %v11924_v31  ;;  %v4991_v5 = vadd.f32 %v10533_v33, %v4162_v47  ;;  %v4990_v59 = vadd.f32 %v10533_v33, %v4043_v27  ;;  %v4164_v10 = vpop.f32.mrb[117].mxu1  ;;  %v4045_v21 = vpop.f32.mrb[118].mxu0  ;;  %v11939_v47 = vld [vmem:[%s15164_s3] sm:$0xff]  }
 0x3ff   : > { %15790 = vst [vmem:[#allocation131_spill] sm:$0xff] %v11927_v18  ;;  %v4992_v9 = vadd.f32 %v10533_v33, %v4164_v10  ;;  %v5021_v48 = vadd.f32 %v10538_v16, %v4045_v21  ;;  %v4166_v35 = vpop.f32.mrb[118].mxu1  ;;  %v4047_v11 = vpop.f32.mrb[119].mxu0  ;;  %v5501_v56 = vmax.f32 %v4989_v2, 0.0  ;;  %v15794_v18 = vld [vmem:[#allocation27_spill] sm:$0xff] }
 0x400   : > { %v5023_v19 = vadd.f32 %v10538_v16, %v4166_v35  ;;  %v5022_v14 = vadd.f32 %v10538_v16, %v4047_v11  ;;  %v4168_v25 = vpop.f32.mrb[119].mxu1  ;;  %v5503_v27 = vmax.f32 %v4991_v5, 0.0  ;;  %v5502_v10 = vmax.f32 %v4990_v59, 0.0  ;;  %v15791_v35 = vld [vmem:[#allocation19_spill] sm:$0xff] }
 0x401   : > { %v5533_v0 = vmax.f32 %v5021_v48, 0.0  ;;  %v5024_v29 = vadd.f32 %v10538_v16, %v4168_v25  ;;  %6426 = vmatmul.mubr.bf16.vlgmr.msra.gmra.mrb[224].mxu0 %v11939_v47  ;;  %v5504_v11 = vmax.f32 %v4992_v9, 0.0  ;;  %v15793_v25 = vld [vmem:[#allocation20_spill] sm:$0xff] }
 0x402   : > { %v5535_v21 = vmax.f32 %v5023_v19, 0.0  ;;  %v5534_v62 = vmax.f32 %v5022_v14, 0.0  ;;  %6539 = vmatmul.mubr.bf16.vlgmr.msra.gmra.mrb[224].mxu1 %v11939_v47  ;;  %6620 = vmatpush1.bf16.msra.mxu0 %v15791_v35  ;;  %v11972_v35 = vld [vmem:[%s15164_s3 + $0x8] sm:$0xff]  }
 0x403   : > { %v11944_v2 = vpack.c.bf16 %v5533_v0, %v5501_v56  ;;  %v5536_v48 = vmax.f32 %v5024_v29, 0.0  ;;  %6733 = vmatpush1.bf16.msra.mxu1 %v15793_v25  ;;  %6621 = vmatprep.subr.bf16.mxu0 %v15794_v18  ;;  %v15803_v18 = vld [vmem:[#allocation22_spill] sm:$0xff]  ;;  %v15809_v25 = vld [vmem:[#allocation105_spill] sm:$0xff] }
 0x404   : > { %v11948_v31 = vpack.c.bf16 %v5535_v21, %v5503_v27  ;;  %6734 = vmatprep.subr.bf16.mxu1 %v15796_v37  ;;  %v11951_v5 = vpop.f32.mrb[120].mxu0  ;;  %6435 = vmatprep.mubr.bf16.mxu0 %v15457_v36  ;;  %v11954_v59 = vpack.c.bf16 %v5534_v62, %v5502_v10  ;;  %v15804_v37 = vld [vmem:[#allocation23_spill] sm:$0xff]  ;;  %v15806_v10 = vld [vmem:[#allocation32_spill] sm:$0xff] }
 0x405   : > { %15792 = vst [vmem:[#allocation19_spill] sm:$0xff] %v11944_v2  ;;  %15797 = vst [vmem:[#allocation27_spill] sm:$0xff] %v11951_v5  ;;  %v11956_v19 = vpop.f32.mrb[120].mxu1  ;;  %v11958_v9 = vpop.f32.mrb[121].mxu0  ;;  %6548 = vmatprep.mubr.bf16.mxu1 %v15457_v36  ;;  %v11961_v56 = vpack.c.bf16 %v5536_v48, %v5504_v11  ;;  %v15805_v27 = vld [vmem:[#allocation31_spill] sm:$0xff]  ;;  %v15807_v11 = vld [vmem:[#allocation25_spill] sm:$0xff] }
 0x406   : > { %15795 = vst [vmem:[#allocation20_spill] sm:$0xff] %v11948_v31  ;;  %15798 = vst [vmem:[#allocation28_spill] sm:$0xff] %v11954_v59  ;;  %v11963_v14 = vpop.f32.mrb[121].mxu1  ;;  %6622 = vmatpush1.bf16.msra.mxu0 %v15803_v18  ;;  %v4055_v0 = vpop.f32.mrb[122].mxu0  ;;  %v15808_v48 = vld [vmem:[#allocation26_spill] sm:$0xff] }
 0x407   : > { %15799 = vst [vmem:[#allocation132_spill] sm:$0xff] %v11956_v19  ;;  %15800 = vst [vmem:[#allocation133_spill] sm:$0xff] %v11958_v9  ;;  %6735 = vmatpush1.bf16.msra.mxu1 %v15804_v37  ;;  %v4176_v29 = vpop.f32.mrb[122].mxu1  ;;  %6623 = vmatprep.subr.bf16.mxu0 %v15805_v27  ;;  %v4056_v62 = vpop.f32.mrb[123].mxu0  ;;  %v15810_v18 = vld [vmem:[#allocation106_spill] sm:$0xff] }
 0x408   : > { %15801 = vst [vmem:[#allocation134_spill] sm:$0xff] %v11961_v56  ;;  %15802 = vst [vmem:[#allocation135_spill] sm:$0xff] %v11963_v14  ;;  %6736 = vmatprep.subr.bf16.mxu1 %v15806_v10  ;;  %v4177_v21 = vpop.f32.mrb[123].mxu1  ;;  %v15814_v31 = vld [vmem:[#allocation110_spill] sm:$0xff] }
 0x409   : > { %6436 = vmatmul.mubr.bf16.gmra.mrb[228].mxu0 %v11972_v35  ;;  %v15820_v59 = vld [vmem:[#allocation114_spill] sm:$0xff] }
 0x40a   : > { %6549 = vmatmul.mubr.bf16.gmra.mrb[228].mxu1 %v11972_v35  ;;  %6624 = vmatpush1.bf16.msra.mxu0 %v15807_v11  ;;  %v15811_v11 = vld [vmem:[#allocation29_spill] sm:$0xff] }
 0x40b   : > { %6737 = vmatpush1.bf16.msra.mxu1 %v15808_v48  ;;  %6625 = vmatprep.subr.bf16.mxu0 %v15809_v25 }
 0x40c   : > { %6738 = vmatprep.subr.bf16.mxu1 %v15810_v18  ;;  %v4213_v0 = vpop.f32.mrb[124].mxu0  ;;  %6445 = vmatprep.mubr.bf16.mxu0 %v15457_v36  ;;  %v15812_v18 = vld [vmem:[#allocation30_spill] sm:$0xff] }
 0x40d   : > { %v4545_v37 = vadd.f32 %v10335_v57, %v4213_v0  ;;  %v4334_v29 = vpop.f32.mrb[124].mxu1  ;;  %v4215_v27 = vpop.f32.mrb[125].mxu0  ;;  %6558 = vmatprep.mubr.bf16.mxu1 %v15457_v36  ;;  %v15813_v0 = vld [vmem:[#allocation109_spill] sm:$0xff] }
 0x40e   : > { %v4547_v62 = vadd.f32 %v10335_v57, %v4334_v29  ;;  %v4546_v10 = vadd.f32 %v10335_v57, %v4215_v27  ;;  %v4336_v21 = vpop.f32.mrb[125].mxu1  ;;  %6626 = vmatpush1.bf16.msra.mxu0 %v15811_v11  ;;  %v4217_v48 = vpop.f32.mrb[126].mxu0 }
 0x40f   : > { %v4548_v25 = vadd.f32 %v10335_v57, %v4336_v21  ;;  %6739 = vmatpush1.bf16.msra.mxu1 %v15812_v18  ;;  %v4577_v14 = vadd.f32 %v10340_v6, %v4217_v48  ;;  %v4338_v9 = vpop.f32.mrb[126].mxu1  ;;  %6627 = vmatprep.subr.bf16.mxu0 %v15813_v0  ;;  %v4219_v19 = vpop.f32.mrb[127].mxu0  ;;  %v5057_v2 = vmax.f32 %v4545_v37, 0.0  ;;  %v11997_v57 = vld [vmem:[%s15164_s3 + $0x10] sm:$0xff]   ;;  %v15818_v0 = vld [vmem:[#allocation113_spill] sm:$0xff] }
 0x410   : > { %v4579_v5 = vadd.f32 %v10340_v6, %v4338_v9  ;;  %6740 = vmatprep.subr.bf16.mxu1 %v15814_v31  ;;  %v4578_v29 = vadd.f32 %v10340_v6, %v4219_v19  ;;  %v4340_v27 = vpop.f32.mrb[127].mxu1  ;;  %v5059_v21 = vmax.f32 %v4547_v62, 0.0  ;;  %v5058_v48 = vmax.f32 %v4546_v10, 0.0  ;;  %v15815_v31 = vld [vmem:[#allocation107_spill] sm:$0xff] }
 0x411   : > { %v5089_v11 = vmax.f32 %v4577_v14, 0.0  ;;  %v4580_v56 = vadd.f32 %v10340_v6, %v4340_v27  ;;  %6446 = vmatmul.mubr.bf16.gmra.mrb[232].mxu0 %v11997_v57  ;;  %v5060_v19 = vmax.f32 %v4548_v25, 0.0  ;;  %v15817_v6 = vld [vmem:[#allocation108_spill] sm:$0xff] }
 0x412   : > { %v5091_v18 = vmax.f32 %v4579_v5, 0.0  ;;  %v5090_v9 = vmax.f32 %v4578_v29, 0.0  ;;  %6559 = vmatmul.mubr.bf16.gmra.mrb[232].mxu1 %v11997_v57  ;;  %6628 = vmatpush1.bf16.msra.mxu0 %v15815_v31 }
 0x413   : > { %v12002_v37 = vpack.c.bf16 %v5089_v11, %v5057_v2  ;;  %v5092_v14 = vmax.f32 %v4580_v56, 0.0  ;;  %6741 = vmatpush1.bf16.msra.mxu1 %v15817_v6  ;;  %6629 = vmatprep.subr.bf16.mxu0 %v15818_v0  ;;  %v15825_v0 = vld [vmem:[#allocation117_spill] sm:$0xff] }
 0x414   : > { %v12006_v27 = vpack.c.bf16 %v5091_v18, %v5059_v21  ;;  %6742 = vmatprep.subr.bf16.mxu1 %v15820_v59  ;;  %v4223_v62 = vpop.f32.mrb[128].mxu0  ;;  %6455 = vmatprep.mubr.bf16.mxu0 %v15457_v36  ;;  %v12010_v5 = vpack.c.bf16 %v5090_v9, %v5058_v48  ;;  %v15823_v18 = vld [vmem:[#allocation111_spill] sm:$0xff]  ;;  %v15824_v48 = vld [vmem:[#allocation112_spill] sm:$0xff] }
 0x415   : > { %15816 = vst [vmem:[#allocation22_spill] sm:$0xff] %v12002_v37  ;;  %v4609_v10 = vadd.f32 %v10361_v55, %v4223_v62  ;;  %v4344_v29 = vpop.f32.mrb[128].mxu1  ;;  %v4225_v25 = vpop.f32.mrb[129].mxu0  ;;  %6568 = vmatprep.mubr.bf16.mxu1 %v15457_v36  ;;  %v12014_v2 = vpack.c.bf16 %v5092_v14, %v5060_v19  ;;  %v15826_v14 = vld [vmem:[#allocation118_spill] sm:$0xff] }
 0x416   : > { %15819 = vst [vmem:[#allocation23_spill] sm:$0xff] %v12006_v27  ;;  %15821 = vst [vmem:[#allocation31_spill] sm:$0xff] %v12010_v5  ;;  %v4611_v56 = vadd.f32 %v10361_v55, %v4344_v29  ;;  %v4610_v11 = vadd.f32 %v10361_v55, %v4225_v25  ;;  %v4346_v21 = vpop.f32.mrb[129].mxu1  ;;  %6630 = vmatpush1.bf16.msra.mxu0 %v15823_v18  ;;  %v4227_v59 = vpop.f32.mrb[130].mxu0 }
 0x417   : > { %15822 = vst [vmem:[#allocation32_spill] sm:$0xff] %v12014_v2  ;;  %v4612_v31 = vadd.f32 %v10361_v55, %v4346_v21  ;;  %6743 = vmatpush1.bf16.msra.mxu1 %v15824_v48  ;;  %v4641_v9 = vadd.f32 %v10367_v22, %v4227_v59  ;;  %v4348_v6 = vpop.f32.mrb[130].mxu1  ;;  %6631 = vmatprep.subr.bf16.mxu0 %v15825_v0  ;;  %v4229_v62 = vpop.f32.mrb[131].mxu0  ;;  %v5121_v27 = vmax.f32 %v4609_v10, 0.0  ;;  %v12030_v55 = vld [vmem:[%s15164_s3 + $0x18] sm:$0xff]   ;;  %v15827_v0 = vld [vmem:[#allocation115_spill] sm:$0xff] }
 0x418   : > { %v4643_v19 = vadd.f32 %v10367_v22, %v4348_v6  ;;  %6744 = vmatprep.subr.bf16.mxu1 %v15826_v14  ;;  %v4642_v29 = vadd.f32 %v10367_v22, %v4229_v62  ;;  %v4350_v25 = vpop.f32.mrb[131].mxu1  ;;  %v5123_v21 = vmax.f32 %v4611_v56, 0.0  ;;  %v5122_v59 = vmax.f32 %v4610_v11, 0.0  ;;  %v15830_v14 = vld [vmem:[#allocation122_spill] sm:$0xff]  ;;  %v15832_v2 = vld [vmem:[#allocation125_spill] sm:$0xff] }
 0x419   : > { %v5153_v18 = vmax.f32 %v4641_v9, 0.0  ;;  %v4644_v37 = vadd.f32 %v10367_v22, %v4350_v25  ;;  %6456 = vmatmul.mubr.bf16.gmra.mrb[236].mxu0 %v12030_v55  ;;  %v5124_v62 = vmax.f32 %v4612_v31, 0.0  ;;  %v15829_v22 = vld [vmem:[#allocation116_spill] sm:$0xff] }
 0x41a   : > { %v5155_v48 = vmax.f32 %v4643_v19, 0.0  ;;  %v5154_v6 = vmax.f32 %v4642_v29, 0.0  ;;  %6569 = vmatmul.mubr.bf16.gmra.mrb[236].mxu1 %v12030_v55  ;;  %6632 = vmatpush1.bf16.msra.mxu0 %v15827_v0 }
 0x41b   : > { %v12035_v10 = vpack.c.bf16 %v5153_v18, %v5121_v27  ;;  %v5156_v9 = vmax.f32 %v4644_v37, 0.0  ;;  %6745 = vmatpush1.bf16.msra.mxu1 %v15829_v22  ;;  %6633 = vmatprep.subr.bf16.mxu0 %v15830_v14 }
 0x41c   : > { %v12039_v25 = vpack.c.bf16 %v5155_v48, %v5123_v21  ;;  %6746 = vmatprep.subr.bf16.mxu1 %v15832_v2  ;;  %v4233_v56 = vpop.f32.mrb[132].mxu0  ;;  %6465 = vmatprep.mubr.bf16.mxu0 %v15457_v36  ;;  %v12043_v11 = vpack.c.bf16 %v5154_v6, %v5122_v59  ;;  %v15835_v48 = vld [vmem:[#allocation119_spill] sm:$0xff]  ;;  %v15836_v59 = vld [vmem:[#allocation120_spill] sm:$0xff] }
 0x41d   : > { %15828 = vst [vmem:[#allocation25_spill] sm:$0xff] %v12035_v10  ;;  %v4673_v19 = vadd.f32 %v10395_v41, %v4233_v56  ;;  %v4354_v29 = vpop.f32.mrb[132].mxu1  ;;  %v4235_v31 = vpop.f32.mrb[133].mxu0  ;;  %6578 = vmatprep.mubr.bf16.mxu1 %v15457_v36  ;;  %v12047_v37 = vpack.c.bf16 %v5156_v9, %v5124_v62 }
 0x41e   : > { %15831 = vst [vmem:[#allocation26_spill] sm:$0xff] %v12039_v25  ;;  %15833 = vst [vmem:[#allocation105_spill] sm:$0xff] %v12043_v11  ;;  %v4675_v27 = vadd.f32 %v10395_v41, %v4354_v29  ;;  %v4674_v18 = vadd.f32 %v10395_v41, %v4235_v31  ;;  %v4356_v21 = vpop.f32.mrb[133].mxu1  ;;  %6634 = vmatpush1.bf16.msra.mxu0 %v15835_v48  ;;  %v4237_v2 = vpop.f32.mrb[134].mxu0 }
 0x41f   : > { %15834 = vst [vmem:[#allocation106_spill] sm:$0xff] %v12047_v37  ;;  %v4676_v0 = vadd.f32 %v10395_v41, %v4356_v21  ;;  %6747 = vmatpush1.bf16.msra.mxu1 %v15836_v59  ;;  %v4705_v6 = vadd.f32 %v10401_v8, %v4237_v2  ;;  %v4358_v22 = vpop.f32.mrb[134].mxu1  ;;  %6845 = vmatprep.subr.bf16.mxu0 %v11311_v1  ;;  %v4239_v14 = vpop.f32.mrb[135].mxu0  ;;  %v5185_v29 = vmax.f32 %v4673_v19, 0.0  ;;  %v12063_v41 = vld [vmem:[%s15164_s3 + $0x20] sm:$0xff]  }
 0x420   : > { %v4707_v62 = vadd.f32 %v10401_v8, %v4358_v22  ;;  %6958 = vmatprep.subr.bf16.mxu1 %v11315_v40  ;;  %v4706_v9 = vadd.f32 %v10401_v8, %v4239_v14  ;;  %v4360_v56 = vpop.f32.mrb[135].mxu1  ;;  %v5187_v1 = vmax.f32 %v4675_v27, 0.0  ;;  %v5186_v21 = vmax.f32 %v4674_v18, 0.0 }
 0x421   : > { %v5217_v31 = vmax.f32 %v4705_v6, 0.0  ;;  %v4708_v48 = vadd.f32 %v10401_v8, %v4360_v56  ;;  %6466 = vmatmul.mubr.bf16.gmra.mrb[240].mxu0 %v12063_v41  ;;  %v5188_v40 = vmax.f32 %v4676_v0, 0.0 }
 0x422   : > { %v5219_v2 = vmax.f32 %v4707_v62, 0.0  ;;  %v5218_v59 = vmax.f32 %v4706_v9, 0.0  ;;  %6579 = vmatmul.mubr.bf16.gmra.mrb[240].mxu1 %v12063_v41  ;;  %6475 = vmatprep.mubr.bf16.mxu0 %v15457_v36 }
 0x423   : > { %v12068_v19 = vpack.c.bf16 %v5217_v31, %v5185_v29  ;;  %v5220_v6 = vmax.f32 %v4708_v48, 0.0  ;;  %6588 = vmatprep.mubr.bf16.mxu1 %v15457_v36 }
 0x424   : > { %v12071_v8 = vpack.c.bf16 %v5219_v2, %v5187_v1  ;;  %v4243_v22 = vpop.f32.mrb[136].mxu0  ;;  %v12073_v14 = vpack.c.bf16 %v5218_v59, %v5186_v21 }
 0x425   : > { %15837 = vst [vmem:[#allocation29_spill] sm:$0xff] %v12068_v19  ;;  %v4737_v27 = vadd.f32 %v10429_v38, %v4243_v22  ;;  %v4364_v18 = vpop.f32.mrb[136].mxu1  ;;  %v4245_v62 = vpop.f32.mrb[137].mxu0  ;;  %v12076_v9 = vpack.c.bf16 %v5220_v6, %v5188_v40 }
 0x426   : > { %15838 = vst [vmem:[#allocation30_spill] sm:$0xff] %v12071_v8  ;;  %15839 = vst [vmem:[#allocation109_spill] sm:$0xff] %v12073_v14  ;;  %v4739_v56 = vadd.f32 %v10429_v38, %v4364_v18  ;;  %v4738_v0 = vadd.f32 %v10429_v38, %v4245_v62  ;;  %v4366_v29 = vpop.f32.mrb[137].mxu1  ;;  %v4247_v31 = vpop.f32.mrb[138].mxu0  ;;  %v12088_v18 = vld [vmem:[%s15164_s3 + $0x28] sm:$0xff]  }
 0x427   : > { %15840 = vst [vmem:[#allocation110_spill] sm:$0xff] %v12076_v9  ;;  %v4740_v48 = vadd.f32 %v10429_v38, %v4366_v29  ;;  %v4769_v1 = vadd.f32 %v10434_v12, %v4247_v31  ;;  %v4368_v2 = vpop.f32.mrb[138].mxu1  ;;  %v4249_v8 = vpop.f32.mrb[139].mxu0  ;;  %v5249_v19 = vmax.f32 %v4737_v27, 0.0 }
 0x428   : > { %v4771_v21 = vadd.f32 %v10434_v12, %v4368_v2  ;;  %v4770_v59 = vadd.f32 %v10434_v12, %v4249_v8  ;;  %v4370_v22 = vpop.f32.mrb[139].mxu1  ;;  %v5251_v38 = vmax.f32 %v4739_v56, 0.0  ;;  %v5250_v62 = vmax.f32 %v4738_v0, 0.0 }
 0x429   : > { %v5281_v40 = vmax.f32 %v4769_v1, 0.0  ;;  %v4772_v6 = vadd.f32 %v10434_v12, %v4370_v22  ;;  %6476 = vmatmul.mubr.bf16.gmra.mrb[244].mxu0 %v12088_v18  ;;  %v5252_v8 = vmax.f32 %v4740_v48, 0.0 }
 0x42a   : > { %v5283_v29 = vmax.f32 %v4771_v21, 0.0  ;;  %v5282_v31 = vmax.f32 %v4770_v59, 0.0  ;;  %6589 = vmatmul.mubr.bf16.gmra.mrb[244].mxu1 %v12088_v18  ;;  %6485 = vmatprep.mubr.bf16.mxu0 %v15457_v36 }
 0x42b   : > { %v12093_v27 = vpack.c.bf16 %v5281_v40, %v5249_v19  ;;  %v5284_v1 = vmax.f32 %v4772_v6, 0.0  ;;  %6598 = vmatprep.mubr.bf16.mxu1 %v15457_v36 }
 0x42c   : > { %v12096_v12 = vpack.c.bf16 %v5283_v29, %v5251_v38  ;;  %v4253_v2 = vpop.f32.mrb[140].mxu0  ;;  %v12098_v22 = vpack.c.bf16 %v5282_v31, %v5250_v62 }
 0x42d   : > { %15841 = vst [vmem:[#allocation107_spill] sm:$0xff] %v12093_v27  ;;  %v4801_v56 = vadd.f32 %v10455_v50, %v4253_v2  ;;  %v4374_v0 = vpop.f32.mrb[140].mxu1  ;;  %v4255_v21 = vpop.f32.mrb[141].mxu0  ;;  %v12101_v59 = vpack.c.bf16 %v5284_v1, %v5252_v8 }
 0x42e   : > { %15842 = vst [vmem:[#allocation108_spill] sm:$0xff] %v12096_v12  ;;  %15843 = vst [vmem:[#allocation113_spill] sm:$0xff] %v12098_v22  ;;  %v4803_v9 = vadd.f32 %v10455_v50, %v4374_v0  ;;  %v4802_v48 = vadd.f32 %v10455_v50, %v4255_v21  ;;  %v4376_v19 = vpop.f32.mrb[141].mxu1  ;;  %v4257_v40 = vpop.f32.mrb[142].mxu0  ;;  %v12113_v0 = vld [vmem:[%s15164_s3 + $0x30] sm:$0xff]  }
 0x42f   : > { %15844 = vst [vmem:[#allocation114_spill] sm:$0xff] %v12101_v59  ;;  %v4804_v6 = vadd.f32 %v10455_v50, %v4376_v19  ;;  %v4833_v38 = vadd.f32 %v10460_v30, %v4257_v40  ;;  %v4378_v29 = vpop.f32.mrb[142].mxu1  ;;  %v4259_v12 = vpop.f32.mrb[143].mxu0  ;;  %v5313_v27 = vmax.f32 %v4801_v56, 0.0  ;;  %15845 = vst [vmem:[#allocation111_spill] sm:$0xff] %v12113_v0 }
 0x430   : > { %v4835_v62 = vadd.f32 %v10460_v30, %v4378_v29  ;;  %v4834_v31 = vadd.f32 %v10460_v30, %v4259_v12  ;;  %v4380_v2 = vpop.f32.mrb[143].mxu1  ;;  %v5315_v50 = vmax.f32 %v4803_v9, 0.0  ;;  %v5314_v21 = vmax.f32 %v4802_v48, 0.0 }
 0x431   : > { %v5345_v8 = vmax.f32 %v4833_v38, 0.0  ;;  %v4836_v1 = vadd.f32 %v10460_v30, %v4380_v2  ;;  %6486 = vmatmul.mubr.bf16.gmra.mrb[248].mxu0 %v12113_v0  ;;  %v5316_v12 = vmax.f32 %v4804_v6, 0.0 }
 0x432   : > { %v5347_v19 = vmax.f32 %v4835_v62, 0.0  ;;  %v5346_v40 = vmax.f32 %v4834_v31, 0.0  ;;  %6599 = vmatmul.mubr.bf16.gmra.mrb[248].mxu1 %v12113_v0  ;;  %6495 = vmatprep.mubr.bf16.mxu0 %v15457_v36 }
 0x433   : > { %v12118_v56 = vpack.c.bf16 %v5345_v8, %v5313_v27  ;;  %v5348_v38 = vmax.f32 %v4836_v1, 0.0  ;;  %6608 = vmatprep.mubr.bf16.mxu1 %v15457_v36 }
 0x434   : > { %v12121_v30 = vpack.c.bf16 %v5347_v19, %v5315_v50  ;;  %v4263_v29 = vpop.f32.mrb[144].mxu0  ;;  %v12123_v2 = vpack.c.bf16 %v5346_v40, %v5314_v21 }
 0x435   : > { %15846 = vst [vmem:[#allocation112_spill] sm:$0xff] %v12118_v56  ;;  %v4865_v9 = vadd.f32 %v10481_v3, %v4263_v29  ;;  %v4384_v48 = vpop.f32.mrb[144].mxu1  ;;  %v4265_v62 = vpop.f32.mrb[145].mxu0  ;;  %v12126_v31 = vpack.c.bf16 %v5348_v38, %v5316_v12 }
 0x436   : > { %15847 = vst [vmem:[#allocation117_spill] sm:$0xff] %v12121_v30  ;;  %15848 = vst [vmem:[#allocation118_spill] sm:$0xff] %v12123_v2  ;;  %v4867_v59 = vadd.f32 %v10481_v3, %v4384_v48  ;;  %v4866_v6 = vadd.f32 %v10481_v3, %v4265_v62  ;;  %v4386_v27 = vpop.f32.mrb[145].mxu1  ;;  %v4267_v8 = vpop.f32.mrb[146].mxu0  ;;  %v12138_v48 = vld [vmem:[%s15164_s3 + $0x38] sm:$0xff]  }
 0x437   : > { %15849 = vst [vmem:[#allocation115_spill] sm:$0xff] %v12126_v31  ;;  %v4868_v1 = vadd.f32 %v10481_v3, %v4386_v27  ;;  %v4897_v50 = vadd.f32 %v10486_v7, %v4267_v8  ;;  %v4388_v19 = vpop.f32.mrb[146].mxu1  ;;  %v4269_v30 = vpop.f32.mrb[147].mxu0  ;;  %v5377_v56 = vmax.f32 %v4865_v9, 0.0  ;;  %15850 = vst [vmem:[#allocation116_spill] sm:$0xff] %v12138_v48 }
 0x438   : > { %v4899_v21 = vadd.f32 %v10486_v7, %v4388_v19  ;;  %v4898_v40 = vadd.f32 %v10486_v7, %v4269_v30  ;;  %v4390_v29 = vpop.f32.mrb[147].mxu1  ;;  %v5379_v3 = vmax.f32 %v4867_v59, 0.0  ;;  %v5378_v62 = vmax.f32 %v4866_v6, 0.0 }
 0x439   : > { %v5409_v12 = vmax.f32 %v4897_v50, 0.0  ;;  %v4900_v38 = vadd.f32 %v10486_v7, %v4390_v29  ;;  %6496 = vmatmul.mubr.bf16.gmra.mrb[252].mxu0 %v12138_v48  ;;  %v5380_v30 = vmax.f32 %v4868_v1, 0.0 }
 0x43a   : > { %v5411_v27 = vmax.f32 %v4899_v21, 0.0  ;;  %v5410_v8 = vmax.f32 %v4898_v40, 0.0  ;;  %6609 = vmatmul.mubr.bf16.gmra.mrb[252].mxu1 %v12138_v48  ;;  %6651 = vmatprep.mubr.bf16.mxu0 %v15457_v36 }
 0x43b   : > { %v12143_v9 = vpack.c.bf16 %v5409_v12, %v5377_v56  ;;  %v5412_v50 = vmax.f32 %v4900_v38, 0.0  ;;  %6764 = vmatprep.mubr.bf16.mxu1 %v15457_v36 }
 0x43c   : > { %v12146_v7 = vpack.c.bf16 %v5411_v27, %v5379_v3  ;;  %v4273_v19 = vpop.f32.mrb[148].mxu0  ;;  %v12148_v29 = vpack.c.bf16 %v5410_v8, %v5378_v62 }
 0x43d   : > { %15851 = vst [vmem:[#allocation122_spill] sm:$0xff] %v12143_v9  ;;  %v4929_v59 = vadd.f32 %v10507_v51, %v4273_v19  ;;  %v4394_v6 = vpop.f32.mrb[148].mxu1  ;;  %v4275_v21 = vpop.f32.mrb[149].mxu0  ;;  %v12151_v40 = vpack.c.bf16 %v5412_v50, %v5380_v30 }
 0x43e   : > { %15852 = vst [vmem:[#allocation125_spill] sm:$0xff] %v12146_v7  ;;  %15853 = vst [vmem:[#allocation119_spill] sm:$0xff] %v12148_v29  ;;  %v4931_v31 = vadd.f32 %v10507_v51, %v4394_v6  ;;  %v4930_v1 = vadd.f32 %v10507_v51, %v4275_v21  ;;  %v4396_v56 = vpop.f32.mrb[149].mxu1  ;;  %v4277_v12 = vpop.f32.mrb[150].mxu0 }
 0x43f   : > { %15854 = vst [vmem:[#allocation120_spill] sm:$0xff] %v12151_v40  ;;  %v4932_v38 = vadd.f32 %v10507_v51, %v4396_v56  ;;  %v4961_v3 = vadd.f32 %v10512_v58, %v4277_v12  ;;  %v4398_v27 = vpop.f32.mrb[150].mxu1  ;;  %v4279_v7 = vpop.f32.mrb[151].mxu0  ;;  %v5441_v9 = vmax.f32 %v4929_v59, 0.0 }
 0x440   : > { %v4963_v62 = vadd.f32 %v10512_v58, %v4398_v27  ;;  %v4962_v8 = vadd.f32 %v10512_v58, %v4279_v7  ;;  %v4400_v19 = vpop.f32.mrb[151].mxu1  ;;  %v5443_v6 = vmax.f32 %v4931_v31, 0.0  ;;  %v5442_v21 = vmax.f32 %v4930_v1, 0.0 }
 0x441   : > { %v5473_v30 = vmax.f32 %v4961_v3, 0.0  ;;  %v4964_v50 = vadd.f32 %v10512_v58, %v4400_v19  ;;  %6652 = vmatmul.mubr.bf16.vlgmr.msra.gmra.mrb[0].mxu0 %v11939_v47  ;;  %v5444_v51 = vmax.f32 %v4932_v38, 0.0 }
 0x442   : > { %v5475_v40 = vmax.f32 %v4963_v62, 0.0  ;;  %v5474_v29 = vmax.f32 %v4962_v8, 0.0  ;;  %6765 = vmatmul.mubr.bf16.vlgmr.msra.gmra.mrb[0].mxu1 %v11939_v47  ;;  %6846 = vmatpush1.bf16.msra.mxu0 %v11303_v53 }
 0x443   : > { %v12163_v56 = vpack.c.bf16 %v5473_v30, %v5441_v9  ;;  %v5476_v12 = vmax.f32 %v4964_v50, 0.0  ;;  %6959 = vmatpush1.bf16.msra.mxu1 %v11307_v24  ;;  %6847 = vmatprep.subr.bf16.mxu0 %v11341_v43 }
 0x444   : > { %v12167_v7 = vpack.c.bf16 %v5475_v40, %v5443_v6  ;;  %6960 = vmatprep.subr.bf16.mxu1 %v11345_v32  ;;  %v4283_v58 = vpop.f32.mrb[152].mxu0  ;;  %6661 = vmatprep.mubr.bf16.mxu0 %v15457_v36  ;;  %v12171_v31 = vpack.c.bf16 %v5474_v29, %v5442_v21  ;;  %v15859_v29 = vld [vmem:[#allocation35_spill] sm:$0xff] }
 0x445   : > { %15855 = vst [vmem:[#allocation136_spill] sm:$0xff] %v12163_v56  ;;  %v4993_v59 = vadd.f32 %v10533_v33, %v4283_v58  ;;  %v4404_v53 = vpop.f32.mrb[152].mxu1  ;;  %v4285_v1 = vpop.f32.mrb[153].mxu0  ;;  %6774 = vmatprep.mubr.bf16.mxu1 %v15457_v36  ;;  %v12175_v9 = vpack.c.bf16 %v5476_v12, %v5444_v51 }
 0x446   : > { %15856 = vst [vmem:[#allocation137_spill] sm:$0xff] %v12167_v7  ;;  %15857 = vst [vmem:[#allocation138_spill] sm:$0xff] %v12171_v31  ;;  %v4995_v24 = vadd.f32 %v10533_v33, %v4404_v53  ;;  %v4994_v43 = vadd.f32 %v10533_v33, %v4285_v1  ;;  %v4406_v40 = vpop.f32.mrb[153].mxu1  ;;  %6848 = vmatpush1.bf16.msra.mxu0 %v11333_v49  ;;  %v4287_v32 = vpop.f32.mrb[154].mxu0  ;;  %v15862_v1 = vld [vmem:[#allocation34_spill] sm:$0xff] }
 0x447   : > { %15858 = vst [vmem:[#allocation139_spill] sm:$0xff] %v12175_v9  ;;  %v4996_v38 = vadd.f32 %v10533_v33, %v4406_v40  ;;  %6961 = vmatpush1.bf16.msra.mxu1 %v15859_v29  ;;  %v5025_v3 = vadd.f32 %v10538_v16, %v4287_v32  ;;  %v4408_v27 = vpop.f32.mrb[154].mxu1  ;;  %6849 = vmatprep.subr.bf16.mxu0 %v11371_v42  ;;  %v4289_v62 = vpop.f32.mrb[155].mxu0  ;;  %v5505_v50 = vmax.f32 %v4993_v59, 0.0  ;;  %v15860_v42 = vld [vmem:[#allocation33_spill] sm:$0xff] }
 0x448   : > { %v5027_v8 = vadd.f32 %v10538_v16, %v4408_v27  ;;  %6962 = vmatprep.subr.bf16.mxu1 %v11375_v23  ;;  %v5026_v19 = vadd.f32 %v10538_v16, %v4289_v62  ;;  %v4410_v30 = vpop.f32.mrb[155].mxu1  ;;  %v5507_v33 = vmax.f32 %v4995_v24, 0.0  ;;  %v5506_v21 = vmax.f32 %v4994_v43, 0.0  ;;  %v15872_v62 = vld [vmem:[#allocation38_spill] sm:$0xff] }
 0x449   : > { %v5537_v49 = vmax.f32 %v5025_v3, 0.0  ;;  %v5028_v6 = vadd.f32 %v10538_v16, %v4410_v30  ;;  %6662 = vmatmul.mubr.bf16.gmra.mrb[4].mxu0 %v11972_v35  ;;  %v5508_v58 = vmax.f32 %v4996_v38, 0.0  ;;  %v15870_v38 = vld [vmem:[#allocation36_spill] sm:$0xff]  ;;  %v15871_v3 = vld [vmem:[#allocation37_spill] sm:$0xff] }
 0x44a   : > { %v5539_v51 = vmax.f32 %v5027_v8, 0.0  ;;  %v5538_v12 = vmax.f32 %v5026_v19, 0.0  ;;  %6775 = vmatmul.mubr.bf16.gmra.mrb[4].mxu1 %v11972_v35  ;;  %6850 = vmatpush1.bf16.msra.mxu0 %v15860_v42  ;;  %v12219_v8 = vpop.permute.xlu0 %5815  ;;  %v15873_v19 = vld [vmem:[#allocation39_spill] sm:$0xff]  ;;  %v15875_v30 = vld [vmem:[#allocation41_spill] sm:$0xff] }
 0x44b   : > { %v12191_v53 = vpack.c.bf16 %v5537_v49, %v5505_v50  ;;  %v5540_v23 = vmax.f32 %v5028_v6, 0.0  ;;  %6963 = vmatpush1.bf16.msra.mxu1 %v15862_v1  ;;  %6851 = vmatprep.subr.bf16.mxu0 %v11401_v46 }
 0x44c   : > { %v12195_v59 = vpack.c.bf16 %v5539_v51, %v5507_v33  ;;  %6964 = vmatprep.subr.bf16.mxu1 %v11405_v13  ;;  %v12198_v16 = vpop.f32.mrb[156].mxu0  ;;  %6671 = vmatprep.mubr.bf16.mxu0 %v15457_v36  ;;  %v12201_v24 = vpack.c.bf16 %v5538_v12, %v5506_v21  ;;  %v15876_v12 = vld [vmem:[#allocation42_spill] sm:$0xff] }
 0x44d   : > { %15861 = vst [vmem:[#allocation35_spill] sm:$0xff] %v12191_v53  ;;  %15864 = vst [vmem:[#allocation34_spill] sm:$0xff] %v12198_v16  ;;  %v12203_v35 = vpop.f32.mrb[156].mxu1  ;;  %v12205_v43 = vpop.f32.mrb[157].mxu0  ;;  %6784 = vmatprep.mubr.bf16.mxu1 %v15457_v36  ;;  %v12208_v40 = vpack.c.bf16 %v5540_v23, %v5508_v58  ;;  %v15877_v23 = vld [vmem:[#allocation43_spill] sm:$0xff] }
 0x44e   : > { %15863 = vst [vmem:[#allocation33_spill] sm:$0xff] %v12195_v59  ;;  %15865 = vst [vmem:[#allocation140_spill] sm:$0xff] %v12201_v24  ;;  %v12210_v32 = vpop.f32.mrb[157].mxu1  ;;  %6852 = vmatpush1.bf16.msra.mxu0 %v11393_v63  ;;  %v4297_v46 = vpop.f32.mrb[158].mxu0  ;;  %v15874_v63 = vld [vmem:[#allocation40_spill] sm:$0xff] }
 0x44f   : > { %15866 = vst [vmem:[#allocation141_spill] sm:$0xff] %v12203_v35  ;;  %15867 = vst [vmem:[#allocation142_spill] sm:$0xff] %v12205_v43  ;;  %6965 = vmatpush1.bf16.msra.mxu1 %v11397_v17  ;;  %v4418_v13 = vpop.f32.mrb[158].mxu1  ;;  %6853 = vmatprep.subr.bf16.mxu0 %v15870_v38  ;;  %v4298_v29 = vpop.f32.mrb[159].mxu0 }
 0x450   : > { %15868 = vst [vmem:[#allocation143_spill] sm:$0xff] %v12208_v40  ;;  %15869 = vst [vmem:[#allocation144_spill] sm:$0xff] %v12210_v32  ;;  %6966 = vmatprep.subr.bf16.mxu1 %v15871_v3  ;;  %v4419_v27 = vpop.f32.mrb[159].mxu1  ;;  %v12223_v17 = vpop.permute.xlu1 %5820  ;;  %v15878_v13 = vld [vmem:[#allocation44_spill] sm:$0xff]  ;;  %v15887_v32 = vld [vmem:[#allocation9_spill] sm:$0xff] }
 0x451   : > { %6672 = vmatmul.mubr.bf16.gmra.mrb[8].mxu0 %v11997_v57  ;;  %v15879_v27 = vld [vmem:[#allocation45_spill] sm:$0xff] }
 0x452   : > { %6785 = vmatmul.mubr.bf16.gmra.mrb[8].mxu1 %v11997_v57  ;;  %6854 = vmatpush1.bf16.msra.mxu0 %v15872_v62 }
 0x453   : > { %6967 = vmatpush1.bf16.msra.mxu1 %v15873_v19  ;;  %6855 = vmatprep.subr.bf16.mxu0 %v15874_v63  ;;  %v15886_v63 = vld [vmem:[#allocation51_spill] sm:$0xff] }
 0x454   : > { %6968 = vmatprep.subr.bf16.mxu1 %v15875_v30  ;;  %v5975_v50 = vpop.f32.mrb[160].mxu0  ;;  %6681 = vmatprep.mubr.bf16.mxu0 %v15457_v36 }
 0x455   : > { %v12228_v49 = vadd.f32 %v5975_v50, %v12219_v8  ;;  %v6088_v6 = vpop.f32.mrb[160].mxu1  ;;  %v5977_v57 = vpop.f32.mrb[161].mxu0  ;;  %6794 = vmatprep.mubr.bf16.mxu1 %v15457_v36 }
 0x456   : > { %v12232_v33 = vadd.f32 %v6088_v6, %v12219_v8  ;;  %v12235_v21 = vadd.f32 %v5977_v57, %v12219_v8  ;;  %v6090_v51 = vpop.f32.mrb[161].mxu1  ;;  %6856 = vmatpush1.bf16.msra.mxu0 %v15876_v12  ;;  %v5979_v42 = vpop.f32.mrb[162].mxu0  ;;  %v15880_v6 = vld [vmem:[#allocation46_spill] sm:$0xff]  ;;  %v15881_v12 = vld [vmem:[#allocation47_spill] sm:$0xff] }
 0x457   : > { %v12239_v58 = vadd.f32 %v6090_v51, %v12219_v8  ;;  %6969 = vmatpush1.bf16.msra.mxu1 %v15877_v23  ;;  %v12243_v1 = vadd.f32 %v5979_v42, %v12223_v17  ;;  %v6092_v46 = vpop.f32.mrb[162].mxu1  ;;  %6857 = vmatprep.subr.bf16.mxu0 %v15878_v13  ;;  %v5981_v38 = vpop.f32.mrb[163].mxu0  ;;  %v15882_v42 = vld [vmem:[#allocation49_spill] sm:$0xff]  ;;  %v15885_v51 = vld [vmem:[#allocation50_spill] sm:$0xff] }
 0x458   : > { %v12249_v3 = vadd.f32 %v6092_v46, %v12223_v17  ;;  %6970 = vmatprep.subr.bf16.mxu1 %v15879_v27  ;;  %v12253_v62 = vadd.f32 %v5981_v38, %v12223_v17  ;;  %v6094_v19 = vpop.f32.mrb[163].mxu1  ;;  %v12265_v57 = vpop.permute.xlu0 %5825  ;;  %v15884_v46 = vld [vmem:[#allocation127_spill] sm:$0xff] }
 0x459   : > { %v12258_v30 = vadd.f32 %v6094_v19, %v12223_v17  ;;  %6682 = vmatmul.mubr.bf16.gmra.mrb[12].mxu0 %v12030_v55  ;;  %v12271_v23 = vpop.permute.xlu1 %5830 }
 0x45a   : > { %6795 = vmatmul.mubr.bf16.gmra.mrb[12].mxu1 %v12030_v55  ;;  %6858 = vmatpush1.bf16.msra.mxu0 %v15880_v6  ;;  %15883 = vst [vmem:[#allocation36_spill] sm:$0xff] %v12271_v23 }
 0x45b   : > { %6971 = vmatpush1.bf16.msra.mxu1 %v15881_v12  ;;  %6859 = vmatprep.subr.bf16.mxu0 %v15882_v42 }
 0x45c   : > { %6972 = vmatprep.subr.bf16.mxu1 %v15884_v46  ;;  %v5985_v13 = vpop.f32.mrb[164].mxu0  ;;  %6691 = vmatprep.mubr.bf16.mxu0 %v15457_v36 }
 0x45d   : > { %v12276_v38 = vadd.f32 %v5985_v13, %v12265_v57  ;;  %v6098_v27 = vpop.f32.mrb[164].mxu1  ;;  %v5987_v19 = vpop.f32.mrb[165].mxu0  ;;  %6804 = vmatprep.mubr.bf16.mxu1 %v15457_v36 }
 0x45e   : > { %v12280_v6 = vadd.f32 %v6098_v27, %v12265_v57  ;;  %v12283_v12 = vadd.f32 %v5987_v19, %v12265_v57  ;;  %v6100_v42 = vpop.f32.mrb[165].mxu1  ;;  %6860 = vmatpush1.bf16.msra.mxu0 %v15885_v51  ;;  %v5989_v46 = vpop.f32.mrb[166].mxu0  ;;  %v15888_v51 = vld [vmem:[#allocation7_spill] sm:$0xff] }
 0x45f   : > { %v12287_v50 = vadd.f32 %v6100_v42, %v12265_v57  ;;  %6973 = vmatpush1.bf16.msra.mxu1 %v15886_v63  ;;  %v12291_v13 = vadd.f32 %v5989_v46, %v12271_v23  ;;  %v6102_v29 = vpop.f32.mrb[166].mxu1  ;;  %7071 = vmatprep.subr.bf16.mxu0 %v15887_v32  ;;  %v5991_v27 = vpop.f32.mrb[167].mxu0 }
 0x460   : > { %v12297_v43 = vadd.f32 %v6102_v29, %v12271_v23  ;;  %7184 = vmatprep.subr.bf16.mxu1 %v15888_v51  ;;  %v12301_v42 = vadd.f32 %v5991_v27, %v12271_v23  ;;  %v6104_v35 = vpop.f32.mrb[167].mxu1  ;;  %v12313_v29 = vpop.permute.xlu0 %5835 }
 0x461   : > { %v12306_v46 = vadd.f32 %v6104_v35, %v12271_v23  ;;  %6692 = vmatmul.mubr.bf16.gmra.mrb[16].mxu0 %v12063_v41  ;;  %15889 = vst [vmem:[#allocation37_spill] sm:$0xff] %v12313_v29  ;;  %v12318_v51 = vpop.permute.xlu1 %5840 }
 0x462   : > { %6805 = vmatmul.mubr.bf16.gmra.mrb[16].mxu1 %v12063_v41  ;;  %6701 = vmatprep.mubr.bf16.mxu0 %v15457_v36  ;;  %15890 = vst [vmem:[#allocation38_spill] sm:$0xff] %v12318_v51 }
 0x463   : > { %6814 = vmatprep.mubr.bf16.mxu1 %v15457_v36 }
 0x464   : > { %v5995_v35 = vpop.f32.mrb[168].mxu0 }
 0x465   : > { %v12321_v63 = vadd.f32 %v5995_v35, %v12313_v29  ;;  %v6108_v19 = vpop.f32.mrb[168].mxu1  ;;  %v5997_v16 = vpop.f32.mrb[169].mxu0 }
 0x466   : > { %v12324_v32 = vadd.f32 %v6108_v19, %v12313_v29  ;;  %v12327_v59 = vadd.f32 %v5997_v16, %v12313_v29  ;;  %v6110_v53 = vpop.f32.mrb[169].mxu1  ;;  %v5999_v40 = vpop.f32.mrb[170].mxu0 }
 0x467   : > { %v12330_v27 = vadd.f32 %v6110_v53, %v12313_v29  ;;  %v12333_v24 = vadd.f32 %v5999_v40, %v12318_v51  ;;  %v6112_v7 = vpop.f32.mrb[170].mxu1  ;;  %v6001_v56 = vpop.f32.mrb[171].mxu0 }
 0x468   : > { %v12338_v9 = vadd.f32 %v6112_v7, %v12318_v51  ;;  %v12341_v19 = vadd.f32 %v6001_v56, %v12318_v51  ;;  %v6114_v16 = vpop.f32.mrb[171].mxu1  ;;  %v12353_v7 = vpop.permute.xlu0 %5845 }
 0x469   : > { %v12346_v53 = vadd.f32 %v6114_v16, %v12318_v51  ;;  %6702 = vmatmul.mubr.bf16.gmra.mrb[20].mxu0 %v12088_v18  ;;  %15891 = vst [vmem:[#allocation39_spill] sm:$0xff] %v12353_v7  ;;  %v12358_v31 = vpop.permute.xlu1 %5850 }
 0x46a   : > { %6815 = vmatmul.mubr.bf16.gmra.mrb[20].mxu1 %v12088_v18  ;;  %6711 = vmatprep.mubr.bf16.mxu0 %v15457_v36  ;;  %15892 = vst [vmem:[#allocation40_spill] sm:$0xff] %v12358_v31 }
 0x46b   : > { %6824 = vmatprep.mubr.bf16.mxu1 %v15457_v36 }
 0x46c   : > { %v6005_v16 = vpop.f32.mrb[172].mxu0 }
 0x46d   : > { %v12361_v35 = vadd.f32 %v6005_v16, %v12353_v7  ;;  %v6118_v2 = vpop.f32.mrb[172].mxu1  ;;  %v6007_v22 = vpop.f32.mrb[173].mxu0 }
 0x46e   : > { %v12364_v40 = vadd.f32 %v6118_v2, %v12353_v7  ;;  %v12367_v14 = vadd.f32 %v6007_v22, %v12353_v7  ;;  %v6120_v25 = vpop.f32.mrb[173].mxu1  ;;  %v6009_v10 = vpop.f32.mrb[174].mxu0 }
 0x46f   : > { %v12370_v56 = vadd.f32 %v6120_v25, %v12353_v7  ;;  %v12373_v37 = vadd.f32 %v6009_v10, %v12358_v31  ;;  %v6122_v11 = vpop.f32.mrb[174].mxu1  ;;  %v6011_v5 = vpop.f32.mrb[175].mxu0 }
 0x470   : > { %v12378_v45 = vadd.f32 %v6122_v11, %v12358_v31  ;;  %v12381_v2 = vadd.f32 %v6011_v5, %v12358_v31  ;;  %v6124_v22 = vpop.f32.mrb[175].mxu1  ;;  %v12393_v11 = vpop.permute.xlu0 %5855 }
 0x471   : > { %15893 = vst [vmem:[#allocation41_spill] sm:$0xff] %v12373_v37  ;;  %v12386_v25 = vadd.f32 %v6124_v22, %v12358_v31  ;;  %6712 = vmatmul.mubr.bf16.gmra.mrb[24].mxu0 %v12113_v0  ;;  %15897 = vst [vmem:[#allocation45_spill] sm:$0xff] %v12393_v11  ;;  %v12398_v39 = vpop.permute.xlu1 %5860 }
 0x472   : > { %15894 = vst [vmem:[#allocation42_spill] sm:$0xff] %v12378_v45  ;;  %15895 = vst [vmem:[#allocation43_spill] sm:$0xff] %v12381_v2  ;;  %6825 = vmatmul.mubr.bf16.gmra.mrb[24].mxu1 %v12113_v0  ;;  %6721 = vmatprep.mubr.bf16.mxu0 %v15457_v36 }
 0x473   : > { %15896 = vst [vmem:[#allocation44_spill] sm:$0xff] %v12386_v25  ;;  %6834 = vmatprep.mubr.bf16.mxu1 %v15457_v36  ;;  %15898 = vst [vmem:[#allocation46_spill] sm:$0xff] %v12398_v39 }
 0x474   : > { %v6015_v22 = vpop.f32.mrb[176].mxu0 }
 0x475   : > { %v12401_v16 = vadd.f32 %v6015_v22, %v12393_v11  ;;  %v6128_v61 = vpop.f32.mrb[176].mxu1  ;;  %v6017_v60 = vpop.f32.mrb[177].mxu0 }
 0x476   : > { %v12404_v10 = vadd.f32 %v6128_v61, %v12393_v11  ;;  %v12407_v20 = vadd.f32 %v6017_v60, %v12393_v11  ;;  %v6130_v15 = vpop.f32.mrb[177].mxu1  ;;  %v6019_v52 = vpop.f32.mrb[178].mxu0 }
 0x477   : > { %15899 = vst [vmem:[#allocation47_spill] sm:$0xff] %v12401_v16  ;;  %v12410_v5 = vadd.f32 %v6130_v15, %v12393_v11  ;;  %v12413_v25 = vadd.f32 %v6019_v52, %v12398_v39  ;;  %v6132_v2 = vpop.f32.mrb[178].mxu1  ;;  %v6021_v0 = vpop.f32.mrb[179].mxu0  ;;  %v15920_v16 = vld [vmem:[#allocation61_spill] sm:$0xff] }
 0x478   : > { %15900 = vst [vmem:[#allocation49_spill] sm:$0xff] %v12404_v10  ;;  %15901 = vst [vmem:[#allocation127_spill] sm:$0xff] %v12407_v20  ;;  %v12418_v45 = vadd.f32 %v6132_v2, %v12398_v39  ;;  %v12421_v61 = vadd.f32 %v6021_v0, %v12398_v39  ;;  %v6134_v60 = vpop.f32.mrb[179].mxu1  ;;  %v12433_v2 = vpop.permute.xlu0 %5865 }
 0x479   : > { %15902 = vst [vmem:[#allocation50_spill] sm:$0xff] %v12410_v5  ;;  %15903 = vst [vmem:[#allocation51_spill] sm:$0xff] %v12413_v25  ;;  %v12426_v15 = vadd.f32 %v6134_v60, %v12398_v39  ;;  %6722 = vmatmul.mubr.bf16.gmra.mrb[28].mxu0 %v12138_v48  ;;  %v12438_v37 = vpop.permute.xlu1 %5870 }
 0x47a   : > { %15904 = vst [vmem:[#allocation9_spill] sm:$0xff] %v12418_v45  ;;  %15905 = vst [vmem:[#allocation7_spill] sm:$0xff] %v12421_v61  ;;  %6835 = vmatmul.mubr.bf16.gmra.mrb[28].mxu1 %v12138_v48  ;;  %6877 = vmatprep.mubr.bf16.mxu0 %v15457_v36 }
 0x47b   : > { %15906 = vst [vmem:[#allocation145_spill] sm:$0xff] %v12426_v15  ;;  %15907 = vst [vmem:[#allocation146_spill] sm:$0xff] %v12433_v2  ;;  %6990 = vmatprep.mubr.bf16.mxu1 %v15457_v36 }
 0x47c   : > { %15908 = vst [vmem:[#allocation147_spill] sm:$0xff] %v12438_v37  ;;  %v6025_v60 = vpop.f32.mrb[180].mxu0 }
 0x47d   : > { %v12441_v22 = vadd.f32 %v6025_v60, %v12433_v2  ;;  %v6138_v5 = vpop.f32.mrb[180].mxu1  ;;  %v6027_v20 = vpop.f32.mrb[181].mxu0  ;;  %v15917_v60 = vld [vmem:[#allocation58_spill] sm:$0xff] }
 0x47e   : > { %v12444_v52 = vadd.f32 %v6138_v5, %v12433_v2  ;;  %v12447_v48 = vadd.f32 %v6027_v20, %v12433_v2  ;;  %v6140_v45 = vpop.f32.mrb[181].mxu1  ;;  %v6029_v25 = vpop.f32.mrb[182].mxu0 }
 0x47f   : > { %15909 = vst [vmem:[#allocation148_spill] sm:$0xff] %v12441_v22  ;;  %v12450_v0 = vadd.f32 %v6140_v45, %v12433_v2  ;;  %v12453_v15 = vadd.f32 %v6029_v25, %v12438_v37  ;;  %v6142_v61 = vpop.f32.mrb[182].mxu1  ;;  %v6031_v39 = vpop.f32.mrb[183].mxu0 }
 0x480   : > { %15910 = vst [vmem:[#allocation149_spill] sm:$0xff] %v12444_v52  ;;  %15911 = vst [vmem:[#allocation150_spill] sm:$0xff] %v12447_v48  ;;  %v12458_v10 = vadd.f32 %v6142_v61, %v12438_v37  ;;  %v12461_v5 = vadd.f32 %v6031_v39, %v12438_v37  ;;  %v6144_v20 = vpop.f32.mrb[183].mxu1  ;;  %v12473_v61 = vpop.permute.xlu0 %5875  ;;  %v15919_v52 = vld [vmem:[#allocation59_spill] sm:$0xff] }
 0x481   : > { %15912 = vst [vmem:[#allocation151_spill] sm:$0xff] %v12450_v0  ;;  %15913 = vst [vmem:[#allocation152_spill] sm:$0xff] %v12453_v15  ;;  %v12466_v45 = vadd.f32 %v6144_v20, %v12438_v37  ;;  %6878 = vmatmul.mubr.bf16.vlgmr.msra.gmra.mrb[32].mxu0 %v11939_v47  ;;  %v12479_v20 = vpop.permute.xlu1 %5880  ;;  %v15922_v0 = vld [vmem:[#allocation62_spill] sm:$0xff]  ;;  %v15930_v37 = vld [vmem:[#allocation65_spill] sm:$0xff] }
 0x482   : > { %15914 = vst [vmem:[#allocation153_spill] sm:$0xff] %v12458_v10  ;;  %15915 = vst [vmem:[#allocation154_spill] sm:$0xff] %v12461_v5  ;;  %6991 = vmatmul.mubr.bf16.vlgmr.msra.gmra.mrb[32].mxu1 %v11939_v47  ;;  %7072 = vmatpush1.bf16.msra.mxu0 %v15917_v60  ;;  %v15928_v10 = vld [vmem:[#allocation6_spill] sm:$0xff] }
 0x483   : > { %15916 = vst [vmem:[#allocation155_spill] sm:$0xff] %v12466_v45  ;;  %15918 = vst [vmem:[#allocation58_spill] sm:$0xff] %v12473_v61  ;;  %7185 = vmatpush1.bf16.msra.mxu1 %v15919_v52  ;;  %7073 = vmatprep.subr.bf16.mxu0 %v15920_v16  ;;  %v15926_v45 = vld [vmem:[#allocation5_spill] sm:$0xff] }
 0x484   : > { %15921 = vst [vmem:[#allocation59_spill] sm:$0xff] %v12479_v20  ;;  %7186 = vmatprep.subr.bf16.mxu1 %v15922_v0  ;;  %v6035_v48 = vpop.f32.mrb[184].mxu0  ;;  %6887 = vmatprep.mubr.bf16.mxu0 %v15457_v36 }
 0x485   : > { %v12484_v47 = vadd.f32 %v6035_v48, %v12473_v61  ;;  %v6148_v60 = vpop.f32.mrb[184].mxu1  ;;  %v6037_v25 = vpop.f32.mrb[185].mxu0  ;;  %7000 = vmatprep.mubr.bf16.mxu1 %v15457_v36 }
 0x486   : > { %v12488_v39 = vadd.f32 %v6148_v60, %v12473_v61  ;;  %v12491_v52 = vadd.f32 %v6037_v25, %v12473_v61  ;;  %v6150_v16 = vpop.f32.mrb[185].mxu1  ;;  %7074 = vmatpush1.bf16.msra.mxu0 %v15926_v45  ;;  %v6039_v0 = vpop.f32.mrb[186].mxu0  ;;  %v15932_v45 = vld [vmem:[#allocation66_spill] sm:$0xff]  ;;  %v15939_v25 = vld [vmem:[#allocation69_spill] sm:$0xff] }
 0x487   : > { %15923 = vst [vmem:[#allocation61_spill] sm:$0xff] %v12484_v47  ;;  %v12495_v5 = vadd.f32 %v6150_v16, %v12473_v61  ;;  %7187 = vmatpush1.bf16.msra.mxu1 %v15928_v10  ;;  %v12499_v48 = vadd.f32 %v6039_v0, %v12479_v20  ;;  %v6152_v15 = vpop.f32.mrb[186].mxu1  ;;  %7075 = vmatprep.subr.bf16.mxu0 %v15930_v37  ;;  %v6041_v60 = vpop.f32.mrb[187].mxu0  ;;  %v12519_v37 = vld [vmem:[%s15164_s3 + $0x8] sm:$0xff]   ;;  %v15938_v10 = vld [vmem:[#allocation60_spill] sm:$0xff] }
 0x488   : > { %15924 = vst [vmem:[#allocation62_spill] sm:$0xff] %v12488_v39  ;;  %15925 = vst [vmem:[#allocation156_spill] sm:$0xff] %v12491_v52  ;;  %v12505_v22 = vadd.f32 %v6152_v15, %v12479_v20  ;;  %7188 = vmatprep.subr.bf16.mxu1 %v15932_v45  ;;  %v12509_v16 = vadd.f32 %v6041_v60, %v12479_v20  ;;  %v6154_v61 = vpop.f32.mrb[187].mxu1  ;;  %v15936_v60 = vld [vmem:[#allocation8_spill] sm:$0xff]  ;;  %v12526_v45 = vpop.permute.xlu0 %5885  ;;  %v15941_v52 = vld [vmem:[#allocation70_spill] sm:$0xff] }
 0x489   : > { %15927 = vst [vmem:[#allocation5_spill] sm:$0xff] %v12495_v5  ;;  %15929 = vst [vmem:[#allocation6_spill] sm:$0xff] %v12499_v48  ;;  %v12514_v0 = vadd.f32 %v6154_v61, %v12479_v20  ;;  %6888 = vmatmul.mubr.bf16.gmra.mrb[36].mxu0 %v12519_v37  ;;  %v12532_v5 = vpop.permute.xlu1 %5890  ;;  %v15948_v39 = vld [vmem:[#allocation73_spill] sm:$0xff] }
 0x48a   : > { %15931 = vst [vmem:[#allocation65_spill] sm:$0xff] %v12505_v22  ;;  %15933 = vst [vmem:[#allocation66_spill] sm:$0xff] %v12509_v16  ;;  %7001 = vmatmul.mubr.bf16.gmra.mrb[36].mxu1 %v12519_v37  ;;  %7076 = vmatpush1.bf16.msra.mxu0 %v15936_v60  ;;  %v15946_v22 = vld [vmem:[#allocation64_spill] sm:$0xff] }
 0x48b   : > { %15934 = vst [vmem:[#allocation157_spill] sm:$0xff] %v12514_v0  ;;  %15935 = vst [vmem:[#allocation158_spill] sm:$0xff] %v12519_v37  ;;  %7189 = vmatpush1.bf16.msra.mxu1 %v15938_v10  ;;  %7077 = vmatprep.subr.bf16.mxu0 %v15939_v25  ;;  %v15944_v0 = vld [vmem:[#allocation63_spill] sm:$0xff] }
 0x48c   : > { %15937 = vst [vmem:[#allocation8_spill] sm:$0xff] %v12526_v45  ;;  %15940 = vst [vmem:[#allocation60_spill] sm:$0xff] %v12532_v5  ;;  %7190 = vmatprep.subr.bf16.mxu1 %v15941_v52  ;;  %v6045_v20 = vpop.f32.mrb[188].mxu0  ;;  %6897 = vmatprep.mubr.bf16.mxu0 %v15457_v36 }
 0x48d   : > { %v12537_v15 = vadd.f32 %v6045_v20, %v12526_v45  ;;  %v6158_v60 = vpop.f32.mrb[188].mxu1  ;;  %v6047_v37 = vpop.f32.mrb[189].mxu0  ;;  %7010 = vmatprep.mubr.bf16.mxu1 %v15457_v36 }
 0x48e   : > { %v12541_v61 = vadd.f32 %v6158_v60, %v12526_v45  ;;  %v12544_v10 = vadd.f32 %v6047_v37, %v12526_v45  ;;  %v6160_v25 = vpop.f32.mrb[189].mxu1  ;;  %7078 = vmatpush1.bf16.msra.mxu0 %v15944_v0  ;;  %v6049_v52 = vpop.f32.mrb[190].mxu0  ;;  %v15950_v0 = vld [vmem:[#allocation74_spill] sm:$0xff] }
 0x48f   : > { %v12548_v16 = vadd.f32 %v6160_v25, %v12526_v45  ;;  %7191 = vmatpush1.bf16.msra.mxu1 %v15946_v22  ;;  %v12552_v20 = vadd.f32 %v6049_v52, %v12532_v5  ;;  %v6162_v48 = vpop.f32.mrb[190].mxu1  ;;  %7079 = vmatprep.subr.bf16.mxu0 %v15948_v39  ;;  %v6051_v60 = vpop.f32.mrb[191].mxu0  ;;  %v12572_v39 = vld [vmem:[%s15164_s3 + $0x10] sm:$0xff]   ;;  %v15955_v22 = vld [vmem:[#allocation68_spill] sm:$0xff]  ;;  %v15957_v37 = vld [vmem:[#allocation78_spill] sm:$0xff] }
 0x490   : > { %15942 = vst [vmem:[#allocation69_spill] sm:$0xff] %v12541_v61  ;;  %15943 = vst [vmem:[#allocation70_spill] sm:$0xff] %v12544_v10  ;;  %v12558_v47 = vadd.f32 %v6162_v48, %v12532_v5  ;;  %7192 = vmatprep.subr.bf16.mxu1 %v15950_v0  ;;  %v12562_v25 = vadd.f32 %v6051_v60, %v12532_v5  ;;  %v6164_v45 = vpop.f32.mrb[191].mxu1  ;;  %v15954_v60 = vld [vmem:[#allocation67_spill] sm:$0xff] }
 0x491   : > { %15945 = vst [vmem:[#allocation63_spill] sm:$0xff] %v12548_v16  ;;  %15947 = vst [vmem:[#allocation64_spill] sm:$0xff] %v12552_v20  ;;  %v12567_v52 = vadd.f32 %v6164_v45, %v12532_v5  ;;  %6898 = vmatmul.mubr.bf16.gmra.mrb[40].mxu0 %v12572_v39  ;;  %v15956_v45 = vld [vmem:[#allocation77_spill] sm:$0xff]  ;;  %v15961_v20 = vld [vmem:[#allocation82_spill] sm:$0xff] }
 0x492   : > { %15949 = vst [vmem:[#allocation73_spill] sm:$0xff] %v12558_v47  ;;  %15951 = vst [vmem:[#allocation74_spill] sm:$0xff] %v12562_v25  ;;  %7011 = vmatmul.mubr.bf16.gmra.mrb[40].mxu1 %v12572_v39  ;;  %7080 = vmatpush1.bf16.msra.mxu0 %v15954_v60  ;;  %v15958_v47 = vld [vmem:[#allocation71_spill] sm:$0xff] }
 0x493   : > { %15952 = vst [vmem:[#allocation159_spill] sm:$0xff] %v12567_v52  ;;  %15953 = vst [vmem:[#allocation160_spill] sm:$0xff] %v12572_v39  ;;  %7193 = vmatpush1.bf16.msra.mxu1 %v15955_v22  ;;  %7081 = vmatprep.subr.bf16.mxu0 %v15956_v45  ;;  %v15959_v22 = vmax.f32 %v12228_v49, %v12232_v33  ;;  %v15960_v52 = vld [vmem:[#allocation72_spill] sm:$0xff]  ;;  %v15963_v33 = vld [vmem:[#allocation85_spill] sm:$0xff] }
 0x494   : > { %7194 = vmatprep.subr.bf16.mxu1 %v15957_v37  ;;  %v6201_v16 = vpop.f32.mrb[192].mxu0  ;;  %6907 = vmatprep.mubr.bf16.mxu0 %v15457_v36 }
 0x495   : > { %v6202_v10 = vadd.f32 %v6201_v16, %v12219_v8  ;;  %v6314_v5 = vpop.f32.mrb[192].mxu1  ;;  %v6203_v48 = vpop.f32.mrb[193].mxu0  ;;  %7020 = vmatprep.mubr.bf16.mxu1 %v15457_v36 }
 0x496   : > { %v6204_v60 = vadd.f32 %v6203_v48, %v12219_v8  ;;  %v6316_v39 = vpop.f32.mrb[193].mxu1  ;;  %7082 = vmatpush1.bf16.msra.mxu0 %v15958_v47  ;;  %v6205_v0 = vpop.f32.mrb[194].mxu0  ;;  %v12595_v37 = vadd.f32 %v6314_v5, %v12219_v8  ;;  %v15962_v47 = vmax.f32 %v12235_v21, %v12239_v58 }
 0x497   : > { %v12592_v45 = vmax.f32 %v15959_v22, %v6202_v10  ;;  %7195 = vmatpush1.bf16.msra.mxu1 %v15960_v52  ;;  %v6206_v16 = vadd.f32 %v6205_v0, %v12223_v17  ;;  %v6318_v25 = vpop.f32.mrb[194].mxu1  ;;  %7083 = vmatprep.subr.bf16.mxu0 %v15961_v20  ;;  %v6207_v48 = vpop.f32.mrb[195].mxu0  ;;  %v12606_v49 = vadd.f32 %v6316_v39, %v12219_v8 }
 0x498   : > { %v12603_v61 = vmax.f32 %v15962_v47, %v6204_v60  ;;  %7196 = vmatprep.subr.bf16.mxu1 %v15963_v33  ;;  %v6208_v5 = vadd.f32 %v6207_v48, %v12223_v17  ;;  %v6320_v10 = vpop.f32.mrb[195].mxu1  ;;  %v15964_v20 = vmax.f32 %v12243_v1, %v12249_v3  ;;  %v12618_v21 = vadd.f32 %v6318_v25, %v12223_v17  ;;  %v12634_v1 = vld [vmem:[%s15164_s3 + $0x18] sm:$0xff]   ;;  %v15966_v3 = vld [vmem:[#allocation75_spill] sm:$0xff] }
 0x499   : > { %6908 = vmatmul.mubr.bf16.gmra.mrb[44].mxu0 %v12030_v55  ;;  %v15965_v39 = vmax.f32 %v12253_v62, %v12258_v30  ;;  %v12629_v22 = vadd.f32 %v6320_v10, %v12223_v17  ;;  %v15967_v25 = vld [vmem:[#allocation76_spill] sm:$0xff]  ;;  %v15968_v10 = vmax.f32 %v12276_v38, %v12280_v6  ;;  %v15993_v55 = vld [vmem:[#allocation127_spill] sm:$0xff] }
 0x49a   : > { %v12615_v0 = vmax.f32 %v15964_v20, %v6206_v16  ;;  %7021 = vmatmul.mubr.bf16.gmra.mrb[44].mxu1 %v12634_v1  ;;  %7084 = vmatpush1.bf16.msra.mxu0 %v15966_v3 }
 0x49b   : > { %v12626_v60 = vmax.f32 %v15965_v39, %v6208_v5  ;;  %7197 = vmatpush1.bf16.msra.mxu1 %v15967_v25  ;;  %7085 = vmatprep.subr.bf16.mxu0 %v11742_v4 }
 0x49c   : > { %7198 = vmatprep.subr.bf16.mxu1 %v11748_v34  ;;  %v6211_v30 = vpop.f32.mrb[196].mxu0  ;;  %6917 = vmatprep.mubr.bf16.mxu0 %v15457_v36 }
 0x49d   : > { %v6212_v16 = vadd.f32 %v6211_v30, %v12265_v57  ;;  %v6324_v48 = vpop.f32.mrb[196].mxu1  ;;  %v6213_v47 = vpop.f32.mrb[197].mxu0  ;;  %7030 = vmatprep.mubr.bf16.mxu1 %v15457_v36 }
 0x49e   : > { %v6214_v33 = vadd.f32 %v6213_v47, %v12265_v57  ;;  %v6326_v5 = vpop.f32.mrb[197].mxu1  ;;  %7086 = vmatpush1.bf16.msra.mxu0 %v11735_v44  ;;  %v6215_v4 = vpop.f32.mrb[198].mxu0  ;;  %v12656_v34 = vadd.f32 %v6324_v48, %v12265_v57  ;;  %v15969_v44 = vmax.f32 %v12283_v12, %v12287_v50  ;;  %v15992_v12 = vld [vmem:[#allocation46_spill] sm:$0xff] }
 0x49f   : > { %v12653_v20 = vmax.f32 %v15968_v10, %v6212_v16  ;;  %7199 = vmatpush1.bf16.msra.mxu1 %v11738_v54  ;;  %v6216_v39 = vadd.f32 %v6215_v4, %v12271_v23  ;;  %v6328_v3 = vpop.f32.mrb[198].mxu1  ;;  %7297 = vmatprep.subr.bf16.mxu0 %v11783_v26  ;;  %v6217_v25 = vpop.f32.mrb[199].mxu0  ;;  %v12667_v38 = vadd.f32 %v6326_v5, %v12265_v57 }
 0x4a0   : > { %v12664_v30 = vmax.f32 %v15969_v44, %v6214_v33  ;;  %7410 = vmatprep.subr.bf16.mxu1 %v11787_v28  ;;  %v6218_v6 = vadd.f32 %v6217_v25, %v12271_v23  ;;  %v6330_v16 = vpop.f32.mrb[199].mxu1  ;;  %v15970_v26 = vmax.f32 %v12291_v13, %v12297_v43  ;;  %v12679_v50 = vadd.f32 %v6328_v3, %v12271_v23 }
 0x4a1   : > { %6918 = vmatmul.mubr.bf16.gmra.mrb[48].mxu0 %v12063_v41  ;;  %v15971_v28 = vmax.f32 %v12301_v42, %v12306_v46  ;;  %v12690_v33 = vadd.f32 %v6330_v16, %v12271_v23 }
 0x4a2   : > { %v12676_v48 = vmax.f32 %v15970_v26, %v6216_v39  ;;  %7031 = vmatmul.mubr.bf16.gmra.mrb[48].mxu1 %v12063_v41  ;;  %6927 = vmatprep.mubr.bf16.mxu0 %v15457_v36  ;;  %v15972_v41 = vmax.f32 %v12321_v63, %v12324_v32 }
 0x4a3   : > { %v12687_v47 = vmax.f32 %v15971_v28, %v6218_v6  ;;  %7040 = vmatprep.mubr.bf16.mxu1 %v15457_v36  ;;  %v15973_v28 = vmax.f32 %v12327_v59, %v12330_v27  ;;  %v15975_v27 = vmax.f32 %v12341_v19, %v12346_v53 }
 0x4a4   : > { %v6221_v5 = vpop.f32.mrb[200].mxu0 }
 0x4a5   : > { %v6222_v42 = vadd.f32 %v6221_v5, %v12313_v29  ;;  %v6334_v46 = vpop.f32.mrb[200].mxu1  ;;  %v6223_v4 = vpop.f32.mrb[201].mxu0 }
 0x4a6   : > { %v6224_v10 = vadd.f32 %v6223_v4, %v12313_v29  ;;  %v6336_v39 = vpop.f32.mrb[201].mxu1  ;;  %v6225_v3 = vpop.f32.mrb[202].mxu0  ;;  %v12707_v44 = vadd.f32 %v6334_v46, %v12313_v29 }
 0x4a7   : > { %v12704_v25 = vmax.f32 %v15972_v41, %v6222_v42  ;;  %v6226_v6 = vadd.f32 %v6225_v3, %v12318_v51  ;;  %v6338_v16 = vpop.f32.mrb[202].mxu1  ;;  %v6227_v26 = vpop.f32.mrb[203].mxu0  ;;  %v12716_v4 = vadd.f32 %v6336_v39, %v12313_v29  ;;  %v15974_v42 = vmax.f32 %v12333_v24, %v12338_v9 }
 0x4a8   : > { %v12713_v5 = vmax.f32 %v15973_v28, %v6224_v10  ;;  %v6228_v13 = vadd.f32 %v6227_v26, %v12318_v51  ;;  %v6340_v63 = vpop.f32.mrb[203].mxu1  ;;  %v12727_v3 = vadd.f32 %v6338_v16, %v12318_v51 }
 0x4a9   : > { %v12724_v46 = vmax.f32 %v15974_v42, %v6226_v6  ;;  %6928 = vmatmul.mubr.bf16.gmra.mrb[52].mxu0 %v12088_v18  ;;  %v12738_v39 = vadd.f32 %v6340_v63, %v12318_v51 }
 0x4aa   : > { %v12735_v10 = vmax.f32 %v15975_v27, %v6228_v13  ;;  %7041 = vmatmul.mubr.bf16.gmra.mrb[52].mxu1 %v12088_v18  ;;  %6937 = vmatprep.mubr.bf16.mxu0 %v15457_v36  ;;  %v15976_v18 = vmax.f32 %v12361_v35, %v12364_v40 }
 0x4ab   : > { %7050 = vmatprep.mubr.bf16.mxu1 %v15457_v36 }
 0x4ac   : > { %v6231_v41 = vpop.f32.mrb[204].mxu0 }
 0x4ad   : > { %v6232_v19 = vadd.f32 %v6231_v41, %v12353_v7  ;;  %v6344_v53 = vpop.f32.mrb[204].mxu1  ;;  %v6233_v13 = vpop.f32.mrb[205].mxu0  ;;  %v15977_v41 = vmax.f32 %v12367_v14, %v12370_v56  ;;  %v15981_v14 = vld [vmem:[#allocation111_spill] sm:$0xff] }
 0x4ae   : > { %v6234_v6 = vadd.f32 %v6233_v13, %v12353_v7  ;;  %v6346_v16 = vpop.f32.mrb[205].mxu1  ;;  %v6235_v26 = vpop.f32.mrb[206].mxu0  ;;  %v12755_v63 = vadd.f32 %v6344_v53, %v12353_v7  ;;  %v15979_v53 = vld [vmem:[#allocation42_spill] sm:$0xff] }
 0x4af   : > { %v12752_v28 = vmax.f32 %v15976_v18, %v6232_v19  ;;  %v6236_v42 = vadd.f32 %v6235_v26, %v12358_v31  ;;  %v6348_v27 = vpop.f32.mrb[206].mxu1  ;;  %v6237_v24 = vpop.f32.mrb[207].mxu0  ;;  %v12764_v13 = vadd.f32 %v6346_v16, %v12353_v7  ;;  %v15978_v19 = vld [vmem:[#allocation41_spill] sm:$0xff]  ;;  %v15983_v16 = vld [vmem:[#allocation44_spill] sm:$0xff] }
 0x4b0   : > { %v12761_v9 = vmax.f32 %v15977_v41, %v6234_v6  ;;  %v6238_v59 = vadd.f32 %v6237_v24, %v12358_v31  ;;  %v6350_v35 = vpop.f32.mrb[207].mxu1  ;;  %v15980_v18 = vmax.f32 %v15978_v19, %v15979_v53  ;;  %v12775_v32 = vadd.f32 %v6348_v27, %v12358_v31  ;;  %v15982_v6 = vld [vmem:[#allocation43_spill] sm:$0xff] }
 0x4b1   : > { %6938 = vmatmul.mubr.bf16.gmra.mrb[56].mxu0 %v15981_v14  ;;  %v15984_v24 = vmax.f32 %v15982_v6, %v15983_v16  ;;  %v12786_v40 = vadd.f32 %v6350_v35, %v12358_v31 }
 0x4b2   : > { %v12772_v26 = vmax.f32 %v15980_v18, %v6236_v42  ;;  %7051 = vmatmul.mubr.bf16.gmra.mrb[56].mxu1 %v15981_v14  ;;  %6947 = vmatprep.mubr.bf16.mxu0 %v15457_v36  ;;  %v15987_v14 = vld [vmem:[#allocation47_spill] sm:$0xff] }
 0x4b3   : > { %v12783_v41 = vmax.f32 %v15984_v24, %v6238_v59  ;;  %15986 = vst [vmem:[#allocation68_spill] sm:$0xff] %v12786_v40  ;;  %7060 = vmatprep.mubr.bf16.mxu1 %v15457_v36  ;;  %v15988_v24 = vld [vmem:[#allocation49_spill] sm:$0xff] }
 0x4b4   : > { %v6241_v19 = vpop.f32.mrb[208].mxu0  ;;  %v15989_v56 = vmax.f32 %v15987_v14, %v15988_v24 }
 0x4b5   : > { %15985 = vst [vmem:[#allocation67_spill] sm:$0xff] %v12783_v41  ;;  %v6242_v53 = vadd.f32 %v6241_v19, %v12393_v11  ;;  %v6354_v59 = vpop.f32.mrb[208].mxu1  ;;  %v6243_v18 = vpop.f32.mrb[209].mxu0  ;;  %v15994_v19 = vld [vmem:[#allocation50_spill] sm:$0xff] }
 0x4b6   : > { %v6244_v35 = vadd.f32 %v6243_v18, %v12393_v11  ;;  %v6356_v6 = vpop.f32.mrb[209].mxu1  ;;  %v6245_v16 = vpop.f32.mrb[210].mxu0  ;;  %v12803_v42 = vadd.f32 %v6354_v59, %v12393_v11  ;;  %v15995_v58 = vmax.f32 %v15993_v55, %v15994_v19  ;;  %v15999_v59 = vld [vmem:[#allocation9_spill] sm:$0xff]  ;;  %v16003_v55 = vld [vmem:[#allocation116_spill] sm:$0xff] }
 0x4b7   : > { %v12800_v43 = vmax.f32 %v15989_v56, %v6242_v53  ;;  %v6246_v54 = vadd.f32 %v6245_v16, %v15992_v12  ;;  %v6358_v27 = vpop.f32.mrb[210].mxu1  ;;  %v6247_v62 = vpop.f32.mrb[211].mxu0  ;;  %v12812_v18 = vadd.f32 %v6356_v6, %v12393_v11  ;;  %v15998_v53 = vld [vmem:[#allocation51_spill] sm:$0xff]  ;;  %v16005_v6 = vld [vmem:[#allocation145_spill] sm:$0xff] }
 0x4b8   : > { %15991 = vst [vmem:[#allocation78_spill] sm:$0xff] %v12803_v42  ;;  %v12809_v52 = vmax.f32 %v15995_v58, %v6244_v35  ;;  %v6248_v40 = vadd.f32 %v6247_v62, %v15992_v12  ;;  %v6360_v14 = vpop.f32.mrb[211].mxu1  ;;  %v16000_v24 = vmax.f32 %v15998_v53, %v15999_v59  ;;  %v12823_v41 = vadd.f32 %v6358_v27, %v15992_v12  ;;  %v16004_v35 = vld [vmem:[#allocation7_spill] sm:$0xff] }
 0x4b9   : > { %15990 = vst [vmem:[#allocation77_spill] sm:$0xff] %v12800_v43  ;;  %15997 = vst [vmem:[#allocation72_spill] sm:$0xff] %v12812_v18  ;;  %6948 = vmatmul.mubr.bf16.gmra.mrb[60].mxu0 %v16003_v55  ;;  %v16006_v62 = vmax.f32 %v16004_v35, %v16005_v6  ;;  %v12834_v56 = vadd.f32 %v6360_v14, %v15992_v12 }
 0x4ba   : > { %15996 = vst [vmem:[#allocation71_spill] sm:$0xff] %v12809_v52  ;;  %v12820_v16 = vmax.f32 %v16000_v24, %v6246_v54  ;;  %16002 = vst [vmem:[#allocation85_spill] sm:$0xff] %v12823_v41  ;;  %7061 = vmatmul.mubr.bf16.gmra.mrb[60].mxu1 %v16003_v55  ;;  %7103 = vmatprep.mubr.bf16.mxu0 %v15457_v36  ;;  %v16009_v55 = vld [vmem:[#allocation148_spill] sm:$0xff]  ;;  %v16014_v41 = vld [vmem:[#allocation147_spill] sm:$0xff] }
 0x4bb   : > { %v12831_v19 = vmax.f32 %v16006_v62, %v6248_v40  ;;  %16008 = vst [vmem:[#allocation76_spill] sm:$0xff] %v12834_v56  ;;  %7216 = vmatprep.mubr.bf16.mxu1 %v15457_v36  ;;  %v16010_v62 = vld [vmem:[#allocation149_spill] sm:$0xff] }
 0x4bc   : > { %16001 = vst [vmem:[#allocation82_spill] sm:$0xff] %v12820_v16  ;;  %v6251_v53 = vpop.f32.mrb[212].mxu0  ;;  %v16011_v58 = vmax.f32 %v16009_v55, %v16010_v62 }
 0x4bd   : > { %16007 = vst [vmem:[#allocation75_spill] sm:$0xff] %v12831_v19  ;;  %v6252_v59 = vadd.f32 %v6251_v53, %v12433_v2  ;;  %v6364_v40 = vpop.f32.mrb[212].mxu1  ;;  %v6253_v24 = vpop.f32.mrb[213].mxu0  ;;  %v16015_v19 = vld [vmem:[#allocation150_spill] sm:$0xff]  ;;  %v16016_v53 = vld [vmem:[#allocation151_spill] sm:$0xff] }
 0x4be   : > { %v6254_v14 = vadd.f32 %v6253_v24, %v12433_v2  ;;  %v6366_v35 = vpop.f32.mrb[213].mxu1  ;;  %v6255_v6 = vpop.f32.mrb[214].mxu0  ;;  %v12851_v54 = vadd.f32 %v6364_v40, %v12433_v2  ;;  %v16017_v52 = vmax.f32 %v16015_v19, %v16016_v53  ;;  %v16021_v40 = vld [vmem:[#allocation153_spill] sm:$0xff]  ;;  %v16026_v19 = vld [vmem:[#allocation154_spill] sm:$0xff] }
 0x4bf   : > { %v12848_v18 = vmax.f32 %v16011_v58, %v6252_v59  ;;  %v6256_v16 = vadd.f32 %v6255_v6, %v16014_v41  ;;  %v6368_v27 = vpop.f32.mrb[214].mxu1  ;;  %v6257_v56 = vpop.f32.mrb[215].mxu0  ;;  %v12860_v24 = vadd.f32 %v6366_v35, %v12433_v2  ;;  %v16020_v59 = vld [vmem:[#allocation152_spill] sm:$0xff] }
 0x4c0   : > { %16013 = vst [vmem:[#allocation42_spill] sm:$0xff] %v12851_v54  ;;  %v12857_v12 = vmax.f32 %v16017_v52, %v6254_v14  ;;  %v6258_v42 = vadd.f32 %v6257_v56, %v16014_v41  ;;  %v6370_v55 = vpop.f32.mrb[215].mxu1  ;;  %v16022_v62 = vmax.f32 %v16020_v59, %v16021_v40  ;;  %v12871_v43 = vadd.f32 %v6368_v27, %v16014_v41  ;;  %v12876_v52 = vld [vmem:[%s15164_s3] sm:$0xff]   ;;  %v16027_v14 = vld [vmem:[#allocation155_spill] sm:$0xff]  ;;  %v16031_v27 = vld [vmem:[#allocation10_spill] sm:$0xff] }
 0x4c1   : > { %16012 = vst [vmem:[#allocation41_spill] sm:$0xff] %v12848_v18  ;;  %16019 = vst [vmem:[#allocation43_spill] sm:$0xff] %v12860_v24  ;;  %7104 = vmatmul.mubr.bf16.vlgmr.msra.gmra.mrb[64].mxu0 %v12876_v52  ;;  %v16028_v35 = vmax.f32 %v16026_v19, %v16027_v14  ;;  %v16032_v40 = vld [vmem:[#allocation11_spill] sm:$0xff]  ;;  %v16046_v54 = vld [vmem:[#allocation5_spill] sm:$0xff] }
 0x4c2   : > { %16018 = vst [vmem:[#allocation111_spill] sm:$0xff] %v12857_v12  ;;  %v12868_v6 = vmax.f32 %v16022_v62, %v6256_v16  ;;  %16024 = vst [vmem:[#allocation47_spill] sm:$0xff] %v12871_v43  ;;  %v12887_v16 = vadd.f32 %v6370_v55, %v16014_v41  ;;  %7217 = vmatmul.mubr.bf16.vlgmr.msra.gmra.mrb[64].mxu1 %v12876_v52  ;;  %7298 = vmatpush1.bf16.msra.mxu0 %v16031_v27  ;;  %v16033_v62 = vld [vmem:[#allocation18_spill] sm:$0xff]  ;;  %v16034_v19 = vld [vmem:[#allocation15_spill] sm:$0xff] }
 0x4c3   : > { %16025 = vst [vmem:[#allocation49_spill] sm:$0xff] %v12876_v52  ;;  %v12884_v53 = vmax.f32 %v16028_v35, %v6258_v42  ;;  %7411 = vmatpush1.bf16.msra.mxu1 %v16032_v40  ;;  %7299 = vmatprep.subr.bf16.mxu0 %v16033_v62  ;;  %v16035_v55 = vld [vmem:[#allocation58_spill] sm:$0xff]  ;;  %v16037_v52 = vld [vmem:[#allocation61_spill] sm:$0xff]  ;;  %v16044_v12 = vld [vmem:[#allocation87_spill] sm:$0xff] }
 0x4c4   : > { %16023 = vst [vmem:[#allocation44_spill] sm:$0xff] %v12868_v6  ;;  %16030 = vst [vmem:[#allocation50_spill] sm:$0xff] %v12887_v16  ;;  %7412 = vmatprep.subr.bf16.mxu1 %v16034_v19  ;;  %v6261_v42 = vpop.f32.mrb[216].mxu0  ;;  %7113 = vmatprep.mubr.bf16.mxu0 %v15457_v36  ;;  %v16036_v40 = vld [vmem:[#allocation14_spill] sm:$0xff]  ;;  %v16045_v41 = vld [vmem:[#allocation156_spill] sm:$0xff] }
 0x4c5   : > { %16029 = vst [vmem:[#allocation127_spill] sm:$0xff] %v12884_v53  ;;  %v6262_v14 = vadd.f32 %v6261_v42, %v16035_v55  ;;  %v6374_v35 = vpop.f32.mrb[216].mxu1  ;;  %v6263_v58 = vpop.f32.mrb[217].mxu0  ;;  %7226 = vmatprep.mubr.bf16.mxu1 %v15457_v36  ;;  %v16038_v43 = vld [vmem:[#allocation62_spill] sm:$0xff]  ;;  %v16042_v53 = vld [vmem:[#allocation13_spill] sm:$0xff]  ;;  %v16043_v42 = vld [vmem:[#allocation59_spill] sm:$0xff] }
 0x4c6   : > { %v6264_v27 = vadd.f32 %v6263_v58, %v16035_v55  ;;  %v6376_v59 = vpop.f32.mrb[217].mxu1  ;;  %7300 = vmatpush1.bf16.msra.mxu0 %v16036_v40  ;;  %v6265_v62 = vpop.f32.mrb[218].mxu0  ;;  %v16039_v56 = vmax.f32 %v16037_v52, %v16038_v43  ;;  %v12909_v19 = vadd.f32 %v6374_v35, %v16035_v55  ;;  %v16047_v40 = vmax.f32 %v16045_v41, %v16046_v54  ;;  %v16050_v52 = vld [vmem:[#allocation16_spill] sm:$0xff]  ;;  %v16051_v35 = vld [vmem:[#allocation6_spill] sm:$0xff] }
 0x4c7   : > { %7413 = vmatpush1.bf16.msra.mxu1 %v16042_v53  ;;  %v6266_v6 = vadd.f32 %v6265_v62, %v16043_v42  ;;  %v6378_v24 = vpop.f32.mrb[218].mxu1  ;;  %7301 = vmatprep.subr.bf16.mxu0 %v16044_v12  ;;  %v6267_v58 = vpop.f32.mrb[219].mxu0  ;;  %v12920_v43 = vadd.f32 %v6376_v59, %v16035_v55  ;;  %v16052_v62 = vld [vmem:[#allocation65_spill] sm:$0xff]  ;;  %v16056_v54 = vld [vmem:[#allocation158_spill] sm:$0xff] }
 0x4c8   : > { %v12906_v16 = vmax.f32 %v16039_v56, %v6262_v14  ;;  %16041 = vst [vmem:[#allocation9_spill] sm:$0xff] %v12909_v19  ;;  %v12917_v18 = vmax.f32 %v16047_v40, %v6264_v27  ;;  %7414 = vmatprep.subr.bf16.mxu1 %v16050_v52  ;;  %v6268_v56 = vadd.f32 %v6267_v58, %v16043_v42  ;;  %v6380_v14 = vpop.f32.mrb[219].mxu1  ;;  %v16057_v27 = vld [vmem:[#allocation66_spill] sm:$0xff]  ;;  %v16058_v40 = vld [vmem:[#allocation157_spill] sm:$0xff] }
 0x4c9   : > { %16049 = vst [vmem:[#allocation7_spill] sm:$0xff] %v12920_v43  ;;  %v16053_v12 = vmax.f32 %v16051_v35, %v16052_v62  ;;  %v12932_v41 = vadd.f32 %v6378_v24, %v16043_v42  ;;  %7114 = vmatmul.mubr.bf16.gmra.mrb[68].mxu0 %v16056_v54  ;;  %v16059_v58 = vmax.f32 %v16057_v27, %v16058_v40  ;;  %v16063_v35 = vld [vmem:[#allocation21_spill] sm:$0xff]  ;;  %v16064_v62 = vld [vmem:[#allocation91_spill] sm:$0xff]  ;;  %v16065_v27 = vld [vmem:[#allocation88_spill] sm:$0xff] }
 0x4ca   : > { %16040 = vst [vmem:[#allocation51_spill] sm:$0xff] %v12906_v16  ;;  %16048 = vst [vmem:[#allocation116_spill] sm:$0xff] %v12917_v18  ;;  %v12943_v53 = vadd.f32 %v6380_v14, %v16043_v42  ;;  %7227 = vmatmul.mubr.bf16.gmra.mrb[68].mxu1 %v16056_v54  ;;  %7123 = vmatprep.mubr.bf16.mxu0 %v15457_v36  ;;  %v16066_v14 = vld [vmem:[#allocation8_spill] sm:$0xff]  ;;  %v16068_v54 = vld [vmem:[#allocation69_spill] sm:$0xff] }
 0x4cb   : > { %v12929_v2 = vmax.f32 %v16053_v12, %v6266_v6  ;;  %16055 = vst [vmem:[#allocation148_spill] sm:$0xff] %v12932_v41  ;;  %v12940_v52 = vmax.f32 %v16059_v58, %v6268_v56  ;;  %v16062_v6 = vld [vmem:[#allocation12_spill] sm:$0xff]  ;;  %7415 = vmatpush1.bf16.msra.mxu1 %v16063_v35  ;;  %7236 = vmatprep.mubr.bf16.mxu1 %v15457_v36  ;;  %v16067_v35 = vld [vmem:[#allocation17_spill] sm:$0xff]  ;;  %v16072_v43 = vld [vmem:[#allocation95_spill] sm:$0xff] }
 0x4cc   : > { %16061 = vst [vmem:[#allocation150_spill] sm:$0xff] %v12943_v53  ;;  %7302 = vmatpush1.bf16.msra.mxu0 %v16062_v6  ;;  %7416 = vmatprep.subr.bf16.mxu1 %v16065_v27  ;;  %v6271_v56 = vpop.f32.mrb[220].mxu0  ;;  %v16069_v12 = vmax.f32 %v12537_v15, %v16068_v54  ;;  %v16073_v18 = vld [vmem:[#allocation70_spill] sm:$0xff]  ;;  %v16074_v42 = vld [vmem:[#allocation63_spill] sm:$0xff]  ;;  %v16076_v54 = vld [vmem:[#allocation92_spill] sm:$0xff] }
 0x4cd   : > { %16054 = vst [vmem:[#allocation145_spill] sm:$0xff] %v12929_v2  ;;  %16060 = vst [vmem:[#allocation149_spill] sm:$0xff] %v12940_v52  ;;  %7303 = vmatprep.subr.bf16.mxu0 %v16064_v62  ;;  %v6272_v40 = vadd.f32 %v6271_v56, %v16066_v14  ;;  %v6384_v58 = vpop.f32.mrb[220].mxu1  ;;  %v6273_v59 = vpop.f32.mrb[221].mxu0  ;;  %v16070_v52 = vld [vmem:[#allocation90_spill] sm:$0xff]  ;;  %v16071_v56 = vld [vmem:[#allocation60_spill] sm:$0xff] }
 0x4ce   : > { %v6274_v6 = vadd.f32 %v6273_v59, %v16066_v14  ;;  %v6386_v24 = vpop.f32.mrb[221].mxu1  ;;  %v6275_v62 = vpop.f32.mrb[222].mxu0  ;;  %v12965_v27 = vadd.f32 %v6384_v58, %v16066_v14  ;;  %v16077_v58 = vld [vmem:[#allocation64_spill] sm:$0xff] }
 0x4cf   : > { %v12962_v53 = vmax.f32 %v16069_v12, %v6272_v40  ;;  %7417 = vmatpush1.bf16.msra.mxu1 %v16070_v52  ;;  %v6276_v41 = vadd.f32 %v6275_v62, %v16071_v56  ;;  %v6388_v2 = vpop.f32.mrb[222].mxu1  ;;  %v6277_v59 = vpop.f32.mrb[223].mxu0  ;;  %v12976_v15 = vadd.f32 %v6386_v24, %v16066_v14  ;;  %v16078_v62 = vld [vmem:[#allocation73_spill] sm:$0xff] }
 0x4d0   : > { %7304 = vmatpush1.bf16.msra.mxu0 %v16067_v35  ;;  %v16075_v35 = vmax.f32 %v16073_v18, %v16074_v42  ;;  %7418 = vmatprep.subr.bf16.mxu1 %v16076_v54  ;;  %v6278_v12 = vadd.f32 %v6277_v59, %v16071_v56  ;;  %v6390_v40 = vpop.f32.mrb[223].mxu1  ;;  %v12988_v18 = vadd.f32 %v6388_v2, %v16071_v56  ;;  %v16081_v42 = vld [vmem:[#allocation160_spill] sm:$0xff] }
 0x4d1   : > { %7305 = vmatprep.subr.bf16.mxu0 %v16072_v43  ;;  %v16079_v43 = vmax.f32 %v16077_v58, %v16078_v62  ;;  %7124 = vmatmul.mubr.bf16.gmra.mrb[72].mxu0 %v16081_v42  ;;  %v12999_v52 = vadd.f32 %v6390_v40, %v16071_v56  ;;  %v16088_v58 = vld [vmem:[#allocation94_spill] sm:$0xff] }
 0x4d2   : > { %v12973_v19 = vmax.f32 %v16075_v35, %v6274_v6  ;;  %16080 = vst [vmem:[#allocation151_spill] sm:$0xff] %v12988_v18  ;;  %v16082_v6 = vld [vmem:[#allocation74_spill] sm:$0xff]  ;;  %v16083_v35 = vld [vmem:[#allocation159_spill] sm:$0xff]  ;;  %7237 = vmatmul.mubr.bf16.gmra.mrb[72].mxu1 %v16081_v42  ;;  %7133 = vmatprep.mubr.bf16.mxu0 %v15457_v36  ;;  %v16094_v42 = vld [vmem:[#allocation104_spill] sm:$0xff] }
 0x4d3   : > { %v12985_v16 = vmax.f32 %v16079_v43, %v6276_v41  ;;  %v16084_v59 = vmax.f32 %v16082_v6, %v16083_v35  ;;  %16086 = vst [vmem:[#allocation153_spill] sm:$0xff] %v12999_v52  ;;  %v16087_v41 = vld [vmem:[#allocation89_spill] sm:$0xff]  ;;  %7419 = vmatpush1.bf16.msra.mxu1 %v16088_v58  ;;  %v16089_v62 = vld [vmem:[#allocation102_spill] sm:$0xff]  ;;  %v16090_v6 = vld [vmem:[#allocation96_spill] sm:$0xff]  ;;  %7246 = vmatprep.mubr.bf16.mxu1 %v15457_v36 }
 0x4d4   : > { %7306 = vmatpush1.bf16.msra.mxu0 %v16087_v41  ;;  %7420 = vmatprep.subr.bf16.mxu1 %v16090_v6  ;;  %v16091_v58 = vld [vmem:[#allocation93_spill] sm:$0xff]  ;;  %v16092_v43 = vmax.f32 %v12592_v45, %v12595_v37  ;;  %v16093_v52 = vld [vmem:[#allocation99_spill] sm:$0xff] }
 0x4d5   : > { %v12996_v54 = vmax.f32 %v16084_v59, %v6278_v12  ;;  %7307 = vmatprep.subr.bf16.mxu0 %v16089_v62  ;;  %v6427_v12 = vpop.f32.mrb[224].mxu0  ;;  %v6540_v35 = vpop.f32.mrb[224].mxu1  ;;  %v16096_v37 = vld [vmem:[#allocation131_spill] sm:$0xff] }
 0x4d6   : > { %v6428_v40 = vadd.f32 %v6427_v12, %v12219_v8  ;;  %v6429_v59 = vpop.f32.mrb[225].mxu0  ;;  %v6542_v2 = vpop.f32.mrb[225].mxu1  ;;  %v13021_v6 = vadd.f32 %v6540_v35, %v12219_v8 }
 0x4d7   : > { %16085 = vst [vmem:[#allocation152_spill] sm:$0xff] %v12996_v54  ;;  %v6430_v41 = vadd.f32 %v6429_v59, %v12219_v8  ;;  %v6431_v62 = vpop.f32.mrb[226].mxu0  ;;  %7421 = vmatpush1.bf16.msra.mxu1 %v16093_v52  ;;  %v6544_v54 = vpop.f32.mrb[226].mxu1  ;;  %v13032_v45 = vadd.f32 %v6542_v2, %v12219_v8  ;;  %v16098_v2 = vmax.f32 %v12626_v60, %v12629_v22  ;;  %v16102_v60 = vld [vmem:[#allocation134_spill] sm:$0xff] }
 0x4d8   : > { %7308 = vmatpush1.bf16.msra.mxu0 %v16091_v58  ;;  %v13018_v24 = vmax.f32 %v16092_v43, %v6428_v40  ;;  %v6432_v12 = vadd.f32 %v6431_v62, %v12223_v17  ;;  %v6433_v59 = vpop.f32.mrb[227].mxu0  ;;  %v16095_v58 = vmax.f32 %v12603_v61, %v12606_v49  ;;  %7422 = vmatprep.subr.bf16.mxu1 %v16096_v37  ;;  %v6546_v40 = vpop.f32.mrb[227].mxu1  ;;  %v16106_v49 = vld [vmem:[#allocation31_spill] sm:$0xff] }
 0x4d9   : > { %7309 = vmatprep.subr.bf16.mxu0 %v16094_v42  ;;  %v6434_v43 = vadd.f32 %v6433_v59, %v12223_v17  ;;  %v16097_v42 = vmax.f32 %v12615_v0, %v12618_v21  ;;  %v13044_v61 = vadd.f32 %v6544_v54, %v12223_v17  ;;  %7134 = vmatmul.mubr.bf16.gmra.mrb[76].mxu0 %v12634_v1  ;;  %v16099_v0 = vld [vmem:[#allocation97_spill] sm:$0xff]  ;;  %v16100_v54 = vld [vmem:[#allocation24_spill] sm:$0xff] }
 0x4da   : > { %v13029_v18 = vmax.f32 %v16095_v58, %v6430_v41  ;;  %v13055_v62 = vadd.f32 %v6546_v40, %v12223_v17  ;;  %7247 = vmatmul.mubr.bf16.gmra.mrb[76].mxu1 %v12634_v1  ;;  %7143 = vmatprep.mubr.bf16.mxu0 %v15457_v36  ;;  %v16105_v59 = vld [vmem:[#allocation20_spill] sm:$0xff] }
 0x4db   : > { %v13041_v35 = vmax.f32 %v16097_v42, %v6432_v12  ;;  %v13052_v41 = vmax.f32 %v16098_v2, %v6434_v43  ;;  %7423 = vmatpush1.bf16.msra.mxu1 %v16100_v54  ;;  %v16101_v12 = vld [vmem:[#allocation28_spill] sm:$0xff]  ;;  %7256 = vmatprep.mubr.bf16.mxu1 %v15457_v36  ;;  %v16103_v2 = vld [vmem:[#allocation19_spill] sm:$0xff]  ;;  %v16104_v54 = vmax.f32 %v12653_v20, %v12656_v34 }
 0x4dc   : > { %7310 = vmatpush1.bf16.msra.mxu0 %v16099_v0  ;;  %7424 = vmatprep.subr.bf16.mxu1 %v16102_v60  ;;  %v6437_v22 = vpop.f32.mrb[228].mxu0  ;;  %v16108_v34 = vld [vmem:[#allocation32_spill] sm:$0xff] }
 0x4dd   : > { %7311 = vmatprep.subr.bf16.mxu0 %v16101_v12  ;;  %v6438_v58 = vadd.f32 %v6437_v22, %v12265_v57  ;;  %v6550_v37 = vpop.f32.mrb[228].mxu1  ;;  %v6439_v43 = vpop.f32.mrb[229].mxu0 }
 0x4de   : > { %v6440_v40 = vadd.f32 %v6439_v43, %v12265_v57  ;;  %v6552_v42 = vpop.f32.mrb[229].mxu1  ;;  %v6441_v0 = vpop.f32.mrb[230].mxu0  ;;  %v13077_v60 = vadd.f32 %v6550_v37, %v12265_v57 }
 0x4df   : > { %v13074_v12 = vmax.f32 %v16104_v54, %v6438_v58  ;;  %7425 = vmatpush1.bf16.msra.mxu1 %v16105_v59  ;;  %v6442_v22 = vadd.f32 %v6441_v0, %v12271_v23  ;;  %v6554_v21 = vpop.f32.mrb[230].mxu1  ;;  %v6443_v43 = vpop.f32.mrb[231].mxu0  ;;  %v13088_v20 = vadd.f32 %v6552_v42, %v12265_v57  ;;  %v16110_v42 = vmax.f32 %v12687_v47, %v12690_v33 }
 0x4e0   : > { %7312 = vmatpush1.bf16.msra.mxu0 %v16103_v2  ;;  %v16107_v2 = vmax.f32 %v12664_v30, %v12667_v38  ;;  %7636 = vmatprep.subr.bf16.mxu1 %v16108_v34  ;;  %v6444_v58 = vadd.f32 %v6443_v43, %v12271_v23  ;;  %v6556_v37 = vpop.f32.mrb[231].mxu1  ;;  %v13100_v30 = vadd.f32 %v6554_v21, %v12271_v23  ;;  %v13105_v38 = vld [vmem:[%s15164_s3 + $0x20] sm:$0xff]  }
 0x4e1   : > { %7523 = vmatprep.subr.bf16.mxu0 %v16106_v49  ;;  %v16109_v49 = vmax.f32 %v12676_v48, %v12679_v50  ;;  %7144 = vmatmul.mubr.bf16.gmra.mrb[80].mxu0 %v13105_v38  ;;  %v13116_v48 = vadd.f32 %v6556_v37, %v12271_v23  ;;  %v16112_v37 = vmax.f32 %v12704_v25, %v12707_v44 }
 0x4e2   : > { %v13085_v52 = vmax.f32 %v16107_v2, %v6440_v40  ;;  %v13113_v54 = vmax.f32 %v16110_v42, %v6444_v58  ;;  %7257 = vmatmul.mubr.bf16.gmra.mrb[80].mxu1 %v13105_v38  ;;  %7153 = vmatprep.mubr.bf16.mxu0 %v15457_v36 }
 0x4e3   : > { %v13097_v0 = vmax.f32 %v16109_v49, %v6442_v22  ;;  %16111 = vst [vmem:[#allocation154_spill] sm:$0xff] %v13116_v48  ;;  %7266 = vmatprep.mubr.bf16.mxu1 %v15457_v36 }
 0x4e4   : > { %v6447_v22 = vpop.f32.mrb[232].mxu0 }
 0x4e5   : > { %v6448_v47 = vadd.f32 %v6447_v22, %v12313_v29  ;;  %v6560_v33 = vpop.f32.mrb[232].mxu1  ;;  %v6449_v43 = vpop.f32.mrb[233].mxu0  ;;  %v16113_v22 = vmax.f32 %v12713_v5, %v12716_v4  ;;  %v13158_v5 = vld [vmem:[%s15164_s3 + $0x28] sm:$0xff]  }
 0x4e6   : > { %v6450_v2 = vadd.f32 %v6449_v43, %v12313_v29  ;;  %v6562_v34 = vpop.f32.mrb[233].mxu1  ;;  %v6451_v58 = vpop.f32.mrb[234].mxu0  ;;  %v13133_v42 = vadd.f32 %v6560_v33, %v12313_v29  ;;  %16115 = vst [vmem:[#allocation155_spill] sm:$0xff] %v13158_v5 }
 0x4e7   : > { %v13130_v49 = vmax.f32 %v16112_v37, %v6448_v47  ;;  %v6452_v50 = vadd.f32 %v6451_v58, %v12318_v51  ;;  %v6564_v21 = vpop.f32.mrb[234].mxu1  ;;  %v6453_v40 = vpop.f32.mrb[235].mxu0  ;;  %v13142_v43 = vadd.f32 %v6562_v34, %v12313_v29  ;;  %v16114_v47 = vmax.f32 %v12724_v46, %v12727_v3 }
 0x4e8   : > { %v13139_v59 = vmax.f32 %v16113_v22, %v6450_v2  ;;  %v6454_v48 = vadd.f32 %v6453_v40, %v12318_v51  ;;  %v6566_v25 = vpop.f32.mrb[235].mxu1  ;;  %v13153_v58 = vadd.f32 %v6564_v21, %v12318_v51  ;;  %v16116_v40 = vmax.f32 %v12735_v10, %v12738_v39 }
 0x4e9   : > { %v13150_v33 = vmax.f32 %v16114_v47, %v6452_v50  ;;  %7154 = vmatmul.mubr.bf16.gmra.mrb[84].mxu0 %v13158_v5  ;;  %v13169_v46 = vadd.f32 %v6566_v25, %v12318_v51  ;;  %v16118_v25 = vmax.f32 %v12752_v28, %v12755_v63 }
 0x4ea   : > { %v13166_v2 = vmax.f32 %v16116_v40, %v6454_v48  ;;  %7267 = vmatmul.mubr.bf16.gmra.mrb[84].mxu1 %v13158_v5  ;;  %7163 = vmatprep.mubr.bf16.mxu0 %v15457_v36 }
 0x4eb   : > { %16117 = vst [vmem:[#allocation10_spill] sm:$0xff] %v13169_v46  ;;  %7276 = vmatprep.mubr.bf16.mxu1 %v15457_v36 }
 0x4ec   : > { %v6457_v21 = vpop.f32.mrb[236].mxu0 }
 0x4ed   : > { %v6458_v10 = vadd.f32 %v6457_v21, %v12353_v7  ;;  %v6570_v39 = vpop.f32.mrb[236].mxu1  ;;  %v6459_v48 = vpop.f32.mrb[237].mxu0  ;;  %v16120_v21 = vmax.f32 %v12761_v9, %v12764_v13  ;;  %v13211_v9 = vld [vmem:[%s15164_s3 + $0x30] sm:$0xff]   ;;  %v16133_v13 = vld [vmem:[#allocation78_spill] sm:$0xff] }
 0x4ee   : > { %v6460_v34 = vadd.f32 %v6459_v48, %v12353_v7  ;;  %v6572_v37 = vpop.f32.mrb[237].mxu1  ;;  %v6461_v22 = vpop.f32.mrb[238].mxu0  ;;  %v13186_v40 = vadd.f32 %v6570_v39, %v12353_v7  ;;  %16126 = vst [vmem:[#allocation61_spill] sm:$0xff] %v13211_v9 }
 0x4ef   : > { %v13183_v47 = vmax.f32 %v16118_v25, %v6458_v10  ;;  %v6462_v3 = vadd.f32 %v6461_v22, %v12358_v31  ;;  %v6574_v50 = vpop.f32.mrb[238].mxu1  ;;  %v6463_v4 = vpop.f32.mrb[239].mxu0  ;;  %v13195_v48 = vadd.f32 %v6572_v37, %v12353_v7  ;;  %v16123_v10 = vmax.f32 %v12772_v26, %v12775_v32 }
 0x4f0   : > { %16119 = vst [vmem:[#allocation11_spill] sm:$0xff] %v13186_v40  ;;  %v13192_v44 = vmax.f32 %v16120_v21, %v6460_v34  ;;  %v6464_v46 = vadd.f32 %v6463_v4, %v12358_v31  ;;  %v6576_v28 = vpop.f32.mrb[239].mxu1  ;;  %v13206_v22 = vadd.f32 %v6574_v50, %v12358_v31  ;;  %v16127_v4 = vld [vmem:[#allocation67_spill] sm:$0xff]  ;;  %v16128_v34 = vld [vmem:[#allocation68_spill] sm:$0xff] }
 0x4f1   : > { %16122 = vst [vmem:[#allocation15_spill] sm:$0xff] %v13195_v48  ;;  %v13203_v39 = vmax.f32 %v16123_v10, %v6462_v3  ;;  %7164 = vmatmul.mubr.bf16.gmra.mrb[88].mxu0 %v13211_v9  ;;  %v16129_v37 = vmax.f32 %v16127_v4, %v16128_v34  ;;  %v13222_v32 = vadd.f32 %v6576_v28, %v12358_v31 }
 0x4f2   : > { %16121 = vst [vmem:[#allocation18_spill] sm:$0xff] %v13192_v44  ;;  %16125 = vst [vmem:[#allocation14_spill] sm:$0xff] %v13206_v22  ;;  %7277 = vmatmul.mubr.bf16.gmra.mrb[88].mxu1 %v13211_v9  ;;  %7173 = vmatprep.mubr.bf16.mxu0 %v15457_v36  ;;  %v16137_v22 = vld [vmem:[#allocation46_spill] sm:$0xff] }
 0x4f3   : > { %16124 = vst [vmem:[#allocation58_spill] sm:$0xff] %v13203_v39  ;;  %v13219_v25 = vmax.f32 %v16129_v37, %v6464_v46  ;;  %16131 = vst [vmem:[#allocation13_spill] sm:$0xff] %v13222_v32  ;;  %7286 = vmatprep.mubr.bf16.mxu1 %v15457_v36  ;;  %v16132_v37 = vld [vmem:[#allocation77_spill] sm:$0xff] }
 0x4f4   : > { %v6467_v50 = vpop.f32.mrb[240].mxu0  ;;  %v16134_v63 = vmax.f32 %v16132_v37, %v16133_v13 }
 0x4f5   : > { %16130 = vst [vmem:[#allocation62_spill] sm:$0xff] %v13219_v25  ;;  %v6468_v21 = vadd.f32 %v6467_v50, %v12393_v11  ;;  %v6580_v46 = vpop.f32.mrb[240].mxu1  ;;  %v6469_v10 = vpop.f32.mrb[241].mxu0  ;;  %v16138_v25 = vld [vmem:[#allocation71_spill] sm:$0xff]  ;;  %v16139_v50 = vld [vmem:[#allocation72_spill] sm:$0xff] }
 0x4f6   : > { %v6470_v28 = vadd.f32 %v6469_v10, %v12393_v11  ;;  %v6582_v4 = vpop.f32.mrb[241].mxu1  ;;  %v6471_v34 = vpop.f32.mrb[242].mxu0  ;;  %v13239_v26 = vadd.f32 %v6580_v46, %v12393_v11  ;;  %v16140_v48 = vmax.f32 %v16138_v25, %v16139_v50  ;;  %v16144_v46 = vld [vmem:[#allocation85_spill] sm:$0xff] }
 0x4f7   : > { %v13236_v9 = vmax.f32 %v16134_v63, %v6468_v21  ;;  %v6472_v39 = vadd.f32 %v6471_v34, %v16137_v22  ;;  %v6584_v3 = vpop.f32.mrb[242].mxu1  ;;  %v6473_v32 = vpop.f32.mrb[243].mxu0  ;;  %v13248_v10 = vadd.f32 %v6582_v4, %v12393_v11  ;;  %v16143_v21 = vld [vmem:[#allocation82_spill] sm:$0xff]  ;;  %v16155_v63 = vld [vmem:[#allocation41_spill] sm:$0xff] }
 0x4f8   : > { %16136 = vst [vmem:[#allocation156_spill] sm:$0xff] %v13239_v26  ;;  %v13245_v44 = vmax.f32 %v16140_v48, %v6470_v28  ;;  %v6474_v31 = vadd.f32 %v6473_v32, %v16137_v22  ;;  %v6586_v13 = vpop.f32.mrb[243].mxu1  ;;  %v16145_v37 = vmax.f32 %v16143_v21, %v16144_v46  ;;  %v13259_v40 = vadd.f32 %v6584_v3, %v16137_v22  ;;  %v13264_v48 = vld [vmem:[%s15164_s3 + $0x38] sm:$0xff]   ;;  %v16149_v32 = vld [vmem:[#allocation75_spill] sm:$0xff] }
 0x4f9   : > { %16135 = vst [vmem:[#allocation87_spill] sm:$0xff] %v13236_v9  ;;  %16142 = vst [vmem:[#allocation16_spill] sm:$0xff] %v13248_v10  ;;  %7174 = vmatmul.mubr.bf16.gmra.mrb[92].mxu0 %v13264_v48  ;;  %v16150_v28 = vld [vmem:[#allocation76_spill] sm:$0xff] }
 0x4fa   : > { %16141 = vst [vmem:[#allocation5_spill] sm:$0xff] %v13245_v44  ;;  %v13256_v34 = vmax.f32 %v16145_v37, %v6472_v39  ;;  %16147 = vst [vmem:[#allocation65_spill] sm:$0xff] %v13259_v40  ;;  %v16151_v4 = vmax.f32 %v16149_v32, %v16150_v28  ;;  %v13275_v39 = vadd.f32 %v6586_v13, %v16137_v22  ;;  %7287 = vmatmul.mubr.bf16.gmra.mrb[92].mxu1 %v13264_v48  ;;  %v16154_v37 = vld [vmem:[#allocation146_spill] sm:$0xff]  ;;  %v16160_v40 = vld [vmem:[#allocation147_spill] sm:$0xff] }
 0x4fb   : > { %16148 = vst [vmem:[#allocation66_spill] sm:$0xff] %v13264_v48  ;;  %7329 = vmatprep.mubr.bf16.mxu0 %v15457_v36  ;;  %7442 = vmatprep.mubr.bf16.mxu1 %v15457_v36  ;;  %v16156_v48 = vld [vmem:[#allocation42_spill] sm:$0xff] }
 0x4fc   : > { %16146 = vst [vmem:[#allocation6_spill] sm:$0xff] %v13256_v34  ;;  %v13272_v50 = vmax.f32 %v16151_v4, %v6474_v31  ;;  %16153 = vst [vmem:[#allocation12_spill] sm:$0xff] %v13275_v39  ;;  %v6477_v46 = vpop.f32.mrb[244].mxu0  ;;  %v16157_v10 = vmax.f32 %v16155_v63, %v16156_v48  ;;  %v16166_v48 = vld [vmem:[#allocation44_spill] sm:$0xff] }
 0x4fd   : > { %v6478_v32 = vadd.f32 %v6477_v46, %v16154_v37  ;;  %v6590_v31 = vpop.f32.mrb[244].mxu1  ;;  %v6479_v28 = vpop.f32.mrb[245].mxu0  ;;  %v16162_v46 = vld [vmem:[#allocation43_spill] sm:$0xff] }
 0x4fe   : > { %16152 = vst [vmem:[#allocation157_spill] sm:$0xff] %v13272_v50  ;;  %v6480_v13 = vadd.f32 %v6479_v28, %v16154_v37  ;;  %v6592_v4 = vpop.f32.mrb[245].mxu1  ;;  %v6481_v25 = vpop.f32.mrb[246].mxu0  ;;  %v13292_v3 = vadd.f32 %v6590_v31, %v16154_v37  ;;  %v16161_v50 = vld [vmem:[#allocation111_spill] sm:$0xff] }
 0x4ff   : > { %v13289_v44 = vmax.f32 %v16157_v10, %v6478_v32  ;;  %v6482_v34 = vadd.f32 %v6481_v25, %v16160_v40  ;;  %v6594_v21 = vpop.f32.mrb[246].mxu1  ;;  %v6483_v39 = vpop.f32.mrb[247].mxu0  ;;  %v16163_v22 = vmax.f32 %v16161_v50, %v16162_v46  ;;  %v13301_v28 = vadd.f32 %v6592_v4, %v16154_v37  ;;  %v16167_v32 = vld [vmem:[#allocation47_spill] sm:$0xff]  ;;  %v16171_v50 = vld [vmem:[#allocation49_spill] sm:$0xff]  ;;  %v16173_v4 = vld [vmem:[#allocation50_spill] sm:$0xff] }
 0x500   : > { %16159 = vst [vmem:[#allocation91_spill] sm:$0xff] %v13292_v3  ;;  %v6484_v9 = vadd.f32 %v6483_v39, %v16160_v40  ;;  %v6596_v63 = vpop.f32.mrb[247].mxu1  ;;  %v16168_v31 = vmax.f32 %v16166_v48, %v16167_v32  ;;  %v13312_v11 = vadd.f32 %v6594_v21, %v16160_v40  ;;  %v16178_v48 = vld [vmem:[#allocation23_spill] sm:$0xff]  ;;  %v16179_v32 = vld [vmem:[#allocation105_spill] sm:$0xff] }
 0x501   : > { %16158 = vst [vmem:[#allocation21_spill] sm:$0xff] %v13289_v44  ;;  %v13298_v26 = vmax.f32 %v16163_v22, %v6480_v13  ;;  %16165 = vst [vmem:[#allocation8_spill] sm:$0xff] %v13301_v28  ;;  %7330 = vmatmul.mubr.bf16.vlgmr.msra.gmra.mrb[96].mxu0 %v16171_v50  ;;  %v16172_v13 = vld [vmem:[#allocation127_spill] sm:$0xff]  ;;  %v13323_v10 = vadd.f32 %v6596_v63, %v16160_v40  ;;  %v16187_v28 = vld [vmem:[#allocation109_spill] sm:$0xff] }
 0x502   : > { %v13309_v25 = vmax.f32 %v16168_v31, %v6482_v34  ;;  %16170 = vst [vmem:[#allocation69_spill] sm:$0xff] %v13312_v11  ;;  %v16174_v39 = vmax.f32 %v16172_v13, %v16173_v4  ;;  %7443 = vmatmul.mubr.bf16.vlgmr.msra.gmra.mrb[96].mxu1 %v16171_v50  ;;  %v16177_v34 = vld [vmem:[#allocation22_spill] sm:$0xff]  ;;  %7339 = vmatprep.mubr.bf16.mxu0 %v15457_v36  ;;  %v16182_v22 = vld [vmem:[#allocation51_spill] sm:$0xff]  ;;  %v16183_v50 = vld [vmem:[#allocation9_spill] sm:$0xff] }
 0x503   : > { %16164 = vst [vmem:[#allocation88_spill] sm:$0xff] %v13298_v26  ;;  %16176 = vst [vmem:[#allocation95_spill] sm:$0xff] %v13323_v10  ;;  %7524 = vmatpush1.bf16.msra.mxu0 %v16177_v34  ;;  %7637 = vmatpush1.bf16.msra.mxu1 %v16178_v48  ;;  %v16180_v13 = vld [vmem:[#allocation106_spill] sm:$0xff]  ;;  %v16181_v48 = vld [vmem:[#allocation25_spill] sm:$0xff]  ;;  %v16184_v31 = vmax.f32 %v16182_v22, %v16183_v50 }
 0x504   : > { %16169 = vst [vmem:[#allocation17_spill] sm:$0xff] %v13309_v25  ;;  %v13320_v46 = vmax.f32 %v16174_v39, %v6484_v9  ;;  %7525 = vmatprep.subr.bf16.mxu0 %v16179_v32  ;;  %7638 = vmatprep.subr.bf16.mxu1 %v16180_v13  ;;  %v6487_v9 = vpop.f32.mrb[248].mxu0  ;;  %v16188_v26 = vld [vmem:[#allocation116_spill] sm:$0xff]  ;;  %v16189_v40 = vld [vmem:[#allocation7_spill] sm:$0xff]  ;;  %v16191_v22 = vld [vmem:[#allocation110_spill] sm:$0xff] }
 0x505   : > { %v6488_v63 = vadd.f32 %v6487_v9, %v16035_v55  ;;  %v6600_v4 = vpop.f32.mrb[248].mxu1  ;;  %v6489_v39 = vpop.f32.mrb[249].mxu0  ;;  %7452 = vmatprep.mubr.bf16.mxu1 %v15457_v36  ;;  %v16186_v9 = vld [vmem:[#allocation59_spill] sm:$0xff] }
 0x506   : > { %16175 = vst [vmem:[#allocation90_spill] sm:$0xff] %v13320_v46  ;;  %v6490_v34 = vadd.f32 %v6489_v39, %v16035_v55  ;;  %v6602_v21 = vpop.f32.mrb[249].mxu1  ;;  %v6491_v32 = vpop.f32.mrb[250].mxu0  ;;  %v13345_v13 = vadd.f32 %v6600_v4, %v16035_v55  ;;  %v16185_v46 = vld [vmem:[#allocation26_spill] sm:$0xff]  ;;  %v16192_v4 = vld [vmem:[#allocation145_spill] sm:$0xff] }
 0x507   : > { %7526 = vmatpush1.bf16.msra.mxu0 %v16181_v48  ;;  %v13342_v10 = vmax.f32 %v16184_v31, %v6488_v63  ;;  %7639 = vmatpush1.bf16.msra.mxu1 %v16185_v46  ;;  %v6492_v11 = vadd.f32 %v6491_v32, %v16186_v9  ;;  %v6604_v25 = vpop.f32.mrb[250].mxu1  ;;  %v6493_v39 = vpop.f32.mrb[251].mxu0  ;;  %v16190_v48 = vmax.f32 %v16188_v26, %v16189_v40  ;;  %v16193_v32 = vld [vmem:[#allocation148_spill] sm:$0xff]  ;;  %v16196_v26 = vld [vmem:[#allocation158_spill] sm:$0xff] }
 0x508   : > { %7527 = vmatprep.subr.bf16.mxu0 %v16187_v28  ;;  %v13356_v50 = vadd.f32 %v6602_v21, %v16035_v55  ;;  %7640 = vmatprep.subr.bf16.mxu1 %v16191_v22  ;;  %v6494_v31 = vadd.f32 %v6493_v39, %v16186_v9  ;;  %v6606_v63 = vpop.f32.mrb[251].mxu1  ;;  %v16194_v28 = vmax.f32 %v16192_v4, %v16193_v32  ;;  %v16203_v4 = vld [vmem:[#allocation30_spill] sm:$0xff]  ;;  %v16204_v32 = vld [vmem:[#allocation113_spill] sm:$0xff]  ;;  %v16208_v21 = vld [vmem:[#allocation108_spill] sm:$0xff] }
 0x509   : > { %v13353_v3 = vmax.f32 %v16190_v48, %v6490_v34  ;;  %v13368_v40 = vadd.f32 %v6604_v25, %v16186_v9  ;;  %7340 = vmatmul.mubr.bf16.gmra.mrb[100].mxu0 %v16196_v26  ;;  %v16197_v34 = vld [vmem:[#allocation149_spill] sm:$0xff]  ;;  %v16198_v48 = vld [vmem:[#allocation150_spill] sm:$0xff]  ;;  %v13379_v46 = vadd.f32 %v6606_v63, %v16186_v9 }
 0x50a   : > { %v13365_v44 = vmax.f32 %v16194_v28, %v6492_v11  ;;  %v16199_v39 = vmax.f32 %v16197_v34, %v16198_v48  ;;  %7453 = vmatmul.mubr.bf16.gmra.mrb[100].mxu1 %v16196_v26  ;;  %v16202_v11 = vld [vmem:[#allocation29_spill] sm:$0xff]  ;;  %v16205_v34 = vld [vmem:[#allocation114_spill] sm:$0xff]  ;;  %7349 = vmatprep.mubr.bf16.mxu0 %v15457_v36  ;;  %v16207_v28 = vmax.f32 %v12962_v53, %v12965_v27  ;;  %v16211_v27 = vld [vmem:[#allocation115_spill] sm:$0xff] }
 0x50b   : > { %16195 = vst [vmem:[#allocation70_spill] sm:$0xff] %v13368_v40  ;;  %16201 = vst [vmem:[#allocation92_spill] sm:$0xff] %v13379_v46  ;;  %7528 = vmatpush1.bf16.msra.mxu0 %v16202_v11  ;;  %7641 = vmatpush1.bf16.msra.mxu1 %v16203_v4  ;;  %v16206_v4 = vld [vmem:[#allocation107_spill] sm:$0xff] }
 0x50c   : > { %v13376_v22 = vmax.f32 %v16199_v39, %v6494_v31  ;;  %7529 = vmatprep.subr.bf16.mxu0 %v16204_v32  ;;  %7642 = vmatprep.subr.bf16.mxu1 %v16205_v34  ;;  %v6497_v31 = vpop.f32.mrb[252].mxu0 }
 0x50d   : > { %v6498_v63 = vadd.f32 %v6497_v31, %v16066_v14  ;;  %v6610_v26 = vpop.f32.mrb[252].mxu1  ;;  %v6499_v48 = vpop.f32.mrb[253].mxu0  ;;  %7462 = vmatprep.mubr.bf16.mxu1 %v15457_v36 }
 0x50e   : > { %16200 = vst [vmem:[#allocation63_spill] sm:$0xff] %v13376_v22  ;;  %v6500_v39 = vadd.f32 %v6499_v48, %v16066_v14  ;;  %v6612_v11 = vpop.f32.mrb[253].mxu1  ;;  %v6501_v32 = vpop.f32.mrb[254].mxu0  ;;  %v13401_v34 = vadd.f32 %v6610_v26, %v16066_v14  ;;  %v16209_v22 = vld [vmem:[#allocation118_spill] sm:$0xff]  ;;  %v16212_v26 = vld [vmem:[#allocation151_spill] sm:$0xff] }
 0x50f   : > { %7530 = vmatpush1.bf16.msra.mxu0 %v16206_v4  ;;  %v13398_v25 = vmax.f32 %v16207_v28, %v6498_v63  ;;  %7643 = vmatpush1.bf16.msra.mxu1 %v16208_v21  ;;  %v6502_v31 = vadd.f32 %v6501_v32, %v16071_v56  ;;  %v6614_v46 = vpop.f32.mrb[254].mxu1  ;;  %v6503_v48 = vpop.f32.mrb[255].mxu0  ;;  %v16210_v4 = vmax.f32 %v12973_v19, %v12976_v15  ;;  %v16215_v15 = vld [vmem:[#allocation160_spill] sm:$0xff] }
 0x510   : > { %7531 = vmatprep.subr.bf16.mxu0 %v16209_v22  ;;  %v13412_v53 = vadd.f32 %v6612_v11, %v16066_v14  ;;  %7644 = vmatprep.subr.bf16.mxu1 %v16211_v27  ;;  %v6504_v28 = vadd.f32 %v6503_v48, %v16071_v56  ;;  %v6616_v63 = vpop.f32.mrb[255].mxu1  ;;  %v16213_v22 = vmax.f32 %v12985_v16, %v16212_v26  ;;  %v16216_v11 = vld [vmem:[#allocation152_spill] sm:$0xff]  ;;  %v13440_v16 = vld [vmem:[%s15164_s3 + $0x10] sm:$0xff]   ;;  %v16223_v26 = vld [vmem:[#allocation117_spill] sm:$0xff] }
 0x511   : > { %v13409_v40 = vmax.f32 %v16210_v4, %v6500_v39  ;;  %v13424_v19 = vadd.f32 %v6614_v46, %v16071_v56  ;;  %7350 = vmatmul.mubr.bf16.gmra.mrb[104].mxu0 %v16215_v15  ;;  %v16217_v4 = vld [vmem:[#allocation153_spill] sm:$0xff]  ;;  %v13435_v21 = vadd.f32 %v6616_v63, %v16071_v56  ;;  %16221 = vst [vmem:[#allocation159_spill] sm:$0xff] %v13440_v16  ;;  %v16222_v46 = vld [vmem:[#allocation112_spill] sm:$0xff] }
 0x512   : > { %v13421_v32 = vmax.f32 %v16213_v22, %v6502_v31  ;;  %v16218_v48 = vmax.f32 %v16216_v11, %v16217_v4  ;;  %7463 = vmatmul.mubr.bf16.gmra.mrb[104].mxu1 %v13440_v16  ;;  %v16224_v22 = vld [vmem:[#allocation119_spill] sm:$0xff]  ;;  %v16225_v63 = vld [vmem:[#allocation120_spill] sm:$0xff]  ;;  %7359 = vmatprep.mubr.bf16.mxu0 %v15457_v36  ;;  %v16229_v16 = vld [vmem:[#allocation138_spill] sm:$0xff] }
 0x513   : > { %16214 = vst [vmem:[#allocation64_spill] sm:$0xff] %v13424_v19  ;;  %16220 = vst [vmem:[#allocation74_spill] sm:$0xff] %v13435_v21  ;;  %7532 = vmatpush1.bf16.msra.mxu0 %v16222_v46  ;;  %7645 = vmatpush1.bf16.msra.mxu1 %v16223_v26  ;;  %v16226_v26 = vld [vmem:[#allocation122_spill] sm:$0xff]  ;;  %v16228_v21 = vld [vmem:[#allocation125_spill] sm:$0xff] }
 0x514   : > { %v13432_v27 = vmax.f32 %v16218_v48, %v6504_v28  ;;  %7533 = vmatprep.subr.bf16.mxu0 %v16224_v22  ;;  %7646 = vmatprep.subr.bf16.mxu1 %v16225_v63  ;;  %v6653_v15 = vpop.f32.mrb[0].mxu0  ;;  %v16227_v28 = vmax.f32 %v13018_v24, %v13021_v6  ;;  %v16231_v6 = vld [vmem:[#allocation139_spill] sm:$0xff] }
 0x515   : > { %v6654_v11 = vadd.f32 %v6653_v15, %v12219_v8  ;;  %v6766_v4 = vpop.f32.mrb[0].mxu1  ;;  %v6655_v48 = vpop.f32.mrb[1].mxu0  ;;  %7472 = vmatprep.mubr.bf16.mxu1 %v15457_v36 }
 0x516   : > { %16219 = vst [vmem:[#allocation73_spill] sm:$0xff] %v13432_v27  ;;  %v6656_v46 = vadd.f32 %v6655_v48, %v12219_v8  ;;  %v6768_v31 = vpop.f32.mrb[1].mxu1  ;;  %v6657_v22 = vpop.f32.mrb[2].mxu0  ;;  %v13462_v63 = vadd.f32 %v6766_v4, %v12219_v8 }
 0x517   : > { %7534 = vmatpush1.bf16.msra.mxu0 %v16226_v26  ;;  %v13459_v39 = vmax.f32 %v16227_v28, %v6654_v11  ;;  %7647 = vmatpush1.bf16.msra.mxu1 %v16228_v21  ;;  %v6658_v15 = vadd.f32 %v6657_v22, %v12223_v17  ;;  %v6770_v27 = vpop.f32.mrb[2].mxu1  ;;  %v6659_v48 = vpop.f32.mrb[3].mxu0  ;;  %v16230_v26 = vmax.f32 %v13029_v18, %v13032_v45 }
 0x518   : > { %7535 = vmatprep.subr.bf16.mxu0 %v16229_v16  ;;  %v13473_v24 = vadd.f32 %v6768_v31, %v12219_v8  ;;  %7648 = vmatprep.subr.bf16.mxu1 %v16231_v6  ;;  %v6660_v28 = vadd.f32 %v6659_v48, %v12223_v17  ;;  %v6772_v11 = vpop.f32.mrb[3].mxu1  ;;  %v16232_v16 = vmax.f32 %v13041_v35, %v13044_v61  ;;  %v13501_v35 = vld [vmem:[%s15164_s3 + $0x18] sm:$0xff]  }
 0x519   : > { %v13470_v19 = vmax.f32 %v16230_v26, %v6656_v46  ;;  %v13485_v18 = vadd.f32 %v6770_v27, %v12223_v17  ;;  %7360 = vmatmul.mubr.bf16.gmra.mrb[108].mxu0 %v12634_v1  ;;  %v16233_v31 = vmax.f32 %v13052_v41, %v13055_v62  ;;  %v13496_v22 = vadd.f32 %v6772_v11, %v12223_v17  ;;  %v16234_v61 = vld [vmem:[#allocation136_spill] sm:$0xff]  ;;  %v16235_v27 = vld [vmem:[#allocation137_spill] sm:$0xff] }
 0x51a   : > { %v13482_v4 = vmax.f32 %v16232_v16, %v6658_v15  ;;  %7473 = vmatmul.mubr.bf16.gmra.mrb[108].mxu1 %v13501_v35  ;;  %v16236_v41 = vld [vmem:[#allocation140_spill] sm:$0xff]  ;;  %v16237_v15 = vld [vmem:[#allocation143_spill] sm:$0xff]  ;;  %7369 = vmatprep.mubr.bf16.mxu0 %v15457_v36  ;;  %v16240_v62 = vld [vmem:[#allocation33_spill] sm:$0xff] }
 0x51b   : > { %v13493_v46 = vmax.f32 %v16233_v31, %v6660_v28  ;;  %7536 = vmatpush1.bf16.msra.mxu0 %v16234_v61  ;;  %7649 = vmatpush1.bf16.msra.mxu1 %v16235_v27  ;;  %v16238_v31 = vld [vmem:[#allocation35_spill] sm:$0xff]  ;;  %v16239_v27 = vmax.f32 %v13074_v12, %v13077_v60 }
 0x51c   : > { %7537 = vmatprep.subr.bf16.mxu0 %v16236_v41  ;;  %7650 = vmatprep.subr.bf16.mxu1 %v16237_v15  ;;  %v6663_v48 = vpop.f32.mrb[4].mxu0 }
 0x51d   : > { %v6664_v26 = vadd.f32 %v6663_v48, %v12265_v57  ;;  %v6776_v6 = vpop.f32.mrb[4].mxu1  ;;  %v6665_v28 = vpop.f32.mrb[5].mxu0  ;;  %7482 = vmatprep.mubr.bf16.mxu1 %v15457_v36 }
 0x51e   : > { %v6666_v11 = vadd.f32 %v6665_v28, %v12265_v57  ;;  %v6778_v16 = vpop.f32.mrb[5].mxu1  ;;  %v6667_v61 = vpop.f32.mrb[6].mxu0  ;;  %v13523_v15 = vadd.f32 %v6776_v6, %v12265_v57  ;;  %v16241_v28 = vmax.f32 %v13085_v52, %v13088_v20  ;;  %v16243_v20 = vld [vmem:[#allocation154_spill] sm:$0xff] }
 0x51f   : > { %7538 = vmatpush1.bf16.msra.mxu0 %v16238_v31  ;;  %v13520_v41 = vmax.f32 %v16239_v27, %v6664_v26  ;;  %7651 = vmatpush1.bf16.msra.mxu1 %v16240_v62  ;;  %v6668_v48 = vadd.f32 %v6667_v61, %v12271_v23  ;;  %v6780_v1 = vpop.f32.mrb[6].mxu1  ;;  %v6669_v45 = vpop.f32.mrb[7].mxu0  ;;  %v13533_v31 = vadd.f32 %v6778_v16, %v12265_v57 }
 0x520   : > { %v13530_v21 = vmax.f32 %v16241_v28, %v6666_v11  ;;  %v6670_v12 = vadd.f32 %v6669_v45, %v12271_v23  ;;  %v6782_v60 = vpop.f32.mrb[7].mxu1  ;;  %v16242_v62 = vmax.f32 %v13097_v0, %v13100_v30  ;;  %v13544_v61 = vadd.f32 %v6780_v1, %v12271_v23 }
 0x521   : > { %7370 = vmatmul.mubr.bf16.gmra.mrb[112].mxu0 %v13105_v38  ;;  %v16244_v45 = vmax.f32 %v13113_v54, %v16243_v20  ;;  %v13555_v16 = vadd.f32 %v6782_v60, %v12271_v23 }
 0x522   : > { %v13541_v6 = vmax.f32 %v16242_v62, %v6668_v48  ;;  %7483 = vmatmul.mubr.bf16.gmra.mrb[112].mxu1 %v13105_v38  ;;  %7379 = vmatprep.mubr.bf16.mxu0 %v15457_v36  ;;  %v16246_v62 = vmax.f32 %v13130_v49, %v13133_v42 }
 0x523   : > { %v13552_v11 = vmax.f32 %v16244_v45, %v6670_v12  ;;  %16245 = vst [vmem:[#allocation89_spill] sm:$0xff] %v13555_v16  ;;  %7492 = vmatprep.mubr.bf16.mxu1 %v15457_v36 }
 0x524   : > { %v6673_v1 = vpop.f32.mrb[8].mxu0 }
 0x525   : > { %v6674_v54 = vadd.f32 %v6673_v1, %v12313_v29  ;;  %v6786_v27 = vpop.f32.mrb[8].mxu1  ;;  %v6675_v48 = vpop.f32.mrb[9].mxu0  ;;  %v16247_v1 = vmax.f32 %v13139_v59, %v13142_v43  ;;  %v16252_v43 = vld [vmem:[#allocation10_spill] sm:$0xff]  ;;  %v16260_v59 = vld [vmem:[#allocation40_spill] sm:$0xff] }
 0x526   : > { %v6676_v28 = vadd.f32 %v6675_v48, %v12313_v29  ;;  %v6788_v12 = vpop.f32.mrb[9].mxu1  ;;  %v6677_v60 = vpop.f32.mrb[10].mxu0  ;;  %v13572_v45 = vadd.f32 %v6786_v27, %v12313_v29 }
 0x527   : > { %v13569_v20 = vmax.f32 %v16246_v62, %v6674_v54  ;;  %v6678_v0 = vadd.f32 %v6677_v60, %v12318_v51  ;;  %v6790_v30 = vpop.f32.mrb[10].mxu1  ;;  %v6679_v52 = vpop.f32.mrb[11].mxu0  ;;  %v13581_v48 = vadd.f32 %v6788_v12, %v12313_v29  ;;  %v16249_v54 = vmax.f32 %v13150_v33, %v13153_v58 }
 0x528   : > { %v13578_v26 = vmax.f32 %v16247_v1, %v6676_v28  ;;  %v6680_v16 = vadd.f32 %v6679_v52, %v12318_v51  ;;  %v6792_v49 = vpop.f32.mrb[11].mxu1  ;;  %v13592_v60 = vadd.f32 %v6790_v30, %v12318_v51  ;;  %v16253_v52 = vmax.f32 %v13166_v2, %v16252_v43 }
 0x529   : > { %16248 = vst [vmem:[#allocation94_spill] sm:$0xff] %v13581_v48  ;;  %v13589_v27 = vmax.f32 %v16249_v54, %v6678_v0  ;;  %7380 = vmatmul.mubr.bf16.gmra.mrb[116].mxu0 %v13158_v5  ;;  %v13603_v12 = vadd.f32 %v6792_v49, %v12318_v51  ;;  %v16256_v54 = vld [vmem:[#allocation11_spill] sm:$0xff] }
 0x52a   : > { %16251 = vst [vmem:[#allocation96_spill] sm:$0xff] %v13592_v60  ;;  %v13600_v28 = vmax.f32 %v16253_v52, %v6680_v16  ;;  %7493 = vmatmul.mubr.bf16.gmra.mrb[116].mxu1 %v13158_v5  ;;  %7389 = vmatprep.mubr.bf16.mxu0 %v15457_v36  ;;  %v16257_v43 = vmax.f32 %v13183_v47, %v16256_v54  ;;  %v16267_v54 = vld [vmem:[#allocation14_spill] sm:$0xff] }
 0x52b   : > { %16250 = vst [vmem:[#allocation102_spill] sm:$0xff] %v13589_v27  ;;  %16255 = vst [vmem:[#allocation99_spill] sm:$0xff] %v13603_v12  ;;  %7502 = vmatprep.mubr.bf16.mxu1 %v15457_v36 }
 0x52c   : > { %16254 = vst [vmem:[#allocation93_spill] sm:$0xff] %v13600_v28  ;;  %v6683_v0 = vpop.f32.mrb[12].mxu0  ;;  %v16261_v28 = vld [vmem:[#allocation18_spill] sm:$0xff] }
 0x52d   : > { %v6684_v2 = vadd.f32 %v6683_v0, %v12353_v7  ;;  %v6796_v16 = vpop.f32.mrb[12].mxu1  ;;  %v6685_v30 = vpop.f32.mrb[13].mxu0  ;;  %v16262_v0 = vld [vmem:[#allocation15_spill] sm:$0xff] }
 0x52e   : > { %v6686_v62 = vadd.f32 %v6685_v30, %v12353_v7  ;;  %v6798_v1 = vpop.f32.mrb[13].mxu1  ;;  %v6687_v49 = vpop.f32.mrb[14].mxu0  ;;  %v13620_v33 = vadd.f32 %v6796_v16, %v12353_v7  ;;  %v16263_v5 = vmax.f32 %v16261_v28, %v16262_v0  ;;  %v16266_v16 = vld [vmem:[#allocation58_spill] sm:$0xff]  ;;  %v16271_v28 = vld [vmem:[#allocation61_spill] sm:$0xff] }
 0x52f   : > { %v13617_v52 = vmax.f32 %v16257_v43, %v6684_v2  ;;  %v6688_v42 = vadd.f32 %v6687_v49, %v16260_v59  ;;  %v6800_v58 = vpop.f32.mrb[14].mxu1  ;;  %v6689_v12 = vpop.f32.mrb[15].mxu0  ;;  %v13629_v30 = vadd.f32 %v6798_v1, %v12353_v7  ;;  %v16268_v43 = vmax.f32 %v16266_v16, %v16267_v54  ;;  %v16273_v1 = vld [vmem:[#allocation13_spill] sm:$0xff] }
 0x530   : > { %16259 = vst [vmem:[#allocation131_spill] sm:$0xff] %v13620_v33  ;;  %v13626_v60 = vmax.f32 %v16263_v5, %v6686_v62  ;;  %v6690_v27 = vadd.f32 %v6689_v12, %v16260_v59  ;;  %v6802_v47 = vpop.f32.mrb[15].mxu1  ;;  %v13640_v48 = vadd.f32 %v6800_v58, %v16260_v59  ;;  %v16272_v62 = vld [vmem:[#allocation62_spill] sm:$0xff]  ;;  %v16277_v54 = vld [vmem:[#allocation45_spill] sm:$0xff]  ;;  %v16278_v5 = vld [vmem:[#allocation87_spill] sm:$0xff] }
 0x531   : > { %16258 = vst [vmem:[#allocation104_spill] sm:$0xff] %v13617_v52  ;;  %16265 = vst [vmem:[#allocation24_spill] sm:$0xff] %v13629_v30  ;;  %v13637_v49 = vmax.f32 %v16268_v43, %v6688_v42  ;;  %7390 = vmatmul.mubr.bf16.gmra.mrb[120].mxu0 %v16271_v28  ;;  %v16274_v12 = vmax.f32 %v16272_v62, %v16273_v1  ;;  %v13651_v2 = vadd.f32 %v6802_v47, %v16260_v59 }
 0x532   : > { %16264 = vst [vmem:[#allocation97_spill] sm:$0xff] %v13626_v60  ;;  %16270 = vst [vmem:[#allocation134_spill] sm:$0xff] %v13640_v48  ;;  %7503 = vmatmul.mubr.bf16.gmra.mrb[120].mxu1 %v16271_v28  ;;  %7399 = vmatprep.mubr.bf16.mxu0 %v15457_v36  ;;  %v16279_v28 = vld [vmem:[#allocation156_spill] sm:$0xff]  ;;  %v16283_v48 = vld [vmem:[#allocation46_spill] sm:$0xff] }
 0x533   : > { %16269 = vst [vmem:[#allocation28_spill] sm:$0xff] %v13637_v49  ;;  %v13648_v0 = vmax.f32 %v16274_v12, %v6690_v27  ;;  %16276 = vst [vmem:[#allocation20_spill] sm:$0xff] %v13651_v2  ;;  %7512 = vmatprep.mubr.bf16.mxu1 %v15457_v36  ;;  %v16280_v30 = vmax.f32 %v16278_v5, %v16279_v28  ;;  %v16289_v5 = vld [vmem:[#allocation6_spill] sm:$0xff] }
 0x534   : > { %v6693_v16 = vpop.f32.mrb[16].mxu0 }
 0x535   : > { %16275 = vst [vmem:[#allocation19_spill] sm:$0xff] %v13648_v0  ;;  %v6694_v43 = vadd.f32 %v6693_v16, %v16277_v54  ;;  %v6806_v27 = vpop.f32.mrb[16].mxu1  ;;  %v6695_v62 = vpop.f32.mrb[17].mxu0  ;;  %v16284_v0 = vld [vmem:[#allocation5_spill] sm:$0xff]  ;;  %v16285_v16 = vld [vmem:[#allocation16_spill] sm:$0xff] }
 0x536   : > { %v6696_v47 = vadd.f32 %v6695_v62, %v16277_v54  ;;  %v6808_v1 = vpop.f32.mrb[17].mxu1  ;;  %v6697_v12 = vpop.f32.mrb[18].mxu0  ;;  %v13668_v42 = vadd.f32 %v6806_v27, %v16277_v54  ;;  %v16286_v59 = vmax.f32 %v16284_v0, %v16285_v16  ;;  %v16294_v0 = vld [vmem:[#allocation66_spill] sm:$0xff] }
 0x537   : > { %v13665_v60 = vmax.f32 %v16280_v30, %v6694_v43  ;;  %v6698_v49 = vadd.f32 %v6697_v12, %v16283_v48  ;;  %v6810_v58 = vpop.f32.mrb[18].mxu1  ;;  %v6699_v2 = vpop.f32.mrb[19].mxu0  ;;  %v13677_v62 = vadd.f32 %v6808_v1, %v16277_v54  ;;  %v16290_v43 = vld [vmem:[#allocation65_spill] sm:$0xff]  ;;  %v16296_v1 = vld [vmem:[#allocation12_spill] sm:$0xff] }
 0x538   : > { %16282 = vst [vmem:[#allocation32_spill] sm:$0xff] %v13668_v42  ;;  %v13674_v33 = vmax.f32 %v16286_v59, %v6696_v47  ;;  %v6700_v52 = vadd.f32 %v6699_v2, %v16283_v48  ;;  %v6812_v28 = vpop.f32.mrb[19].mxu1  ;;  %v16291_v27 = vmax.f32 %v16289_v5, %v16290_v43  ;;  %v13688_v7 = vadd.f32 %v6810_v58, %v16283_v48  ;;  %v16295_v47 = vld [vmem:[#allocation157_spill] sm:$0xff]  ;;  %v16301_v59 = vld [vmem:[#allocation91_spill] sm:$0xff] }
 0x539   : > { %16281 = vst [vmem:[#allocation31_spill] sm:$0xff] %v13665_v60  ;;  %16288 = vst [vmem:[#allocation68_spill] sm:$0xff] %v13677_v62  ;;  %7400 = vmatmul.mubr.bf16.gmra.mrb[124].mxu0 %v16294_v0  ;;  %v16297_v2 = vmax.f32 %v16295_v47, %v16296_v1  ;;  %v13699_v30 = vadd.f32 %v6812_v28, %v16283_v48 }
 0x53a   : > { %16287 = vst [vmem:[#allocation67_spill] sm:$0xff] %v13674_v33  ;;  %v13685_v12 = vmax.f32 %v16291_v27, %v6698_v49  ;;  %16293 = vst [vmem:[#allocation78_spill] sm:$0xff] %v13688_v7  ;;  %7513 = vmatmul.mubr.bf16.gmra.mrb[124].mxu1 %v16294_v0  ;;  %7555 = vmatprep.mubr.bf16.mxu0 %v15457_v36  ;;  %v16303_v7 = vld [vmem:[#allocation147_spill] sm:$0xff] }
 0x53b   : > { %v13696_v16 = vmax.f32 %v16297_v2, %v6700_v52  ;;  %16299 = vst [vmem:[#allocation72_spill] sm:$0xff] %v13699_v30  ;;  %7668 = vmatprep.mubr.bf16.mxu1 %v15457_v36  ;;  %v16300_v2 = vld [vmem:[#allocation21_spill] sm:$0xff] }
 0x53c   : > { %16292 = vst [vmem:[#allocation77_spill] sm:$0xff] %v13685_v12  ;;  %v6703_v5 = vpop.f32.mrb[20].mxu0  ;;  %v16302_v0 = vmax.f32 %v16300_v2, %v16301_v59 }
 0x53d   : > { %16298 = vst [vmem:[#allocation71_spill] sm:$0xff] %v13696_v16  ;;  %v6704_v43 = vadd.f32 %v6703_v5, %v16154_v37  ;;  %v6816_v52 = vpop.f32.mrb[20].mxu1  ;;  %v6705_v27 = vpop.f32.mrb[21].mxu0  ;;  %v16304_v16 = vld [vmem:[#allocation88_spill] sm:$0xff] }
 0x53e   : > { %v6706_v28 = vadd.f32 %v6705_v27, %v16154_v37  ;;  %v6818_v47 = vpop.f32.mrb[21].mxu1  ;;  %v6707_v1 = vpop.f32.mrb[22].mxu0  ;;  %v13716_v49 = vadd.f32 %v6816_v52, %v16154_v37  ;;  %v16305_v5 = vld [vmem:[#allocation8_spill] sm:$0xff]  ;;  %v16308_v52 = vld [vmem:[#allocation69_spill] sm:$0xff] }
 0x53f   : > { %v13713_v62 = vmax.f32 %v16302_v0, %v6704_v43  ;;  %v6708_v12 = vadd.f32 %v6707_v1, %v16303_v7  ;;  %v6820_v58 = vpop.f32.mrb[22].mxu1  ;;  %v6709_v30 = vpop.f32.mrb[23].mxu0  ;;  %v16306_v33 = vmax.f32 %v16304_v16, %v16305_v5  ;;  %v13725_v27 = vadd.f32 %v6818_v47, %v16154_v37  ;;  %v16307_v43 = vld [vmem:[#allocation17_spill] sm:$0xff]  ;;  %v16313_v47 = vld [vmem:[#allocation95_spill] sm:$0xff] }
 0x540   : > { %v6710_v42 = vadd.f32 %v6709_v30, %v16303_v7  ;;  %v6822_v59 = vpop.f32.mrb[23].mxu1  ;;  %v16309_v2 = vmax.f32 %v16307_v43, %v16308_v52  ;;  %v13736_v60 = vadd.f32 %v6820_v58, %v16303_v7  ;;  %v16311_v16 = vld [vmem:[#allocation49_spill] sm:$0xff] }
 0x541   : > { %v13722_v48 = vmax.f32 %v16306_v33, %v6706_v28  ;;  %7556 = vmatmul.mubr.bf16.vlgmr.msra.gmra.mrb[128].mxu0 %v16311_v16  ;;  %v16312_v28 = vld [vmem:[#allocation90_spill] sm:$0xff]  ;;  %v13747_v0 = vadd.f32 %v6822_v59, %v16303_v7 }
 0x542   : > { %v13733_v1 = vmax.f32 %v16309_v2, %v6708_v12  ;;  %16310 = vst [vmem:[#allocation82_spill] sm:$0xff] %v13736_v60  ;;  %v16314_v30 = vmax.f32 %v16312_v28, %v16313_v47  ;;  %v8935_v12 = vld [vmem:[%s15164_s3] sm:$0xff]   ;;  %7565 = vmatprep.mubr.bf16.mxu0 %v15457_v36 }
 0x543   : > { %16316 = vst [vmem:[#allocation75_spill] sm:$0xff] %v13747_v0  ;;  %7669 = vmatmul.mubr.bf16.vlgmr.msra.gmra.mrb[128].mxu1 %v8935_v12 }
 0x544   : > { %v13744_v5 = vmax.f32 %v16314_v30, %v6710_v42  ;;  %7678 = vmatprep.mubr.bf16.mxu1 %v15457_v36  ;;  %v6713_v42 = vpop.f32.mrb[24].mxu0  ;;  %v16317_v30 = vmax.f32 %v13342_v10, %v13345_v13 }
 0x545   : > { %v6714_v52 = vadd.f32 %v6713_v42, %v16035_v55  ;;  %v6826_v59 = vpop.f32.mrb[24].mxu1  ;;  %v6715_v2 = vpop.f32.mrb[25].mxu0  ;;  %v16318_v42 = vmax.f32 %v13353_v3, %v13356_v50  ;;  %v8936_v3 = vld [vmem:[%s15164_s3 + $0x8] sm:$0xff]  }
 0x546   : > { %16315 = vst [vmem:[#allocation85_spill] sm:$0xff] %v13744_v5  ;;  %v6716_v16 = vadd.f32 %v6715_v2, %v16035_v55  ;;  %v6828_v28 = vpop.f32.mrb[25].mxu1  ;;  %v6717_v47 = vpop.f32.mrb[26].mxu0  ;;  %v13766_v58 = vadd.f32 %v6826_v59, %v16035_v55 }
 0x547   : > { %v13763_v12 = vmax.f32 %v16317_v30, %v6714_v52  ;;  %v6718_v33 = vadd.f32 %v6717_v47, %v16186_v9  ;;  %v6830_v43 = vpop.f32.mrb[26].mxu1  ;;  %v6719_v0 = vpop.f32.mrb[27].mxu0  ;;  %v13775_v2 = vadd.f32 %v6828_v28, %v16035_v55  ;;  %v16319_v52 = vld [vmem:[#allocation70_spill] sm:$0xff] }
 0x548   : > { %v13772_v5 = vmax.f32 %v16318_v42, %v6716_v16  ;;  %v6720_v60 = vadd.f32 %v6719_v0, %v16186_v9  ;;  %v6832_v10 = vpop.f32.mrb[27].mxu1  ;;  %v16320_v59 = vmax.f32 %v13365_v44, %v16319_v52  ;;  %v13786_v30 = vadd.f32 %v6830_v43, %v16186_v9  ;;  %v16322_v0 = vld [vmem:[#allocation63_spill] sm:$0xff]  ;;  %v16323_v16 = vld [vmem:[#allocation92_spill] sm:$0xff] }
 0x549   : > { %7566 = vmatmul.mubr.bf16.gmra.mrb[132].mxu0 %v8936_v3  ;;  %v16324_v28 = vmax.f32 %v16322_v0, %v16323_v16  ;;  %v13799_v44 = vadd.f32 %v6832_v10, %v16186_v9 }
 0x54a   : > { %v13783_v47 = vmax.f32 %v16320_v59, %v6718_v33  ;;  %16321 = vst [vmem:[#allocation76_spill] sm:$0xff] %v13786_v30  ;;  %7575 = vmatprep.mubr.bf16.mxu0 %v15457_v36 }
 0x54b   : > { %v13796_v42 = vmax.f32 %v16324_v28, %v6720_v60  ;;  %16326 = vst [vmem:[#allocation41_spill] sm:$0xff] %v13799_v44  ;;  %7679 = vmatmul.mubr.bf16.gmra.mrb[132].mxu1 %v8936_v3  ;;  %v16327_v3 = vmax.f32 %v13398_v25, %v13401_v34 }
 0x54c   : > { %7688 = vmatprep.mubr.bf16.mxu1 %v15457_v36  ;;  %v6723_v52 = vpop.f32.mrb[28].mxu0 }
 0x54d   : > { %16325 = vst [vmem:[#allocation146_spill] sm:$0xff] %v13796_v42  ;;  %v6724_v59 = vadd.f32 %v6723_v52, %v16066_v14  ;;  %v6836_v0 = vpop.f32.mrb[28].mxu1  ;;  %v6725_v60 = vpop.f32.mrb[29].mxu0  ;;  %v16328_v52 = vmax.f32 %v13409_v40, %v13412_v53  ;;  %v16332_v40 = vld [vmem:[#allocation159_spill] sm:$0xff] }
 0x54e   : > { %v6726_v16 = vadd.f32 %v6725_v60, %v16066_v14  ;;  %v6838_v10 = vpop.f32.mrb[29].mxu1  ;;  %v6727_v28 = vpop.f32.mrb[30].mxu0  ;;  %v13815_v33 = vadd.f32 %v6836_v0, %v16066_v14 }
 0x54f   : > { %v13812_v50 = vmax.f32 %v16327_v3, %v6724_v59  ;;  %v6728_v13 = vadd.f32 %v6727_v28, %v16071_v56  ;;  %v6840_v43 = vpop.f32.mrb[30].mxu1  ;;  %v6729_v44 = vpop.f32.mrb[31].mxu0  ;;  %v13824_v60 = vadd.f32 %v6838_v10, %v16066_v14  ;;  %v16329_v59 = vld [vmem:[#allocation64_spill] sm:$0xff]  ;;  %v16334_v10 = vld [vmem:[#allocation74_spill] sm:$0xff] }
 0x550   : > { %v13821_v42 = vmax.f32 %v16328_v52, %v6726_v16  ;;  %v6730_v30 = vadd.f32 %v6729_v44, %v16071_v56  ;;  %v6842_v25 = vpop.f32.mrb[31].mxu1  ;;  %v16330_v0 = vmax.f32 %v13421_v32, %v16329_v59  ;;  %v13835_v3 = vadd.f32 %v6840_v43, %v16071_v56  ;;  %v16333_v16 = vld [vmem:[#allocation73_spill] sm:$0xff] }
 0x551   : > { %7576 = vmatmul.mubr.bf16.gmra.mrb[136].mxu0 %v16332_v40  ;;  %v16335_v44 = vmax.f32 %v16333_v16, %v16334_v10  ;;  %v13846_v34 = vadd.f32 %v6842_v25, %v16071_v56 }
 0x552   : > { %v13832_v28 = vmax.f32 %v16330_v0, %v6728_v13  ;;  %16331 = vst [vmem:[#allocation42_spill] sm:$0xff] %v13835_v3  ;;  %7585 = vmatprep.mubr.bf16.mxu0 %v15457_v36 }
 0x553   : > { %v13843_v52 = vmax.f32 %v16335_v44, %v6730_v30  ;;  %16337 = vst [vmem:[#allocation43_spill] sm:$0xff] %v13846_v34  ;;  %7689 = vmatmul.mubr.bf16.gmra.mrb[136].mxu1 %v16332_v40  ;;  %v16338_v40 = vmax.f32 %v13459_v39, %v13462_v63 }
 0x554   : > { %7698 = vmatprep.mubr.bf16.mxu1 %v15457_v36  ;;  %v6879_v43 = vpop.f32.mrb[32].mxu0 }
 0x555   : > { %16336 = vst [vmem:[#allocation111_spill] sm:$0xff] %v13843_v52  ;;  %v6880_v59 = vadd.f32 %v6879_v43, %v12219_v8  ;;  %v6992_v30 = vpop.f32.mrb[32].mxu1  ;;  %v6881_v0 = vpop.f32.mrb[33].mxu0  ;;  %v16339_v43 = vmax.f32 %v13470_v19, %v13473_v24  ;;  %v16341_v24 = vmax.f32 %v13493_v46, %v13496_v22 }
 0x556   : > { %v6882_v25 = vadd.f32 %v6881_v0, %v12219_v8  ;;  %v6994_v16 = vpop.f32.mrb[33].mxu1  ;;  %v6883_v10 = vpop.f32.mrb[34].mxu0  ;;  %v13863_v32 = vadd.f32 %v6992_v30, %v12219_v8 }
 0x557   : > { %v13860_v44 = vmax.f32 %v16338_v40, %v6880_v59  ;;  %v6884_v53 = vadd.f32 %v6883_v10, %v12223_v17  ;;  %v6996_v13 = vpop.f32.mrb[34].mxu1  ;;  %v6885_v34 = vpop.f32.mrb[35].mxu0  ;;  %v13872_v0 = vadd.f32 %v6994_v16, %v12219_v8  ;;  %v16340_v59 = vmax.f32 %v13482_v4, %v13485_v18 }
 0x558   : > { %v13869_v52 = vmax.f32 %v16339_v43, %v6882_v25  ;;  %v6886_v3 = vadd.f32 %v6885_v34, %v12223_v17  ;;  %v6998_v39 = vpop.f32.mrb[35].mxu1  ;;  %v13883_v10 = vadd.f32 %v6996_v13, %v12223_v17 }
 0x559   : > { %v13880_v30 = vmax.f32 %v16340_v59, %v6884_v53  ;;  %7586 = vmatmul.mubr.bf16.gmra.mrb[140].mxu0 %v13501_v35  ;;  %v13894_v25 = vadd.f32 %v6998_v39, %v12223_v17 }
 0x55a   : > { %v13891_v34 = vmax.f32 %v16341_v24, %v6886_v3  ;;  %7595 = vmatprep.mubr.bf16.mxu0 %v15457_v36 }
 0x55b   : > { %7699 = vmatmul.mubr.bf16.gmra.mrb[140].mxu1 %v13501_v35  ;;  %v16342_v35 = vmax.f32 %v13520_v41, %v13523_v15 }
 0x55c   : > { %7708 = vmatprep.mubr.bf16.mxu1 %v15457_v36  ;;  %v6889_v53 = vpop.f32.mrb[36].mxu0 }
 0x55d   : > { %v6890_v46 = vadd.f32 %v6889_v53, %v12265_v57  ;;  %v7002_v22 = vpop.f32.mrb[36].mxu1  ;;  %v6891_v3 = vpop.f32.mrb[37].mxu0  ;;  %v16343_v53 = vmax.f32 %v13530_v21, %v13533_v31  ;;  %v16345_v31 = vld [vmem:[#allocation89_spill] sm:$0xff] }
 0x55e   : > { %v6892_v13 = vadd.f32 %v6891_v3, %v12265_v57  ;;  %v7004_v16 = vpop.f32.mrb[37].mxu1  ;;  %v6893_v40 = vpop.f32.mrb[38].mxu0  ;;  %v13911_v39 = vadd.f32 %v7002_v22, %v12265_v57 }
 0x55f   : > { %v13908_v43 = vmax.f32 %v16342_v35, %v6890_v46  ;;  %v6894_v59 = vadd.f32 %v6893_v40, %v12271_v23  ;;  %v7006_v24 = vpop.f32.mrb[38].mxu1  ;;  %v6895_v18 = vpop.f32.mrb[39].mxu0  ;;  %v13920_v3 = vadd.f32 %v7004_v16, %v12265_v57  ;;  %v16344_v46 = vmax.f32 %v13541_v6, %v13544_v61 }
 0x560   : > { %v13917_v4 = vmax.f32 %v16343_v53, %v6892_v13  ;;  %v6896_v19 = vadd.f32 %v6895_v18, %v12271_v23  ;;  %v7008_v41 = vpop.f32.mrb[39].mxu1  ;;  %v13931_v40 = vadd.f32 %v7006_v24, %v12271_v23  ;;  %v16346_v18 = vmax.f32 %v13552_v11, %v16345_v31 }
 0x561   : > { %v13928_v22 = vmax.f32 %v16344_v46, %v6894_v59  ;;  %7596 = vmatmul.mubr.bf16.gmra.mrb[144].mxu0 %v13105_v38  ;;  %v13942_v16 = vadd.f32 %v7008_v41, %v12271_v23 }
 0x562   : > { %v13939_v13 = vmax.f32 %v16346_v18, %v6896_v19  ;;  %7605 = vmatprep.mubr.bf16.mxu0 %v15457_v36 }
 0x563   : > { %16347 = vst [vmem:[#allocation44_spill] sm:$0xff] %v13942_v16  ;;  %7709 = vmatmul.mubr.bf16.gmra.mrb[144].mxu1 %v13105_v38  ;;  %v16348_v38 = vmax.f32 %v13569_v20, %v13572_v45 }
 0x564   : > { %7718 = vmatprep.mubr.bf16.mxu1 %v15457_v36  ;;  %v6899_v35 = vpop.f32.mrb[40].mxu0 }
 0x565   : > { %v6900_v11 = vadd.f32 %v6899_v35, %v12313_v29  ;;  %v7012_v19 = vpop.f32.mrb[40].mxu1  ;;  %v6901_v59 = vpop.f32.mrb[41].mxu0  ;;  %v16351_v35 = vld [vmem:[#allocation94_spill] sm:$0xff] }
 0x566   : > { %v6902_v24 = vadd.f32 %v6901_v59, %v12313_v29  ;;  %v7014_v53 = vpop.f32.mrb[41].mxu1  ;;  %v6903_v41 = vpop.f32.mrb[42].mxu0  ;;  %v13959_v31 = vadd.f32 %v7012_v19, %v12313_v29  ;;  %v16352_v21 = vmax.f32 %v13578_v26, %v16351_v35  ;;  %v16356_v19 = vld [vmem:[#allocation96_spill] sm:$0xff]  ;;  %v16360_v26 = vld [vmem:[#allocation155_spill] sm:$0xff] }
 0x567   : > { %v13956_v46 = vmax.f32 %v16348_v38, %v6900_v11  ;;  %v6904_v18 = vadd.f32 %v6903_v41, %v12318_v51  ;;  %v7016_v61 = vpop.f32.mrb[42].mxu1  ;;  %v6905_v6 = vpop.f32.mrb[43].mxu0  ;;  %v13968_v59 = vadd.f32 %v7014_v53, %v12313_v29  ;;  %v16355_v11 = vld [vmem:[#allocation102_spill] sm:$0xff]  ;;  %v16362_v53 = vld [vmem:[#allocation99_spill] sm:$0xff] }
 0x568   : > { %16350 = vst [vmem:[#allocation127_spill] sm:$0xff] %v13959_v31  ;;  %v13965_v15 = vmax.f32 %v16352_v21, %v6902_v24  ;;  %v6906_v63 = vadd.f32 %v6905_v6, %v12318_v51  ;;  %v7018_v20 = vpop.f32.mrb[43].mxu1  ;;  %v16357_v38 = vmax.f32 %v16355_v11, %v16356_v19  ;;  %v13979_v16 = vadd.f32 %v7016_v61, %v12318_v51  ;;  %v16361_v24 = vld [vmem:[#allocation93_spill] sm:$0xff]  ;;  %v16366_v19 = vld [vmem:[#allocation39_spill] sm:$0xff] }
 0x569   : > { %16349 = vst [vmem:[#allocation47_spill] sm:$0xff] %v13956_v46  ;;  %16354 = vst [vmem:[#allocation22_spill] sm:$0xff] %v13968_v59  ;;  %7606 = vmatmul.mubr.bf16.gmra.mrb[148].mxu0 %v16360_v26  ;;  %v16363_v6 = vmax.f32 %v16361_v24, %v16362_v53  ;;  %v13990_v45 = vadd.f32 %v7018_v20, %v12318_v51  ;;  %v16368_v21 = vld [vmem:[#allocation131_spill] sm:$0xff] }
 0x56a   : > { %16353 = vst [vmem:[#allocation50_spill] sm:$0xff] %v13965_v15  ;;  %v13976_v41 = vmax.f32 %v16357_v38, %v6904_v18  ;;  %16359 = vst [vmem:[#allocation105_spill] sm:$0xff] %v13979_v16  ;;  %7615 = vmatprep.mubr.bf16.mxu0 %v15457_v36  ;;  %v16372_v16 = vld [vmem:[#allocation40_spill] sm:$0xff] }
 0x56b   : > { %v13987_v35 = vmax.f32 %v16363_v6, %v6906_v63  ;;  %16365 = vst [vmem:[#allocation25_spill] sm:$0xff] %v13990_v45  ;;  %7719 = vmatmul.mubr.bf16.gmra.mrb[148].mxu1 %v16360_v26  ;;  %v16367_v26 = vld [vmem:[#allocation104_spill] sm:$0xff] }
 0x56c   : > { %16358 = vst [vmem:[#allocation23_spill] sm:$0xff] %v13976_v41  ;;  %7728 = vmatprep.mubr.bf16.mxu1 %v15457_v36  ;;  %v6909_v11 = vpop.f32.mrb[44].mxu0  ;;  %v16369_v59 = vmax.f32 %v16367_v26, %v16368_v21 }
 0x56d   : > { %16364 = vst [vmem:[#allocation106_spill] sm:$0xff] %v13987_v35  ;;  %v6910_v38 = vadd.f32 %v6909_v11, %v16366_v19  ;;  %v7022_v63 = vpop.f32.mrb[44].mxu1  ;;  %v6911_v24 = vpop.f32.mrb[45].mxu0  ;;  %v16373_v35 = vld [vmem:[#allocation97_spill] sm:$0xff]  ;;  %v16374_v11 = vld [vmem:[#allocation24_spill] sm:$0xff] }
 0x56e   : > { %v6912_v20 = vadd.f32 %v6911_v24, %v16366_v19  ;;  %v7024_v53 = vpop.f32.mrb[45].mxu1  ;;  %v6913_v6 = vpop.f32.mrb[46].mxu0  ;;  %v14007_v61 = vadd.f32 %v7022_v63, %v16366_v19  ;;  %v16375_v51 = vmax.f32 %v16373_v35, %v16374_v11  ;;  %v16379_v63 = vld [vmem:[#allocation134_spill] sm:$0xff]  ;;  %v16383_v35 = vld [vmem:[#allocation61_spill] sm:$0xff] }
 0x56f   : > { %v14004_v15 = vmax.f32 %v16369_v59, %v6910_v38  ;;  %v6914_v41 = vadd.f32 %v6913_v6, %v16372_v16  ;;  %v7026_v18 = vpop.f32.mrb[46].mxu1  ;;  %v6915_v45 = vpop.f32.mrb[47].mxu0  ;;  %v14016_v24 = vadd.f32 %v7024_v53, %v16366_v19  ;;  %v16378_v38 = vld [vmem:[#allocation28_spill] sm:$0xff] }
 0x570   : > { %16371 = vst [vmem:[#allocation9_spill] sm:$0xff] %v14007_v61  ;;  %v14013_v31 = vmax.f32 %v16375_v51, %v6912_v20  ;;  %v6916_v46 = vadd.f32 %v6915_v45, %v16372_v16  ;;  %v7028_v21 = vpop.f32.mrb[47].mxu1  ;;  %v16380_v26 = vmax.f32 %v16378_v38, %v16379_v63  ;;  %v14027_v29 = vadd.f32 %v7026_v18, %v16372_v16  ;;  %v16384_v20 = vld [vmem:[#allocation19_spill] sm:$0xff]  ;;  %v16385_v53 = vld [vmem:[#allocation20_spill] sm:$0xff] }
 0x571   : > { %16370 = vst [vmem:[#allocation51_spill] sm:$0xff] %v14004_v15  ;;  %16377 = vst [vmem:[#allocation59_spill] sm:$0xff] %v14016_v24  ;;  %7616 = vmatmul.mubr.bf16.gmra.mrb[152].mxu0 %v16383_v35  ;;  %v16386_v45 = vmax.f32 %v16384_v20, %v16385_v53  ;;  %v14038_v59 = vadd.f32 %v7028_v21, %v16372_v16 }
 0x572   : > { %16376 = vst [vmem:[#allocation26_spill] sm:$0xff] %v14013_v31  ;;  %v14024_v6 = vmax.f32 %v16380_v26, %v6914_v41  ;;  %16382 = vst [vmem:[#allocation116_spill] sm:$0xff] %v14027_v29  ;;  %7625 = vmatprep.mubr.bf16.mxu0 %v15457_v36  ;;  %v16392_v29 = vld [vmem:[#allocation46_spill] sm:$0xff] }
 0x573   : > { %v14035_v11 = vmax.f32 %v16386_v45, %v6916_v46  ;;  %16388 = vst [vmem:[#allocation110_spill] sm:$0xff] %v14038_v59  ;;  %7729 = vmatmul.mubr.bf16.gmra.mrb[152].mxu1 %v16383_v35  ;;  %v16389_v35 = vld [vmem:[#allocation31_spill] sm:$0xff]  ;;  %v16390_v45 = vld [vmem:[#allocation32_spill] sm:$0xff] }
 0x574   : > { %16381 = vst [vmem:[#allocation109_spill] sm:$0xff] %v14024_v6  ;;  %7738 = vmatprep.mubr.bf16.mxu1 %v15457_v36  ;;  %v6919_v38 = vpop.f32.mrb[48].mxu0  ;;  %v16391_v51 = vmax.f32 %v16389_v35, %v16390_v45 }
 0x575   : > { %16387 = vst [vmem:[#allocation7_spill] sm:$0xff] %v14035_v11  ;;  %v6920_v63 = vadd.f32 %v6919_v38, %v16277_v54  ;;  %v7032_v46 = vpop.f32.mrb[48].mxu1  ;;  %v6921_v26 = vpop.f32.mrb[49].mxu0  ;;  %v16393_v11 = vld [vmem:[#allocation67_spill] sm:$0xff]  ;;  %v16394_v38 = vld [vmem:[#allocation68_spill] sm:$0xff] }
 0x576   : > { %v6922_v21 = vadd.f32 %v6921_v26, %v16277_v54  ;;  %v7034_v20 = vpop.f32.mrb[49].mxu1  ;;  %v6923_v53 = vpop.f32.mrb[50].mxu0  ;;  %v14055_v41 = vadd.f32 %v7032_v46, %v16277_v54  ;;  %v16395_v31 = vmax.f32 %v16393_v11, %v16394_v38  ;;  %v16397_v46 = vld [vmem:[#allocation78_spill] sm:$0xff] }
 0x577   : > { %v14052_v24 = vmax.f32 %v16391_v51, %v6920_v63  ;;  %v6924_v6 = vadd.f32 %v6923_v53, %v16392_v29  ;;  %v7036_v18 = vpop.f32.mrb[50].mxu1  ;;  %v6925_v59 = vpop.f32.mrb[51].mxu0  ;;  %v14064_v26 = vadd.f32 %v7034_v20, %v16277_v54  ;;  %v16396_v63 = vld [vmem:[#allocation77_spill] sm:$0xff]  ;;  %v16399_v11 = vld [vmem:[#allocation66_spill] sm:$0xff]  ;;  %v16401_v20 = vld [vmem:[#allocation72_spill] sm:$0xff] }
 0x578   : > { %v14061_v16 = vmax.f32 %v16395_v31, %v6922_v21  ;;  %v6926_v61 = vadd.f32 %v6925_v59, %v16392_v29  ;;  %v7038_v35 = vpop.f32.mrb[51].mxu1  ;;  %v16398_v45 = vmax.f32 %v16396_v63, %v16397_v46  ;;  %v14075_v15 = vadd.f32 %v7036_v18, %v16392_v29  ;;  %v16400_v21 = vld [vmem:[#allocation71_spill] sm:$0xff] }
 0x579   : > { %7626 = vmatmul.mubr.bf16.gmra.mrb[156].mxu0 %v16399_v11  ;;  %v16402_v59 = vmax.f32 %v16400_v21, %v16401_v20  ;;  %v14086_v51 = vadd.f32 %v7038_v35, %v16392_v29 }
 0x57a   : > { %v14072_v53 = vmax.f32 %v16398_v45, %v6924_v6  ;;  %8283 = vmatprep.mubr.bf16.mxu0 %v15457_v36 }
 0x57b   : > { %v14083_v38 = vmax.f32 %v16402_v59, %v6926_v61  ;;  %16404 = vst [vmem:[#allocation148_spill] sm:$0xff] %v14086_v51  ;;  %7739 = vmatmul.mubr.bf16.gmra.mrb[156].mxu1 %v16399_v11  ;;  %v16405_v11 = vmax.f32 %v13713_v62, %v13716_v49 }
 0x57c   : > { %v6929_v63 = vpop.f32.mrb[52].mxu0 }
 0x57d   : > { %16403 = vst [vmem:[#allocation145_spill] sm:$0xff] %v14083_v38  ;;  %v6930_v46 = vadd.f32 %v6929_v63, %v16154_v37  ;;  %v7042_v45 = vpop.f32.mrb[52].mxu1  ;;  %v6931_v21 = vpop.f32.mrb[53].mxu0  ;;  %v16406_v63 = vmax.f32 %v13722_v48, %v13725_v27  ;;  %v16410_v27 = vld [vmem:[#allocation85_spill] sm:$0xff] }
 0x57e   : > { %v6932_v61 = vadd.f32 %v6931_v21, %v16154_v37  ;;  %v7044_v20 = vpop.f32.mrb[53].mxu1  ;;  %v6933_v35 = vpop.f32.mrb[54].mxu0  ;;  %v14102_v36 = vadd.f32 %v7042_v45, %v16154_v37 }
 0x57f   : > { %v14099_v59 = vmax.f32 %v16405_v11, %v6930_v46  ;;  %v6934_v6 = vadd.f32 %v6933_v35, %v16303_v7  ;;  %v7046_v18 = vpop.f32.mrb[54].mxu1  ;;  %v6935_v31 = vpop.f32.mrb[55].mxu0  ;;  %v14111_v21 = vadd.f32 %v7044_v20, %v16154_v37  ;;  %v16408_v46 = vld [vmem:[#allocation82_spill] sm:$0xff] }
 0x580   : > { %v14108_v51 = vmax.f32 %v16406_v63, %v6932_v61  ;;  %v6936_v38 = vadd.f32 %v6935_v31, %v16303_v7  ;;  %v7048_v62 = vpop.f32.mrb[55].mxu1  ;;  %v16409_v45 = vmax.f32 %v13733_v1, %v16408_v46  ;;  %v14122_v11 = vadd.f32 %v7046_v18, %v16303_v7  ;;  %v16411_v61 = vld [vmem:[#allocation75_spill] sm:$0xff] }
 0x581   : > { %16407 = vst [vmem:[#allocation158_spill] sm:$0xff] %v14111_v21  ;;  %v16412_v20 = vmax.f32 %v16410_v27, %v16411_v61  ;;  %v14132_v31 = vadd.f32 %v7048_v62, %v16303_v7 }
 0x582   : > { %v14119_v35 = vmax.f32 %v16409_v45, %v6934_v6 }
 0x583   : > { %v14129_v63 = vmax.f32 %v16412_v20, %v6936_v38  ;;  %16414 = vst [vmem:[#allocation150_spill] sm:$0xff] %v14132_v31  ;;  %v16415_v38 = vmax.f32 %v13763_v12, %v13766_v58 }
 0x584   : > { %v6939_v6 = vpop.f32.mrb[56].mxu0 }
 0x585   : > { %16413 = vst [vmem:[#allocation149_spill] sm:$0xff] %v14129_v63  ;;  %v6940_v18 = vadd.f32 %v6939_v6, %v16035_v55  ;;  %v7052_v46 = vpop.f32.mrb[56].mxu1  ;;  %v6941_v45 = vpop.f32.mrb[57].mxu0  ;;  %v16416_v6 = vmax.f32 %v13772_v5, %v13775_v2  ;;  %v16420_v2 = vld [vmem:[#allocation146_spill] sm:$0xff] }
 0x586   : > { %v6942_v48 = vadd.f32 %v6941_v45, %v16035_v55  ;;  %v7054_v21 = vpop.f32.mrb[57].mxu1  ;;  %v6943_v27 = vpop.f32.mrb[58].mxu0  ;;  %v14146_v61 = vadd.f32 %v7052_v46, %v16035_v55 }
 0x587   : > { %v14143_v62 = vmax.f32 %v16415_v38, %v6940_v18  ;;  %v6944_v20 = vadd.f32 %v6943_v27, %v16186_v9  ;;  %v7056_v1 = vpop.f32.mrb[58].mxu1  ;;  %v6945_v49 = vpop.f32.mrb[59].mxu0  ;;  %v14155_v45 = vadd.f32 %v7054_v21, %v16035_v55  ;;  %v16418_v18 = vld [vmem:[#allocation76_spill] sm:$0xff]  ;;  %v16421_v21 = vld [vmem:[#allocation41_spill] sm:$0xff] }
 0x588   : > { %v14152_v31 = vmax.f32 %v16416_v6, %v6942_v48  ;;  %v6946_v63 = vadd.f32 %v6945_v49, %v16186_v9  ;;  %v7058_v58 = vpop.f32.mrb[59].mxu1  ;;  %v16419_v46 = vmax.f32 %v13783_v47, %v16418_v18  ;;  %v14166_v38 = vadd.f32 %v7056_v1, %v16186_v9 }
 0x589   : > { %16417 = vst [vmem:[#allocation29_spill] sm:$0xff] %v14155_v45  ;;  %v16422_v48 = vmax.f32 %v16420_v2, %v16421_v21  ;;  %v14176_v49 = vadd.f32 %v7058_v58, %v16186_v9 }
 0x58a   : > { %v14163_v27 = vmax.f32 %v16419_v46, %v6944_v20 }
 0x58b   : > { %v14173_v6 = vmax.f32 %v16422_v48, %v6946_v63  ;;  %16424 = vst [vmem:[#allocation113_spill] sm:$0xff] %v14176_v49  ;;  %v16425_v63 = vmax.f32 %v13812_v50, %v13815_v33 }
 0x58c   : > { %v6949_v20 = vpop.f32.mrb[60].mxu0 }
 0x58d   : > { %16423 = vst [vmem:[#allocation30_spill] sm:$0xff] %v14173_v6  ;;  %v6950_v1 = vadd.f32 %v6949_v20, %v16066_v14  ;;  %v7062_v18 = vpop.f32.mrb[60].mxu1  ;;  %v6951_v46 = vpop.f32.mrb[61].mxu0  ;;  %v16426_v20 = vmax.f32 %v13821_v42, %v13824_v60  ;;  %v16430_v60 = vld [vmem:[#allocation111_spill] sm:$0xff] }
 0x58e   : > { %v6952_v5 = vadd.f32 %v6951_v46, %v16066_v14  ;;  %v7064_v45 = vpop.f32.mrb[61].mxu1  ;;  %v6953_v2 = vpop.f32.mrb[62].mxu0  ;;  %v14190_v21 = vadd.f32 %v7062_v18, %v16066_v14 }
 0x58f   : > { %v14187_v58 = vmax.f32 %v16425_v63, %v6950_v1  ;;  %v6954_v48 = vadd.f32 %v6953_v2, %v16071_v56  ;;  %v7066_v47 = vpop.f32.mrb[62].mxu1  ;;  %v6955_v12 = vpop.f32.mrb[63].mxu0  ;;  %v14199_v46 = vadd.f32 %v7064_v45, %v16066_v14  ;;  %v16428_v1 = vld [vmem:[#allocation42_spill] sm:$0xff]  ;;  %v16431_v45 = vld [vmem:[#allocation43_spill] sm:$0xff] }
 0x590   : > { %v14196_v49 = vmax.f32 %v16426_v20, %v6952_v5  ;;  %v6956_v6 = vadd.f32 %v6955_v12, %v16071_v56  ;;  %v7068_v50 = vpop.f32.mrb[63].mxu1  ;;  %v16429_v18 = vmax.f32 %v13832_v28, %v16428_v1  ;;  %v14210_v63 = vadd.f32 %v7066_v47, %v16071_v56 }
 0x591   : > { %16427 = vst [vmem:[#allocation114_spill] sm:$0xff] %v14199_v46  ;;  %v16432_v5 = vmax.f32 %v16430_v60, %v16431_v45  ;;  %v14220_v12 = vadd.f32 %v7068_v50, %v16071_v56 }
 0x592   : > { %v14207_v2 = vmax.f32 %v16429_v18, %v6954_v48 }
 0x593   : > { %v14217_v20 = vmax.f32 %v16432_v5, %v6956_v6  ;;  %16434 = vst [vmem:[#allocation108_spill] sm:$0xff] %v14220_v12  ;;  %v16435_v6 = vmax.f32 %v13860_v44, %v13863_v32 }
 0x594   : > { %v7105_v48 = vpop.f32.mrb[64].mxu0 }
 0x595   : > { %16433 = vst [vmem:[#allocation107_spill] sm:$0xff] %v14217_v20  ;;  %v7106_v47 = vadd.f32 %v7105_v48, %v12219_v8  ;;  %v7218_v1 = vpop.f32.mrb[64].mxu1  ;;  %v7107_v18 = vpop.f32.mrb[65].mxu0  ;;  %v16436_v48 = vmax.f32 %v13869_v52, %v13872_v0  ;;  %v16438_v0 = vmax.f32 %v13891_v34, %v13894_v25  ;;  %v16439_v25 = vmax.f32 %v13908_v43, %v13911_v39 }
 0x596   : > { %v7108_v42 = vadd.f32 %v7107_v18, %v12219_v8  ;;  %v7220_v46 = vpop.f32.mrb[65].mxu1  ;;  %v7109_v60 = vpop.f32.mrb[66].mxu0  ;;  %v14234_v45 = vadd.f32 %v7218_v1, %v12219_v8 }
 0x597   : > { %v14231_v50 = vmax.f32 %v16435_v6, %v7106_v47  ;;  %v7110_v5 = vadd.f32 %v7109_v60, %v12223_v17  ;;  %v7222_v28 = vpop.f32.mrb[66].mxu1  ;;  %v7111_v33 = vpop.f32.mrb[67].mxu0  ;;  %v14243_v18 = vadd.f32 %v7220_v46, %v12219_v8  ;;  %v16437_v47 = vmax.f32 %v13880_v30, %v13883_v10 }
 0x598   : > { %v14240_v12 = vmax.f32 %v16436_v48, %v7108_v42  ;;  %v7112_v20 = vadd.f32 %v7111_v33, %v12223_v17  ;;  %v7224_v32 = vpop.f32.mrb[67].mxu1  ;;  %v14254_v60 = vadd.f32 %v7222_v28, %v12223_v17 }
 0x599   : > { %v14251_v1 = vmax.f32 %v16437_v47, %v7110_v5  ;;  %v14264_v33 = vadd.f32 %v7224_v32, %v12223_v17 }
 0x59a   : > { %v14261_v46 = vmax.f32 %v16438_v0, %v7112_v20 }
 0x59c   : > { %v7115_v10 = vpop.f32.mrb[68].mxu0 }
 0x59d   : > { %v7116_v28 = vadd.f32 %v7115_v10, %v12265_v57  ;;  %v7228_v6 = vpop.f32.mrb[68].mxu1  ;;  %v7117_v5 = vpop.f32.mrb[69].mxu0  ;;  %v16441_v10 = vmax.f32 %v13917_v4, %v13920_v3  ;;  %v16447_v3 = vld [vmem:[#allocation44_spill] sm:$0xff] }
 0x59e   : > { %v7118_v48 = vadd.f32 %v7117_v5, %v12265_v57  ;;  %v7230_v47 = vpop.f32.mrb[69].mxu1  ;;  %v7119_v34 = vpop.f32.mrb[70].mxu0  ;;  %v14278_v32 = vadd.f32 %v7228_v6, %v12265_v57 }
 0x59f   : > { %v14275_v20 = vmax.f32 %v16439_v25, %v7116_v28  ;;  %v7120_v0 = vadd.f32 %v7119_v34, %v12271_v23  ;;  %v7232_v30 = vpop.f32.mrb[70].mxu1  ;;  %v7121_v42 = vpop.f32.mrb[71].mxu0  ;;  %v14287_v5 = vadd.f32 %v7230_v47, %v12265_v57  ;;  %v16444_v28 = vmax.f32 %v13928_v22, %v13931_v40  ;;  %v16457_v25 = vld [vmem:[#allocation38_spill] sm:$0xff] }
 0x5a0   : > { %16440 = vst [vmem:[#allocation118_spill] sm:$0xff] %v14278_v32  ;;  %v14284_v52 = vmax.f32 %v16441_v10, %v7118_v48  ;;  %v7122_v44 = vadd.f32 %v7121_v42, %v12271_v23  ;;  %v7234_v43 = vpop.f32.mrb[71].mxu1  ;;  %v14298_v34 = vadd.f32 %v7232_v30, %v12271_v23  ;;  %v16448_v48 = vmax.f32 %v13939_v13, %v16447_v3  ;;  %v16451_v30 = vld [vmem:[#allocation37_spill] sm:$0xff]  ;;  %v16453_v3 = vld [vmem:[#allocation127_spill] sm:$0xff] }
 0x5a1   : > { %16443 = vst [vmem:[#allocation151_spill] sm:$0xff] %v14287_v5  ;;  %v14295_v6 = vmax.f32 %v16444_v28, %v7120_v0  ;;  %v14308_v42 = vadd.f32 %v7234_v43, %v12271_v23 }
 0x5a2   : > { %16442 = vst [vmem:[#allocation115_spill] sm:$0xff] %v14284_v52  ;;  %16446 = vst [vmem:[#allocation152_spill] sm:$0xff] %v14298_v34  ;;  %v14305_v47 = vmax.f32 %v16448_v48, %v7122_v44  ;;  %v16452_v44 = vld [vmem:[#allocation47_spill] sm:$0xff] }
 0x5a3   : > { %16445 = vst [vmem:[#allocation160_spill] sm:$0xff] %v14295_v6  ;;  %16450 = vst [vmem:[#allocation112_spill] sm:$0xff] %v14308_v42  ;;  %v16454_v48 = vmax.f32 %v16452_v44, %v16453_v3  ;;  %v16464_v3 = vld [vmem:[#allocation105_spill] sm:$0xff] }
 0x5a4   : > { %16449 = vst [vmem:[#allocation153_spill] sm:$0xff] %v14305_v47  ;;  %v7125_v40 = vpop.f32.mrb[72].mxu0  ;;  %v16458_v47 = vld [vmem:[#allocation50_spill] sm:$0xff] }
 0x5a5   : > { %v7126_v0 = vadd.f32 %v7125_v40, %v16451_v30  ;;  %v7238_v10 = vpop.f32.mrb[72].mxu1  ;;  %v7127_v28 = vpop.f32.mrb[73].mxu0  ;;  %v16459_v40 = vld [vmem:[#allocation22_spill] sm:$0xff] }
 0x5a6   : > { %v7128_v4 = vadd.f32 %v7127_v28, %v16451_v30  ;;  %v7240_v39 = vpop.f32.mrb[73].mxu1  ;;  %v7129_v13 = vpop.f32.mrb[74].mxu0  ;;  %v14322_v5 = vadd.f32 %v7238_v10, %v16451_v30  ;;  %v16460_v6 = vmax.f32 %v16458_v47, %v16459_v40  ;;  %v16463_v10 = vld [vmem:[#allocation23_spill] sm:$0xff] }
 0x5a7   : > { %v14319_v43 = vmax.f32 %v16454_v48, %v7126_v0  ;;  %v7130_v34 = vadd.f32 %v7129_v13, %v16457_v25  ;;  %v7242_v22 = vpop.f32.mrb[74].mxu1  ;;  %v7131_v42 = vpop.f32.mrb[75].mxu0  ;;  %v14331_v28 = vadd.f32 %v7240_v39, %v16451_v30  ;;  %v16465_v48 = vmax.f32 %v16463_v10, %v16464_v3  ;;  %v16469_v39 = vld [vmem:[#allocation25_spill] sm:$0xff]  ;;  %v16476_v0 = vld [vmem:[#allocation40_spill] sm:$0xff] }
 0x5a8   : > { %16456 = vst [vmem:[#allocation119_spill] sm:$0xff] %v14322_v5  ;;  %v14328_v52 = vmax.f32 %v16460_v6, %v7128_v4  ;;  %v7132_v23 = vadd.f32 %v7131_v42, %v16457_v25  ;;  %v7244_v44 = vpop.f32.mrb[75].mxu1  ;;  %v14342_v32 = vadd.f32 %v7242_v22, %v16457_v25  ;;  %v16468_v4 = vld [vmem:[#allocation106_spill] sm:$0xff] }
 0x5a9   : > { %16455 = vst [vmem:[#allocation117_spill] sm:$0xff] %v14319_v43  ;;  %16462 = vst [vmem:[#allocation122_spill] sm:$0xff] %v14331_v28  ;;  %v14339_v13 = vmax.f32 %v16465_v48, %v7130_v34  ;;  %v16470_v47 = vmax.f32 %v16468_v4, %v16469_v39  ;;  %v14352_v42 = vadd.f32 %v7244_v44, %v16457_v25  ;;  %v16474_v39 = vld [vmem:[#allocation9_spill] sm:$0xff] }
 0x5aa   : > { %16461 = vst [vmem:[#allocation120_spill] sm:$0xff] %v14328_v52  ;;  %16467 = vst [vmem:[#allocation138_spill] sm:$0xff] %v14342_v32 }
 0x5ab   : > { %16466 = vst [vmem:[#allocation125_spill] sm:$0xff] %v14339_v13  ;;  %v14349_v40 = vmax.f32 %v16470_v47, %v7132_v23  ;;  %16472 = vst [vmem:[#allocation136_spill] sm:$0xff] %v14352_v42  ;;  %v16473_v23 = vld [vmem:[#allocation51_spill] sm:$0xff] }
 0x5ac   : > { %v7135_v10 = vpop.f32.mrb[76].mxu0  ;;  %v16475_v47 = vmax.f32 %v16473_v23, %v16474_v39  ;;  %v16482_v39 = vld [vmem:[#allocation116_spill] sm:$0xff] }
 0x5ad   : > { %16471 = vst [vmem:[#allocation139_spill] sm:$0xff] %v14349_v40  ;;  %v7136_v22 = vadd.f32 %v7135_v10, %v16366_v19  ;;  %v7248_v3 = vpop.f32.mrb[76].mxu1  ;;  %v7137_v48 = vpop.f32.mrb[77].mxu0  ;;  %v16477_v40 = vld [vmem:[#allocation26_spill] sm:$0xff]  ;;  %v16478_v10 = vld [vmem:[#allocation59_spill] sm:$0xff] }
 0x5ae   : > { %v7138_v6 = vadd.f32 %v7137_v48, %v16366_v19  ;;  %v7250_v28 = vpop.f32.mrb[77].mxu1  ;;  %v7139_v4 = vpop.f32.mrb[78].mxu0  ;;  %v14366_v52 = vadd.f32 %v7248_v3, %v16366_v19  ;;  %v16479_v13 = vmax.f32 %v16477_v40, %v16478_v10  ;;  %v16481_v3 = vld [vmem:[#allocation109_spill] sm:$0xff] }
 0x5af   : > { %v14363_v44 = vmax.f32 %v16475_v47, %v7136_v22  ;;  %v7140_v32 = vadd.f32 %v7139_v4, %v16476_v0  ;;  %v7252_v34 = vpop.f32.mrb[78].mxu1  ;;  %v7141_v42 = vpop.f32.mrb[79].mxu0  ;;  %v14375_v48 = vadd.f32 %v7250_v28, %v16366_v19  ;;  %v16483_v47 = vmax.f32 %v16481_v3, %v16482_v39  ;;  %v16485_v28 = vld [vmem:[#allocation110_spill] sm:$0xff] }
 0x5b0   : > { %v14372_v25 = vmax.f32 %v16479_v13, %v7138_v6  ;;  %v7142_v5 = vadd.f32 %v7141_v42, %v16476_v0  ;;  %v7254_v23 = vpop.f32.mrb[79].mxu1  ;;  %v14386_v43 = vadd.f32 %v7252_v34, %v16476_v0  ;;  %v16484_v6 = vld [vmem:[#allocation7_spill] sm:$0xff] }
 0x5b1   : > { %16480 = vst [vmem:[#allocation137_spill] sm:$0xff] %v14375_v48  ;;  %v14383_v4 = vmax.f32 %v16483_v47, %v7140_v32  ;;  %v16486_v40 = vmax.f32 %v16484_v6, %v16485_v28  ;;  %v14396_v42 = vadd.f32 %v7254_v23, %v16476_v0 }
 0x5b3   : > { %v14393_v10 = vmax.f32 %v16486_v40, %v7142_v5  ;;  %16488 = vst [vmem:[#allocation143_spill] sm:$0xff] %v14396_v42  ;;  %v16489_v5 = vmax.f32 %v14052_v24, %v14055_v41 }
 0x5b4   : > { %v7145_v3 = vpop.f32.mrb[80].mxu0 }
 0x5b5   : > { %16487 = vst [vmem:[#allocation140_spill] sm:$0xff] %v14393_v10  ;;  %v7146_v34 = vadd.f32 %v7145_v3, %v16277_v54  ;;  %v7258_v39 = vpop.f32.mrb[80].mxu1  ;;  %v7147_v47 = vpop.f32.mrb[81].mxu0  ;;  %v16490_v3 = vmax.f32 %v14061_v16, %v14064_v26  ;;  %v16493_v26 = vld [vmem:[#allocation145_spill] sm:$0xff] }
 0x5b6   : > { %v7148_v13 = vadd.f32 %v7147_v47, %v16277_v54  ;;  %v7260_v48 = vpop.f32.mrb[81].mxu1  ;;  %v7149_v6 = vpop.f32.mrb[82].mxu0  ;;  %v14410_v28 = vadd.f32 %v7258_v39, %v16277_v54 }
 0x5b7   : > { %v14407_v23 = vmax.f32 %v16489_v5, %v7146_v34  ;;  %v7150_v40 = vadd.f32 %v7149_v6, %v16392_v29  ;;  %v7262_v32 = vpop.f32.mrb[82].mxu1  ;;  %v7151_v22 = vpop.f32.mrb[83].mxu0  ;;  %v14419_v47 = vadd.f32 %v7260_v48, %v16277_v54  ;;  %v16491_v34 = vmax.f32 %v14072_v53, %v14075_v15  ;;  %v16494_v48 = vld [vmem:[#allocation148_spill] sm:$0xff] }
 0x5b8   : > { %v14416_v42 = vmax.f32 %v16490_v3, %v7148_v13  ;;  %v7152_v10 = vadd.f32 %v7151_v22, %v16392_v29  ;;  %v7264_v24 = vpop.f32.mrb[83].mxu1  ;;  %v14430_v6 = vadd.f32 %v7262_v32, %v16392_v29  ;;  %v16495_v13 = vmax.f32 %v16493_v26, %v16494_v48 }
 0x5b9   : > { %v14427_v39 = vmax.f32 %v16491_v34, %v7150_v40  ;;  %v14440_v22 = vadd.f32 %v7264_v24, %v16392_v29 }
 0x5ba   : > { %16492 = vst [vmem:[#allocation35_spill] sm:$0xff] %v14430_v6  ;;  %v14437_v5 = vmax.f32 %v16495_v13, %v7152_v10  ;;  %v16498_v10 = vmax.f32 %v14099_v59, %v14102_v36 }
 0x5bb   : > { %16497 = vst [vmem:[#allocation154_spill] sm:$0xff] %v14440_v22 }
 0x5bc   : > { %16496 = vst [vmem:[#allocation33_spill] sm:$0xff] %v14437_v5  ;;  %v7155_v53 = vpop.f32.mrb[84].mxu0 }
 0x5bd   : > { %v7156_v32 = vadd.f32 %v7155_v53, %v16154_v37  ;;  %v7268_v40 = vpop.f32.mrb[84].mxu1  ;;  %v7157_v34 = vpop.f32.mrb[85].mxu0  ;;  %v16499_v53 = vld [vmem:[#allocation158_spill] sm:$0xff] }
 0x5be   : > { %v7158_v16 = vadd.f32 %v7157_v34, %v16154_v37  ;;  %v7270_v41 = vpop.f32.mrb[85].mxu1  ;;  %v7159_v26 = vpop.f32.mrb[86].mxu0  ;;  %v14454_v48 = vadd.f32 %v7268_v40, %v16154_v37  ;;  %v16500_v22 = vmax.f32 %v14108_v51, %v16499_v53 }
 0x5bf   : > { %v14451_v24 = vmax.f32 %v16498_v10, %v7156_v32  ;;  %v7160_v13 = vadd.f32 %v7159_v26, %v16303_v7  ;;  %v7272_v15 = vpop.f32.mrb[86].mxu1  ;;  %v7161_v3 = vpop.f32.mrb[87].mxu0  ;;  %v14463_v34 = vadd.f32 %v7270_v41, %v16154_v37  ;;  %v16501_v32 = vmax.f32 %v14119_v35, %v14122_v11  ;;  %v16504_v41 = vld [vmem:[#allocation150_spill] sm:$0xff] }
 0x5c0   : > { %v14460_v5 = vmax.f32 %v16500_v22, %v7158_v16  ;;  %v7162_v6 = vadd.f32 %v7161_v3, %v16303_v7  ;;  %v7274_v59 = vpop.f32.mrb[87].mxu1  ;;  %v14474_v26 = vadd.f32 %v7272_v15, %v16303_v7  ;;  %v16503_v16 = vld [vmem:[#allocation149_spill] sm:$0xff] }
 0x5c1   : > { %v14471_v40 = vmax.f32 %v16501_v32, %v7160_v13  ;;  %v16505_v22 = vmax.f32 %v16503_v16, %v16504_v41  ;;  %v14484_v3 = vadd.f32 %v7274_v59, %v16303_v7 }
 0x5c2   : > { %16502 = vst [vmem:[#allocation10_spill] sm:$0xff] %v14474_v26 }
 0x5c3   : > { %v14481_v10 = vmax.f32 %v16505_v22, %v7162_v6  ;;  %16507 = vst [vmem:[#allocation18_spill] sm:$0xff] %v14484_v3  ;;  %v16508_v6 = vmax.f32 %v14143_v62, %v14146_v61 }
 0x5c4   : > { %v7165_v11 = vpop.f32.mrb[88].mxu0 }
 0x5c5   : > { %16506 = vst [vmem:[#allocation11_spill] sm:$0xff] %v14481_v10  ;;  %v7166_v15 = vadd.f32 %v7165_v11, %v16035_v55  ;;  %v7278_v13 = vpop.f32.mrb[88].mxu1  ;;  %v7167_v32 = vpop.f32.mrb[89].mxu0  ;;  %v16509_v11 = vld [vmem:[#allocation29_spill] sm:$0xff] }
 0x5c6   : > { %v7168_v51 = vadd.f32 %v7167_v32, %v16035_v55  ;;  %v7280_v36 = vpop.f32.mrb[89].mxu1  ;;  %v7169_v16 = vpop.f32.mrb[90].mxu0  ;;  %v14498_v41 = vadd.f32 %v7278_v13, %v16035_v55  ;;  %v16510_v3 = vmax.f32 %v14152_v31, %v16509_v11 }
 0x5c7   : > { %v14495_v59 = vmax.f32 %v16508_v6, %v7166_v15  ;;  %v7170_v22 = vadd.f32 %v7169_v16, %v16186_v9  ;;  %v7282_v35 = vpop.f32.mrb[90].mxu1  ;;  %v7171_v53 = vpop.f32.mrb[91].mxu0  ;;  %v14507_v32 = vadd.f32 %v7280_v36, %v16035_v55  ;;  %v16511_v15 = vmax.f32 %v14163_v27, %v14166_v38  ;;  %v16514_v36 = vld [vmem:[#allocation113_spill] sm:$0xff] }
 0x5c8   : > { %v14504_v10 = vmax.f32 %v16510_v3, %v7168_v51  ;;  %v7172_v26 = vadd.f32 %v7171_v53, %v16186_v9  ;;  %v7284_v62 = vpop.f32.mrb[91].mxu1  ;;  %v14518_v16 = vadd.f32 %v7282_v35, %v16186_v9  ;;  %v16513_v51 = vld [vmem:[#allocation30_spill] sm:$0xff] }
 0x5c9   : > { %v14515_v13 = vmax.f32 %v16511_v15, %v7170_v22  ;;  %v16515_v3 = vmax.f32 %v16513_v51, %v16514_v36  ;;  %v14528_v53 = vadd.f32 %v7284_v62, %v16186_v9 }
 0x5ca   : > { %16512 = vst [vmem:[#allocation15_spill] sm:$0xff] %v14518_v16 }
 0x5cb   : > { %v14525_v6 = vmax.f32 %v16515_v3, %v7172_v26  ;;  %16517 = vst [vmem:[#allocation14_spill] sm:$0xff] %v14528_v53  ;;  %v16518_v26 = vmax.f32 %v14187_v58, %v14190_v21 }
 0x5cc   : > { %v7175_v38 = vpop.f32.mrb[92].mxu0 }
 0x5cd   : > { %16516 = vst [vmem:[#allocation58_spill] sm:$0xff] %v14525_v6  ;;  %v7176_v35 = vadd.f32 %v7175_v38, %v16066_v14  ;;  %v7288_v22 = vpop.f32.mrb[92].mxu1  ;;  %v7177_v15 = vpop.f32.mrb[93].mxu0  ;;  %v16519_v38 = vld [vmem:[#allocation114_spill] sm:$0xff] }
 0x5ce   : > { %v7178_v31 = vadd.f32 %v7177_v15, %v16066_v14  ;;  %v7290_v61 = vpop.f32.mrb[93].mxu1  ;;  %v7179_v51 = vpop.f32.mrb[94].mxu0  ;;  %v14542_v36 = vadd.f32 %v7288_v22, %v16066_v14  ;;  %v16520_v53 = vmax.f32 %v14196_v49, %v16519_v38 }
 0x5cf   : > { %v14539_v62 = vmax.f32 %v16518_v26, %v7176_v35  ;;  %v7180_v3 = vadd.f32 %v7179_v51, %v16071_v56  ;;  %v7292_v27 = vpop.f32.mrb[94].mxu1  ;;  %v7181_v11 = vpop.f32.mrb[95].mxu0  ;;  %v14551_v15 = vadd.f32 %v7290_v61, %v16066_v14  ;;  %v16521_v35 = vmax.f32 %v14207_v2, %v14210_v63  ;;  %v16523_v61 = vld [vmem:[#allocation108_spill] sm:$0xff] }
 0x5d0   : > { %v14548_v6 = vmax.f32 %v16520_v53, %v7178_v31  ;;  %v7182_v16 = vadd.f32 %v7181_v11, %v16071_v56  ;;  %v7294_v58 = vpop.f32.mrb[95].mxu1  ;;  %v14562_v51 = vadd.f32 %v7292_v27, %v16071_v56  ;;  %v16522_v31 = vld [vmem:[#allocation107_spill] sm:$0xff] }
 0x5d1   : > { %v14559_v22 = vmax.f32 %v16521_v35, %v7180_v3  ;;  %v16524_v53 = vmax.f32 %v16522_v31, %v16523_v61  ;;  %v14572_v11 = vadd.f32 %v7294_v58, %v16071_v56 }
 0x5d3   : > { %v14569_v26 = vmax.f32 %v16524_v53, %v7182_v16  ;;  %16526 = vst [vmem:[#allocation13_spill] sm:$0xff] %v14572_v11  ;;  %v16527_v16 = vmax.f32 %v14231_v50, %v14234_v45 }
 0x5d4   : > { %v7331_v63 = vpop.f32.mrb[96].mxu0 }
 0x5d5   : > { %16525 = vst [vmem:[#allocation62_spill] sm:$0xff] %v14569_v26  ;;  %v7332_v27 = vadd.f32 %v7331_v63, %v12219_v8  ;;  %v7444_v3 = vpop.f32.mrb[96].mxu1  ;;  %v7333_v35 = vpop.f32.mrb[97].mxu0  ;;  %v16528_v63 = vmax.f32 %v14240_v12, %v14243_v18  ;;  %v16533_v18 = vmax.f32 %v14261_v46, %v14264_v33  ;;  %v16536_v33 = vld [vmem:[#allocation118_spill] sm:$0xff] }
 0x5d6   : > { %v7334_v49 = vadd.f32 %v7333_v35, %v12219_v8  ;;  %v7446_v21 = vpop.f32.mrb[97].mxu1  ;;  %v7335_v31 = vpop.f32.mrb[98].mxu0  ;;  %v14586_v61 = vadd.f32 %v7444_v3, %v12219_v8 }
 0x5d7   : > { %v14583_v58 = vmax.f32 %v16527_v16, %v7332_v27  ;;  %v7336_v53 = vadd.f32 %v7335_v31, %v12223_v17  ;;  %v7448_v2 = vpop.f32.mrb[98].mxu1  ;;  %v7337_v38 = vpop.f32.mrb[99].mxu0  ;;  %v14595_v35 = vadd.f32 %v7446_v21, %v12219_v8  ;;  %v16530_v27 = vmax.f32 %v14251_v1, %v14254_v60 }
 0x5d8   : > { %v14592_v11 = vmax.f32 %v16528_v63, %v7334_v49  ;;  %v7338_v26 = vadd.f32 %v7337_v38, %v12223_v17  ;;  %v7450_v50 = vpop.f32.mrb[99].mxu1  ;;  %v14606_v31 = vadd.f32 %v7448_v2, %v12223_v17  ;;  %v16540_v38 = vld [vmem:[#allocation36_spill] sm:$0xff] }
 0x5d9   : > { %16529 = vst [vmem:[#allocation45_spill] sm:$0xff] %v14595_v35  ;;  %v14603_v3 = vmax.f32 %v16530_v27, %v7336_v53  ;;  %v14616_v49 = vadd.f32 %v7450_v50, %v12223_v17 }
 0x5da   : > { %16532 = vst [vmem:[#allocation156_spill] sm:$0xff] %v14606_v31  ;;  %v14613_v21 = vmax.f32 %v16533_v18, %v7338_v26  ;;  %v16537_v26 = vmax.f32 %v14275_v20, %v16536_v33  ;;  %v16547_v33 = vld [vmem:[#allocation152_spill] sm:$0xff] }
 0x5db   : > { %16531 = vst [vmem:[#allocation87_spill] sm:$0xff] %v14603_v3  ;;  %16535 = vst [vmem:[#allocation16_spill] sm:$0xff] %v14616_v49  ;;  %v16541_v49 = vld [vmem:[#allocation115_spill] sm:$0xff] }
 0x5dc   : > { %16534 = vst [vmem:[#allocation5_spill] sm:$0xff] %v14613_v21  ;;  %v7341_v60 = vpop.f32.mrb[100].mxu0 }
 0x5dd   : > { %v7342_v2 = vadd.f32 %v7341_v60, %v12265_v57  ;;  %v7454_v16 = vpop.f32.mrb[100].mxu1  ;;  %v7343_v53 = vpop.f32.mrb[101].mxu0  ;;  %v16542_v60 = vld [vmem:[#allocation151_spill] sm:$0xff] }
 0x5de   : > { %v7344_v63 = vadd.f32 %v7343_v53, %v12265_v57  ;;  %v7456_v27 = vpop.f32.mrb[101].mxu1  ;;  %v7345_v46 = vpop.f32.mrb[102].mxu0  ;;  %v14630_v18 = vadd.f32 %v7454_v16, %v12265_v57  ;;  %v16543_v21 = vmax.f32 %v16541_v49, %v16542_v60  ;;  %v16546_v16 = vld [vmem:[#allocation160_spill] sm:$0xff]  ;;  %v16551_v49 = vld [vmem:[#allocation153_spill] sm:$0xff] }
 0x5df   : > { %v14627_v50 = vmax.f32 %v16537_v26, %v7342_v2  ;;  %v7346_v12 = vadd.f32 %v7345_v46, %v16540_v38  ;;  %v7458_v1 = vpop.f32.mrb[102].mxu1  ;;  %v7347_v45 = vpop.f32.mrb[103].mxu0  ;;  %v14639_v53 = vadd.f32 %v7456_v27, %v12265_v57  ;;  %v16548_v26 = vmax.f32 %v16546_v16, %v16547_v33  ;;  %v16559_v2 = vld [vmem:[#allocation38_spill] sm:$0xff] }
 0x5e0   : > { %16539 = vst [vmem:[#allocation65_spill] sm:$0xff] %v14630_v18  ;;  %v14636_v31 = vmax.f32 %v16543_v21, %v7344_v63  ;;  %v7348_v3 = vadd.f32 %v7347_v45, %v16540_v38  ;;  %v7460_v20 = vpop.f32.mrb[103].mxu1  ;;  %v14650_v35 = vadd.f32 %v7458_v1, %v16540_v38  ;;  %v16552_v63 = vld [vmem:[#allocation112_spill] sm:$0xff] }
 0x5e1   : > { %16538 = vst [vmem:[#allocation6_spill] sm:$0xff] %v14627_v50  ;;  %16545 = vst [vmem:[#allocation12_spill] sm:$0xff] %v14639_v53  ;;  %v14647_v46 = vmax.f32 %v16548_v26, %v7346_v12  ;;  %v16553_v27 = vmax.f32 %v16551_v49, %v16552_v63  ;;  %v14660_v45 = vadd.f32 %v7460_v20, %v16540_v38  ;;  %v16557_v63 = vld [vmem:[#allocation119_spill] sm:$0xff] }
 0x5e2   : > { %16544 = vst [vmem:[#allocation157_spill] sm:$0xff] %v14636_v31  ;;  %16550 = vst [vmem:[#allocation91_spill] sm:$0xff] %v14650_v35 }
 0x5e3   : > { %16549 = vst [vmem:[#allocation21_spill] sm:$0xff] %v14647_v46  ;;  %v14657_v60 = vmax.f32 %v16553_v27, %v7348_v3  ;;  %16555 = vst [vmem:[#allocation88_spill] sm:$0xff] %v14660_v45  ;;  %v16556_v3 = vld [vmem:[#allocation117_spill] sm:$0xff] }
 0x5e4   : > { %v7351_v16 = vpop.f32.mrb[104].mxu0  ;;  %v16558_v27 = vmax.f32 %v16556_v3, %v16557_v63  ;;  %v16565_v63 = vld [vmem:[#allocation138_spill] sm:$0xff] }
 0x5e5   : > { %16554 = vst [vmem:[#allocation147_spill] sm:$0xff] %v14657_v60  ;;  %v7352_v1 = vadd.f32 %v7351_v16, %v16451_v30  ;;  %v7464_v33 = vpop.f32.mrb[104].mxu1  ;;  %v7353_v26 = vpop.f32.mrb[105].mxu0  ;;  %v16560_v60 = vld [vmem:[#allocation120_spill] sm:$0xff]  ;;  %v16561_v16 = vld [vmem:[#allocation122_spill] sm:$0xff] }
 0x5e6   : > { %v7354_v21 = vadd.f32 %v7353_v26, %v16451_v30  ;;  %v7466_v53 = vpop.f32.mrb[105].mxu1  ;;  %v7355_v49 = vpop.f32.mrb[106].mxu0  ;;  %v14674_v31 = vadd.f32 %v7464_v33, %v16451_v30  ;;  %v16562_v46 = vmax.f32 %v16560_v60, %v16561_v16  ;;  %v16564_v33 = vld [vmem:[#allocation125_spill] sm:$0xff] }
 0x5e7   : > { %v14671_v20 = vmax.f32 %v16558_v27, %v7352_v1  ;;  %v7356_v35 = vadd.f32 %v7355_v49, %v16559_v2  ;;  %v7468_v12 = vpop.f32.mrb[106].mxu1  ;;  %v7357_v45 = vpop.f32.mrb[107].mxu0  ;;  %v14683_v26 = vadd.f32 %v7466_v53, %v16451_v30  ;;  %v16566_v27 = vmax.f32 %v16564_v33, %v16565_v63  ;;  %v16569_v53 = vld [vmem:[#allocation136_spill] sm:$0xff] }
 0x5e8   : > { %v14680_v38 = vmax.f32 %v16562_v46, %v7354_v21  ;;  %v7358_v18 = vadd.f32 %v7357_v45, %v16559_v2  ;;  %v7470_v3 = vpop.f32.mrb[107].mxu1  ;;  %v14694_v50 = vadd.f32 %v7468_v12, %v16559_v2  ;;  %v16568_v21 = vld [vmem:[#allocation139_spill] sm:$0xff] }
 0x5e9   : > { %16563 = vst [vmem:[#allocation8_spill] sm:$0xff] %v14683_v26  ;;  %v14691_v49 = vmax.f32 %v16566_v27, %v7356_v35  ;;  %v16570_v60 = vmax.f32 %v16568_v21, %v16569_v53  ;;  %v14704_v45 = vadd.f32 %v7470_v3, %v16559_v2 }
 0x5ea   : > { %16567 = vst [vmem:[#allocation17_spill] sm:$0xff] %v14694_v50 }
 0x5eb   : > { %v14701_v16 = vmax.f32 %v16570_v60, %v7358_v18  ;;  %16572 = vst [vmem:[#allocation49_spill] sm:$0xff] %v14704_v45  ;;  %v16573_v18 = vmax.f32 %v14363_v44, %v14366_v52 }
 0x5ec   : > { %v7361_v33 = vpop.f32.mrb[108].mxu0 }
 0x5ed   : > { %16571 = vst [vmem:[#allocation69_spill] sm:$0xff] %v14701_v16  ;;  %v7362_v12 = vadd.f32 %v7361_v33, %v16366_v19  ;;  %v7474_v63 = vpop.f32.mrb[108].mxu1  ;;  %v7363_v27 = vpop.f32.mrb[109].mxu0  ;;  %v16574_v33 = vld [vmem:[#allocation137_spill] sm:$0xff] }
 0x5ee   : > { %v7364_v46 = vadd.f32 %v7363_v27, %v16366_v19  ;;  %v7476_v26 = vpop.f32.mrb[109].mxu1  ;;  %v7365_v21 = vpop.f32.mrb[110].mxu0  ;;  %v14718_v53 = vadd.f32 %v7474_v63, %v16366_v19  ;;  %v16575_v45 = vmax.f32 %v14372_v25, %v16574_v33 }
 0x5ef   : > { %v14715_v3 = vmax.f32 %v16573_v18, %v7362_v12  ;;  %v7366_v60 = vadd.f32 %v7365_v21, %v16476_v0  ;;  %v7478_v35 = vpop.f32.mrb[110].mxu1  ;;  %v7367_v1 = vpop.f32.mrb[111].mxu0  ;;  %v14727_v27 = vadd.f32 %v7476_v26, %v16366_v19  ;;  %v16576_v12 = vmax.f32 %v14383_v4, %v14386_v43  ;;  %v16578_v26 = vld [vmem:[#allocation143_spill] sm:$0xff] }
 0x5f0   : > { %v14724_v16 = vmax.f32 %v16575_v45, %v7364_v46  ;;  %v7368_v50 = vadd.f32 %v7367_v1, %v16476_v0  ;;  %v7480_v52 = vpop.f32.mrb[111].mxu1  ;;  %v14738_v21 = vadd.f32 %v7478_v35, %v16476_v0  ;;  %v16577_v46 = vld [vmem:[#allocation140_spill] sm:$0xff] }
 0x5f1   : > { %v14735_v63 = vmax.f32 %v16576_v12, %v7366_v60  ;;  %v16579_v45 = vmax.f32 %v16577_v46, %v16578_v26  ;;  %v14748_v1 = vadd.f32 %v7480_v52, %v16476_v0 }
 0x5f3   : > { %v14745_v18 = vmax.f32 %v16579_v45, %v7368_v50  ;;  %16581 = vst [vmem:[#allocation95_spill] sm:$0xff] %v14748_v1  ;;  %v16582_v50 = vmax.f32 %v14407_v23, %v14410_v28 }
 0x5f4   : > { %v7371_v4 = vpop.f32.mrb[112].mxu0 }
 0x5f5   : > { %16580 = vst [vmem:[#allocation90_spill] sm:$0xff] %v14745_v18  ;;  %v7372_v35 = vadd.f32 %v7371_v4, %v16277_v54  ;;  %v7484_v60 = vpop.f32.mrb[112].mxu1  ;;  %v7373_v12 = vpop.f32.mrb[113].mxu0  ;;  %v16583_v4 = vmax.f32 %v14416_v42, %v14419_v47  ;;  %v16587_v47 = vld [vmem:[#allocation33_spill] sm:$0xff] }
 0x5f6   : > { %v7374_v25 = vadd.f32 %v7373_v12, %v16277_v54  ;;  %v7486_v44 = vpop.f32.mrb[113].mxu1  ;;  %v7375_v46 = vpop.f32.mrb[114].mxu0  ;;  %v14762_v26 = vadd.f32 %v7484_v60, %v16277_v54 }
 0x5f7   : > { %v14759_v52 = vmax.f32 %v16582_v50, %v7372_v35  ;;  %v7376_v45 = vadd.f32 %v7375_v46, %v16392_v29  ;;  %v7488_v43 = vpop.f32.mrb[114].mxu1  ;;  %v7377_v33 = vpop.f32.mrb[115].mxu0  ;;  %v14771_v12 = vadd.f32 %v7486_v44, %v16277_v54  ;;  %v16585_v35 = vld [vmem:[#allocation35_spill] sm:$0xff]  ;;  %v16588_v44 = vld [vmem:[#allocation154_spill] sm:$0xff] }
 0x5f8   : > { %v14768_v1 = vmax.f32 %v16583_v4, %v7374_v25  ;;  %v7378_v18 = vadd.f32 %v7377_v33, %v16392_v29  ;;  %v7490_v23 = vpop.f32.mrb[115].mxu1  ;;  %v16586_v60 = vmax.f32 %v14427_v39, %v16585_v35  ;;  %v14782_v50 = vadd.f32 %v7488_v43, %v16392_v29 }
 0x5f9   : > { %16584 = vst [vmem:[#allocation70_spill] sm:$0xff] %v14771_v12  ;;  %v16589_v25 = vmax.f32 %v16587_v47, %v16588_v44  ;;  %v14792_v33 = vadd.f32 %v7490_v23, %v16392_v29 }
 0x5fa   : > { %v14779_v46 = vmax.f32 %v16586_v60, %v7376_v45 }
 0x5fb   : > { %v14789_v4 = vmax.f32 %v16589_v25, %v7378_v18  ;;  %16591 = vst [vmem:[#allocation92_spill] sm:$0xff] %v14792_v33  ;;  %v16592_v18 = vmax.f32 %v14451_v24, %v14454_v48 }
 0x5fc   : > { %v7381_v45 = vpop.f32.mrb[116].mxu0 }
 0x5fd   : > { %16590 = vst [vmem:[#allocation63_spill] sm:$0xff] %v14789_v4  ;;  %v7382_v43 = vadd.f32 %v7381_v45, %v16154_v37  ;;  %v7494_v35 = vpop.f32.mrb[116].mxu1  ;;  %v7383_v60 = vpop.f32.mrb[117].mxu0  ;;  %v16593_v45 = vmax.f32 %v14460_v5, %v14463_v34  ;;  %v16597_v34 = vld [vmem:[#allocation11_spill] sm:$0xff] }
 0x5fe   : > { %v7384_v42 = vadd.f32 %v7383_v60, %v16154_v37  ;;  %v7496_v12 = vpop.f32.mrb[117].mxu1  ;;  %v7385_v47 = vpop.f32.mrb[118].mxu0  ;;  %v14806_v44 = vadd.f32 %v7494_v35, %v16154_v37 }
 0x5ff   : > { %v14803_v23 = vmax.f32 %v16592_v18, %v7382_v43  ;;  %v7386_v25 = vadd.f32 %v7385_v47, %v16303_v7  ;;  %v7498_v39 = vpop.f32.mrb[118].mxu1  ;;  %v7387_v28 = vpop.f32.mrb[119].mxu0  ;;  %v14815_v60 = vadd.f32 %v7496_v12, %v16154_v37  ;;  %v16595_v43 = vld [vmem:[#allocation10_spill] sm:$0xff] }
 0x600   : > { %v14812_v33 = vmax.f32 %v16593_v45, %v7384_v42  ;;  %v7388_v4 = vadd.f32 %v7387_v28, %v16303_v7  ;;  %v7500_v24 = vpop.f32.mrb[119].mxu1  ;;  %v16596_v35 = vmax.f32 %v14471_v40, %v16595_v43  ;;  %v14826_v18 = vadd.f32 %v7498_v39, %v16303_v7  ;;  %v16598_v12 = vld [vmem:[#allocation18_spill] sm:$0xff] }
 0x601   : > { %16594 = vst [vmem:[#allocation64_spill] sm:$0xff] %v14815_v60  ;;  %v16599_v42 = vmax.f32 %v16597_v34, %v16598_v12  ;;  %v14836_v28 = vadd.f32 %v7500_v24, %v16303_v7 }
 0x602   : > { %v14823_v47 = vmax.f32 %v16596_v35, %v7386_v25 }
 0x603   : > { %v14833_v45 = vmax.f32 %v16599_v42, %v7388_v4  ;;  %16601 = vst [vmem:[#allocation73_spill] sm:$0xff] %v14836_v28  ;;  %v16602_v4 = vmax.f32 %v14495_v59, %v14498_v41 }
 0x604   : > { %v7391_v25 = vpop.f32.mrb[120].mxu0 }
 0x605   : > { %16600 = vst [vmem:[#allocation159_spill] sm:$0xff] %v14833_v45  ;;  %v7392_v39 = vadd.f32 %v7391_v25, %v16035_v55  ;;  %v7504_v43 = vpop.f32.mrb[120].mxu1  ;;  %v7393_v35 = vpop.f32.mrb[121].mxu0  ;;  %v16603_v25 = vmax.f32 %v14504_v10, %v14507_v32  ;;  %v16607_v32 = vld [vmem:[#allocation58_spill] sm:$0xff] }
 0x606   : > { %v7394_v5 = vadd.f32 %v7393_v35, %v16035_v55  ;;  %v7506_v60 = vpop.f32.mrb[121].mxu1  ;;  %v7395_v34 = vpop.f32.mrb[122].mxu0  ;;  %v14850_v12 = vadd.f32 %v7504_v43, %v16035_v55 }
 0x607   : > { %v14847_v24 = vmax.f32 %v16602_v4, %v7392_v39  ;;  %v7396_v42 = vadd.f32 %v7395_v34, %v16186_v9  ;;  %v7508_v40 = vpop.f32.mrb[122].mxu1  ;;  %v7397_v48 = vpop.f32.mrb[123].mxu0  ;;  %v14859_v35 = vadd.f32 %v7506_v60, %v16035_v55  ;;  %v16605_v39 = vld [vmem:[#allocation15_spill] sm:$0xff]  ;;  %v16608_v60 = vld [vmem:[#allocation14_spill] sm:$0xff] }
 0x608   : > { %v14856_v28 = vmax.f32 %v16603_v25, %v7394_v5  ;;  %v7398_v45 = vadd.f32 %v7397_v48, %v16186_v9  ;;  %v7510_v59 = vpop.f32.mrb[123].mxu1  ;;  %v16606_v43 = vmax.f32 %v14515_v13, %v16605_v39  ;;  %v14870_v4 = vadd.f32 %v7508_v40, %v16186_v9 }
 0x609   : > { %16604 = vst [vmem:[#allocation74_spill] sm:$0xff] %v14859_v35  ;;  %v16609_v5 = vmax.f32 %v16607_v32, %v16608_v60  ;;  %v14880_v48 = vadd.f32 %v7510_v59, %v16186_v9 }
 0x60a   : > { %v14867_v34 = vmax.f32 %v16606_v43, %v7396_v42 }
 0x60b   : > { %v14877_v25 = vmax.f32 %v16609_v5, %v7398_v45  ;;  %16611 = vst [vmem:[#allocation94_spill] sm:$0xff] %v14880_v48  ;;  %v16612_v45 = vmax.f32 %v14539_v62, %v14542_v36 }
 0x60c   : > { %v7401_v42 = vpop.f32.mrb[124].mxu0 }
 0x60d   : > { %16610 = vst [vmem:[#allocation89_spill] sm:$0xff] %v14877_v25  ;;  %v7402_v40 = vadd.f32 %v7401_v42, %v16066_v14  ;;  %v7514_v39 = vpop.f32.mrb[124].mxu1  ;;  %v7403_v43 = vpop.f32.mrb[125].mxu0  ;;  %v16615_v42 = vmax.f32 %v14548_v6, %v14551_v15  ;;  %v16621_v15 = vld [vmem:[#allocation62_spill] sm:$0xff] }
 0x60e   : > { %v7404_v10 = vadd.f32 %v7403_v43, %v16066_v14  ;;  %v7516_v35 = vpop.f32.mrb[125].mxu1  ;;  %v7405_v32 = vpop.f32.mrb[126].mxu0  ;;  %v14894_v60 = vadd.f32 %v7514_v39, %v16066_v14 }
 0x60f   : > { %v14891_v59 = vmax.f32 %v16612_v45, %v7402_v40  ;;  %v7406_v5 = vadd.f32 %v7405_v32, %v16071_v56  ;;  %v7518_v13 = vpop.f32.mrb[126].mxu1  ;;  %v7407_v41 = vpop.f32.mrb[127].mxu0  ;;  %v14903_v43 = vadd.f32 %v7516_v35, %v16066_v14  ;;  %v16618_v40 = vmax.f32 %v14559_v22, %v14562_v51  ;;  %v16622_v35 = vld [vmem:[#allocation13_spill] sm:$0xff] }
 0x610   : > { %16614 = vst [vmem:[#allocation96_spill] sm:$0xff] %v14894_v60  ;;  %v14900_v48 = vmax.f32 %v16615_v42, %v7404_v10  ;;  %v7408_v25 = vadd.f32 %v7407_v41, %v16071_v56  ;;  %v7520_v62 = vpop.f32.mrb[127].mxu1  ;;  %v14914_v32 = vadd.f32 %v7518_v13, %v16071_v56  ;;  %v16623_v10 = vmax.f32 %v16621_v15, %v16622_v35  ;;  %v16627_v22 = vld [vmem:[#allocation45_spill] sm:$0xff] }
 0x611   : > { %16613 = vst [vmem:[#allocation102_spill] sm:$0xff] %v14891_v59  ;;  %16617 = vst [vmem:[#allocation93_spill] sm:$0xff] %v14903_v43  ;;  %v14911_v39 = vmax.f32 %v16618_v40, %v7406_v5  ;;  %v14924_v41 = vadd.f32 %v7520_v62, %v16071_v56  ;;  %v16630_v56 = vld [vmem:[#allocation156_spill] sm:$0xff] }
 0x612   : > { %16616 = vst [vmem:[#allocation155_spill] sm:$0xff] %v14900_v48  ;;  %16620 = vst [vmem:[#allocation39_spill] sm:$0xff] %v14914_v32  ;;  %v14921_v45 = vmax.f32 %v16623_v10, %v7408_v25  ;;  %v16626_v25 = vmax.f32 %v14583_v58, %v14586_v61  ;;  %v16629_v48 = vld [vmem:[#allocation87_spill] sm:$0xff] }
 0x613   : > { %16619 = vst [vmem:[#allocation99_spill] sm:$0xff] %v14911_v39  ;;  %16625 = vst [vmem:[#allocation131_spill] sm:$0xff] %v14924_v41  ;;  %v16628_v41 = vmax.f32 %v14592_v11, %v16627_v22  ;;  %v16631_v58 = vmax.f32 %v16629_v48, %v16630_v56 }
 0x614   : > { %16624 = vst [vmem:[#allocation104_spill] sm:$0xff] %v14921_v45  ;;  %v7557_v51 = vpop.f32.mrb[128].mxu0 }
 0x615   : > { %v7558_v13 = vadd.f32 %v7557_v51, %v12219_v8  ;;  %v7559_v40 = vpop.f32.mrb[129].mxu0 }
 0x616   : > { %v7670_v5 = vpop.f32.mrb[128].mxu1  ;;  %v7560_v6 = vadd.f32 %v7559_v40, %v12219_v8  ;;  %v7561_v15 = vpop.f32.mrb[130].mxu0 }
 0x617   : > { %v7672_v36 = vpop.f32.mrb[129].mxu1  ;;  %v8165_v62 = vmax.f32 %v16626_v25, %v7558_v13  ;;  %v7671_v35 = vadd.f32 %v7670_v5, %v12219_v8  ;;  %v7562_v10 = vadd.f32 %v7561_v15, %v12223_v17  ;;  %v7563_v32 = vpop.f32.mrb[131].mxu0  ;;  %v16632_v15 = vld [vmem:[#allocation5_spill] sm:$0xff]  ;;  %v16633_v25 = vld [vmem:[#allocation16_spill] sm:$0xff] }
 0x618   : > { %v7674_v42 = vpop.f32.mrb[130].mxu1  ;;  %v8166_v51 = vmax.f32 %v16628_v41, %v7560_v6  ;;  %v7673_v45 = vadd.f32 %v7672_v36, %v12219_v8  ;;  %v7564_v40 = vadd.f32 %v7563_v32, %v12223_v17  ;;  %v16634_v60 = vmax.f32 %v16632_v15, %v16633_v25 }
 0x619   : > { %v7676_v39 = vpop.f32.mrb[131].mxu1  ;;  %v8197_v43 = vmax.f32 %v8165_v62, %v7671_v35  ;;  %v8167_v61 = vmax.f32 %v16631_v58, %v7562_v10  ;;  %v7675_v13 = vadd.f32 %v7674_v42, %v12223_v17  ;;  %v16636_v10 = vld [vmem:[#allocation65_spill] sm:$0xff] }
 0x61a   : > { %v8198_v5 = vmax.f32 %v8166_v51, %v7673_v45  ;;  %v8168_v59 = vmax.f32 %v16634_v60, %v7564_v40  ;;  %v7677_v11 = vadd.f32 %v7676_v39, %v12223_v17  ;;  %v16635_v45 = vld [vmem:[#allocation6_spill] sm:$0xff]  ;;  %v16638_v17 = vld [vmem:[#allocation36_spill] sm:$0xff] }
 0x61b   : > { %v8199_v6 = vmax.f32 %v8167_v61, %v7675_v13  ;;  %v16637_v51 = vmax.f32 %v16635_v45, %v16636_v10  ;;  %v16640_v61 = vld [vmem:[#allocation12_spill] sm:$0xff]  ;;  %v16645_v45 = vld [vmem:[#allocation147_spill] sm:$0xff] }
 0x61c   : > { %v8200_v41 = vmax.f32 %v8168_v59, %v7677_v11  ;;  %v7567_v8 = vpop.f32.mrb[132].mxu0  ;;  %v16646_v10 = vld [vmem:[#allocation88_spill] sm:$0xff] }
 0x61d   : > { %v8229_v36 = vpack.c.bf16 %v8199_v6, %v8197_v43  ;;  %v7568_v32 = vadd.f32 %v7567_v8, %v12265_v57  ;;  %v7569_v62 = vpop.f32.mrb[133].mxu0  ;;  %v16639_v43 = vld [vmem:[#allocation157_spill] sm:$0xff]  ;;  %v16643_v8 = vld [vmem:[#allocation91_spill] sm:$0xff] }
 0x61e   : > { %v7680_v22 = vpop.f32.mrb[132].mxu1  ;;  %v7570_v56 = vadd.f32 %v7569_v62, %v12265_v57  ;;  %v7571_v35 = vpop.f32.mrb[134].mxu0  ;;  %v8230_v42 = vpack.c.bf16 %v8200_v41, %v8198_v5  ;;  %v16641_v13 = vmax.f32 %v16639_v43, %v16640_v61  ;;  %v16642_v41 = vld [vmem:[#allocation21_spill] sm:$0xff] }
 0x61f   : > { %v7682_v48 = vpop.f32.mrb[133].mxu1  ;;  %v8169_v58 = vmax.f32 %v16637_v51, %v7568_v32  ;;  %v7681_v60 = vadd.f32 %v7680_v22, %v12265_v57  ;;  %v7572_v39 = vadd.f32 %v7571_v35, %v16638_v17  ;;  %v7573_v40 = vpop.f32.mrb[135].mxu0  ;;  %v16644_v32 = vmax.f32 %v16642_v41, %v16643_v8 }
 0x620   : > { %v7684_v59 = vpop.f32.mrb[134].mxu1  ;;  %v8170_v15 = vmax.f32 %v16641_v13, %v7570_v56  ;;  %v7683_v25 = vadd.f32 %v7682_v48, %v12265_v57  ;;  %v7574_v11 = vadd.f32 %v7573_v40, %v16638_v17  ;;  %8251 = vmatprep.subr.bf16.mxu0 %v8230_v42  ;;  %v16647_v51 = vmax.f32 %v16645_v45, %v16646_v10 }
 0x621   : > { %v7686_v6 = vpop.f32.mrb[135].mxu1  ;;  %v8201_v5 = vmax.f32 %v8169_v58, %v7681_v60  ;;  %v8171_v62 = vmax.f32 %v16644_v32, %v7572_v39  ;;  %v7685_v22 = vadd.f32 %v7684_v59, %v16638_v17  ;;  %8252 = vmatpush1.bf16.msra.mxu0 %v8229_v36 }
 0x622   : > { %v8202_v35 = vmax.f32 %v8170_v15, %v7683_v25  ;;  %v8172_v43 = vmax.f32 %v16647_v51, %v7574_v11  ;;  %v7687_v56 = vadd.f32 %v7686_v6, %v16638_v17  ;;  %v16648_v15 = vmax.f32 %v14671_v20, %v14674_v31  ;;  %v16651_v31 = vld [vmem:[#allocation17_spill] sm:$0xff] }
 0x623   : > { %v8203_v57 = vmax.f32 %v8171_v62, %v7685_v22  ;;  %v16652_v20 = vmax.f32 %v14691_v49, %v16651_v31 }
 0x624   : > { %v8204_v48 = vmax.f32 %v8172_v43, %v7687_v56  ;;  %v7577_v40 = vpop.f32.mrb[136].mxu0  ;;  %v16653_v56 = vld [vmem:[#allocation69_spill] sm:$0xff] }
 0x625   : > { %v8231_v61 = vpack.c.bf16 %v8203_v57, %v8201_v5  ;;  %v7578_v42 = vadd.f32 %v7577_v40, %v16451_v30  ;;  %v7579_v60 = vpop.f32.mrb[137].mxu0  ;;  %v16649_v5 = vld [vmem:[#allocation8_spill] sm:$0xff]  ;;  %v16654_v57 = vld [vmem:[#allocation49_spill] sm:$0xff] }
 0x626   : > { %v7690_v58 = vpop.f32.mrb[136].mxu1  ;;  %v7580_v39 = vadd.f32 %v7579_v60, %v16451_v30  ;;  %v7581_v59 = vpop.f32.mrb[138].mxu0  ;;  %v8232_v36 = vpack.c.bf16 %v8204_v48, %v8202_v35  ;;  %v16650_v8 = vmax.f32 %v14680_v38, %v16649_v5  ;;  %v16655_v48 = vmax.f32 %v16653_v56, %v16654_v57 }
 0x627   : > { %v7692_v13 = vpop.f32.mrb[137].mxu1  ;;  %v8173_v25 = vmax.f32 %v16648_v15, %v7578_v42  ;;  %v7691_v11 = vadd.f32 %v7690_v58, %v16451_v30  ;;  %v7582_v17 = vadd.f32 %v7581_v59, %v16559_v2  ;;  %v7583_v41 = vpop.f32.mrb[139].mxu0  ;;  %v16657_v5 = vmax.f32 %v14724_v16, %v14727_v27 }
 0x628   : > { %v7694_v6 = vpop.f32.mrb[138].mxu1  ;;  %v8174_v32 = vmax.f32 %v16650_v8, %v7580_v39  ;;  %v7693_v62 = vadd.f32 %v7692_v13, %v16451_v30  ;;  %v7584_v22 = vadd.f32 %v7583_v41, %v16559_v2  ;;  %8253 = vmatprep.subr.bf16.mxu0 %v8232_v36 }
 0x629   : > { %v7696_v45 = vpop.f32.mrb[139].mxu1  ;;  %v8205_v35 = vmax.f32 %v8173_v25, %v7691_v11  ;;  %v8175_v10 = vmax.f32 %v16652_v20, %v7582_v17  ;;  %v7695_v51 = vadd.f32 %v7694_v6, %v16559_v2  ;;  %8254 = vmatpush1.bf16.msra.mxu0 %v8231_v61  ;;  %v16656_v25 = vmax.f32 %v14715_v3, %v14718_v53  ;;  %v16659_v20 = vld [vmem:[#allocation90_spill] sm:$0xff] }
 0x62a   : > { %v8206_v43 = vmax.f32 %v8174_v32, %v7693_v62  ;;  %v8176_v38 = vmax.f32 %v16655_v48, %v7584_v22  ;;  %v7697_v40 = vadd.f32 %v7696_v45, %v16559_v2  ;;  %v16658_v3 = vmax.f32 %v14735_v63, %v14738_v21 }
 0x62b   : > { %v8207_v30 = vmax.f32 %v8175_v10, %v7695_v51  ;;  %v16660_v10 = vld [vmem:[#allocation95_spill] sm:$0xff] }
 0x62c   : > { %v8208_v42 = vmax.f32 %v8176_v38, %v7697_v40  ;;  %v7587_v58 = vpop.f32.mrb[140].mxu0  ;;  %v16661_v51 = vmax.f32 %v16659_v20, %v16660_v10  ;;  %v16669_v10 = vmax.f32 %v14803_v23, %v14806_v44  ;;  %v16672_v23 = vmax.f32 %v14823_v47, %v14826_v18 }
 0x62d   : > { %v8233_v60 = vpack.c.bf16 %v8207_v30, %v8205_v35  ;;  %v7588_v39 = vadd.f32 %v7587_v58, %v16366_v19  ;;  %v7589_v59 = vpop.f32.mrb[141].mxu0  ;;  %v16662_v58 = vmax.f32 %v14759_v52, %v14762_v26  ;;  %v16665_v52 = vmax.f32 %v14779_v46, %v14782_v50 }
 0x62e   : > { %v7700_v13 = vpop.f32.mrb[140].mxu1  ;;  %v7590_v49 = vadd.f32 %v7589_v59, %v16366_v19  ;;  %v7591_v15 = vpop.f32.mrb[142].mxu0  ;;  %v8234_v61 = vpack.c.bf16 %v8208_v42, %v8206_v43 }
 0x62f   : > { %v7702_v36 = vpop.f32.mrb[141].mxu1  ;;  %v8177_v11 = vmax.f32 %v16656_v25, %v7588_v39  ;;  %v7701_v17 = vadd.f32 %v7700_v13, %v16366_v19  ;;  %v7592_v2 = vadd.f32 %v7591_v15, %v16476_v0  ;;  %v7593_v41 = vpop.f32.mrb[143].mxu0 }
 0x630   : > { %v7704_v6 = vpop.f32.mrb[142].mxu1  ;;  %v8178_v8 = vmax.f32 %v16657_v5, %v7590_v49  ;;  %v7703_v32 = vadd.f32 %v7702_v36, %v16366_v19  ;;  %v7594_v62 = vadd.f32 %v7593_v41, %v16476_v0  ;;  %8255 = vmatprep.subr.bf16.mxu0 %v8234_v61  ;;  %v16663_v49 = vld [vmem:[#allocation70_spill] sm:$0xff]  ;;  %v16666_v41 = vld [vmem:[#allocation63_spill] sm:$0xff]  ;;  %v16667_v5 = vld [vmem:[#allocation92_spill] sm:$0xff] }
 0x631   : > { %v7706_v22 = vpop.f32.mrb[143].mxu1  ;;  %v8209_v45 = vmax.f32 %v8177_v11, %v7701_v17  ;;  %v8179_v53 = vmax.f32 %v16658_v3, %v7592_v2  ;;  %v7705_v35 = vadd.f32 %v7704_v6, %v16476_v0  ;;  %8256 = vmatpush1.bf16.msra.mxu0 %v8233_v60  ;;  %v16664_v36 = vmax.f32 %v14768_v1, %v16663_v49 }
 0x632   : > { %v8210_v31 = vmax.f32 %v8178_v8, %v7703_v32  ;;  %v8180_v16 = vmax.f32 %v16661_v51, %v7594_v62  ;;  %v7707_v27 = vadd.f32 %v7706_v22, %v16476_v0  ;;  %v16668_v8 = vmax.f32 %v16666_v41, %v16667_v5 }
 0x633   : > { %v8211_v19 = vmax.f32 %v8179_v53, %v7705_v35 }
 0x634   : > { %v8212_v43 = vmax.f32 %v8180_v16, %v7707_v27  ;;  %v7597_v56 = vpop.f32.mrb[144].mxu0 }
 0x635   : > { %v8235_v57 = vpack.c.bf16 %v8211_v19, %v8209_v45  ;;  %v7598_v48 = vadd.f32 %v7597_v56, %v16277_v54  ;;  %v7599_v40 = vpop.f32.mrb[145].mxu0 }
 0x636   : > { %v7710_v38 = vpop.f32.mrb[144].mxu1  ;;  %v7600_v63 = vadd.f32 %v7599_v40, %v16277_v54  ;;  %v7601_v30 = vpop.f32.mrb[146].mxu0  ;;  %v8236_v42 = vpack.c.bf16 %v8212_v43, %v8210_v31  ;;  %v16670_v43 = vld [vmem:[#allocation64_spill] sm:$0xff] }
 0x637   : > { %v7712_v21 = vpop.f32.mrb[145].mxu1  ;;  %v8181_v60 = vmax.f32 %v16662_v58, %v7598_v48  ;;  %v7711_v39 = vadd.f32 %v7710_v38, %v16277_v54  ;;  %v7602_v0 = vadd.f32 %v7601_v30, %v16392_v29  ;;  %v7603_v59 = vpop.f32.mrb[147].mxu0  ;;  %v16671_v56 = vmax.f32 %v14812_v33, %v16670_v43  ;;  %v16674_v58 = vld [vmem:[#allocation73_spill] sm:$0xff] }
 0x638   : > { %v7714_v13 = vpop.f32.mrb[146].mxu1  ;;  %v8182_v15 = vmax.f32 %v16664_v36, %v7600_v63  ;;  %v7713_v61 = vadd.f32 %v7712_v21, %v16277_v54  ;;  %v7604_v25 = vadd.f32 %v7603_v59, %v16392_v29  ;;  %8257 = vmatprep.subr.bf16.mxu0 %v8236_v42  ;;  %v16673_v42 = vld [vmem:[#allocation159_spill] sm:$0xff] }
 0x639   : > { %v7716_v11 = vpop.f32.mrb[147].mxu1  ;;  %v8213_v17 = vmax.f32 %v8181_v60, %v7711_v39  ;;  %v8183_v26 = vmax.f32 %v16665_v52, %v7602_v0  ;;  %v7715_v2 = vadd.f32 %v7714_v13, %v16392_v29  ;;  %8258 = vmatpush1.bf16.msra.mxu0 %v8235_v57  ;;  %v16675_v60 = vmax.f32 %v16673_v42, %v16674_v58 }
 0x63a   : > { %v8214_v6 = vmax.f32 %v8182_v15, %v7713_v61  ;;  %v8184_v1 = vmax.f32 %v16668_v8, %v7604_v25  ;;  %v7717_v32 = vadd.f32 %v7716_v11, %v16392_v29  ;;  %v16676_v11 = vmax.f32 %v14847_v24, %v14850_v12 }
 0x63b   : > { %v8215_v54 = vmax.f32 %v8183_v26, %v7715_v2  ;;  %v16679_v24 = vmax.f32 %v14867_v34, %v14870_v4 }
 0x63c   : > { %v8216_v62 = vmax.f32 %v8184_v1, %v7717_v32  ;;  %v7607_v22 = vpop.f32.mrb[148].mxu0 }
 0x63d   : > { %v8237_v45 = vpack.c.bf16 %v8215_v54, %v8213_v17  ;;  %v7608_v3 = vadd.f32 %v7607_v22, %v16154_v37  ;;  %v7609_v35 = vpop.f32.mrb[149].mxu0 }
 0x63e   : > { %v7720_v53 = vpop.f32.mrb[148].mxu1  ;;  %v7610_v46 = vadd.f32 %v7609_v35, %v16154_v37  ;;  %v7611_v31 = vpop.f32.mrb[150].mxu0  ;;  %v8238_v20 = vpack.c.bf16 %v8216_v62, %v8214_v6  ;;  %v16677_v6 = vld [vmem:[#allocation74_spill] sm:$0xff] }
 0x63f   : > { %v7722_v50 = vpop.f32.mrb[149].mxu1  ;;  %v8185_v51 = vmax.f32 %v16669_v10, %v7608_v3  ;;  %v7721_v16 = vadd.f32 %v7720_v53, %v16154_v37  ;;  %v7612_v29 = vadd.f32 %v7611_v31, %v16303_v7  ;;  %v7613_v19 = vpop.f32.mrb[151].mxu0  ;;  %v16678_v41 = vmax.f32 %v14856_v28, %v16677_v6  ;;  %v16681_v3 = vld [vmem:[#allocation94_spill] sm:$0xff] }
 0x640   : > { %v7724_v27 = vpop.f32.mrb[150].mxu1  ;;  %v8186_v57 = vmax.f32 %v16671_v56, %v7610_v46  ;;  %v7723_v48 = vadd.f32 %v7722_v50, %v16154_v37  ;;  %v7614_v38 = vadd.f32 %v7613_v19, %v16303_v7  ;;  %8259 = vmatprep.subr.bf16.mxu0 %v8238_v20  ;;  %v16684_v19 = vld [vmem:[#allocation96_spill] sm:$0xff] }
 0x641   : > { %v7726_v40 = vpop.f32.mrb[151].mxu1  ;;  %v8217_v63 = vmax.f32 %v8185_v51, %v7721_v16  ;;  %v8187_v44 = vmax.f32 %v16672_v23, %v7612_v29  ;;  %v7725_v21 = vadd.f32 %v7724_v27, %v16303_v7  ;;  %8260 = vmatpush1.bf16.msra.mxu0 %v8237_v45  ;;  %v16680_v45 = vld [vmem:[#allocation89_spill] sm:$0xff]  ;;  %v16683_v27 = vld [vmem:[#allocation102_spill] sm:$0xff] }
 0x642   : > { %v8218_v30 = vmax.f32 %v8186_v57, %v7723_v48  ;;  %v8188_v33 = vmax.f32 %v16675_v60, %v7614_v38  ;;  %v7727_v39 = vadd.f32 %v7726_v40, %v16303_v7  ;;  %v16682_v53 = vmax.f32 %v16680_v45, %v16681_v3  ;;  %v16688_v23 = vld [vmem:[#allocation93_spill] sm:$0xff]  ;;  %v16700_v45 = vld [vmem:[#allocation98_spill] sm:$0xff] }
 0x643   : > { %v8219_v37 = vmax.f32 %v8187_v44, %v7725_v21  ;;  %v16685_v43 = vmax.f32 %v16683_v27, %v16684_v19  ;;  %v16708_v27 = vld [vmem:[#allocation27_spill] sm:$0xff] }
 0x644   : > { %v8220_v0 = vmax.f32 %v8188_v33, %v7727_v39  ;;  %v7617_v13 = vpop.f32.mrb[152].mxu0  ;;  %v16690_v33 = vld [vmem:[#allocation99_spill] sm:$0xff] }
 0x645   : > { %v8239_v59 = vpack.c.bf16 %v8219_v37, %v8217_v63  ;;  %v7618_v49 = vadd.f32 %v7617_v13, %v16035_v55  ;;  %v7619_v15 = vpop.f32.mrb[153].mxu0  ;;  %v16687_v63 = vld [vmem:[#allocation155_spill] sm:$0xff] }
 0x646   : > { %v7730_v36 = vpop.f32.mrb[152].mxu1  ;;  %v7620_v47 = vadd.f32 %v7619_v15, %v16035_v55  ;;  %v7621_v61 = vpop.f32.mrb[154].mxu0  ;;  %v8240_v25 = vpack.c.bf16 %v8220_v0, %v8218_v30  ;;  %v16689_v44 = vmax.f32 %v16687_v63, %v16688_v23  ;;  %v16691_v39 = vld [vmem:[#allocation39_spill] sm:$0xff]  ;;  %v16713_v23 = vld [vmem:[#allocation57_spill] sm:$0xff] }
 0x647   : > { %v7732_v18 = vpop.f32.mrb[153].mxu1  ;;  %v8189_v17 = vmax.f32 %v16676_v11, %v7618_v49  ;;  %v7731_v52 = vadd.f32 %v7730_v36, %v16035_v55  ;;  %v7622_v7 = vadd.f32 %v7621_v61, %v16186_v9  ;;  %v7623_v2 = vpop.f32.mrb[155].mxu0  ;;  %v16692_v37 = vmax.f32 %v16690_v33, %v16691_v39  ;;  %v16693_v49 = vld [vmem:[#allocation104_spill] sm:$0xff]  ;;  %v16694_v36 = vld [vmem:[#allocation131_spill] sm:$0xff] }
 0x648   : > { %v7734_v26 = vpop.f32.mrb[154].mxu1  ;;  %v8190_v5 = vmax.f32 %v16678_v41, %v7620_v47  ;;  %v7733_v8 = vadd.f32 %v7732_v18, %v16035_v55  ;;  %v7624_v1 = vadd.f32 %v7623_v2, %v16186_v9  ;;  %8261 = vmatprep.subr.bf16.mxu0 %v8240_v25  ;;  %v16695_v15 = vmax.f32 %v16693_v49, %v16694_v36  ;;  %v16717_v39 = vld [vmem:[#allocation103_spill] sm:$0xff]  ;;  %v16720_v36 = vld [vmem:[#allocation53_spill] sm:$0xff] }
 0x649   : > { %v7736_v32 = vpop.f32.mrb[155].mxu1  ;;  %v8221_v54 = vmax.f32 %v8189_v17, %v7731_v52  ;;  %v8191_v12 = vmax.f32 %v16679_v24, %v7622_v7  ;;  %v7735_v62 = vadd.f32 %v7734_v26, %v16186_v9  ;;  %8262 = vmatpush1.bf16.msra.mxu0 %v8239_v59  ;;  %v443_v17 = vld [vmem:[%s15165_s4] sm:$0x3]  ;;  %v8249_v52 = vpop.permute.xlu0 %8248 }
 0x64a   : > { %v8222_v22 = vmax.f32 %v8190_v5, %v7733_v8  ;;  %v8192_v28 = vmax.f32 %v16682_v53, %v7624_v1  ;;  %v7737_v35 = vadd.f32 %v7736_v32, %v16186_v9  ;;  %v16686_v9 = vld [vmem:[#allocation60_spill] sm:$0xff]  ;;  %v16696_v5 = vld [vmem:[#allocation54_spill] sm:$0xff]  ;;  %v16697_v1 = vld [vmem:[#allocation55_spill] sm:$0xff] }
 0x64b   : > { %v8223_v55 = vmax.f32 %v8191_v12, %v7735_v62  ;;  %v16699_v12 = vld [vmem:[#allocation83_spill] sm:$0xff]  ;;  %v16701_v53 = vld [vmem:[#allocation100_spill] sm:$0xff] }
 0x64c   : > { %v8224_v46 = vmax.f32 %v8192_v28, %v7737_v35  ;;  %v7627_v50 = vpop.f32.mrb[156].mxu0  ;;  %v16702_v35 = vld [vmem:[#allocation121_spill] sm:$0xff] }
 0x64d   : > { %v8241_v31 = vpack.c.bf16 %v8223_v55, %v8221_v54  ;;  %v7628_v20 = vadd.f32 %v7627_v50, %v16066_v14  ;;  %v7629_v51 = vpop.f32.mrb[157].mxu0  ;;  %v16698_v54 = vld [vmem:[#allocation81_spill] sm:$0xff] }
 0x64e   : > { %v7740_v10 = vpop.f32.mrb[156].mxu1  ;;  %v7630_v34 = vadd.f32 %v7629_v51, %v16066_v14  ;;  %v7631_v16 = vpop.f32.mrb[158].mxu0  ;;  %v8242_v29 = vpack.c.bf16 %v8224_v46, %v8222_v22  ;;  %v16703_v46 = vld [vmem:[#allocation123_spill] sm:$0xff] }
 0x64f   : > { %v7742_v4 = vpop.f32.mrb[157].mxu1  ;;  %v8193_v56 = vmax.f32 %v16685_v43, %v7628_v20  ;;  %v7741_v57 = vadd.f32 %v7740_v10, %v16066_v14  ;;  %v7632_v48 = vadd.f32 %v7631_v16, %v16686_v9  ;;  %v7633_v40 = vpop.f32.mrb[159].mxu0  ;;  %v16705_v10 = vld [vmem:[#allocation52_spill] sm:$0xff] }
 0x650   : > { %v7744_v38 = vpop.f32.mrb[158].mxu1  ;;  %v8194_v21 = vmax.f32 %v16689_v44, %v7630_v34  ;;  %v7743_v30 = vadd.f32 %v7742_v4, %v16066_v14  ;;  %v7634_v42 = vadd.f32 %v7633_v40, %v16686_v9  ;;  %8263 = vmatprep.subr.bf16.mxu0 %v8242_v29  ;;  %v16706_v34 = vld [vmem:[#allocation79_spill] sm:$0xff]  ;;  %v16707_v16 = vld [vmem:[#allocation80_spill] sm:$0xff] }
 0x651   : > { %v7746_v58 = vpop.f32.mrb[159].mxu1  ;;  %v8225_v60 = vmax.f32 %v8193_v56, %v7741_v57  ;;  %v8195_v0 = vmax.f32 %v16692_v37, %v7632_v48  ;;  %v7745_v13 = vadd.f32 %v7744_v38, %v16686_v9  ;;  %8264 = vmatpush1.bf16.msra.mxu0 %v8241_v31  ;;  %v16704_v31 = vld [vmem:[#allocation48_spill] sm:$0xff]  ;;  %v16710_v57 = vld [vmem:[#allocation34_spill] sm:$0xff]  ;;  %v16711_v48 = vld [vmem:[#allocation141_spill] sm:$0xff] }
 0x652   : > { %v8226_v59 = vmax.f32 %v8194_v21, %v7743_v30  ;;  %v8196_v47 = vmax.f32 %v16695_v15, %v7634_v42  ;;  %v7747_v14 = vadd.f32 %v7746_v58, %v16686_v9  ;;  %v16709_v43 = vld [vmem:[#allocation132_spill] sm:$0xff]  ;;  %v16715_v42 = vld [vmem:[#allocation86_spill] sm:$0xff] }
 0x653   : > { %v8227_v18 = vmax.f32 %v8195_v0, %v7745_v13  ;;  %v16712_v40 = vld [vmem:[#allocation56_spill] sm:$0xff] }
 0x654   : > { %v8228_v61 = vmax.f32 %v8196_v47, %v7747_v14  ;;  %v16714_v21 = vld [vmem:[#allocation84_spill] sm:$0xff] }
 0x655   : > { %v8243_v25 = vpack.c.bf16 %v8227_v18, %v8225_v60  ;;  %v16716_v60 = vld [vmem:[#allocation101_spill] sm:$0xff]  ;;  %v16718_v0 = vld [vmem:[#allocation124_spill] sm:$0xff] }
 0x656   : > { %v8244_v11 = vpack.c.bf16 %v8228_v61, %v8226_v59  ;;  %v16719_v59 = vld [vmem:[#allocation126_spill] sm:$0xff]  ;;  %v16721_v47 = vld [vmem:[#allocation128_spill] sm:$0xff]  ;;  %v16722_v18 = vld [vmem:[#allocation129_spill] sm:$0xff] }
 0x658   : > { %8265 = vmatprep.subr.bf16.mxu0 %v8244_v11 }
 0x659   : > { %8266 = vmatpush1.bf16.msra.mxu0 %v8243_v25  ;;  %v16723_v25 = vld [vmem:[#allocation130_spill] sm:$0xff] }
 0x65c   : > { %8284 = vmatmul.mubr.bf16.vlgmr.msra.gmra.mrb[160].mxu0 %v443_v17  ;;  %v16724_v17 = vld [vmem:[#allocation133_spill] sm:$0xff] }
 0x72f   : > { %v8285_v7 = vpop.f32.mrb[160].mxu0 }
 0x730   : > { %v8286_v26 = vadd.f32 %v8285_v7, %v8249_v52  ;;  %v8287_v2 = vpop.f32.mrb[161].mxu0  ;;  %v16725_v7 = vld [vmem:[#allocation135_spill] sm:$0xff] }
 0x731   : > { %v8288_v6 = vadd.f32 %v8287_v2, %v8249_v52  ;;  %v8289_v41 = vpop.f32.mrb[162].mxu0  ;;  %v16726_v2 = vld [vmem:[#allocation142_spill] sm:$0xff] }
 0x732   : > { %v8292_v8 = vadd.f32 %v8286_v26, %v16696_v5  ;;  %v8294_v32 = vadd.f32 %v8286_v26, %v16697_v1  ;;  %v8296_v24 = vadd.f32 %v8286_v26, %v16698_v54  ;;  %v8298_v62 = vadd.f32 %v8286_v26, %v16699_v12  ;;  %v8290_v22 = vpop.f32.mrb[163].mxu0  ;;  %v16727_v5 = vld [vmem:[#allocation144_spill] sm:$0xff] }
 0x733   : > { %v8300_v3 = vadd.f32 %v8286_v26, %v16700_v45  ;;  %v8302_v28 = vadd.f32 %v8286_v26, %v16701_v53  ;;  %v8304_v55 = vadd.f32 %v8286_v26, %v16702_v35  ;;  %v8306_v50 = vadd.f32 %v8286_v26, %v16703_v46 }
 0x734   : > { %v8308_v20 = vadd.f32 %v8286_v26, %v16704_v31  ;;  %v8310_v51 = vadd.f32 %v8286_v26, %v16705_v10  ;;  %v8312_v4 = vadd.f32 %v8286_v26, %v16706_v34  ;;  %v8314_v29 = vadd.f32 %v8286_v26, %v16707_v16 }
 0x735   : > { %v8316_v19 = vadd.f32 %v8286_v26, %v16708_v27  ;;  %v8318_v56 = vadd.f32 %v8286_v26, %v16709_v43  ;;  %v8320_v9 = vadd.f32 %v8286_v26, %v16710_v57  ;;  %v8322_v38 = vadd.f32 %v8286_v26, %v16711_v48 }
 0x736   : > { %v8293_v63 = vadd.f32 %v8288_v6, %v16712_v40  ;;  %v8295_v44 = vadd.f32 %v8288_v6, %v16713_v23  ;;  %v8297_v30 = vadd.f32 %v8288_v6, %v16714_v21  ;;  %v8299_v58 = vadd.f32 %v8288_v6, %v16715_v42 }
 0x737   : > { %v8301_v33 = vadd.f32 %v8288_v6, %v16716_v60  ;;  %v8303_v37 = vadd.f32 %v8288_v6, %v16717_v39  ;;  %v8305_v13 = vadd.f32 %v8288_v6, %v16718_v0  ;;  %v8307_v49 = vadd.f32 %v8288_v6, %v16719_v59 }
 0x738   : > { %v8309_v15 = vadd.f32 %v8288_v6, %v16720_v36  ;;  %v8311_v14 = vadd.f32 %v8288_v6, %v16721_v47  ;;  %v8313_v61 = vadd.f32 %v8288_v6, %v16722_v18  ;;  %v8315_v11 = vadd.f32 %v8288_v6, %v16723_v25 }
 0x739   : > { %v8317_v52 = vadd.f32 %v8288_v6, %v16724_v17  ;;  %v8319_v26 = vadd.f32 %v8288_v6, %v16725_v7  ;;  %v8321_v41 = vadd.f32 %v8288_v6, %v16726_v2  ;;  %v8323_v1 = vadd.f32 %v8288_v6, %v16727_v5 }
 0x73a   : > { %v8356_v54 = vcombine.low %v8292_v8, %v8293_v63  ;;  %v8357_v12 = vcombine.low %v8294_v32, %v8295_v44  ;;  %v8358_v22 = vcombine.low %v8296_v24, %v8297_v30  ;;  %v8359_v45 = vcombine.low %v8298_v62, %v8299_v58 }
 0x73b   : > { %v8360_v53 = vcombine.low %v8300_v3, %v8301_v33  ;;  %v8361_v35 = vcombine.low %v8302_v28, %v8303_v37  ;;  %v8362_v46 = vcombine.low %v8304_v55, %v8305_v13  ;;  %v8363_v31 = vcombine.low %v8306_v50, %v8307_v49 }
 0x73c   : > { %v8364_v10 = vcombine.low %v8308_v20, %v8309_v15  ;;  %v8365_v34 = vcombine.low %v8310_v51, %v8311_v14  ;;  %v8366_v16 = vcombine.low %v8312_v4, %v8313_v61  ;;  %v8367_v6 = vcombine.low %v8314_v29, %v8315_v11  ;;  %8388 = vst [vmem:[%s15126_s25] sm:$0x77] %v8356_v54 }
 0x73d   : > { %8389 = vst [vmem:[%s15126_s25 + $0x8] sm:$0x77] %v8357_v12  ;;  %8390 = vst [vmem:[%s15126_s25 + $0x10] sm:$0x77] %v8358_v22  ;;  %v8368_v8 = vcombine.low %v8316_v19, %v8317_v52  ;;  %v8369_v32 = vcombine.low %v8318_v56, %v8319_v26  ;;  %v8370_v24 = vcombine.low %v8320_v9, %v8321_v41 }
 0x73e   : > { %8391 = vst [vmem:[%s15126_s25 + $0x18] sm:$0x77] %v8359_v45  ;;  %v8371_v62 = vcombine.low %v8322_v38, %v8323_v1  ;;  %8392 = vst [vmem:[%s15126_s25 + $0x20] sm:$0x77] %v8360_v53 }
 0x73f   : > { %8393 = vst [vmem:[%s15126_s25 + $0x28] sm:$0x77] %v8361_v35  ;;  %8394 = vst [vmem:[%s15126_s25 + $0x30] sm:$0x77] %v8362_v46 }
 0x740   : > { %8395 = vst [vmem:[%s15126_s25 + $0x38] sm:$0x77] %v8363_v31  ;;  %8396 = vst [vmem:[%s15126_s25 + $0x40] sm:$0x77] %v8364_v10 }
 0x741   : > { %8397 = vst [vmem:[%s15126_s25 + $0x48] sm:$0x77] %v8365_v34  ;;  %8398 = vst [vmem:[%s15126_s25 + $0x50] sm:$0x77] %v8366_v16 }
 0x742   : > { %8399 = vst [vmem:[%s15126_s25 + $0x58] sm:$0x77] %v8367_v6  ;;  %8400 = vst [vmem:[%s15126_s25 + $0x60] sm:$0x77] %v8368_v8 }
 0x743   : > { %8401 = vst [vmem:[%s15126_s25 + $0x68] sm:$0x77] %v8369_v32  ;;  %8402 = vst [vmem:[%s15126_s25 + $0x70] sm:$0x77] %v8370_v24 }
 0x744   : > { %8403 = vst [vmem:[%s15126_s25 + $0x78] sm:$0x77] %v8371_v62 }
 0x745 PF: > { %p19_p8 = scmp.ge.s32.totalorder %s9079_s14, 4   ;;  %s16728_s30 = smov %s8993_s10 }
 0x746   : > { %s16729_s10 = smov %s8997_s11  ;;  %s16730_s11 = smov %s9089_s17 }
 0x747   : > { %s16731_s12 = smov %s9079_s14  ;;  %21 = sbr.rel (!%p19_p8) target bundleno = 3 (0x3), region = 96 }
 0x74e   :  { %8425 = vsyncpa [#allocation3], 1 }
 0x74f   :  { %8427 = vsyncpa [#allocation3 + $0x1], 1 }

</bundles_post_ra>
